<compile_context>
chip_gen: v5e
topology: v5e:2x2
jax: 0.10.0
libtpu: 0.0.40
codegen_flags: <defaults>
</compile_context>

<pallas_src>
import jax
import jax.numpy as jnp
from jax.experimental import pallas as pl
from jax.experimental.pallas import tpu as pltpu


def _round_up(x, m):
    return ((x + m - 1) // m) * m


def dipoles_kernel(idx_row_ref, idx_col_ref, l0_ref, pos_ref, mol_ref,
                   w1_ref, b1_ref, w2_ref, b2_ref,
                   charges_ref, dip_ref,
                   q_sc, corr_sc, acc_sc):
    """grid = (2, num_tiles): pass 0 = MLP + segment reductions, pass 1 = correction."""
    p = pl.program_id(0)                      # 0: accumulate pass, 1: correction pass
    i = pl.program_id(1)                      # atom-tile index
    n_tiles = pl.num_programs(1)

    tn, n_out = charges_ref.shape             # (tile_n, n_out)
    M = dip_ref.shape[0]
    G = (acc_sc.shape[1] - 8) // 4            # 8-lane aligned q-group width
    row0 = pl.multiple_of(i * tn, tn)         # this tile's rows inside the q stash

    @pl.when((p == 0) & (i == 0))
    def _init():
        acc_sc[...] = jnp.zeros_like(acc_sc)

    # ---------------- pass 0: MLP + fused one-hot segment reduction ----------------
    @pl.when(p == 0)
    def _accumulate():
        h = jnp.dot(l0_ref[...], w1_ref[...],
                    preferred_element_type=jnp.float32) + b1_ref[...]
        h = h * jax.nn.sigmoid(h)                                       # SiLU
        q = jnp.dot(h, w2_ref[...],
                    preferred_element_type=jnp.float32) + b2_ref[...]   # (tn, n_out)
        q_sc[pl.ds(row0, tn), :] = q          # stash for pass 1 (no HBM round trip)

        pos = pos_ref[...]                                              # (tn, 3)
        gpad = G - n_out
        q_g = q if gpad == 0 else jnp.concatenate(
            [q, jnp.zeros((tn, gpad), jnp.float32)], axis=-1)           # (tn, G)
        pos_g = jnp.concatenate([pos, jnp.zeros((tn, 5), jnp.float32)], axis=-1)
        # 8-lane aligned groups: [pos | q | x*q | y*q | z*q]
        feats = jnp.concatenate(
            [pos_g, q_g, pos[:, 0:1] * q_g, pos[:, 1:2] * q_g, pos[:, 2:3] * q_g],
            axis=-1)                                                    # (tn, 8+4G)

        # one-hot built pre-transposed (M, tn): contraction over the LAST LHS dim
        # (pure VPU iota+compare, no XLU transpose).  Sentinel idx == M matches no row.
        onehot = (jax.lax.broadcasted_iota(jnp.int32, (M, tn), 0)
                  == idx_row_ref[...]).astype(jnp.float32)              # idx_row (1, tn)
        acc_sc[...] += jnp.dot(onehot, feats, preferred_element_type=jnp.float32)

    # -------- pass 0, last tile: per-molecule correction + corrected dipoles -------
    @pl.when((p == 0) & (i == n_tiles - 1))
    def _finalize():
        acc = acc_sc[...]
        pos_sum = acc[:, 0:3]                                           # (M, 3)
        sum_q = acc[:, 8:8 + n_out]                                     # (M, n_out)
        corr = (mol_ref[:, 0:1] - sum_q) * mol_ref[:, 1:2]              # (tq-sum_q)/natoms
        corr_sc[...] = corr
        # corrected per-axis dipoles, emitted in (state k, axis j) lane order so the
        # wrapper reshape to (M*n_out, 3) is layout-preserving (no XLA transpose).
        y = [acc[:, 8 + (j + 1) * G: 8 + (j + 1) * G + n_out]
             + pos_sum[:, j:j + 1] * corr for j in range(3)]
        cols = []
        for k in range(n_out):
            for j in range(3):
                cols.append(y[j][:, k:k + 1])
        dip_ref[...] = jnp.concatenate(cols, axis=-1)                   # (M, 3*n_out)

    # ---------------- pass 1: charges = q + corr[idx_m], tile by tile --------------
    @pl.when(p == 1)
    def _correct():
        onehot = (jax.lax.broadcasted_iota(jnp.int32, (tn, M), 1)
                  == idx_col_ref[...]).astype(jnp.float32)              # idx_col (tn, 1)
        charges_ref[...] = q_sc[pl.ds(row0, tn), :] + jnp.dot(
            onehot, corr_sc[...], preferred_element_type=jnp.float32)


def dipoles_forward(positions, l0, idx_m, total_charge, natoms, params, *, tile_n=1024):
    N, n_in = l0.shape
    M = total_charge.shape[0]
    n_out = params["w2"].shape[1]

    # ---- tiling geometry: 128-row multiples; keep double-buffered l0 comfortably
    #      inside v7x's 64 MiB VMEM; pad ragged N with sentinel atoms (idx_m == M). ---
    vmem_cap = 8 * 1024 * 1024                               # budget for 2x l0 tiles
    max_tile = max(128, (vmem_cap // max(1, 2 * n_in * 4)) // 128 * 128)
    tile_n = max(128, (int(tile_n) // 128) * 128)
    tile_n = min(tile_n, max_tile, _round_up(N, 128))
    N_pad = _round_up(N, tile_n)
    num_tiles = N_pad // tile_n
    last = num_tiles - 1

    idx_m = idx_m.astype(jnp.int32)
    if N_pad != N:
        pad = N_pad - N
        l0 = jnp.pad(l0, ((0, pad), (0, 0)))
        positions = jnp.pad(positions, ((0, pad), (0, 0)))
        idx_m = jnp.concatenate([idx_m, jnp.full((pad,), M, jnp.int32)])

    # ---- lossless zero-pad of the hidden lane dim to an MXU-native width ----------
    H_PAD = 128
    w1, b1, w2, b2 = params["w1"], params["b1"], params["w2"], params["b2"]
    hpad = (-w1.shape[1]) % H_PAD
    if hpad:
        w1 = jnp.pad(w1, ((0, 0), (0, hpad)))
        b1 = jnp.pad(b1, ((0, 0), (0, hpad)))
        w2 = jnp.pad(w2, ((0, hpad), (0, 0)))
    H = w1.shape[1]

    idx_row = idx_m.reshape(1, N_pad)                # lane-major   (accumulation pass)
    idx_col = idx_m.reshape(N_pad, 1)                # sublane-major (correction pass)
    mol = jnp.concatenate(
        [total_charge.reshape(M, 1).astype(jnp.float32),
         (1.0 / natoms.astype(jnp.float32)).reshape(M, 1)], axis=1)     # [tq | 1/natoms]

    G = _round_up(max(n_out, 1), 8)                  # 8-lane aligned q-group width
    F = 8 + 4 * G                                    # [pos | q | x*q | y*q | z*q]

    flops = (2 * N_pad * n_in * H + 2 * N_pad * H * n_out
             + 2 * N_pad * M * F + 2 * N_pad * M * n_out)
    bytes_accessed = 4 * (N_pad * (n_in + 3 + 2 + n_out) + n_in * H + 2 * H
                          + H * n_out + n_out + 2 * M + 3 * M * n_out)

    charges_pad, dip = pl.pallas_call(
        dipoles_kernel,
        out_shape=(jax.ShapeDtypeStruct((N_pad, n_out), jnp.float32),
                   jax.ShapeDtypeStruct((M, 3 * n_out), jnp.float32)),
        grid_spec=pltpu.PrefetchScalarGridSpec(
            num_scalar_prefetch=0,
            grid=(2, num_tiles),
            in_specs=[
                # idx_m (row form): tiled in pass 0, pinned to the last tile in pass 1
                pl.BlockSpec((1, tile_n), lambda p, i: (0, i * (1 - p) + last * p)),
                # idx_m (column form): pinned to tile 0 in pass 0, tiled in pass 1
                pl.BlockSpec((tile_n, 1), lambda p, i: (i * p, 0)),
                # l0 / positions: consumed in pass 0 only
                pl.BlockSpec((tile_n, n_in), lambda p, i: (i * (1 - p) + last * p, 0)),
                pl.BlockSpec((tile_n, 3), lambda p, i: (i * (1 - p) + last * p, 0)),
                # per-molecule [total_charge | 1/natoms] + MLP weights (resident)
                pl.BlockSpec((M, 2), lambda p, i: (0, 0)),
                pl.BlockSpec((n_in, H), lambda p, i: (0, 0)),
                pl.BlockSpec((1, H), lambda p, i: (0, 0)),
                pl.BlockSpec((H, n_out), lambda p, i: (0, 0)),
                pl.BlockSpec((1, n_out), lambda p, i: (0, 0)),
            ],
            out_specs=(
                # charges: block index frozen at 0 during pass 0 (no spurious writeback),
                # tiled and written during pass 1.
                pl.BlockSpec((tile_n, n_out), lambda p, i: (i * p, 0)),
                # dipole slab: resident, written once in the pass-0 finalize.
                pl.BlockSpec((M, 3 * n_out), lambda p, i: (0, 0)),
            ),
            scratch_shapes=[
                pltpu.VMEM((N_pad, n_out), jnp.float32),   # q stash (no HBM round trip)
                pltpu.VMEM((M, n_out), jnp.float32),       # per-molecule correction
                pltpu.VMEM((M, F), jnp.float32),           # fused segment accumulator
            ],
        ),
        compiler_params=pltpu.CompilerParams(
            dimension_semantics=("arbitrary", "arbitrary"),
            vmem_limit_bytes=32 * 1024 * 1024),
        cost_estimate=pl.CostEstimate(flops=flops, transcendentals=N_pad * H,
                                      bytes_accessed=bytes_accessed),
    )(idx_row, idx_col, l0, positions, mol, w1, b1, w2, b2)

    charges = charges_pad if N_pad == N else charges_pad[:N]
    dipoles = dip.reshape(M * n_out, 3)      # layout-preserving: slab is (k, j) ordered
    return dipoles, charges


def ref_forward(positions, l0, idx_m, total_charge, natoms, params):
    """Pure-JAX reference of the PyTorch forward (use_vector_repr=False)."""
    h = jax.nn.silu(l0 @ params["w1"] + params["b1"][0])
    q = h @ params["w2"] + params["b2"][0]
    M = total_charge.shape[0]
    sum_q = jax.ops.segment_sum(q, idx_m, num_segments=M)
    corr = (total_charge[:, None] - sum_q) / natoms[:, None]
    charges = q + corr[idx_m]
    y = jnp.einsum("ij,ik->ijk", positions, charges)
    y = jax.ops.segment_sum(y, idx_m, num_segments=M)
    y = jnp.transpose(y, (0, 2, 1)).reshape(-1, 3)
    return y, charges


def init_params(key, n_in, n_hidden, n_out):
    k1, k2 = jax.random.split(key)
    return {
        "w1": (jax.random.normal(k1, (n_in, n_hidden), jnp.float32)
               / jnp.sqrt(jnp.float32(n_in))),
        "b1": jnp.zeros((1, n_hidden), jnp.float32) + 0.01,
        "w2": (jax.random.normal(k2, (n_hidden, n_out), jnp.float32)
               / jnp.sqrt(jnp.float32(n_hidden))),
        "b2": jnp.zeros((1, n_out), jnp.float32) + 0.02,
    }


if __name__ == "__main__":
    fwd = jax.jit(dipoles_forward, static_argnames=("tile_n",))

    # ---- case 1: 8 molecules x 64 atoms = 512 atoms -> one 512-row tile, grid (2,1).
    # Pyramidal 2-layer MLP: n_in=32 -> n_hidden=16 -> n_out=2 dipole states.
    N_ATOMS, N_MOL = 512, 8
    N_IN, N_HIDDEN, N_OUT = 32, 16, 2

    key = jax.random.PRNGKey(0)
    kpos, kl0, kpar, kpos2, kl02 = jax.random.split(key, 5)

    positions = jax.random.normal(kpos, (N_ATOMS, 3), jnp.float32)
    l0 = jax.random.normal(kl0, (N_ATOMS, N_IN), jnp.float32)
    idx_m = jnp.repeat(jnp.arange(N_MOL, dtype=jnp.int32), N_ATOMS // N_MOL)
    natoms = jnp.full((N_MOL,), N_ATOMS // N_MOL, jnp.float32)
    total_charge = jnp.array([0.0, 1.0, -1.0, 0.0, 2.0, 0.0, -1.0, 1.0], jnp.float32)
    params = init_params(kpar, N_IN, N_HIDDEN, N_OUT)

    dipoles, charges = fwd(positions, l0, idx_m, total_charge, natoms, params)
    jax.block_until_ready((dipoles, charges))
    dipoles_ref, charges_ref = ref_forward(positions, l0, idx_m,
                                           total_charge, natoms, params)
    assert dipoles.shape == (N_MOL * N_OUT, 3)
    assert charges.shape == (N_ATOMS, N_OUT)
    assert jnp.allclose(charges, charges_ref, rtol=1e-4, atol=1e-4)
    assert jnp.allclose(dipoles, dipoles_ref, rtol=1e-4, atol=1e-4)

    # ---- case 2: ragged N (300 atoms, uneven molecules) + multi-tile (tile_n=128,
    # N padded to 384 with sentinel idx_m == M) exercises the padding path.
    counts = jnp.array([70, 50, 90, 60, 30], jnp.int32)
    N2, M2 = 300, 5
    positions2 = jax.random.normal(kpos2, (N2, 3), jnp.float32)
    l02 = jax.random.normal(kl02, (N2, N_IN), jnp.float32)
    idx_m2 = jnp.repeat(jnp.arange(M2, dtype=jnp.int32), counts)
    natoms2 = counts.astype(jnp.float32)
    total_charge2 = jnp.array([0.0, -1.0, 1.0, 0.0, 2.0], jnp.float32)

    dipoles2, charges2 = fwd(positions2, l02, idx_m2, total_charge2, natoms2,
                             params, tile_n=128)
    jax.block_until_ready((dipoles2, charges2))
    dipoles2_ref, charges2_ref = ref_forward(positions2, l02, idx_m2,
                                             total_charge2, natoms2, params)
    assert dipoles2.shape == (M2 * N_OUT, 3)
    assert charges2.shape == (N2, N_OUT)
    assert jnp.allclose(charges2, charges2_ref, rtol=1e-4, atol=1e-4)
    assert jnp.allclose(dipoles2, dipoles2_ref, rtol=1e-4, atol=1e-4)

    print("KERNEL_OK")
</pallas_src>

<mosaic_0001>
module attributes {stable_mosaic.version = 11 : i64} {
  func.func @dipoles_kernel(%arg0: i32, %arg1: i32, %arg2: memref<1x512xi32, #tpu.memory_space<vmem>>, %arg3: memref<512x1xi32, #tpu.memory_space<vmem>>, %arg4: memref<512x32xf32, #tpu.memory_space<vmem>>, %arg5: memref<512x3xf32, #tpu.memory_space<vmem>>, %arg6: memref<8x2xf32, #tpu.memory_space<vmem>>, %arg7: memref<32x128xf32, #tpu.memory_space<vmem>>, %arg8: memref<1x128xf32, #tpu.memory_space<vmem>>, %arg9: memref<128x2xf32, #tpu.memory_space<vmem>>, %arg10: memref<1x2xf32, #tpu.memory_space<vmem>>, %arg11: memref<512x2xf32, #tpu.memory_space<vmem>>, %arg12: memref<8x6xf32, #tpu.memory_space<vmem>>, %arg13: memref<512x2xf32, #tpu.memory_space<vmem>>, %arg14: memref<8x2xf32, #tpu.memory_space<vmem>>, %arg15: memref<8x40xf32, #tpu.memory_space<vmem>>) attributes {dimension_semantics = [#tpu.dimension_semantics<arbitrary>, #tpu.dimension_semantics<arbitrary>], iteration_bounds = array<i64: 2, 1>, scalar_prefetch = 0 : i64, scratch_operands = 3 : i64, tpu.core_type = #tpu.core_type<tc>, window_params = [{transform_indices = @transform_0, window_bounds = array<i64: 1, 512>}, {transform_indices = @transform_1, window_bounds = array<i64: 512, 1>}, {transform_indices = @transform_2, window_bounds = array<i64: 512, 32>}, {transform_indices = @transform_3, window_bounds = array<i64: 512, 3>}, {pipeline_mode = #tpu.pipeline_mode<synchronous>, transform_indices = @transform_4, window_bounds = array<i64: 8, 2>}, {pipeline_mode = #tpu.pipeline_mode<synchronous>, transform_indices = @transform_5, window_bounds = array<i64: 32, 128>}, {pipeline_mode = #tpu.pipeline_mode<synchronous>, transform_indices = @transform_6, window_bounds = array<i64: 1, 128>}, {pipeline_mode = #tpu.pipeline_mode<synchronous>, transform_indices = @transform_7, window_bounds = array<i64: 128, 2>}, {pipeline_mode = #tpu.pipeline_mode<synchronous>, transform_indices = @transform_8, window_bounds = array<i64: 1, 2>}, {transform_indices = @transform_9, window_bounds = array<i64: 512, 2>}, {pipeline_mode = #tpu.pipeline_mode<synchronous>, transform_indices = @transform_10, window_bounds = array<i64: 8, 6>}]} {
    %c512_i32 = arith.constant 512 : i32
    %0 = arith.muli %arg1, %c512_i32 : i32
    %1 = tpu.assume_multiple %0, 512 : i32
    %c0_i32 = arith.constant 0 : i32
    %2 = arith.cmpi eq, %arg0, %c0_i32 : i32
    %c0_i32_0 = arith.constant 0 : i32
    %3 = arith.cmpi eq, %arg1, %c0_i32_0 : i32
    %4 = arith.andi %2, %3 : i1
    %5 = arith.extui %4 : i1 to i32
    %c0_i32_1 = arith.constant 0 : i32
    %6 = arith.cmpi ne, %5, %c0_i32_1 : i32
    scf.if %6 {
      %cst = arith.constant 0.000000e+00 : f32
      %18 = vector.broadcast %cst : f32 to vector<8x40xf32>
      %c0 = arith.constant 0 : index
      %c0_8 = arith.constant 0 : index
      %19 = vector.load %arg15[%c0, %c0_8] : memref<8x40xf32, #tpu.memory_space<vmem>>, vector<8x40xf32>
      tpu.vector_store %arg15[%c0, %c0_8], %18 {strides = array<i32>} : memref<8x40xf32, #tpu.memory_space<vmem>>, vector<8x40xf32>,
    } else {
    }
    %c0_i32_2 = arith.constant 0 : i32
    %7 = arith.cmpi eq, %arg0, %c0_i32_2 : i32
    %8 = arith.extui %7 : i1 to i32
    %c0_i32_3 = arith.constant 0 : i32
    %9 = arith.cmpi ne, %8, %c0_i32_3 : i32
    scf.if %9 {
      %c0 = arith.constant 0 : index
      %c0_8 = arith.constant 0 : index
      %18 = vector.load %arg4[%c0, %c0_8] : memref<512x32xf32, #tpu.memory_space<vmem>>, vector<512x32xf32>
      %c0_9 = arith.constant 0 : index
      %c0_10 = arith.constant 0 : index
      %19 = vector.load %arg7[%c0_9, %c0_10] : memref<32x128xf32, #tpu.memory_space<vmem>>, vector<32x128xf32>
      %cst = arith.constant dense<0.000000e+00> : vector<512x128xf32>
      %20 = tpu.matmul %18, %19, %cst {dimension_numbers = #tpu.dot_dimension_numbers<[1], [0], [0], [1], [0, 0, 1, 1], [], []>} : vector<512x32xf32>, vector<32x128xf32>, vector<512x128xf32> -> vector<512x128xf32>
      %c0_11 = arith.constant 0 : index
      %c0_12 = arith.constant 0 : index
      %21 = vector.load %arg8[%c0_11, %c0_12] : memref<1x128xf32, #tpu.memory_space<vmem>>, vector<1x128xf32>
      %22 = vector.broadcast %21 : vector<1x128xf32> to vector<512x128xf32>
      %23 = arith.addf %20, %22 : vector<512x128xf32>
      %24 = arith.negf %23 : vector<512x128xf32>
      %25 = math.exp %24 : vector<512x128xf32>
      %cst_13 = arith.constant 1.000000e+00 : f32
      %26 = vector.broadcast %cst_13 : f32 to vector<512x128xf32>
      %27 = arith.addf %26, %25 : vector<512x128xf32>
      %28 = arith.divf %26, %27 : vector<512x128xf32>
      %29 = arith.mulf %23, %28 : vector<512x128xf32>
      %c0_14 = arith.constant 0 : index
      %c0_15 = arith.constant 0 : index
      %30 = vector.load %arg9[%c0_14, %c0_15] : memref<128x2xf32, #tpu.memory_space<vmem>>, vector<128x2xf32>
      %cst_16 = arith.constant dense<0.000000e+00> : vector<512x2xf32>
      %31 = tpu.matmul %29, %30, %cst_16 {dimension_numbers = #tpu.dot_dimension_numbers<[1], [0], [0], [1], [0, 0, 1, 1], [], []>} : vector<512x128xf32>, vector<128x2xf32>, vector<512x2xf32> -> vector<512x2xf32>
      %c0_17 = arith.constant 0 : index
      %c0_18 = arith.constant 0 : index
      %32 = vector.load %arg10[%c0_17, %c0_18] : memref<1x2xf32, #tpu.memory_space<vmem>>, vector<1x2xf32>
      %33 = vector.broadcast %32 : vector<1x2xf32> to vector<512x2xf32>
      %34 = arith.addf %31, %33 : vector<512x2xf32>
      %35 = arith.index_cast %1 : i32 to index
      %c0_19 = arith.constant 0 : index
      %36 = vector.load %arg13[%35, %c0_19] : memref<512x2xf32, #tpu.memory_space<vmem>>, vector<512x2xf32>
      tpu.vector_store %arg13[%35, %c0_19], %34 {strides = array<i32>} : memref<512x2xf32, #tpu.memory_space<vmem>>, vector<512x2xf32>,
      %c0_20 = arith.constant 0 : index
      %c0_21 = arith.constant 0 : index
      %37 = vector.load %arg5[%c0_20, %c0_21] : memref<512x3xf32, #tpu.memory_space<vmem>>, vector<512x3xf32>
      %cst_22 = arith.constant 0.000000e+00 : f32
      %38 = vector.broadcast %cst_22 : f32 to vector<512x6xf32>
      %39 = tpu.concatenate %34, %38 in 1 : vector<512x2xf32>, vector<512x6xf32> -> vector<512x8xf32>
      %cst_23 = arith.constant 0.000000e+00 : f32
      %40 = vector.broadcast %cst_23 : f32 to vector<512x5xf32>
      %41 = tpu.concatenate %37, %40 in 1 : vector<512x3xf32>, vector<512x5xf32> -> vector<512x8xf32>
      %42 = vector.extract_strided_slice %37 {offsets = [0, 0], sizes = [512, 1], strides = [1, 1]} : vector<512x3xf32> to vector<512x1xf32>
      %43 = vector.broadcast %42 : vector<512x1xf32> to vector<512x8xf32>
      %44 = arith.mulf %43, %39 : vector<512x8xf32>
      %45 = vector.extract_strided_slice %37 {offsets = [0, 1], sizes = [512, 1], strides = [1, 1]} : vector<512x3xf32> to vector<512x1xf32>
      %46 = vector.broadcast %45 : vector<512x1xf32> to vector<512x8xf32>
      %47 = arith.mulf %46, %39 : vector<512x8xf32>
      %48 = vector.extract_strided_slice %37 {offsets = [0, 2], sizes = [512, 1], strides = [1, 1]} : vector<512x3xf32> to vector<512x1xf32>
      %49 = vector.broadcast %48 : vector<512x1xf32> to vector<512x8xf32>
      %50 = arith.mulf %49, %39 : vector<512x8xf32>
      %51 = tpu.concatenate %41, %39, %44, %47, %50 in 1 : vector<512x8xf32>, vector<512x8xf32>, vector<512x8xf32>, vector<512x8xf32>, vector<512x8xf32> -> vector<512x40xf32>
      %52 = tpu.iota {dimensions = array<i32: 0>} : vector<8x512xi32>
      %c0_24 = arith.constant 0 : index
      %c0_25 = arith.constant 0 : index
      %53 = vector.load %arg2[%c0_24, %c0_25] : memref<1x512xi32, #tpu.memory_space<vmem>>, vector<1x512xi32>
      %54 = vector.broadcast %53 : vector<1x512xi32> to vector<8x512xi32>
      %55 = arith.cmpi eq, %52, %54 : vector<8x512xi32>
      %56 = arith.extui %55 : vector<8x512xi1> to vector<8x512xi32>
      %57 = arith.sitofp %56 : vector<8x512xi32> to vector<8x512xf32>
      %c0_26 = arith.constant 0 : index
      %c0_27 = arith.constant 0 : index
      %58 = vector.load %arg15[%c0_26, %c0_27] : memref<8x40xf32, #tpu.memory_space<vmem>>, vector<8x40xf32>
      %cst_28 = arith.constant dense<0.000000e+00> : vector<8x40xf32>
      %59 = tpu.matmul %57, %51, %cst_28 {dimension_numbers = #tpu.dot_dimension_numbers<[1], [0], [0], [1], [0, 0, 1, 1], [], []>} : vector<8x512xf32>, vector<512x40xf32>, vector<8x40xf32> -> vector<8x40xf32>
      %60 = arith.addf %58, %59 : vector<8x40xf32>
      %c0_29 = arith.constant 0 : index
      %c0_30 = arith.constant 0 : index
      %61 = vector.load %arg15[%c0_29, %c0_30] : memref<8x40xf32, #tpu.memory_space<vmem>>, vector<8x40xf32>
      tpu.vector_store %arg15[%c0_29, %c0_30], %60 {strides = array<i32>} : memref<8x40xf32, #tpu.memory_space<vmem>>, vector<8x40xf32>,
    } else {
    }
    %c0_i32_4 = arith.constant 0 : i32
    %10 = arith.cmpi eq, %arg0, %c0_i32_4 : i32
    %c0_i32_5 = arith.constant 0 : i32
    %11 = arith.cmpi eq, %arg1, %c0_i32_5 : i32
    %12 = arith.andi %10, %11 : i1
    %13 = arith.extui %12 : i1 to i32
    %c0_i32_6 = arith.constant 0 : i32
    %14 = arith.cmpi ne, %13, %c0_i32_6 : i32
    scf.if %14 {
      %c0 = arith.constant 0 : index
      %c0_8 = arith.constant 0 : index
      %18 = vector.load %arg15[%c0, %c0_8] : memref<8x40xf32, #tpu.memory_space<vmem>>, vector<8x40xf32>
      %19 = vector.extract_strided_slice %18 {offsets = [0, 0], sizes = [8, 3], strides = [1, 1]} : vector<8x40xf32> to vector<8x3xf32>
      %20 = vector.extract_strided_slice %18 {offsets = [0, 8], sizes = [8, 2], strides = [1, 1]} : vector<8x40xf32> to vector<8x2xf32>
      %c0_9 = arith.constant 0 : index
      %c0_10 = arith.constant 0 : index
      %21 = vector.load %arg6[%c0_9, %c0_10] : memref<8x2xf32, #tpu.memory_space<vmem>>, vector<8x1xf32>
      %22 = vector.broadcast %21 : vector<8x1xf32> to vector<8x2xf32>
      %23 = arith.subf %22, %20 : vector<8x2xf32>
      %c0_11 = arith.constant 0 : index
      %c1 = arith.constant 1 : index
      %24 = vector.load %arg6[%c0_11, %c1] : memref<8x2xf32, #tpu.memory_space<vmem>>, vector<8x1xf32>
      %25 = vector.broadcast %24 : vector<8x1xf32> to vector<8x2xf32>
      %26 = arith.mulf %23, %25 : vector<8x2xf32>
      %c0_12 = arith.constant 0 : index
      %c0_13 = arith.constant 0 : index
      %27 = vector.load %arg14[%c0_12, %c0_13] : memref<8x2xf32, #tpu.memory_space<vmem>>, vector<8x2xf32>
      tpu.vector_store %arg14[%c0_12, %c0_13], %26 {strides = array<i32>} : memref<8x2xf32, #tpu.memory_space<vmem>>, vector<8x2xf32>,
      %28 = vector.extract_strided_slice %18 {offsets = [0, 16], sizes = [8, 2], strides = [1, 1]} : vector<8x40xf32> to vector<8x2xf32>
      %29 = vector.extract_strided_slice %19 {offsets = [0, 0], sizes = [8, 1], strides = [1, 1]} : vector<8x3xf32> to vector<8x1xf32>
      %30 = vector.broadcast %29 : vector<8x1xf32> to vector<8x2xf32>
      %31 = arith.mulf %30, %26 : vector<8x2xf32>
      %32 = arith.addf %28, %31 : vector<8x2xf32>
      %33 = vector.extract_strided_slice %18 {offsets = [0, 24], sizes = [8, 2], strides = [1, 1]} : vector<8x40xf32> to vector<8x2xf32>
      %34 = vector.extract_strided_slice %19 {offsets = [0, 1], sizes = [8, 1], strides = [1, 1]} : vector<8x3xf32> to vector<8x1xf32>
      %35 = vector.broadcast %34 : vector<8x1xf32> to vector<8x2xf32>
      %36 = arith.mulf %35, %26 : vector<8x2xf32>
      %37 = arith.addf %33, %36 : vector<8x2xf32>
      %38 = vector.extract_strided_slice %18 {offsets = [0, 32], sizes = [8, 2], strides = [1, 1]} : vector<8x40xf32> to vector<8x2xf32>
      %39 = vector.extract_strided_slice %19 {offsets = [0, 2], sizes = [8, 1], strides = [1, 1]} : vector<8x3xf32> to vector<8x1xf32>
      %40 = vector.broadcast %39 : vector<8x1xf32> to vector<8x2xf32>
      %41 = arith.mulf %40, %26 : vector<8x2xf32>
      %42 = arith.addf %38, %41 : vector<8x2xf32>
      %43 = vector.extract_strided_slice %32 {offsets = [0, 0], sizes = [8, 1], strides = [1, 1]} : vector<8x2xf32> to vector<8x1xf32>
      %44 = vector.extract_strided_slice %37 {offsets = [0, 0], sizes = [8, 1], strides = [1, 1]} : vector<8x2xf32> to vector<8x1xf32>
      %45 = vector.extract_strided_slice %42 {offsets = [0, 0], sizes = [8, 1], strides = [1, 1]} : vector<8x2xf32> to vector<8x1xf32>
      %46 = vector.extract_strided_slice %32 {offsets = [0, 1], sizes = [8, 1], strides = [1, 1]} : vector<8x2xf32> to vector<8x1xf32>
      %47 = vector.extract_strided_slice %37 {offsets = [0, 1], sizes = [8, 1], strides = [1, 1]} : vector<8x2xf32> to vector<8x1xf32>
      %48 = vector.extract_strided_slice %42 {offsets = [0, 1], sizes = [8, 1], strides = [1, 1]} : vector<8x2xf32> to vector<8x1xf32>
      %49 = tpu.concatenate %43, %44, %45, %46, %47, %48 in 1 : vector<8x1xf32>, vector<8x1xf32>, vector<8x1xf32>, vector<8x1xf32>, vector<8x1xf32>, vector<8x1xf32> -> vector<8x6xf32>
      %c0_14 = arith.constant 0 : index
      %c0_15 = arith.constant 0 : index
      %50 = vector.load %arg12[%c0_14, %c0_15] : memref<8x6xf32, #tpu.memory_space<vmem>>, vector<8x6xf32>
      tpu.vector_store %arg12[%c0_14, %c0_15], %49 {strides = array<i32>} : memref<8x6xf32, #tpu.memory_space<vmem>>, vector<8x6xf32>,
    } else {
    }
    %c1_i32 = arith.constant 1 : i32
    %15 = arith.cmpi eq, %arg0, %c1_i32 : i32
    %16 = arith.extui %15 : i1 to i32
    %c0_i32_7 = arith.constant 0 : i32
    %17 = arith.cmpi ne, %16, %c0_i32_7 : i32
    scf.if %17 {
      %18 = tpu.iota {dimensions = array<i32: 1>} : vector<512x8xi32>
      %c0 = arith.constant 0 : index
      %c0_8 = arith.constant 0 : index
      %19 = vector.load %arg3[%c0, %c0_8] : memref<512x1xi32, #tpu.memory_space<vmem>>, vector<512x1xi32>
      %20 = vector.broadcast %19 : vector<512x1xi32> to vector<512x8xi32>
      %21 = arith.cmpi eq, %18, %20 : vector<512x8xi32>
      %22 = arith.extui %21 : vector<512x8xi1> to vector<512x8xi32>
      %23 = arith.sitofp %22 : vector<512x8xi32> to vector<512x8xf32>
      %24 = arith.index_cast %1 : i32 to index
      %c0_9 = arith.constant 0 : index
      %25 = vector.load %arg13[%24, %c0_9] : memref<512x2xf32, #tpu.memory_space<vmem>>, vector<512x2xf32>
      %c0_10 = arith.constant 0 : index
      %c0_11 = arith.constant 0 : index
      %26 = vector.load %arg14[%c0_10, %c0_11] : memref<8x2xf32, #tpu.memory_space<vmem>>, vector<8x2xf32>
      %cst = arith.constant dense<0.000000e+00> : vector<512x2xf32>
      %27 = tpu.matmul %23, %26, %cst {dimension_numbers = #tpu.dot_dimension_numbers<[1], [0], [0], [1], [0, 0, 1, 1], [], []>} : vector<512x8xf32>, vector<8x2xf32>, vector<512x2xf32> -> vector<512x2xf32>
      %28 = arith.addf %25, %27 : vector<512x2xf32>
      %c0_12 = arith.constant 0 : index
      %c0_13 = arith.constant 0 : index
      %29 = vector.load %arg11[%c0_12, %c0_13] : memref<512x2xf32, #tpu.memory_space<vmem>>, vector<512x2xf32>
      tpu.vector_store %arg11[%c0_12, %c0_13], %28 {strides = array<i32>} : memref<512x2xf32, #tpu.memory_space<vmem>>, vector<512x2xf32>,
    } else {
    }
    return
  }
  func.func @transform_0(%arg0: i32, %arg1: i32) -> (i32, i32) {
    %c1_i32 = arith.constant 1 : i32
    %0 = arith.subi %c1_i32, %arg0 : i32
    %1 = arith.muli %arg1, %0 : i32
    %c0_i32 = arith.constant 0 : i32
    %2 = arith.muli %c0_i32, %arg0 : i32
    %3 = arith.addi %1, %2 : i32
    %c0_i32_0 = arith.constant 0 : i32
    %c0_i32_1 = arith.constant 0 : i32
    return %c0_i32_0, %3 : i32, i32
  }
  func.func @transform_1(%arg0: i32, %arg1: i32) -> (i32, i32) {
    %0 = arith.muli %arg1, %arg0 : i32
    %c0_i32 = arith.constant 0 : i32
    %c0_i32_0 = arith.constant 0 : i32
    return %0, %c0_i32 : i32, i32
  }
  func.func @transform_2(%arg0: i32, %arg1: i32) -> (i32, i32) {
    %c1_i32 = arith.constant 1 : i32
    %0 = arith.subi %c1_i32, %arg0 : i32
    %1 = arith.muli %arg1, %0 : i32
    %c0_i32 = arith.constant 0 : i32
    %2 = arith.muli %c0_i32, %arg0 : i32
    %3 = arith.addi %1, %2 : i32
    %c0_i32_0 = arith.constant 0 : i32
    %c0_i32_1 = arith.constant 0 : i32
    return %3, %c0_i32_0 : i32, i32
  }
  func.func @transform_3(%arg0: i32, %arg1: i32) -> (i32, i32) {
    %c1_i32 = arith.constant 1 : i32
    %0 = arith.subi %c1_i32, %arg0 : i32
    %1 = arith.muli %arg1, %0 : i32
    %c0_i32 = arith.constant 0 : i32
    %2 = arith.muli %c0_i32, %arg0 : i32
    %3 = arith.addi %1, %2 : i32
    %c0_i32_0 = arith.constant 0 : i32
    %c0_i32_1 = arith.constant 0 : i32
    return %3, %c0_i32_0 : i32, i32
  }
  func.func @transform_4(%arg0: i32, %arg1: i32) -> (i32, i32) {
    %c0_i32 = arith.constant 0 : i32
    %c0_i32_0 = arith.constant 0 : i32
    %c0_i32_1 = arith.constant 0 : i32
    return %c0_i32, %c0_i32_0 : i32, i32
  }
  func.func @transform_5(%arg0: i32, %arg1: i32) -> (i32, i32) {
    %c0_i32 = arith.constant 0 : i32
    %c0_i32_0 = arith.constant 0 : i32
    %c0_i32_1 = arith.constant 0 : i32
    return %c0_i32, %c0_i32_0 : i32, i32
  }
  func.func @transform_6(%arg0: i32, %arg1: i32) -> (i32, i32) {
    %c0_i32 = arith.constant 0 : i32
    %c0_i32_0 = arith.constant 0 : i32
    %c0_i32_1 = arith.constant 0 : i32
    return %c0_i32, %c0_i32_0 : i32, i32
  }
  func.func @transform_7(%arg0: i32, %arg1: i32) -> (i32, i32) {
    %c0_i32 = arith.constant 0 : i32
    %c0_i32_0 = arith.constant 0 : i32
    %c0_i32_1 = arith.constant 0 : i32
    return %c0_i32, %c0_i32_0 : i32, i32
  }
  func.func @transform_8(%arg0: i32, %arg1: i32) -> (i32, i32) {
    %c0_i32 = arith.constant 0 : i32
    %c0_i32_0 = arith.constant 0 : i32
    %c0_i32_1 = arith.constant 0 : i32
    return %c0_i32, %c0_i32_0 : i32, i32
  }
  func.func @transform_9(%arg0: i32, %arg1: i32) -> (i32, i32) {
    %0 = arith.muli %arg1, %arg0 : i32
    %c0_i32 = arith.constant 0 : i32
    %c0_i32_0 = arith.constant 0 : i32
    return %0, %c0_i32 : i32, i32
  }
  func.func @transform_10(%arg0: i32, %arg1: i32) -> (i32, i32) {
    %c0_i32 = arith.constant 0 : i32
    %c0_i32_0 = arith.constant 0 : i32
    %c0_i32_1 = arith.constant 0 : i32
    return %c0_i32, %c0_i32_0 : i32, i32
  }
}

</mosaic_0001>

<bundles_post_ra>
// kernel: dipoles_forward.1
= control target key start
LH: loop header
LB: loop body
LE: loop exit
PB: predicated region body
PF: predicated region fallthrough
CT: control target
= control target key end

     0   :  { %s7944_s13 = smov 0   ;;  %s7946_s14 = smov 0   ;;  %s13983_s0 = inlined_call_operand.vmem [shape: s32[1,512], index: 0, kind: input, shape index: {}]   ;;  %s13984_s1 = inlined_call_operand.vmem [shape: s32[512,1], index: 1, kind: input, shape index: {}]   ;;  %s13985_s2 = inlined_call_operand.vmem [shape: f32[512,32], index: 2, kind: input, shape index: {}]   ;;  %s13986_s3 = inlined_call_operand.vmem [shape: f32[512,3], index: 3, kind: input, shape index: {}]   ;;  %s13987_s4 = inlined_call_operand.vmem [shape: f32[8,2], index: 4, kind: input, shape index: {}]   ;;  %s13988_s5 = inlined_call_operand.vmem [shape: f32[32,128], index: 5, kind: input, shape index: {}]   ;;  %s13989_s6 = inlined_call_operand.vmem [shape: f32[1,128], index: 6, kind: input, shape index: {}]   ;;  %s13990_s7 = inlined_call_operand.vmem [shape: f32[128,2], index: 7, kind: input, shape index: {}]   ;;  %s13991_s8 = inlined_call_operand.vmem [shape: f32[1,2], index: 8, kind: input, shape index: {}]   ;;  %s13992_s9 = inlined_call_operand.vmem [shape: f32[512,2], index: 9, kind: output, shape index: {0}]   ;;  %s13993_s10 = inlined_call_operand.vmem [shape: f32[8,6], index: 10, kind: output, shape index: {1}]  }
   0x1   :  { %s7948_s15 = smov 0  }
   0x2 LB: > { %s33_s16 = sadd.s32 1, %s7859_s14  ;;  %p6408_p0 = scmp.ge.s32.totalorder %s7863_s15, 1  ;;  %s7863_s15 = sphi %s7948_s15, %s21_s15   ;;  %s7859_s14 = sphi %s7946_s14, %s14851_s14   ;;  %s7855_s13 = sphi %s7944_s13, %s14850_s13  }
   0x3   : > { %p35_p1 = scmp.ge.s32.totalorder %s33_s16, 2  ;;  %p385_p2 = scmp.lt.s32.totalorder %s7863_s15, 3 }
   0x5   : > { %s14853_s16 = smov (%p35_p1, %s33_s16), 0  ;;  %p386_p3 = pnand %p6408_p0, %p385_p2 }
   0x6   : > { %p491_p4 = scmp.eq.s32.totalorder (!%p386_p3), %s7855_s13, 0 }
   0x7   : > { %389 = sbr.rel (%p386_p3) target bundleno = 1982 (0x7be), region = 56 }
   0xc   : > { %496 = sbr.rel (!%p491_p4) target bundleno = 17 (0x11), region = 60  ;;  %vm497_vm0 = vcmask (%p491_p4), 326656   ;;  %v7865_v0 = vmov (%p491_p4), 0.0  }
   0xd   : > { %498 = vst.msk [vmem:[#allocation4] sm:$0xff] (%p491_p4), %vm497_vm0, %v7865_v0 }
  0x11 PF: > { %p6410_p5 = scmp.ne.s32.totalorder %s7855_s13, 0 }
  0x13   : > { %501 = sbr.rel (%p6410_p5) target bundleno = 1182 (0x49e), region = 64 }
  0x18   : > { %v569_v1 = vld [vmem:[%s13988_s5 + $0x18] sm:$0xff]  ;;  %v7974_v2 = vld [vmem:[%s13986_s3 + $0x20] sm:$0xff]  ;;  %v7979_v3 = vld [vmem:[%s13986_s3 + $0x10] sm:$0xff]  ;;  %v7866_v4 = vmov 0   ;;  %vm574_vm1 = vcmask 261120   ;;  %s7869_s29 = smov 8  }
  0x19   : > { %6754 = vset.pattern.permute.xlu2 %v7866_v4  ;;  %6753 = vset.pattern.permute.xlu1 %v7866_v4  ;;  %v7984_v5 = vld [vmem:[%s13986_s3] sm:$0xff]  ;;  %v568_v6 = vld [vmem:[%s13988_s5 + $0x10] sm:$0xff]  ;;  %v567_v7 = vld [vmem:[%s13988_s5 + $0x8] sm:$0xff]  ;;  %s7870_s20 = smov 16   ;;  %s7871_s25 = smov 24  }
  0x1a   : > { %6752 = vset.pattern.permute.xlu0 %v7866_v4  ;;  %779 = vmatpush.msra.mxu0 %v569_v1  ;;  %v566_v8 = vld [vmem:[%s13988_s5] sm:$0xff]  ;;  %v8004_v10 = vld [vmem:[%s13986_s3 + $0x28] sm:$0xff]  ;;  %v8009_v11 = vld [vmem:[%s13986_s3 + $0x18] sm:$0xff]  ;;  %s7872_s28 = smov 32  }
  0x1b   : > { %2766 = vperm.xlu2 %6754, %v7974_v2   ;;  %2756 = vperm.xlu1 %6753, %v7979_v3   ;;  %v502_v9 = vld [vmem:[%s13985_s2] sm:$0xff]  ;;  %v8015_v12 = vld [vmem:[%s13986_s3 + $0x8] sm:$0xff]  ;;  %v8031_v15 = vld [vmem:[%s13986_s3 + $0x38] sm:$0xff] }
  0x1c   : > { %2746 = vperm.xlu0 %6752, %v7984_v5   ;;  %780 = vmatpush.msra.mxu0 %v568_v6  ;;  %v503_v13 = vld [vmem:[%s13985_s2 + $0x8] sm:$0xff]  ;;  %v8026_v14 = vld [vmem:[%s13986_s3 + $0x40] sm:$0xff]  ;;  %v8037_v16 = vld [vmem:[%s13986_s3 + $0x30] sm:$0xff] }
  0x1d   : > { %6681 = vmatpush.msra.mxu3 %v569_v1  ;;  %v504_v17 = vld [vmem:[%s13985_s2 + $0x10] sm:$0xff]  ;;  %v8048_v18 = vld [vmem:[%s13986_s3 + $0x58] sm:$0xff]  ;;  %v8059_v20 = vld [vmem:[%s13986_s3 + $0x48] sm:$0xff] }
  0x1e   : > { %781 = vmatpush.msra.mxu0 %v567_v7  ;;  %v8053_v19 = vld [vmem:[%s13986_s3 + $0x50] sm:$0xff]  ;;  %v505_v21 = vld [vmem:[%s13985_s2 + $0x18] sm:$0xff]  ;;  %v8075_v23 = vld [vmem:[%s13986_s3 + $0x68] sm:$0xff] }
  0x1f   : > { %6682 = vmatpush.msra.mxu3 %v568_v6  ;;  %v8070_v22 = vld [vmem:[%s13986_s3 + $0x70] sm:$0xff]  ;;  %v8081_v24 = vld [vmem:[%s13986_s3 + $0x60] sm:$0xff]  ;;  %v8092_v26 = vld [vmem:[%s13986_s3 + $0x88] sm:$0xff] }
  0x20   : > { %782 = vmatpush.msra.mxu0 %v566_v8  ;;  %v506_v25 = vld [vmem:[%s13985_s2 + $0x20] sm:$0xff]  ;;  %v8103_v28 = vld [vmem:[%s13986_s3 + $0x78] sm:$0xff]  ;;  %v507_v29 = vld [vmem:[%s13985_s2 + $0x28] sm:$0xff] }
  0x21   : > { %6411 = vmatmul.msk.f32.vlgmr.msra.gmra.mxu0 %vm574_vm1, %v502_v9  ;;  %6683 = vmatpush.msra.mxu3 %v567_v7  ;;  %v8097_v27 = vld [vmem:[%s13986_s3 + $0x80] sm:$0xff]  ;;  %v8119_v31 = vld [vmem:[%s13986_s3 + $0x98] sm:$0xff]  ;;  %v8125_v32 = vld [vmem:[%s13986_s3 + $0x90] sm:$0xff] }
  0x22   : > { %v8114_v30 = vld [vmem:[%s13986_s3 + $0xa0] sm:$0xff]  ;;  %v508_v33 = vld [vmem:[%s13985_s2 + $0x30] sm:$0xff]  ;;  %v8136_v34 = vld [vmem:[%s13986_s3 + $0xb8] sm:$0xff] }
  0x23   : > { %2771 = vperm.xlu2 %6754, %v8004_v10   ;;  %2761 = vperm.xlu1 %6753, %v8009_v11   ;;  %v8141_v35 = vld [vmem:[%s13986_s3 + $0xb0] sm:$0xff]  ;;  %v8147_v36 = vld [vmem:[%s13986_s3 + $0xa8] sm:$0xff]  ;;  %v509_v37 = vld [vmem:[%s13985_s2 + $0x38] sm:$0xff] }
  0x24   : > { %2751 = vperm.xlu0 %6752, %v8015_v12   ;;  %6684 = vmatpush.msra.mxu3 %v566_v8  ;;  %v2577_v38 = vld [vmem:[%s13986_s3 + $0xd0] sm:$0xff]  ;;  %v8161_v39 = vld [vmem:[%s13986_s3 + $0xc8] sm:$0xff]  ;;  %v8167_v40 = vld [vmem:[%s13986_s3 + $0xc0] sm:$0xff] }
  0x25   : > { %v510_v41 = vld [vmem:[%s13985_s2 + $0x40] sm:$0xff]  ;;  %v2580_v42 = vld [vmem:[%s13986_s3 + $0xe8] sm:$0xff]  ;;  %v2578_v44 = vld [vmem:[%s13986_s3 + $0xd8] sm:$0xff] }
  0x26   : > { %v2579_v43 = vld [vmem:[%s13986_s3 + $0xe0] sm:$0xff]  ;;  %v511_v45 = vld [vmem:[%s13985_s2 + $0x48] sm:$0xff]  ;;  %v2582_v47 = vld [vmem:[%s13986_s3 + $0xf8] sm:$0xff] }
  0x27   : > { %v2583_v46 = vld [vmem:[%s13986_s3 + $0x100] sm:$0xff]  ;;  %v2581_v48 = vld [vmem:[%s13986_s3 + $0xf0] sm:$0xff]  ;;  %v2586_v50 = vld [vmem:[%s13986_s3 + $0x118] sm:$0xff] }
  0x28   : > { %v512_v49 = vld [vmem:[%s13985_s2 + $0x50] sm:$0xff]  ;;  %v2584_v52 = vld [vmem:[%s13986_s3 + $0x108] sm:$0xff]  ;;  %v513_v54 = vld [vmem:[%s13985_s2 + $0x58] sm:$0xff] }
  0x29   : > { %6412 = vmatmul.msk.f32.gmra.mxu0 %vm574_vm1, %v503_v13  ;;  %v2585_v51 = vld [vmem:[%s13986_s3 + $0x110] sm:$0xff]  ;;  %v2588_v56 = vld [vmem:[%s13986_s3 + $0x128] sm:$0xff]  ;;  %v2587_v57 = vld [vmem:[%s13986_s3 + $0x120] sm:$0xff] }
  0x2a   : > { %v2589_v55 = vld [vmem:[%s13986_s3 + $0x130] sm:$0xff]  ;;  %v514_v59 = vld [vmem:[%s13985_s2 + $0x60] sm:$0xff]  ;;  %v2592_v60 = vld [vmem:[%s13986_s3 + $0x148] sm:$0xff] }
  0x2b   : > { %2786 = vperm.xlu2 %6754, %v8026_v14   ;;  %2781 = vperm.xlu1 %6753, %v8031_v15   ;;  %v2591_v61 = vld [vmem:[%s13986_s3 + $0x140] sm:$0xff]  ;;  %v2271_v62 = vld [vmem:[%s13990_s7 + $0x78] sm:$0xff]  ;;  %v2270_v0 = vld [vmem:[%s13990_s7 + $0x70] sm:$0xff] }
  0x2c   : > { %2776 = vperm.xlu0 %6752, %v8037_v16   ;;  %v2590_v63 = vld [vmem:[%s13986_s3 + $0x138] sm:$0xff]  ;;  %2276 = vmatpush.msra.mxu1 %v2271_v62  ;;  %v2269_v1 = vld [vmem:[%s13990_s7 + $0x68] sm:$0xff]  ;;  %v2268_v7 = vld [vmem:[%s13990_s7 + $0x60] sm:$0xff] }
  0x2d   : > { %6685 = vmatpush.msra.mxu2 %v2271_v62  ;;  %v515_v6 = vld [vmem:[%s13985_s2 + $0x68] sm:$0xff]  ;;  %v2595_v8 = vld [vmem:[%s13986_s3 + $0x160] sm:$0xff]  ;;  %v2594_v9 = vld [vmem:[%s13986_s3 + $0x158] sm:$0xff] }
  0x2e   : > { %2277 = vmatpush.msra.mxu1 %v2270_v0  ;;  %v2267_v13 = vld [vmem:[%s13990_s7 + $0x58] sm:$0xff] }
  0x2f   : > { %6686 = vmatpush.msra.mxu2 %v2270_v0 }
  0x30   : > { %2278 = vmatpush.msra.mxu1 %v2269_v1 }
  0x31   : > { %6413 = vmatmul.msk.f32.gmra.mxu0 %vm574_vm1, %v504_v17  ;;  %6687 = vmatpush.msra.mxu2 %v2269_v1  ;;  %v2593_v17 = vld [vmem:[%s13986_s3 + $0x150] sm:$0xff] }
  0x32   : > { %2279 = vmatpush.msra.mxu1 %v2268_v7 }
  0x33   : > { %2801 = vperm.xlu2 %6754, %v8048_v18   ;;  %2796 = vperm.xlu1 %6753, %v8053_v19  }
  0x34   : > { %2791 = vperm.xlu0 %6752, %v8059_v20   ;;  %6688 = vmatpush.msra.mxu2 %v2268_v7  ;;  %v2256_v7 = vld [vmem:[%s13990_s7] sm:$0xff] }
  0x35   : > { %2280 = vmatpush.msra.mxu1 %v2267_v13 }
  0x36   : > { %6689 = vmatpush.msra.mxu2 %v2267_v13  ;;  %v2603_v13 = vld [vmem:[%s13986_s3 + $0x1a0] sm:$0xff] }
  0x39   : > { %6414 = vmatmul.msk.f32.gmra.mxu0 %vm574_vm1, %v505_v21  ;;  %v2266_v21 = vld [vmem:[%s13990_s7 + $0x50] sm:$0xff] }
  0x3a   : > { %2281 = vmatpush.msra.mxu1 %v2266_v21  ;;  %6690 = vmatpush.msra.mxu2 %v2266_v21  ;;  %v2602_v21 = vld [vmem:[%s13986_s3 + $0x198] sm:$0xff] }
  0x3b   : > { %2816 = vperm.xlu2 %6754, %v8070_v22   ;;  %2811 = vperm.xlu1 %6753, %v8075_v23  }
  0x3c   : > { %2806 = vperm.xlu0 %6752, %v8081_v24  }
  0x41   : > { %6415 = vmatmul.msk.f32.gmra.mxu0 %vm574_vm1, %v506_v25  ;;  %v2265_v25 = vld [vmem:[%s13990_s7 + $0x48] sm:$0xff] }
  0x42   : > { %2282 = vmatpush.msra.mxu1 %v2265_v25  ;;  %6691 = vmatpush.msra.mxu2 %v2265_v25 }
  0x43   : > { %2831 = vperm.xlu2 %6754, %v8092_v26   ;;  %2826 = vperm.xlu1 %6753, %v8097_v27  }
  0x44   : > { %2821 = vperm.xlu0 %6752, %v8103_v28  }
  0x49   : > { %6416 = vmatmul.msk.f32.gmra.mxu0 %vm574_vm1, %v507_v29 }
  0x4b   : > { %2846 = vperm.xlu2 %6754, %v8114_v30   ;;  %2841 = vperm.xlu1 %6753, %v8119_v31  }
  0x4c   : > { %2836 = vperm.xlu0 %6752, %v8125_v32  }
  0x51   : > { %6417 = vmatmul.msk.f32.gmra.mxu0 %vm574_vm1, %v508_v33 }
  0x53   : > { %2861 = vperm.xlu2 %6754, %v8136_v34   ;;  %2856 = vperm.xlu1 %6753, %v8141_v35  }
  0x54   : > { %2851 = vperm.xlu0 %6752, %v8147_v36  }
  0x59   : > { %6418 = vmatmul.msk.f32.gmra.mxu0 %vm574_vm1, %v509_v37 }
  0x5b   : > { %2876 = vperm.xlu2 %6754, %v2577_v38   ;;  %2871 = vperm.xlu1 %6753, %v8161_v39   ;;  %v516_v38 = vld [vmem:[%s13985_s2 + $0x70] sm:$0xff] }
  0x5c   : > { %2866 = vperm.xlu0 %6752, %v8167_v40  }
  0x61   : > { %6419 = vmatmul.msk.f32.gmra.mxu0 %vm574_vm1, %v510_v41  ;;  %v2264_v41 = vld [vmem:[%s13990_s7 + $0x40] sm:$0xff] }
  0x62   : > { %2283 = vmatpush.msra.mxu1 %v2264_v41  ;;  %6692 = vmatpush.msra.mxu2 %v2264_v41 }
  0x63   : > { %2891 = vperm.xlu2 %6754, %v2580_v42   ;;  %2886 = vperm.xlu1 %6753, %v2579_v43   ;;  %v2598_v42 = vld [vmem:[%s13986_s3 + $0x178] sm:$0xff]  ;;  %v2597_v43 = vld [vmem:[%s13986_s3 + $0x170] sm:$0xff] }
  0x64   : > { %2881 = vperm.xlu0 %6752, %v2578_v44   ;;  %v2263_v44 = vld [vmem:[%s13990_s7 + $0x38] sm:$0xff] }
  0x65   : > { %2284 = vmatpush.msra.mxu1 %v2263_v44  ;;  %6693 = vmatpush.msra.mxu2 %v2263_v44 }
  0x69   : > { %6420 = vmatmul.msk.f32.gmra.mxu0 %vm574_vm1, %v511_v45  ;;  %v2596_v45 = vld [vmem:[%s13986_s3 + $0x168] sm:$0xff] }
  0x6b   : > { %2906 = vperm.xlu2 %6754, %v2583_v46   ;;  %2901 = vperm.xlu1 %6753, %v2582_v47   ;;  %v2262_v46 = vld [vmem:[%s13990_s7 + $0x30] sm:$0xff]  ;;  %v2261_v47 = vld [vmem:[%s13990_s7 + $0x28] sm:$0xff] }
  0x6c   : > { %2896 = vperm.xlu0 %6752, %v2581_v48   ;;  %2285 = vmatpush.msra.mxu1 %v2262_v46 }
  0x6d   : > { %6694 = vmatpush.msra.mxu2 %v2262_v46  ;;  %v2606_v46 = vld [vmem:[%s13986_s3 + $0x1b8] sm:$0xff] }
  0x6e   : > { %2286 = vmatpush.msra.mxu1 %v2261_v47 }
  0x6f   : > { %6695 = vmatpush.msra.mxu2 %v2261_v47 }
  0x71   : > { %6421 = vmatmul.msk.f32.gmra.mxu0 %vm574_vm1, %v512_v49 }
  0x73   : > { %2921 = vperm.xlu2 %6754, %v2586_v50   ;;  %2916 = vperm.xlu1 %6753, %v2585_v51   ;;  %v517_v51 = vld [vmem:[%s13985_s2 + $0x78] sm:$0xff] }
  0x74   : > { %2911 = vperm.xlu0 %6752, %v2584_v52   ;;  %v2260_v52 = vld [vmem:[%s13990_s7 + $0x20] sm:$0xff] }
  0x75   : > { %v8210_v53 = vpop.permute.xlu2 %2766  ;;  %2287 = vmatpush.msra.mxu1 %v2260_v52  ;;  %6696 = vmatpush.msra.mxu2 %v2260_v52  ;;  %v2605_v52 = vld [vmem:[%s13986_s3 + $0x1b0] sm:$0xff] }
  0x76   : > { %14115 = vst [vmem:[#allocation5_spill] sm:$0xff] %v8210_v53 }
  0x79   : > { %6422 = vmatmul.msk.f32.gmra.mxu0 %vm574_vm1, %v513_v54  ;;  %v2601_v54 = vld [vmem:[%s13986_s3 + $0x190] sm:$0xff] }
  0x7b   : > { %2936 = vperm.xlu2 %6754, %v2589_v55   ;;  %2931 = vperm.xlu1 %6753, %v2588_v56   ;;  %v2600_v55 = vld [vmem:[%s13986_s3 + $0x188] sm:$0xff]  ;;  %v2259_v56 = vld [vmem:[%s13990_s7 + $0x18] sm:$0xff] }
  0x7c   : > { %2926 = vperm.xlu0 %6752, %v2587_v57   ;;  %v2599_v57 = vld [vmem:[%s13986_s3 + $0x180] sm:$0xff]  ;;  %2288 = vmatpush.msra.mxu1 %v2259_v56 }
  0x7d   : > { %v8225_v58 = vpop.permute.xlu2 %2771  ;;  %6697 = vmatpush.msra.mxu2 %v2259_v56 }
  0x7e   : > { %14116 = vst [vmem:[#allocation6_spill] sm:$0xff] %v8225_v58 }
  0x81   : > { %6423 = vmatmul.msk.f32.gmra.mxu0 %vm574_vm1, %v514_v59  ;;  %v2258_v59 = vld [vmem:[%s13990_s7 + $0x10] sm:$0xff] }
  0x82   : > { %2289 = vmatpush.msra.mxu1 %v2258_v59  ;;  %6698 = vmatpush.msra.mxu2 %v2258_v59 }
  0x83   : > { %2951 = vperm.xlu2 %6754, %v2592_v60   ;;  %2946 = vperm.xlu1 %6753, %v2591_v61   ;;  %v8338_v60 = vld [vmem:[%s13989_s6] ss:$0 sm:$0xff]  ;;  %v2257_v61 = vld [vmem:[%s13990_s7 + $0x8] sm:$0xff] }
  0x84   : > { %2941 = vperm.xlu0 %6752, %v2590_v63   ;;  %2290 = vmatpush.msra.mxu1 %v2257_v61 }
  0x85   : > { %v8249_v4 = vpop.permute.xlu2 %2786  ;;  %6699 = vmatpush.msra.mxu2 %v2257_v61  ;;  %v520_v61 = vld [vmem:[%s13985_s2 + $0x90] sm:$0xff] }
  0x86   : > { %14117 = vst [vmem:[#allocation7_spill] sm:$0xff] %v8249_v4  ;;  %2291 = vmatpush.msra.mxu1 %v2256_v7 }
  0x87   : > { %6700 = vmatpush.msra.mxu2 %v2256_v7  ;;  %v2609_v7 = vld [vmem:[%s13986_s3 + $0x1d0] sm:$0xff] }
  0x89   : > { %6424 = vmatmul.msk.f32.gmra.mxu0 %vm574_vm1, %v515_v6  ;;  %v518_v6 = vld [vmem:[%s13985_s2 + $0x80] sm:$0xff] }
  0x8b   : > { %2966 = vperm.xlu2 %6754, %v2595_v8   ;;  %2961 = vperm.xlu1 %6753, %v2594_v9   ;;  %v2604_v9 = vld [vmem:[%s13986_s3 + $0x1a8] sm:$0xff] }
  0x8c   : > { %2956 = vperm.xlu0 %6752, %v2593_v17  }
  0x8d   : > { %v8276_v29 = vpop.permute.xlu2 %2801  ;;  %v8278_v33 = vpop.permute.xlu1 %2756 }
  0x8e   : > { %14118 = vst [vmem:[#allocation8_spill] sm:$0xff] %v8276_v29  ;;  %v8280_v37 = vpop.permute.xlu0 %2746 }
  0x8f   : > { %14119 = vst [vmem:[#allocation9_spill] sm:$0xff] %v8278_v33 }
  0x90   : > { %14120 = vst [vmem:[#allocation10_spill] sm:$0xff] %v8280_v37 }
  0x91   : > { %6425 = vmatmul.msk.f32.gmra.mxu0 %vm574_vm1, %v516_v38 }
  0x93   : > { %2981 = vperm.xlu2 %6754, %v2598_v42   ;;  %2976 = vperm.xlu1 %6753, %v2597_v43   ;;  %v519_v43 = vld [vmem:[%s13985_s2 + $0x88] sm:$0xff] }
  0x94   : > { %2971 = vperm.xlu0 %6752, %v2596_v45   ;;  %v2607_v45 = vld [vmem:[%s13986_s3 + $0x1c0] sm:$0xff] }
  0x95   : > { %v8307_v48 = vpop.permute.xlu2 %2816  ;;  %v8309_v49 = vpop.permute.xlu1 %2761 }
  0x96   : > { %14121 = vst [vmem:[#allocation11_spill] sm:$0xff] %v8307_v48  ;;  %v8311_v50 = vpop.permute.xlu0 %2751 }
  0x97   : > { %14122 = vst [vmem:[#allocation12_spill] sm:$0xff] %v8309_v49 }
  0x99   : > { %6426 = vmatmul.msk.f32.gmra.mxu0 %vm574_vm1, %v517_v51 }
  0x9b   : > { %2996 = vperm.xlu2 %6754, %v2601_v54   ;;  %2991 = vperm.xlu1 %6753, %v2600_v55  }
  0x9c   : > { %2986 = vperm.xlu0 %6752, %v2599_v57  }
  0x9d   : > { %v8343_v62 = vpop.permute.xlu2 %2831  ;;  %v8345_v63 = vpop.permute.xlu1 %2781 }
  0x9e   : > { %14123 = vst [vmem:[#allocation13_spill] sm:$0xff] %v8343_v62  ;;  %v8347_v0 = vpop.permute.xlu0 %2776  ;;  %v784_v1 = vpop.f32.mrf.mxu0 }
  0x9f   : > { %14124 = vst [vmem:[#allocation14_spill] sm:$0xff] %v8345_v63  ;;  %v8356_v8 = vadd.f32 %v8338_v60, %v784_v1 }
  0xa0   : > { %14125 = vst [vmem:[#allocation15_spill] sm:$0xff] %v8347_v0 }
  0xa1   : > { %v6475_v17 = vmul.f32 -1.442695, %v8356_v8  ;;  %6427 = vmatmul.msk.f32.gmra.mxu0 %vm574_vm1, %v518_v6  ;;  %v2610_v6 = vld [vmem:[%s13986_s3 + $0x1d8] sm:$0xff] }
  0xa3   : > { %7403 = vpow2.f32 %v6475_v17  ;;  %3011 = vperm.xlu2 %6754, %v2604_v9   ;;  %3006 = vperm.xlu1 %6753, %v2603_v13   ;;  %v2608_v17 = vld [vmem:[%s13986_s3 + $0x1c8] sm:$0xff] }
  0xa4   : > { %3001 = vperm.xlu0 %6752, %v2602_v21  }
  0xa5   : > { %v8369_v25 = vpop.permute.xlu2 %2846  ;;  %v8371_v38 = vpop.permute.xlu1 %2796 }
  0xa6   : > { %14126 = vst [vmem:[#allocation16_spill] sm:$0xff] %v8371_v38  ;;  %v8373_v41 = vpop.permute.xlu0 %2791  ;;  %v787_v42 = vpop.f32.mrf.mxu0 }
  0xa7   : > { %14127 = vst [vmem:[#allocation17_spill] sm:$0xff] %v8373_v41  ;;  %v8379_v44 = vadd.f32 %v8338_v60, %v787_v42 }
  0xa9   : > { %v7404_v47 = vpop.eup %7403  ;;  %v6476_v51 = vmul.f32 -1.442695, %v8379_v44  ;;  %6428 = vmatmul.msk.f32.gmra.mxu0 %vm574_vm1, %v519_v43 }
  0xaa   : > { %v1168_v54 = vadd.f32 1.0, %v7404_v47 }
  0xab   : > { %7405 = vpow2.f32 %v6476_v51  ;;  %3026 = vperm.xlu2 %6754, %v2607_v45   ;;  %3021 = vperm.xlu1 %6753, %v2606_v46  }
  0xac   : > { %7407 = vrcp.f32 %v1168_v54  ;;  %3016 = vperm.xlu0 %6752, %v2605_v52   ;;  %vm1237_vm3 = vweird.f32 %v1168_v54 }
  0xad   : > { %v8392_v55 = vpop.permute.xlu2 %2861  ;;  %v8394_v56 = vpop.permute.xlu1 %2811 }
  0xae   : > { %14128 = vst [vmem:[#allocation18_spill] sm:$0xff] %v8394_v56  ;;  %v8396_v57 = vpop.permute.xlu0 %2806  ;;  %v790_v59 = vpop.f32.mrf.mxu0 }
  0xaf   : > { %14129 = vst [vmem:[#allocation19_spill] sm:$0xff] %v8396_v57  ;;  %v8402_v1 = vadd.f32 %v8338_v60, %v790_v59  ;;  %v521_v59 = vld [vmem:[%s13985_s2 + $0x98] sm:$0xff] }
  0xb1   : > { %v7406_v9 = vpop.eup %7405  ;;  %v6477_v13 = vmul.f32 -1.442695, %v8402_v1  ;;  %6429 = vmatmul.msk.f32.gmra.mxu0 %vm574_vm1, %v520_v61  ;;  %v1243_v61 = vand.u32 2147483648, %v1168_v54 }
  0xb2   : > { %v7408_v21 = vpop.eup %7407  ;;  %v8415_v42 = vadd.f32 1.0, %v7406_v9  ;;  %v1241_v9 = vand.u32 2147483647, %v1168_v54 }
  0xb3   : > { %7409 = vpow2.f32 %v6477_v13  ;;  %3041 = vperm.xlu2 %6754, %v2610_v6   ;;  %3036 = vperm.xlu1 %6753, %v2609_v7   ;;  %v1233_v43 = vmul.f32 %v7408_v21, %v1168_v54  ;;  %vm1238_vm2 = vweird.f32 %v7408_v21  ;;  %v2613_v13 = vld [vmem:[%s13986_s3 + $0x1f0] sm:$0xff] }
  0xb4   : > { %7411 = vrcp.f32 %v8415_v42  ;;  %3031 = vperm.xlu0 %6752, %v2608_v17   ;;  %v2612_v17 = vld [vmem:[%s13986_s3 + $0x1e8] sm:$0xff]  ;;  %vm1239_vm4 = vmor %vm1237_vm3, %vm1238_vm2  ;;  %vm1242_vm5 = vcmp.eq.f32.partialorder %v1241_v9, 8.507059e+37  ;;  %vm1252_vm7 = vweird.f32 %v8415_v42 }
  0xb5   : > { %v8418_v45 = vpop.permute.xlu2 %2876  ;;  %v8420_v46 = vpop.permute.xlu1 %2826  ;;  %v1234_v47 = vsub.f32 1.0, %v1233_v43 }
  0xb6   : > { %14130 = vst [vmem:[#allocation20_spill] sm:$0xff] %v8418_v45  ;;  %v8422_v51 = vpop.permute.xlu0 %2821  ;;  %v793_v52 = vpop.f32.mrf.mxu0 }
  0xb7   : > { %14131 = vst [vmem:[#allocation21_spill] sm:$0xff] %v8420_v46  ;;  %v8428_v6 = vadd.f32 %v8338_v60, %v793_v52  ;;  %v1235_v7 = vmul.f32 %v7408_v21, %v1234_v47  ;;  %v2611_v52 = vld [vmem:[%s13986_s3 + $0x1e0] sm:$0xff]  ;;  %v1244_v46 = vor.u32 1.1754944e-38, %v1243_v61  ;;  %v1258_v61 = vand.u32 2147483648, %v8415_v42 }
  0xb8   : > { %14132 = vst [vmem:[#allocation22_spill] sm:$0xff] %v8422_v51 }
  0xb9   : > { %v7410_v43 = vpop.eup %7409  ;;  %v6478_v45 = vmul.f32 -1.442695, %v8428_v6  ;;  %6430 = vmatmul.msk.f32.gmra.mxu0 %vm574_vm1, %v521_v59  ;;  %v1236_v47 = vadd.f32 %v7408_v21, %v1235_v7 }
  0xba   : > { %v7412_v57 = vpop.eup %7411  ;;  %v8441_v56 = vadd.f32 1.0, %v7410_v43 }
  0xbb   : > { %7413 = vpow2.f32 %v6478_v45  ;;  %3056 = vperm.xlu2 %6754, %v2613_v13   ;;  %3051 = vperm.xlu1 %6753, %v2612_v17   ;;  %v1240_v62 = vsel %vm1239_vm4, %v7408_v21, %v1236_v47  ;;  %v1248_v38 = vmul.f32 %v7412_v57, %v8415_v42  ;;  %v522_v21 = vld [vmem:[%s13985_s2 + $0xa0] sm:$0xff]  ;;  %vm1253_vm6 = vweird.f32 %v7412_v57 }
  0xbc   : > { %7415 = vrcp.f32 %v8441_v56  ;;  %3046 = vperm.xlu0 %6752, %v2611_v52   ;;  %v1245_v59 = vsel %vm1242_vm5, %v1244_v46, %v1240_v62  ;;  %v1256_v46 = vand.u32 2147483647, %v8415_v42  ;;  %vm1254_vm8 = vmor %vm1252_vm7, %vm1253_vm6  ;;  %vm1267_vm11 = vweird.f32 %v8441_v56 }
  0xbd   : > { %v8445_v48 = vpop.permute.xlu2 %2891  ;;  %v8447_v7 = vpop.permute.xlu1 %2841  ;;  %v2192_v54 = vmul.f32 %v1245_v59, %v8356_v8  ;;  %v1249_v43 = vsub.f32 1.0, %v1248_v38  ;;  %v2614_v38 = vld [vmem:[%s13986_s3 + $0x1f8] sm:$0xff]  ;;  %v1259_v59 = vor.u32 1.1754944e-38, %v1258_v61 }
  0xbe   : > { %14133 = vst [vmem:[#allocation23_spill] sm:$0xff] %v8445_v48  ;;  %v8450_v51 = vpop.permute.xlu0 %2836  ;;  %v796_v45 = vpop.f32.mrf.mxu0  ;;  %vm1257_vm9 = vcmp.eq.f32.partialorder %v1256_v46, 8.507059e+37  ;;  %v523_v46 = vld [vmem:[%s13985_s2 + $0xa8] sm:$0xff] }
  0xbf   : > { %14134 = vst [vmem:[#allocation24_spill] sm:$0xff] %v8447_v7  ;;  %v8457_v9 = vadd.f32 %v8338_v60, %v796_v45  ;;  %2292 = vmatmul.f32.vlgmr.msra.gmra.mxu1 %v2192_v54  ;;  %v1250_v62 = vmul.f32 %v7412_v57, %v1249_v43  ;;  %v7867_v54 = vmov 1  }
  0xc0   : > { %14135 = vst [vmem:[#allocation25_spill] sm:$0xff] %v8450_v51 }
  0xc1   : > { %v7414_v13 = vpop.eup %7413  ;;  %v6479_v8 = vmul.f32 -1.442695, %v8457_v9  ;;  %6431 = vmatmul.msk.f32.gmra.mxu0 %vm574_vm1, %v522_v21  ;;  %v1251_v17 = vadd.f32 %v7412_v57, %v1250_v62 }
  0xc2   : > { %v7416_v52 = vpop.eup %7415  ;;  %v8466_v47 = vadd.f32 1.0, %v7414_v13 }
  0xc3   : > { %7417 = vpow2.f32 %v6479_v8  ;;  %6756 = vset.pattern.permute.xlu2 %v7867_v54  ;;  %6755 = vset.pattern.permute.xlu1 %v7867_v54  ;;  %v1255_v43 = vsel %vm1254_vm8, %v7412_v57, %v1251_v17  ;;  %v1263_v45 = vmul.f32 %v7416_v52, %v8441_v56  ;;  %vm1268_vm10 = vweird.f32 %v7416_v52 }
  0xc4   : > { %7419 = vrcp.f32 %v8466_v47  ;;  %3061 = vperm.xlu0 %6752, %v2614_v38   ;;  %3133 = vperm.xlu2 %6756, %v8015_v12   ;;  %v1260_v21 = vsel %vm1257_vm9, %v1259_v59, %v1255_v43  ;;  %v1273_v38 = vand.u32 2147483648, %v8441_v56  ;;  %v1271_v17 = vand.u32 2147483647, %v8441_v56  ;;  %vm1269_vm12 = vmor %vm1267_vm11, %vm1268_vm10 }
  0xc5   : > { %3129 = vperm.xlu1 %6755, %v7984_v5   ;;  %v8472_v42 = vpop.permute.xlu2 %2906  ;;  %v8474_v62 = vpop.permute.xlu1 %2856  ;;  %v2193_v61 = vmul.f32 %v1260_v21, %v8379_v44  ;;  %v1264_v13 = vsub.f32 1.0, %v1263_v45  ;;  %vm1282_vm15 = vweird.f32 %v8466_v47 }
  0xc6   : > { %14136 = vst [vmem:[#allocation26_spill] sm:$0xff] %v8472_v42  ;;  %v8477_v8 = vpop.permute.xlu0 %2851  ;;  %v799_v57 = vpop.f32.mrf.mxu0  ;;  %v1274_v42 = vor.u32 1.1754944e-38, %v1273_v38  ;;  %vm1272_vm13 = vcmp.eq.f32.partialorder %v1271_v17, 8.507059e+37 }
  0xc7   : > { %v8484_v12 = vadd.f32 %v8338_v60, %v799_v57  ;;  %2295 = vmatmul.f32.gmra.mxu1 %v2193_v61  ;;  %v1265_v5 = vmul.f32 %v7416_v52, %v1264_v13 }
  0xc9   : > { %v7418_v59 = vpop.eup %7417  ;;  %v6480_v44 = vmul.f32 -1.442695, %v8484_v12  ;;  %6432 = vmatmul.msk.f32.gmra.mxu0 %vm574_vm1, %v523_v46  ;;  %v1266_v43 = vadd.f32 %v7416_v52, %v1265_v5 }
  0xca   : > { %v7420_v45 = vpop.eup %7419  ;;  %v8490_v21 = vadd.f32 1.0, %v7418_v59 }
  0xcb   : > { %7421 = vpow2.f32 %v6480_v44  ;;  %v1270_v57 = vsel %vm1269_vm12, %v7416_v52, %v1266_v43  ;;  %v1278_v61 = vmul.f32 %v7420_v45, %v8466_v47  ;;  %vm1283_vm14 = vweird.f32 %v7420_v45 }
  0xcc   : > { %7423 = vrcp.f32 %v8490_v21  ;;  %6757 = vset.pattern.permute.xlu0 %v7867_v54  ;;  %3145 = vperm.xlu2 %6756, %v7974_v2   ;;  %v1275_v13 = vsel %vm1272_vm13, %v1274_v42, %v1270_v57  ;;  %v524_v54 = vld [vmem:[%s13985_s2 + $0xb0] sm:$0xff]  ;;  %v1288_v2 = vand.u32 2147483648, %v8466_v47  ;;  %v1286_v42 = vand.u32 2147483647, %v8466_v47  ;;  %vm1284_vm0 = vmor %vm1282_vm15, %vm1283_vm14 }
  0xcd   : > { %3141 = vperm.xlu1 %6755, %v8009_v11   ;;  %3137 = vperm.xlu0 %6757, %v7979_v3   ;;  %v8497_v56 = vpop.permute.xlu2 %2921  ;;  %v8499_v46 = vpop.permute.xlu1 %2871  ;;  %v2194_v38 = vmul.f32 %v1275_v13, %v8402_v1  ;;  %v1279_v52 = vsub.f32 1.0, %v1278_v61  ;;  %vm1297_vm4 = vweird.f32 %v8490_v21 }
  0xce   : > { %14137 = vst [vmem:[#allocation27_spill] sm:$0xff] %v8497_v56  ;;  %v8502_v5 = vpop.permute.xlu0 %2866  ;;  %v802_v17 = vpop.f32.mrf.mxu0  ;;  %v1289_v61 = vor.u32 1.1754944e-38, %v1288_v2  ;;  %vm1287_vm2 = vcmp.eq.f32.partialorder %v1286_v42, 8.507059e+37  ;;  %v525_v42 = vld [vmem:[%s13985_s2 + $0xb8] sm:$0xff] }
  0xcf   : > { %14138 = vst [vmem:[#allocation28_spill] sm:$0xff] %v8499_v46  ;;  %v8509_v11 = vadd.f32 %v8338_v60, %v802_v17  ;;  %2298 = vmatmul.f32.gmra.mxu1 %v2194_v38  ;;  %v1280_v3 = vmul.f32 %v7420_v45, %v1279_v52 }
  0xd0   : > { %14139 = vst [vmem:[#allocation29_spill] sm:$0xff] %v8502_v5 }
  0xd1   : > { %v7422_v59 = vpop.eup %7421  ;;  %v6481_v1 = vmul.f32 -1.442695, %v8509_v11  ;;  %6433 = vmatmul.msk.f32.gmra.mxu0 %vm574_vm1, %v524_v54  ;;  %v1281_v44 = vadd.f32 %v7420_v45, %v1280_v3 }
  0xd2   : > { %v7424_v43 = vpop.eup %7423  ;;  %v8515_v57 = vadd.f32 1.0, %v7422_v59  ;;  %v1301_v59 = vand.u32 2147483647, %v8490_v21 }
  0xd3   : > { %7425 = vpow2.f32 %v6481_v1  ;;  %v1285_v13 = vsel %vm1284_vm0, %v7420_v45, %v1281_v44  ;;  %v1293_v38 = vmul.f32 %v7424_v43, %v8490_v21  ;;  %vm1298_vm3 = vweird.f32 %v7424_v43 }
  0xd4   : > { %7427 = vrcp.f32 %v8515_v57  ;;  %3153 = vperm.xlu2 %6756, %v8037_v16   ;;  %v1290_v52 = vsel %vm1287_vm2, %v1289_v61, %v1285_v13  ;;  %v1303_v16 = vand.u32 2147483648, %v8490_v21  ;;  %vm1299_vm5 = vmor %vm1297_vm4, %vm1298_vm3  ;;  %vm1302_vm6 = vcmp.eq.f32.partialorder %v1301_v59, 8.507059e+37  ;;  %v526_v59 = vld [vmem:[%s13985_s2 + $0xc0] sm:$0xff] }
  0xd5   : > { %3149 = vperm.xlu1 %6755, %v8004_v10   ;;  %3157 = vperm.xlu0 %6757, %v8031_v15   ;;  %v8522_v47 = vpop.permute.xlu2 %2936  ;;  %v8524_v17 = vpop.permute.xlu1 %2886  ;;  %v2195_v54 = vmul.f32 %v1290_v52, %v8428_v6  ;;  %v1294_v2 = vsub.f32 1.0, %v1293_v38  ;;  %vm1312_vm8 = vweird.f32 %v8515_v57 }
  0xd6   : > { %14140 = vst [vmem:[#allocation30_spill] sm:$0xff] %v8522_v47  ;;  %v8527_v45 = vpop.permute.xlu0 %2881  ;;  %v805_v3 = vpop.f32.mrf.mxu0  ;;  %v1304_v38 = vor.u32 1.1754944e-38, %v1303_v16 }
  0xd7   : > { %14141 = vst [vmem:[#allocation31_spill] sm:$0xff] %v8524_v17  ;;  %v8534_v10 = vadd.f32 %v8338_v60, %v805_v3  ;;  %2301 = vmatmul.f32.gmra.mxu1 %v2195_v54  ;;  %v1295_v15 = vmul.f32 %v7424_v43, %v1294_v2 }
  0xd8   : > { %14142 = vst [vmem:[#allocation32_spill] sm:$0xff] %v8527_v45 }
  0xd9   : > { %v7426_v1 = vpop.eup %7425  ;;  %v6482_v6 = vmul.f32 -1.442695, %v8534_v10  ;;  %6434 = vmatmul.msk.f32.gmra.mxu0 %vm574_vm1, %v525_v42  ;;  %v1296_v44 = vadd.f32 %v7424_v43, %v1295_v15 }
  0xda   : > { %v7428_v61 = vpop.eup %7427  ;;  %v8540_v13 = vadd.f32 1.0, %v7426_v1  ;;  %v1316_v1 = vand.u32 2147483647, %v8515_v57 }
  0xdb   : > { %7429 = vpow2.f32 %v6482_v6  ;;  %v1300_v52 = vsel %vm1299_vm5, %v7424_v43, %v1296_v44  ;;  %v1308_v54 = vmul.f32 %v7428_v61, %v8515_v57  ;;  %vm1313_vm7 = vweird.f32 %v7428_v61 }
  0xdc   : > { %7431 = vrcp.f32 %v8540_v13  ;;  %3165 = vperm.xlu2 %6756, %v8059_v20   ;;  %v1305_v2 = vsel %vm1302_vm6, %v1304_v38, %v1300_v52  ;;  %v1318_v20 = vand.u32 2147483648, %v8515_v57  ;;  %vm1314_vm9 = vmor %vm1312_vm8, %vm1313_vm7  ;;  %vm1317_vm10 = vcmp.eq.f32.partialorder %v1316_v1, 8.507059e+37  ;;  %v527_v1 = vld [vmem:[%s13985_s2 + $0xc8] sm:$0xff] }
  0xdd   : > { %3161 = vperm.xlu1 %6755, %v8026_v14   ;;  %3169 = vperm.xlu0 %6757, %v8053_v19   ;;  %v8547_v21 = vpop.permute.xlu2 %2951  ;;  %v8549_v3 = vpop.permute.xlu1 %2901  ;;  %v2196_v42 = vmul.f32 %v1305_v2, %v8457_v9  ;;  %v1309_v16 = vsub.f32 1.0, %v1308_v54  ;;  %vm1327_vm12 = vweird.f32 %v8540_v13 }
  0xde   : > { %14143 = vst [vmem:[#allocation33_spill] sm:$0xff] %v8547_v21  ;;  %v8552_v43 = vpop.permute.xlu0 %2896  ;;  %v808_v15 = vpop.f32.mrf.mxu0  ;;  %v1319_v54 = vor.u32 1.1754944e-38, %v1318_v20 }
  0xdf   : > { %14144 = vst [vmem:[#allocation34_spill] sm:$0xff] %v8549_v3  ;;  %v8559_v14 = vadd.f32 %v8338_v60, %v808_v15  ;;  %2304 = vmatmul.f32.gmra.mxu1 %v2196_v42  ;;  %v1310_v19 = vmul.f32 %v7428_v61, %v1309_v16 }
  0xe0   : > { %14145 = vst [vmem:[#allocation35_spill] sm:$0xff] %v8552_v43 }
  0xe1   : > { %v7430_v6 = vpop.eup %7429  ;;  %v6483_v9 = vmul.f32 -1.442695, %v8559_v14  ;;  %6435 = vmatmul.msk.f32.gmra.mxu0 %vm574_vm1, %v526_v59  ;;  %v1311_v44 = vadd.f32 %v7428_v61, %v1310_v19 }
  0xe2   : > { %v7432_v38 = vpop.eup %7431  ;;  %v8565_v52 = vadd.f32 1.0, %v7430_v6  ;;  %v1331_v6 = vand.u32 2147483647, %v8540_v13 }
  0xe3   : > { %7433 = vpow2.f32 %v6483_v9  ;;  %v1315_v2 = vsel %vm1314_vm9, %v7428_v61, %v1311_v44  ;;  %v1323_v42 = vmul.f32 %v7432_v38, %v8540_v13  ;;  %vm1328_vm11 = vweird.f32 %v7432_v38 }
  0xe4   : > { %7435 = vrcp.f32 %v8565_v52  ;;  %3177 = vperm.xlu2 %6756, %v8081_v24   ;;  %v1320_v16 = vsel %vm1317_vm10, %v1319_v54, %v1315_v2  ;;  %v1333_v24 = vand.u32 2147483648, %v8540_v13  ;;  %vm1329_vm13 = vmor %vm1327_vm12, %vm1328_vm11  ;;  %vm1332_vm14 = vcmp.eq.f32.partialorder %v1331_v6, 8.507059e+37  ;;  %v528_v6 = vld [vmem:[%s13985_s2 + $0xd0] sm:$0xff] }
  0xe5   : > { %3173 = vperm.xlu1 %6755, %v8048_v18   ;;  %3181 = vperm.xlu0 %6757, %v8075_v23   ;;  %v8572_v57 = vpop.permute.xlu2 %2966  ;;  %v8574_v15 = vpop.permute.xlu1 %2916  ;;  %v2197_v59 = vmul.f32 %v1320_v16, %v8484_v12  ;;  %v1324_v20 = vsub.f32 1.0, %v1323_v42  ;;  %vm1342_vm0 = vweird.f32 %v8565_v52 }
  0xe6   : > { %14146 = vst [vmem:[#allocation36_spill] sm:$0xff] %v8572_v57  ;;  %v8577_v61 = vpop.permute.xlu0 %2911  ;;  %v811_v19 = vpop.f32.mrf.mxu0  ;;  %v1334_v42 = vor.u32 1.1754944e-38, %v1333_v24 }
  0xe7   : > { %14147 = vst [vmem:[#allocation37_spill] sm:$0xff] %v8574_v15  ;;  %v8584_v18 = vadd.f32 %v8338_v60, %v811_v19  ;;  %2307 = vmatmul.f32.gmra.mxu1 %v2197_v59  ;;  %v1325_v23 = vmul.f32 %v7432_v38, %v1324_v20 }
  0xe8   : > { %14148 = vst [vmem:[#allocation38_spill] sm:$0xff] %v8577_v61 }
  0xe9   : > { %v7434_v9 = vpop.eup %7433  ;;  %v6484_v12 = vmul.f32 -1.442695, %v8584_v18  ;;  %6436 = vmatmul.msk.f32.gmra.mxu0 %vm574_vm1, %v527_v1  ;;  %v1326_v44 = vadd.f32 %v7432_v38, %v1325_v23 }
  0xea   : > { %v7436_v54 = vpop.eup %7435  ;;  %v8590_v2 = vadd.f32 1.0, %v7434_v9  ;;  %v1346_v9 = vand.u32 2147483647, %v8565_v52 }
  0xeb   : > { %7437 = vpow2.f32 %v6484_v12  ;;  %v1330_v16 = vsel %vm1329_vm13, %v7432_v38, %v1326_v44  ;;  %v1338_v59 = vmul.f32 %v7436_v54, %v8565_v52  ;;  %vm1343_vm15 = vweird.f32 %v7436_v54 }
  0xec   : > { %7439 = vrcp.f32 %v8590_v2  ;;  %3189 = vperm.xlu2 %6756, %v8103_v28   ;;  %v1335_v20 = vsel %vm1332_vm14, %v1334_v42, %v1330_v16  ;;  %v1348_v28 = vand.u32 2147483648, %v8565_v52  ;;  %vm1344_vm2 = vmor %vm1342_vm0, %vm1343_vm15  ;;  %vm1347_vm3 = vcmp.eq.f32.partialorder %v1346_v9, 8.507059e+37  ;;  %v529_v9 = vld [vmem:[%s13985_s2 + $0xd8] sm:$0xff] }
  0xed   : > { %3185 = vperm.xlu1 %6755, %v8070_v22   ;;  %3193 = vperm.xlu0 %6757, %v8097_v27   ;;  %v8597_v13 = vpop.permute.xlu2 %2981  ;;  %v8599_v19 = vpop.permute.xlu1 %2931  ;;  %v2198_v1 = vmul.f32 %v1335_v20, %v8509_v11  ;;  %v1339_v24 = vsub.f32 1.0, %v1338_v59  ;;  %vm1357_vm5 = vweird.f32 %v8590_v2 }
  0xee   : > { %14149 = vst [vmem:[#allocation39_spill] sm:$0xff] %v8597_v13  ;;  %v8602_v38 = vpop.permute.xlu0 %2926  ;;  %v814_v23 = vpop.f32.mrf.mxu0  ;;  %v1349_v59 = vor.u32 1.1754944e-38, %v1348_v28 }
  0xef   : > { %14150 = vst [vmem:[#allocation40_spill] sm:$0xff] %v8599_v19  ;;  %v8609_v22 = vadd.f32 %v8338_v60, %v814_v23  ;;  %2310 = vmatmul.f32.gmra.mxu1 %v2198_v1  ;;  %v1340_v27 = vmul.f32 %v7436_v54, %v1339_v24 }
  0xf0   : > { %14151 = vst [vmem:[#allocation41_spill] sm:$0xff] %v8602_v38 }
  0xf1   : > { %v7438_v12 = vpop.eup %7437  ;;  %v6485_v11 = vmul.f32 -1.442695, %v8609_v22  ;;  %6437 = vmatmul.msk.f32.gmra.mxu0 %vm574_vm1, %v528_v6  ;;  %v1341_v44 = vadd.f32 %v7436_v54, %v1340_v27 }
  0xf2   : > { %v7440_v42 = vpop.eup %7439  ;;  %v8615_v16 = vadd.f32 1.0, %v7438_v12  ;;  %v1361_v12 = vand.u32 2147483647, %v8590_v2 }
  0xf3   : > { %7441 = vpow2.f32 %v6485_v11  ;;  %v1345_v20 = vsel %vm1344_vm2, %v7436_v54, %v1341_v44  ;;  %v1353_v1 = vmul.f32 %v7440_v42, %v8590_v2  ;;  %vm1358_vm4 = vweird.f32 %v7440_v42 }
  0xf4   : > { %7443 = vrcp.f32 %v8615_v16  ;;  %3201 = vperm.xlu2 %6756, %v8125_v32   ;;  %v1350_v24 = vsel %vm1347_vm3, %v1349_v59, %v1345_v20  ;;  %v1363_v32 = vand.u32 2147483648, %v8590_v2  ;;  %vm1359_vm6 = vmor %vm1357_vm5, %vm1358_vm4  ;;  %vm1362_vm7 = vcmp.eq.f32.partialorder %v1361_v12, 8.507059e+37  ;;  %v530_v12 = vld [vmem:[%s13985_s2 + $0xe0] sm:$0xff] }
  0xf5   : > { %3197 = vperm.xlu1 %6755, %v8092_v26   ;;  %3205 = vperm.xlu0 %6757, %v8119_v31   ;;  %v8622_v52 = vpop.permute.xlu2 %2996  ;;  %v8624_v23 = vpop.permute.xlu1 %2946  ;;  %v2199_v6 = vmul.f32 %v1350_v24, %v8534_v10  ;;  %v1354_v28 = vsub.f32 1.0, %v1353_v1  ;;  %vm1372_vm9 = vweird.f32 %v8615_v16 }
  0xf6   : > { %14152 = vst [vmem:[#allocation42_spill] sm:$0xff] %v8622_v52  ;;  %v8627_v54 = vpop.permute.xlu0 %2941  ;;  %v817_v27 = vpop.f32.mrf.mxu0  ;;  %v1364_v1 = vor.u32 1.1754944e-38, %v1363_v32 }
  0xf7   : > { %14153 = vst [vmem:[#allocation43_spill] sm:$0xff] %v8624_v23  ;;  %v8634_v26 = vadd.f32 %v8338_v60, %v817_v27  ;;  %2313 = vmatmul.f32.gmra.mxu1 %v2199_v6  ;;  %v1355_v31 = vmul.f32 %v7440_v42, %v1354_v28 }
  0xf8   : > { %14154 = vst [vmem:[#allocation44_spill] sm:$0xff] %v8627_v54 }
  0xf9   : > { %v7442_v11 = vpop.eup %7441  ;;  %v6486_v10 = vmul.f32 -1.442695, %v8634_v26  ;;  %6438 = vmatmul.msk.f32.gmra.mxu0 %vm574_vm1, %v529_v9  ;;  %v1356_v44 = vadd.f32 %v7440_v42, %v1355_v31 }
  0xfa   : > { %v7444_v59 = vpop.eup %7443  ;;  %v8640_v20 = vadd.f32 1.0, %v7442_v11  ;;  %v1376_v11 = vand.u32 2147483647, %v8615_v16 }
  0xfb   : > { %7445 = vpow2.f32 %v6486_v10  ;;  %v1360_v24 = vsel %vm1359_vm6, %v7440_v42, %v1356_v44  ;;  %v1368_v6 = vmul.f32 %v7444_v59, %v8615_v16  ;;  %vm1373_vm8 = vweird.f32 %v7444_v59 }
  0xfc   : > { %7447 = vrcp.f32 %v8640_v20  ;;  %3213 = vperm.xlu2 %6756, %v8147_v36   ;;  %v1365_v28 = vsel %vm1362_vm7, %v1364_v1, %v1360_v24  ;;  %v1378_v36 = vand.u32 2147483648, %v8615_v16  ;;  %vm1374_vm10 = vmor %vm1372_vm9, %vm1373_vm8  ;;  %vm1377_vm11 = vcmp.eq.f32.partialorder %v1376_v11, 8.507059e+37 }
  0xfd   : > { %3209 = vperm.xlu1 %6755, %v8114_v30   ;;  %3217 = vperm.xlu0 %6757, %v8141_v35   ;;  %v8647_v2 = vpop.permute.xlu2 %3011  ;;  %v8649_v27 = vpop.permute.xlu1 %2961  ;;  %v2200_v9 = vmul.f32 %v1365_v28, %v8559_v14  ;;  %v1369_v32 = vsub.f32 1.0, %v1368_v6  ;;  %v538_v14 = vld [vmem:[%s13985_s2 + $0x120] sm:$0xff]  ;;  %vm1387_vm13 = vweird.f32 %v8640_v20 }
  0xfe   : > { %14155 = vst [vmem:[#allocation45_spill] sm:$0xff] %v8647_v2  ;;  %v8652_v42 = vpop.permute.xlu0 %2956  ;;  %v820_v31 = vpop.f32.mrf.mxu0  ;;  %6447 = vmatmul.msk.f32.vlgmr.msra.gmra.mxu3 %vm574_vm1, %v538_v14  ;;  %v1379_v28 = vor.u32 1.1754944e-38, %v1378_v36  ;;  %v531_v14 = vld [vmem:[%s13985_s2 + $0xe8] sm:$0xff] }
  0xff   : > { %14156 = vst [vmem:[#allocation46_spill] sm:$0xff] %v8649_v27  ;;  %v8659_v30 = vadd.f32 %v8338_v60, %v820_v31  ;;  %2316 = vmatmul.f32.gmra.mxu1 %v2200_v9  ;;  %v1370_v35 = vmul.f32 %v7444_v59, %v1369_v32 }
 0x100   : > { %14157 = vst [vmem:[#allocation47_spill] sm:$0xff] %v8652_v42 }
 0x101   : > { %v7446_v10 = vpop.eup %7445  ;;  %v6487_v44 = vmul.f32 -1.442695, %v8659_v30  ;;  %6439 = vmatmul.msk.f32.gmra.mxu0 %vm574_vm1, %v530_v12  ;;  %v1371_v1 = vadd.f32 %v7444_v59, %v1370_v35 }
 0x102   : > { %v7448_v24 = vpop.eup %7447  ;;  %v8669_v6 = vadd.f32 1.0, %v7446_v10  ;;  %v1391_v10 = vand.u32 2147483647, %v8640_v20 }
 0x103   : > { %7449 = vpow2.f32 %v6487_v44  ;;  %v1375_v9 = vsel %vm1374_vm10, %v7444_v59, %v1371_v1  ;;  %v1383_v32 = vmul.f32 %v7448_v24, %v8640_v20  ;;  %vm1388_vm12 = vweird.f32 %v7448_v24 }
 0x104   : > { %7451 = vrcp.f32 %v8669_v6  ;;  %3225 = vperm.xlu2 %6756, %v8167_v40   ;;  %v1380_v31 = vsel %vm1377_vm11, %v1379_v28, %v1375_v9  ;;  %v1393_v40 = vand.u32 2147483648, %v8640_v20  ;;  %vm1389_vm14 = vmor %vm1387_vm13, %vm1388_vm12  ;;  %vm1392_vm15 = vcmp.eq.f32.partialorder %v1391_v10, 8.507059e+37 }
 0x105   : > { %3221 = vperm.xlu1 %6755, %v8136_v34   ;;  %3229 = vperm.xlu0 %6757, %v8161_v39   ;;  %v8676_v16 = vpop.permute.xlu2 %3026  ;;  %v8678_v12 = vpop.permute.xlu1 %2976  ;;  %v2201_v36 = vmul.f32 %v1380_v31, %v8584_v18  ;;  %v1384_v35 = vsub.f32 1.0, %v1383_v32  ;;  %v539_v18 = vld [vmem:[%s13985_s2 + $0x128] sm:$0xff]  ;;  %vm1402_vm2 = vweird.f32 %v8669_v6 }
 0x106   : > { %14158 = vst [vmem:[#allocation48_spill] sm:$0xff] %v8676_v16  ;;  %v8681_v59 = vpop.permute.xlu0 %2971  ;;  %v823_v11 = vpop.f32.mrf.mxu0  ;;  %6448 = vmatmul.msk.f32.gmra.mxu3 %vm574_vm1, %v539_v18  ;;  %v1394_v31 = vor.u32 1.1754944e-38, %v1393_v40 }
 0x107   : > { %14159 = vst [vmem:[#allocation49_spill] sm:$0xff] %v8678_v12  ;;  %v8688_v34 = vadd.f32 %v8338_v60, %v823_v11  ;;  %2319 = vmatmul.f32.gmra.mxu1 %v2201_v36  ;;  %v1385_v39 = vmul.f32 %v7448_v24, %v1384_v35  ;;  %v7659_v11 = vld [vmem:[%s13986_s3 + $0xd8] sm:$0xff] }
 0x108   : > { %14160 = vst [vmem:[#allocation50_spill] sm:$0xff] %v8681_v59 }
 0x109   : > { %v7450_v44 = vpop.eup %7449  ;;  %v6488_v1 = vmul.f32 -1.442695, %v8688_v34  ;;  %6440 = vmatmul.msk.f32.gmra.mxu0 %vm574_vm1, %v531_v14  ;;  %v1386_v28 = vadd.f32 %v7448_v24, %v1385_v39  ;;  %v7660_v14 = vld [vmem:[%s13986_s3 + $0xd0] sm:$0xff] }
 0x10a   : > { %v7452_v9 = vpop.eup %7451  ;;  %v8698_v32 = vadd.f32 1.0, %v7450_v44 }
 0x10b   : > { %7453 = vpow2.f32 %v6488_v1  ;;  %v1390_v36 = vsel %vm1389_vm14, %v7448_v24, %v1386_v28  ;;  %v1398_v35 = vmul.f32 %v7452_v9, %v8669_v6  ;;  %v7661_v24 = vld [vmem:[%s13986_s3 + $0xe0] sm:$0xff]  ;;  %v532_v28 = vld [vmem:[%s13985_s2 + $0xf0] sm:$0xff]  ;;  %vm1403_vm0 = vweird.f32 %v7452_v9 }
 0x10c   : > { %7455 = vrcp.f32 %v8698_v32  ;;  %3237 = vperm.xlu2 %6756, %v7659_v11   ;;  %v1395_v20 = vsel %vm1392_vm15, %v1394_v31, %v1390_v36  ;;  %v1408_v31 = vand.u32 2147483648, %v8669_v6  ;;  %vm1404_vm3 = vmor %vm1402_vm2, %vm1403_vm0  ;;  %vm1417_vm6 = vweird.f32 %v8698_v32 }
 0x10d   : > { %3233 = vperm.xlu1 %6755, %v7660_v14   ;;  %3241 = vperm.xlu0 %6757, %v7661_v24   ;;  %v8711_v40 = vpop.permute.xlu2 %3041  ;;  %v8713_v39 = vpop.permute.xlu1 %2991  ;;  %v2202_v10 = vmul.f32 %v1395_v20, %v8609_v22  ;;  %v1399_v18 = vsub.f32 1.0, %v1398_v35  ;;  %v1406_v14 = vand.u32 2147483647, %v8669_v6  ;;  %v540_v22 = vld [vmem:[%s13985_s2 + $0x130] sm:$0xff] }
 0x10e   : > { %14161 = vst [vmem:[#allocation51_spill] sm:$0xff] %v8711_v40  ;;  %v8716_v44 = vpop.permute.xlu0 %2986  ;;  %v826_v1 = vpop.f32.mrf.mxu0  ;;  %6449 = vmatmul.msk.f32.gmra.mxu3 %vm574_vm1, %v540_v22 }
 0x10f   : > { %14162 = vst [vmem:[#allocation52_spill] sm:$0xff] %v8713_v39  ;;  %v8723_v36 = vadd.f32 %v8338_v60, %v826_v1  ;;  %2322 = vmatmul.f32.gmra.mxu1 %v2202_v10  ;;  %v1400_v11 = vmul.f32 %v7452_v9, %v1399_v18  ;;  %v1409_v18 = vor.u32 1.1754944e-38, %v1408_v31  ;;  %vm1407_vm4 = vcmp.eq.f32.partialorder %v1406_v14, 8.507059e+37 }
 0x110   : > { %14163 = vst [vmem:[#allocation53_spill] sm:$0xff] %v8716_v44 }
 0x111   : > { %v7454_v35 = vpop.eup %7453  ;;  %v6489_v20 = vmul.f32 -1.442695, %v8723_v36  ;;  %6441 = vmatmul.msk.f32.gmra.mxu0 %vm574_vm1, %v532_v28  ;;  %v1401_v24 = vadd.f32 %v7452_v9, %v1400_v11  ;;  %v7662_v28 = vld [vmem:[%s13986_s3 + $0xf0] sm:$0xff]  ;;  %v7663_v11 = vld [vmem:[%s13986_s3 + $0xe8] sm:$0xff] }
 0x112   : > { %v7456_v1 = vpop.eup %7455  ;;  %v8733_v10 = vadd.f32 1.0, %v7454_v35 }
 0x113   : > { %7457 = vpow2.f32 %v6489_v20  ;;  %v1405_v40 = vsel %vm1404_vm3, %v7452_v9, %v1401_v24  ;;  %v1413_v16 = vmul.f32 %v7456_v1, %v8698_v32  ;;  %v7664_v9 = vld [vmem:[%s13986_s3 + $0xf8] sm:$0xff]  ;;  %vm1418_vm5 = vweird.f32 %v7456_v1 }
 0x114   : > { %7459 = vrcp.f32 %v8733_v10  ;;  %3249 = vperm.xlu2 %6756, %v7662_v28   ;;  %v1410_v6 = vsel %vm1407_vm4, %v1409_v18, %v1405_v40  ;;  %v533_v24 = vld [vmem:[%s13985_s2 + $0xf8] sm:$0xff]  ;;  %v1423_v18 = vand.u32 2147483648, %v8698_v32  ;;  %vm1419_vm7 = vmor %vm1417_vm6, %vm1418_vm5  ;;  %vm1432_vm10 = vweird.f32 %v8733_v10 }
 0x115   : > { %3245 = vperm.xlu1 %6755, %v7663_v11   ;;  %3253 = vperm.xlu0 %6757, %v7664_v9   ;;  %v8746_v31 = vpop.permute.xlu2 %3056  ;;  %v8748_v14 = vpop.permute.xlu1 %3006  ;;  %v2203_v22 = vmul.f32 %v1410_v6, %v8634_v26  ;;  %v1414_v35 = vsub.f32 1.0, %v1413_v16  ;;  %v1421_v9 = vand.u32 2147483647, %v8698_v32  ;;  %v541_v26 = vld [vmem:[%s13985_s2 + $0x138] sm:$0xff] }
 0x116   : > { %14164 = vst [vmem:[#allocation54_spill] sm:$0xff] %v8746_v31  ;;  %v8751_v20 = vpop.permute.xlu0 %3001  ;;  %v829_v40 = vpop.f32.mrf.mxu0  ;;  %6450 = vmatmul.msk.f32.gmra.mxu3 %vm574_vm1, %v541_v26 }
 0x117   : > { %14165 = vst [vmem:[#allocation55_spill] sm:$0xff] %v8748_v14  ;;  %v8758_v28 = vadd.f32 %v8338_v60, %v829_v40  ;;  %2325 = vmatmul.f32.gmra.mxu1 %v2203_v22  ;;  %v1415_v11 = vmul.f32 %v7456_v1, %v1414_v35  ;;  %v1424_v35 = vor.u32 1.1754944e-38, %v1423_v18  ;;  %vm1422_vm8 = vcmp.eq.f32.partialorder %v1421_v9, 8.507059e+37 }
 0x118   : > { %14166 = vst [vmem:[#allocation56_spill] sm:$0xff] %v8751_v20 }
 0x119   : > { %v7458_v16 = vpop.eup %7457  ;;  %v6490_v6 = vmul.f32 -1.442695, %v8758_v28  ;;  %6442 = vmatmul.msk.f32.gmra.mxu0 %vm574_vm1, %v533_v24  ;;  %v1416_v31 = vadd.f32 %v7456_v1, %v1415_v11  ;;  %v7665_v24 = vld [vmem:[%s13986_s3 + $0x108] sm:$0xff]  ;;  %v7666_v11 = vld [vmem:[%s13986_s3 + $0x100] sm:$0xff] }
 0x11a   : > { %v7460_v40 = vpop.eup %7459  ;;  %v8768_v22 = vadd.f32 1.0, %v7458_v16 }
 0x11b   : > { %7461 = vpow2.f32 %v6490_v6  ;;  %v1420_v2 = vsel %vm1419_vm7, %v7456_v1, %v1416_v31  ;;  %v1428_v14 = vmul.f32 %v7460_v40, %v8733_v10  ;;  %v7667_v1 = vld [vmem:[%s13986_s3 + $0x110] sm:$0xff]  ;;  %v1438_v6 = vand.u32 2147483648, %v8733_v10 }
 0x11c   : > { %7463 = vrcp.f32 %v8768_v22  ;;  %3261 = vperm.xlu2 %6756, %v7665_v24   ;;  %v1425_v32 = vsel %vm1422_vm8, %v1424_v35, %v1420_v2  ;;  %v534_v2 = vld [vmem:[%s13985_s2 + $0x100] sm:$0xff]  ;;  %vm1433_vm9 = vweird.f32 %v7460_v40  ;;  %vm1447_vm14 = vweird.f32 %v8768_v22 }
 0x11d   : > { %3257 = vperm.xlu1 %6755, %v7666_v11   ;;  %3265 = vperm.xlu0 %6757, %v7667_v1   ;;  %v8781_v31 = vpop.permute.xlu1 %3021  ;;  %v2204_v18 = vmul.f32 %v1425_v32, %v8659_v30  ;;  %v1429_v9 = vsub.f32 1.0, %v1428_v14  ;;  %v1436_v11 = vand.u32 2147483647, %v8733_v10  ;;  %v542_v32 = vld [vmem:[%s13985_s2 + $0x140] sm:$0xff]  ;;  %vm1434_vm11 = vmor %vm1432_vm10, %vm1433_vm9  ;;  %vm2486_vm8 = vcmask 15360  }
 0x11e   : > { %14167 = vst [vmem:[#allocation57_spill] sm:$0xff] %v8781_v31  ;;  %v8784_v26 = vpop.permute.xlu0 %3016  ;;  %v8786_v16 = vpop.permute.xlu2 %3133  ;;  %6451 = vmatmul.msk.f32.gmra.mxu3 %vm574_vm1, %v542_v32  ;;  %v7668_v10 = vld [vmem:[%s13986_s3 + $0x120] sm:$0xff] }
 0x11f   : > { %14168 = vst [vmem:[#allocation58_spill] sm:$0xff] %v8784_v26  ;;  %v832_v35 = vpop.f32.mrf.mxu0  ;;  %2328 = vmatmul.f32.gmra.mxu1 %v2204_v18  ;;  %v1430_v24 = vmul.f32 %v7460_v40, %v1429_v9  ;;  %v1439_v9 = vor.u32 1.1754944e-38, %v1438_v6  ;;  %vm1437_vm12 = vcmp.eq.f32.partialorder %v1436_v11, 8.507059e+37 }
 0x120   : > { %14169 = vst [vmem:[#allocation59_spill] sm:$0xff] %v8786_v16  ;;  %v8794_v1 = vadd.f32 %v8338_v60, %v832_v35 }
 0x121   : > { %v7462_v30 = vpop.eup %7461  ;;  %6443 = vmatmul.msk.f32.gmra.mxu0 %vm574_vm1, %v534_v2  ;;  %v1431_v14 = vadd.f32 %v7460_v40, %v1430_v24  ;;  %v7669_v24 = vld [vmem:[%s13986_s3 + $0x118] sm:$0xff] }
 0x122   : > { %v7464_v31 = vpop.eup %7463  ;;  %v8801_v26 = vadd.f32 1.0, %v7462_v30  ;;  %v6491_v18 = vmul.f32 -1.442695, %v8794_v1 }
 0x123   : > { %v1435_v60 = vsel %vm1434_vm11, %v7460_v40, %v1431_v14  ;;  %v1443_v2 = vmul.f32 %v7464_v31, %v8768_v22  ;;  %v7670_v40 = vld [vmem:[%s13986_s3 + $0x128] sm:$0xff]  ;;  %vm1448_vm13 = vweird.f32 %v7464_v31 }
 0x124   : > { %7465 = vrcp.f32 %v8801_v26  ;;  %3273 = vperm.xlu2 %6756, %v7668_v10   ;;  %v1440_v35 = vsel %vm1437_vm12, %v1439_v9, %v1435_v60  ;;  %v1453_v9 = vand.u32 2147483648, %v8768_v22  ;;  %vm1449_vm15 = vmor %vm1447_vm14, %vm1448_vm13  ;;  %vm1462_vm3 = vweird.f32 %v8801_v26 }
 0x125   : > { %7467 = vpow2.f32 %v6491_v18  ;;  %3269 = vperm.xlu1 %6755, %v7669_v24   ;;  %3277 = vperm.xlu0 %6757, %v7670_v40   ;;  %v8816_v6 = vpop.permute.xlu1 %3036  ;;  %v2205_v11 = vmul.f32 %v1440_v35, %v8688_v34  ;;  %v1444_v30 = vsub.f32 1.0, %v1443_v2  ;;  %v535_v18 = vld [vmem:[%s13985_s2 + $0x108] sm:$0xff]  ;;  %v1451_v24 = vand.u32 2147483647, %v8768_v22  ;;  %v8831_v34 = vld [vmem:[%s13989_s6] ss:$0 sm:$0xff] }
 0x126   : > { %14170 = vst [vmem:[#allocation60_spill] sm:$0xff] %v8816_v6  ;;  %v8819_v14 = vpop.permute.xlu0 %3031  ;;  %v8821_v32 = vpop.permute.xlu2 %3145  ;;  %v543_v40 = vld [vmem:[%s13985_s2 + $0x148] sm:$0xff]  ;;  %v1454_v6 = vor.u32 1.1754944e-38, %v1453_v9  ;;  %v7672_v22 = vld [vmem:[%s13986_s3 + $0x138] sm:$0xff]  ;;  %v7673_v9 = vld [vmem:[%s13986_s3 + $0x130] sm:$0xff] }
 0x127   : > { %14171 = vst [vmem:[#allocation61_spill] sm:$0xff] %v8819_v14  ;;  %v835_v60 = vpop.f32.mrf.mxu0  ;;  %2331 = vmatmul.f32.gmra.mxu1 %v2205_v11  ;;  %v1445_v10 = vmul.f32 %v7464_v31, %v1444_v30  ;;  %6452 = vmatmul.msk.f32.gmra.mxu3 %vm574_vm1, %v543_v40  ;;  %vm1452_vm0 = vcmp.eq.f32.partialorder %v1451_v24, 8.507059e+37 }
 0x128   : > { %14172 = vst [vmem:[#allocation62_spill] sm:$0xff] %v8821_v32  ;;  %v8834_v2 = vadd.f32 %v8831_v34, %v835_v60 }
 0x129   : > { %6444 = vmatmul.msk.f32.gmra.mxu0 %vm574_vm1, %v535_v18  ;;  %v1446_v35 = vadd.f32 %v7464_v31, %v1445_v10 }
 0x12a   : > { %v7466_v11 = vpop.eup %7465  ;;  %v6492_v30 = vmul.f32 -1.442695, %v8834_v2 }
 0x12b   : > { %v7468_v14 = vpop.eup %7467  ;;  %v1450_v52 = vsel %vm1449_vm15, %v7464_v31, %v1446_v35  ;;  %v1458_v60 = vmul.f32 %v7466_v11, %v8801_v26  ;;  %v7674_v31 = vld [vmem:[%s13986_s3 + $0x140] sm:$0xff]  ;;  %vm1463_vm2 = vweird.f32 %v7466_v11 }
 0x12c   : > { %v8844_v18 = vadd.f32 1.0, %v7468_v14  ;;  %7469 = vpow2.f32 %v6492_v30  ;;  %3285 = vperm.xlu2 %6756, %v7672_v22   ;;  %v1455_v10 = vsel %vm1452_vm0, %v1454_v6, %v1450_v52  ;;  %v536_v6 = vld [vmem:[%s13985_s2 + $0x110] sm:$0xff]  ;;  %v1468_v30 = vand.u32 2147483648, %v8801_v26  ;;  %vm1464_vm4 = vmor %vm1462_vm3, %vm1463_vm2 }
 0x12d   : > { %3281 = vperm.xlu1 %6755, %v7673_v9   ;;  %3289 = vperm.xlu0 %6757, %v7674_v31   ;;  %v8855_v24 = vpop.permute.xlu1 %3051  ;;  %v2206_v14 = vmul.f32 %v1455_v10, %v8723_v36  ;;  %v1459_v35 = vsub.f32 1.0, %v1458_v60  ;;  %v1466_v31 = vand.u32 2147483647, %v8801_v26  ;;  %v544_v10 = vld [vmem:[%s13985_s2 + $0x150] sm:$0xff] }
 0x12e   : > { %14173 = vst [vmem:[#allocation63_spill] sm:$0xff] %v8855_v24  ;;  %7471 = vrcp.f32 %v8844_v18  ;;  %v8859_v40 = vpop.permute.xlu0 %3046  ;;  %v8861_v52 = vpop.permute.xlu2 %3153  ;;  %v7675_v26 = vld [vmem:[%s13986_s3 + $0x150] sm:$0xff]  ;;  %vm1477_vm7 = vweird.f32 %v8844_v18 }
 0x12f   : > { %14174 = vst [vmem:[#allocation64_spill] sm:$0xff] %v8859_v40  ;;  %v838_v22 = vpop.f32.mrf.mxu0  ;;  %2334 = vmatmul.f32.gmra.mxu1 %v2206_v14  ;;  %v1460_v9 = vmul.f32 %v7466_v11, %v1459_v35  ;;  %v1469_v14 = vor.u32 1.1754944e-38, %v1468_v30  ;;  %6453 = vmatmul.msk.f32.gmra.mxu3 %vm574_vm1, %v544_v10  ;;  %vm1467_vm5 = vcmp.eq.f32.partialorder %v1466_v31, 8.507059e+37  ;;  %v7676_v30 = vld [vmem:[%s13986_s3 + $0x148] sm:$0xff] }
 0x130   : > { %14175 = vst [vmem:[#allocation65_spill] sm:$0xff] %v8861_v52  ;;  %v8869_v36 = vadd.f32 %v8831_v34, %v838_v22 }
 0x131   : > { %6445 = vmatmul.msk.f32.gmra.mxu0 %vm574_vm1, %v536_v6  ;;  %v1461_v60 = vadd.f32 %v7466_v11, %v1460_v9 }
 0x132   : > { %v7470_v24 = vpop.eup %7469  ;;  %v6493_v40 = vmul.f32 -1.442695, %v8869_v36 }
 0x133   : > { %v8878_v35 = vadd.f32 1.0, %v7470_v24  ;;  %v1465_v22 = vsel %vm1464_vm4, %v7466_v11, %v1461_v60  ;;  %v7677_v11 = vld [vmem:[%s13986_s3 + $0x158] sm:$0xff] }
 0x134   : > { %v7472_v20 = vpop.eup %7471  ;;  %7473 = vpow2.f32 %v6493_v40  ;;  %3297 = vperm.xlu2 %6756, %v7675_v26   ;;  %v1470_v6 = vsel %vm1467_vm5, %v1469_v14, %v1465_v22  ;;  %v537_v60 = vld [vmem:[%s13985_s2 + $0x118] sm:$0xff] }
 0x135   : > { %7475 = vrcp.f32 %v8878_v35  ;;  %3293 = vperm.xlu1 %6755, %v7676_v30   ;;  %3301 = vperm.xlu0 %6757, %v7677_v11   ;;  %v2207_v24 = vmul.f32 %v1470_v6, %v8758_v28  ;;  %v1473_v40 = vmul.f32 %v7472_v20, %v8844_v18  ;;  %v1483_v28 = vand.u32 2147483648, %v8844_v18  ;;  %v8909_v6 = vld [vmem:[%s13991_s8] ss:$0 sm:$0xff] }
 0x136   : > { %v8892_v9 = vpop.permute.xlu0 %3061  ;;  %v8894_v31 = vpop.permute.xlu2 %3165  ;;  %vm1478_vm6 = vweird.f32 %v7472_v20  ;;  %v1481_v11 = vand.u32 2147483647, %v8844_v18  ;;  %v7680_v18 = vld [vmem:[%s13986_s3 + $0x170] sm:$0xff]  ;;  %vm1492_vm12 = vweird.f32 %v8878_v35 }
 0x137   : > { %14176 = vst [vmem:[#allocation66_spill] sm:$0xff] %v8892_v9  ;;  %v8899_v10 = vpop.permute.xlu1 %3129  ;;  %v841_v14 = vpop.f32.mrf.mxu0  ;;  %2337 = vmatmul.f32.gmra.mxu1 %v2207_v24  ;;  %v1474_v22 = vsub.f32 1.0, %v1473_v40  ;;  %v545_v24 = vld [vmem:[%s13985_s2 + $0x158] sm:$0xff]  ;;  %vm1479_vm9 = vmor %vm1477_vm7, %vm1478_vm6  ;;  %v1484_v12 = vor.u32 1.1754944e-38, %v1483_v28 }
 0x138   : > { %14177 = vst [vmem:[#allocation67_spill] sm:$0xff] %v8894_v31  ;;  %v8902_v26 = vadd.f32 %v8831_v34, %v841_v14  ;;  %6454 = vmatmul.msk.f32.gmra.mxu3 %vm574_vm1, %v545_v24  ;;  %vm1482_vm10 = vcmp.eq.f32.partialorder %v1481_v11, 8.507059e+37 }
 0x139   : > { %14178 = vst [vmem:[#allocation68_spill] sm:$0xff] %v8899_v10  ;;  %6446 = vmatmul.msk.f32.gmra.mxu0 %vm574_vm1, %v537_v60  ;;  %v1475_v30 = vmul.f32 %v7472_v20, %v1474_v22  ;;  %v7678_v22 = vld [vmem:[%s13986_s3 + $0x168] sm:$0xff]  ;;  %v7691_v10 = vld [vmem:[%s13986_s3 + $0x1c0] sm:$0xff] }
 0x13a   : > { %v7474_v40 = vpop.eup %7473  ;;  %v6494_v14 = vmul.f32 -1.442695, %v8902_v26 }
 0x13b   : > { %v7476_v9 = vpop.eup %7475  ;;  %v8917_v60 = vadd.f32 1.0, %v7474_v40  ;;  %v1476_v39 = vadd.f32 %v7472_v20, %v1475_v30  ;;  %v7679_v30 = vld [vmem:[%s13986_s3 + $0x160] sm:$0xff] }
 0x13c   : > { %7477 = vpow2.f32 %v6494_v14  ;;  %3309 = vperm.xlu2 %6756, %v7678_v22   ;;  %v2293_v44 = vpop.f32.mrf.mxu1  ;;  %v1488_v13 = vmul.f32 %v7476_v9, %v8878_v35  ;;  %vm1493_vm11 = vweird.f32 %v7476_v9 }
 0x13d   : > { %7479 = vrcp.f32 %v8917_v60  ;;  %3305 = vperm.xlu1 %6755, %v7679_v30   ;;  %3313 = vperm.xlu0 %6757, %v7680_v18   ;;  %v8933_v24 = vadd.f32 %v8909_v6, %v2293_v44  ;;  %v1480_v40 = vsel %vm1479_vm9, %v7472_v20, %v1476_v39  ;;  %v1498_v18 = vand.u32 2147483648, %v8878_v35  ;;  %vm1494_vm13 = vmor %vm1492_vm12, %vm1493_vm11 }
 0x13e   : > { %v8935_v28 = vpop.permute.xlu2 %3177  ;;  %v1485_v14 = vsel %vm1482_vm10, %v1484_v12, %v1480_v40  ;;  %v1489_v22 = vsub.f32 1.0, %v1488_v13  ;;  %v1496_v39 = vand.u32 2147483647, %v8878_v35  ;;  %v546_v13 = vld [vmem:[%s13985_s2 + $0x160] sm:$0xff]  ;;  %v7682_v35 = vld [vmem:[%s13986_s3 + $0x178] sm:$0xff]  ;;  %v1513_v27 = vand.u32 2147483648, %v8917_v60 }
 0x13f   : > { %14179 = vst [vmem:[#allocation69_spill] sm:$0xff] %v8935_v28  ;;  %v8939_v57 = vpop.permute.xlu1 %3141  ;;  %v8941_v30 = vpop.permute.xlu0 %3137  ;;  %v2208_v59 = vmul.f32 %v1485_v14, %v8794_v1  ;;  %vm1507_vm0 = vweird.f32 %v8917_v60 }
 0x140   : > { %2487 = vst.msk [vmem:[#allocation2] sm:$0xff] %vm2486_vm8, %v8933_v24  ;;  %v844_v31 = vpop.f32.mrf.mxu0  ;;  %v1490_v44 = vmul.f32 %v7476_v9, %v1489_v22  ;;  %6455 = vmatmul.msk.f32.gmra.mxu3 %vm574_vm1, %v546_v13  ;;  %v1499_v22 = vor.u32 1.1754944e-38, %v1498_v18  ;;  %vm1497_vm14 = vcmp.eq.f32.partialorder %v1496_v39, 8.507059e+37  ;;  %v7683_v18 = vld [vmem:[%s13986_s3 + $0x188] sm:$0xff] }
 0x141   : > { %14180 = vst [vmem:[#allocation70_spill] sm:$0xff] %v8939_v57  ;;  %v8947_v20 = vadd.f32 %v8831_v34, %v844_v31  ;;  %2340 = vmatmul.f32.gmra.mxu1 %v2208_v59  ;;  %v7681_v59 = vld [vmem:[%s13986_s3 + $0x180] sm:$0xff] }
 0x142   : > { %14181 = vst [vmem:[#allocation71_spill] sm:$0xff] %v8941_v30  ;;  %v7478_v12 = vpop.eup %7477  ;;  %v1491_v11 = vadd.f32 %v7476_v9, %v1490_v44 }
 0x143   : > { %v7480_v1 = vpop.eup %7479  ;;  %v8954_v40 = vadd.f32 1.0, %v7478_v12  ;;  %v6495_v14 = vmul.f32 -1.442695, %v8947_v20 }
 0x144   : > { %3321 = vperm.xlu2 %6756, %v7681_v59   ;;  %v2296_v31 = vpop.f32.mrf.mxu1  ;;  %v1495_v28 = vsel %vm1494_vm13, %v7476_v9, %v1491_v11  ;;  %v1503_v44 = vmul.f32 %v7480_v1, %v8917_v60  ;;  %vm1508_vm15 = vweird.f32 %v7480_v1 }
 0x145   : > { %7481 = vrcp.f32 %v8954_v40  ;;  %3317 = vperm.xlu1 %6755, %v7682_v35   ;;  %3325 = vperm.xlu0 %6757, %v7683_v18   ;;  %v8969_v13 = vadd.f32 %v8909_v6, %v2296_v31  ;;  %v1500_v12 = vsel %vm1497_vm14, %v1499_v22, %v1495_v28  ;;  %v1511_v28 = vand.u32 2147483647, %v8917_v60  ;;  %v547_v22 = vld [vmem:[%s13985_s2 + $0x168] sm:$0xff]  ;;  %vm8990_vm2 = vmor %vm1507_vm0, %vm1508_vm15 }
 0x146   : > { %7483 = vpow2.f32 %v6495_v14  ;;  %v8971_v9 = vpop.permute.xlu2 %3189  ;;  %v2209_v39 = vmul.f32 %v1500_v12, %v8834_v2  ;;  %v1504_v11 = vsub.f32 1.0, %v1503_v44  ;;  %vm1522_vm5 = vweird.f32 %v8954_v40 }
 0x147   : > { %14182 = vst [vmem:[#allocation72_spill] sm:$0xff] %v8971_v9  ;;  %v8976_v59 = vpop.permute.xlu1 %3149  ;;  %v8978_v35 = vpop.permute.xlu0 %3157  ;;  %vm1512_vm3 = vcmp.eq.f32.partialorder %v1511_v28, 8.507059e+37 }
 0x148   : > { %2488 = vst.msk [vmem:[#allocation2 + $0x8] sm:$0xff] %vm2486_vm8, %v8969_v13  ;;  %v847_v18 = vpop.f32.mrf.mxu0  ;;  %v1505_v42 = vmul.f32 %v7480_v1, %v1504_v11  ;;  %v1514_v11 = vor.u32 1.1754944e-38, %v1513_v27  ;;  %6456 = vmatmul.msk.f32.gmra.mxu3 %vm574_vm1, %v547_v22  ;;  %v7685_v27 = vld [vmem:[%s13986_s3 + $0x190] sm:$0xff]  ;;  %v7686_v22 = vld [vmem:[%s13986_s3 + $0x1a0] sm:$0xff] }
 0x149   : > { %14183 = vst [vmem:[#allocation73_spill] sm:$0xff] %v8976_v59  ;;  %v8983_v14 = vadd.f32 %v8831_v34, %v847_v18  ;;  %2343 = vmatmul.f32.gmra.mxu1 %v2209_v39 }
 0x14a   : > { %14184 = vst [vmem:[#allocation74_spill] sm:$0xff] %v8978_v35  ;;  %v1506_v2 = vadd.f32 %v7480_v1, %v1505_v42  ;;  %v7684_v42 = vld [vmem:[%s13986_s3 + $0x198] sm:$0xff] }
 0x14b   : > { %v7482_v31 = vpop.eup %7481  ;;  %v6496_v44 = vmul.f32 -1.442695, %v8983_v14 }
 0x14c   : > { %v7484_v18 = vpop.eup %7483  ;;  %3333 = vperm.xlu2 %6756, %v7684_v42   ;;  %v2299_v60 = vpop.f32.mrf.mxu1  ;;  %v1510_v39 = vsel %vm8990_vm2, %v7480_v1, %v1506_v2  ;;  %v1518_v9 = vmul.f32 %v7482_v31, %v8954_v40  ;;  %vm1523_vm4 = vweird.f32 %v7482_v31 }
 0x14d   : > { %v9001_v52 = vadd.f32 1.0, %v7484_v18  ;;  %7485 = vpow2.f32 %v6496_v44  ;;  %3329 = vperm.xlu1 %6755, %v7685_v27   ;;  %3337 = vperm.xlu0 %6757, %v7686_v22   ;;  %v9010_v42 = vadd.f32 %v8909_v6, %v2299_v60  ;;  %v1515_v1 = vsel %vm1512_vm3, %v1514_v11, %v1510_v39  ;;  %vm9032_vm6 = vmor %vm1522_vm5, %vm1523_vm4 }
 0x14e   : > { %v9012_v28 = vpop.permute.xlu2 %3201  ;;  %v2210_v2 = vmul.f32 %v1515_v1, %v8869_v36  ;;  %v1519_v12 = vsub.f32 1.0, %v1518_v9  ;;  %v1528_v27 = vand.u32 2147483648, %v8954_v40  ;;  %v1526_v11 = vand.u32 2147483647, %v8954_v40  ;;  %v548_v9 = vld [vmem:[%s13985_s2 + $0x170] sm:$0xff] }
 0x14f   : > { %14187 = vst [vmem:[#allocation75_spill] sm:$0xff] %v9012_v28  ;;  %7487 = vrcp.f32 %v9001_v52  ;;  %v9018_v44 = vpop.permute.xlu1 %3161  ;;  %v9020_v18 = vpop.permute.xlu0 %3169  ;;  %v7687_v40 = vld [vmem:[%s13986_s3 + $0x1b0] sm:$0xff]  ;;  %vm1537_vm10 = vweird.f32 %v9001_v52 }
 0x150   : > { %2489 = vst.msk [vmem:[#allocation2 + $0x10] sm:$0xff] %vm2486_vm8, %v9010_v42  ;;  %v850_v22 = vpop.f32.mrf.mxu0  ;;  %v1520_v60 = vmul.f32 %v7482_v31, %v1519_v12  ;;  %v1529_v12 = vor.u32 1.1754944e-38, %v1528_v27  ;;  %6457 = vmatmul.msk.f32.gmra.mxu3 %vm574_vm1, %v548_v9  ;;  %vm1527_vm7 = vcmp.eq.f32.partialorder %v1526_v11, 8.507059e+37  ;;  %v7688_v27 = vld [vmem:[%s13986_s3 + $0x1a8] sm:$0xff]  ;;  %v7689_v9 = vld [vmem:[%s13986_s3 + $0x1b8] sm:$0xff] }
 0x151   : > { %14188 = vst [vmem:[#allocation76_spill] sm:$0xff] %v9018_v44  ;;  %v9025_v39 = vadd.f32 %v8831_v34, %v850_v22  ;;  %2346 = vmatmul.f32.gmra.mxu1 %v2210_v2 }
 0x152   : > { %14189 = vst [vmem:[#allocation77_spill] sm:$0xff] %v9020_v18  ;;  %v1521_v36 = vadd.f32 %v7482_v31, %v1520_v60 }
 0x153   : > { %v7486_v1 = vpop.eup %7485  ;;  %v6497_v28 = vmul.f32 -1.442695, %v9025_v39 }
 0x154   : > { %v9037_v22 = vadd.f32 1.0, %v7486_v1  ;;  %3345 = vperm.xlu2 %6756, %v7687_v40   ;;  %v2302_v2 = vpop.f32.mrf.mxu1  ;;  %v1525_v60 = vsel %vm9032_vm6, %v7482_v31, %v1521_v36 }
 0x155   : > { %v7488_v18 = vpop.eup %7487  ;;  %7489 = vpow2.f32 %v6497_v28  ;;  %3341 = vperm.xlu1 %6755, %v7688_v27   ;;  %3349 = vperm.xlu0 %6757, %v7689_v9   ;;  %v9051_v1 = vadd.f32 %v8909_v6, %v2302_v2  ;;  %v1530_v40 = vsel %vm1527_vm7, %v1529_v12, %v1525_v60  ;;  %v1543_v12 = vand.u32 2147483648, %v9001_v52 }
 0x156   : > { %7491 = vrcp.f32 %v9037_v22  ;;  %v9054_v31 = vpop.permute.xlu2 %3213  ;;  %v2211_v28 = vmul.f32 %v1530_v40, %v8902_v26  ;;  %v1533_v44 = vmul.f32 %v7488_v18, %v9001_v52  ;;  %vm1538_vm9 = vweird.f32 %v7488_v18  ;;  %v549_v40 = vld [vmem:[%s13985_s2 + $0x178] sm:$0xff] }
 0x157   : > { %14192 = vst [vmem:[#allocation78_spill] sm:$0xff] %v9054_v31  ;;  %v9060_v11 = vpop.permute.xlu1 %3173  ;;  %v9062_v36 = vpop.permute.xlu0 %3181  ;;  %v1541_v26 = vand.u32 2147483647, %v9001_v52  ;;  %vm1539_vm11 = vmor %vm1537_vm10, %vm1538_vm9  ;;  %v1556_v57 = vand.u32 2147483647, %v9037_v22  ;;  %v1558_v21 = vand.u32 2147483648, %v9037_v22  ;;  %vm1552_vm14 = vweird.f32 %v9037_v22 }
 0x158   : > { %2490 = vst.msk [vmem:[#allocation2 + $0x18] sm:$0xff] %vm2486_vm8, %v9051_v1  ;;  %v853_v27 = vpop.f32.mrf.mxu0  ;;  %v1534_v9 = vsub.f32 1.0, %v1533_v44  ;;  %6458 = vmatmul.msk.f32.gmra.mxu3 %vm574_vm1, %v549_v40 }
 0x159   : > { %14193 = vst [vmem:[#allocation79_spill] sm:$0xff] %v9060_v11  ;;  %v9065_v2 = vadd.f32 %v8831_v34, %v853_v27  ;;  %2349 = vmatmul.f32.gmra.mxu1 %v2211_v28  ;;  %v7690_v28 = vld [vmem:[%s13986_s3 + $0x1c8] sm:$0xff]  ;;  %vm1542_vm12 = vcmp.eq.f32.partialorder %v1541_v26, 8.507059e+37  ;;  %vm1557_vm0 = vcmp.eq.f32.partialorder %v1556_v57, 8.507059e+37 }
 0x15a   : > { %14194 = vst [vmem:[#allocation80_spill] sm:$0xff] %v9062_v36  ;;  %v1535_v60 = vmul.f32 %v7488_v18, %v1534_v9 }
 0x15b   : > { %v7490_v35 = vpop.eup %7489  ;;  %v6498_v11 = vmul.f32 -1.442695, %v9065_v2 }
 0x15c   : > { %v7492_v44 = vpop.eup %7491  ;;  %v9074_v36 = vadd.f32 1.0, %v7490_v35  ;;  %3357 = vperm.xlu2 %6756, %v7690_v28   ;;  %v2305_v27 = vpop.f32.mrf.mxu1  ;;  %v1536_v9 = vadd.f32 %v7488_v18, %v1535_v60  ;;  %v7692_v35 = vld [vmem:[%s13986_s3 + $0x1d0] sm:$0xff]  ;;  %v1544_v28 = vor.u32 1.1754944e-38, %v1543_v12 }
 0x15d   : > { %7493 = vpow2.f32 %v6498_v11  ;;  %3353 = vperm.xlu1 %6755, %v7691_v10   ;;  %3361 = vperm.xlu0 %6757, %v7692_v35   ;;  %v9087_v40 = vadd.f32 %v8909_v6, %v2305_v27  ;;  %v1548_v60 = vmul.f32 %v7492_v44, %v9037_v22  ;;  %vm1553_vm13 = vweird.f32 %v7492_v44  ;;  %v7694_v22 = vld [vmem:[%s13986_s3 + $0x1d8] sm:$0xff] }
 0x15e   : > { %7495 = vrcp.f32 %v9074_v36  ;;  %v9092_v52 = vpop.permute.xlu2 %3225  ;;  %v1540_v11 = vsel %vm1539_vm11, %v7488_v18, %v1536_v9  ;;  %vm1554_vm15 = vmor %vm1552_vm14, %vm1553_vm13  ;;  %vm1567_vm3 = vweird.f32 %v9074_v36 }
 0x15f   : > { %14195 = vst [vmem:[#allocation81_spill] sm:$0xff] %v9092_v52  ;;  %v9096_v10 = vpop.permute.xlu1 %3185  ;;  %v9098_v35 = vpop.permute.xlu0 %3193  ;;  %v1545_v27 = vsel %vm1542_vm12, %v1544_v28, %v1540_v11  ;;  %v1549_v30 = vsub.f32 1.0, %v1548_v60  ;;  %v1559_v11 = vor.u32 1.1754944e-38, %v1558_v21 }
 0x160   : > { %2491 = vst.msk [vmem:[#allocation2 + $0x20] sm:$0xff] %vm2486_vm8, %v9087_v40  ;;  %v856_v16 = vpop.f32.mrf.mxu0  ;;  %v2212_v12 = vmul.f32 %v1545_v27, %v8947_v20  ;;  %v550_v20 = vld [vmem:[%s13985_s2 + $0x180] sm:$0xff]  ;;  %v7695_v27 = vld [vmem:[%s13986_s3 + $0x1e8] sm:$0xff] }
 0x161   : > { %14196 = vst [vmem:[#allocation82_spill] sm:$0xff] %v9096_v10  ;;  %v9104_v52 = vadd.f32 %v8831_v34, %v856_v16  ;;  %v1550_v18 = vmul.f32 %v7492_v44, %v1549_v30  ;;  %v7693_v16 = vld [vmem:[%s13986_s3 + $0x1e0] sm:$0xff]  ;;  %6459 = vmatmul.msk.f32.gmra.mxu3 %vm574_vm1, %v550_v20 }
 0x162   : > { %14197 = vst [vmem:[#allocation83_spill] sm:$0xff] %v9098_v35  ;;  %2352 = vmatmul.f32.gmra.mxu1 %v2212_v12 }
 0x163   : > { %v7494_v26 = vpop.eup %7493  ;;  %v6499_v9 = vmul.f32 -1.442695, %v9104_v52  ;;  %v1551_v10 = vadd.f32 %v7492_v44, %v1550_v18 }
 0x164   : > { %v9111_v28 = vpop.eup %7495  ;;  %v9113_v60 = vadd.f32 1.0, %v7494_v26  ;;  %3369 = vperm.xlu2 %6756, %v7693_v16   ;;  %v2308_v30 = vpop.f32.mrf.mxu1 }
 0x165   : > { %7497 = vpow2.f32 %v6499_v9  ;;  %3365 = vperm.xlu1 %6755, %v7694_v22   ;;  %3373 = vperm.xlu0 %6757, %v7695_v27   ;;  %v9126_v12 = vadd.f32 %v8909_v6, %v2308_v30  ;;  %v1555_v18 = vsel %vm1554_vm15, %v7492_v44, %v1551_v10  ;;  %v1563_v21 = vmul.f32 %v9111_v28, %v9074_v36 }
 0x166   : > { %7499 = vrcp.f32 %v9113_v60  ;;  %v9131_v57 = vpop.permute.xlu2 %3237  ;;  %v1560_v26 = vsel %vm1557_vm0, %v1559_v11, %v1555_v18  ;;  %v1573_v44 = vand.u32 2147483648, %v9074_v36  ;;  %vm1568_vm2 = vweird.f32 %v9111_v28 }
 0x167   : > { %14198 = vst [vmem:[#allocation84_spill] sm:$0xff] %v9131_v57  ;;  %v9135_v9 = vpop.permute.xlu1 %3197  ;;  %v9137_v20 = vpop.permute.xlu0 %3205  ;;  %v2213_v16 = vmul.f32 %v1560_v26, %v8983_v14  ;;  %v1564_v30 = vsub.f32 1.0, %v1563_v21  ;;  %v1571_v11 = vand.u32 2147483647, %v9074_v36  ;;  %v551_v14 = vld [vmem:[%s13985_s2 + $0x188] sm:$0xff]  ;;  %vm9160_vm4 = vmor %vm1567_vm3, %vm1568_vm2  ;;  %v7697_v36 = vld [vmem:[%s13986_s3 + $0x1f0] sm:$0xff]  ;;  %vm1582_vm7 = vweird.f32 %v9113_v60 }
 0x168   : > { %2492 = vst.msk [vmem:[#allocation2 + $0x28] sm:$0xff] %vm2486_vm8, %v9126_v12  ;;  %v859_v22 = vpop.f32.mrf.mxu0 }
 0x169   : > { %14199 = vst [vmem:[#allocation85_spill] sm:$0xff] %v9135_v9  ;;  %v9142_v10 = vadd.f32 %v8831_v34, %v859_v22  ;;  %v1565_v27 = vmul.f32 %v9111_v28, %v1564_v30  ;;  %6460 = vmatmul.msk.f32.gmra.mxu3 %vm574_vm1, %v551_v14  ;;  %vm1572_vm5 = vcmp.eq.f32.partialorder %v1571_v11, 8.507059e+37 }
 0x16a   : > { %14200 = vst [vmem:[#allocation86_spill] sm:$0xff] %v9137_v20  ;;  %2355 = vmatmul.f32.gmra.mxu1 %v2213_v16  ;;  %v7696_v16 = vld [vmem:[%s13986_s3 + $0x1f8] sm:$0xff] }
 0x16b   : > { %v7498_v18 = vpop.eup %7497  ;;  %v6500_v35 = vmul.f32 -1.442695, %v9142_v10  ;;  %v1566_v20 = vadd.f32 %v9111_v28, %v1565_v27  ;;  %v1574_v27 = vor.u32 1.1754944e-38, %v1573_v44 }
 0x16c   : > { %v9153_v21 = vpop.eup %7499  ;;  %v9155_v26 = vadd.f32 1.0, %v7498_v18  ;;  %3381 = vperm.xlu2 %6756, %v7696_v16   ;;  %v2311_v30 = vpop.f32.mrf.mxu1  ;;  %v7868_v18 = vmov 2  }
 0x16d   : > { %7501 = vpow2.f32 %v6500_v35  ;;  %3377 = vperm.xlu1 %6755, %v7697_v36   ;;  %6758 = vset.pattern.permute.xlu0 %v7868_v18  ;;  %v9169_v57 = vadd.f32 %v8909_v6, %v2311_v30  ;;  %v1570_v16 = vsel %vm9160_vm4, %v9111_v28, %v1566_v20  ;;  %v1578_v44 = vmul.f32 %v9153_v21, %v9113_v60  ;;  %v7698_v35 = vld [vmem:[%s13986_s3] sm:$0xff] }
 0x16e   : > { %7503 = vrcp.f32 %v9155_v26  ;;  %3449 = vperm.xlu0 %6758, %v7698_v35   ;;  %v9180_v14 = vpop.permute.xlu2 %3249  ;;  %v1575_v28 = vsel %vm1572_vm5, %v1574_v27, %v1570_v16  ;;  %vm1583_vm6 = vweird.f32 %v9153_v21  ;;  %v552_v27 = vld [vmem:[%s13985_s2 + $0x190] sm:$0xff]  ;;  %vm1597_vm12 = vweird.f32 %v9155_v26 }
 0x16f   : > { %14203 = vst [vmem:[#allocation87_spill] sm:$0xff] %v9180_v14  ;;  %v9184_v30 = vpop.permute.xlu1 %3209  ;;  %v9186_v22 = vpop.permute.xlu0 %3217  ;;  %v1579_v20 = vsub.f32 1.0, %v1578_v44  ;;  %v2214_v23 = vmul.f32 %v1575_v28, %v9025_v39  ;;  %v1586_v28 = vand.u32 2147483647, %v9113_v60  ;;  %vm1584_vm9 = vmor %vm1582_vm7, %vm1583_vm6 }
 0x170   : > { %2493 = vst.msk [vmem:[#allocation2 + $0x30] sm:$0xff] %vm2486_vm8, %v9169_v57  ;;  %v862_v36 = vpop.f32.mrf.mxu0 }
 0x171   : > { %14204 = vst [vmem:[#allocation88_spill] sm:$0xff] %v9184_v30  ;;  %v9189_v9 = vadd.f32 %v8831_v34, %v862_v36  ;;  %v1580_v35 = vmul.f32 %v9153_v21, %v1579_v20  ;;  %6461 = vmatmul.msk.f32.gmra.mxu3 %vm574_vm1, %v552_v27  ;;  %v7699_v36 = vld [vmem:[%s13986_s3 + $0x10] sm:$0xff]  ;;  %vm1587_vm10 = vcmp.eq.f32.partialorder %v1586_v28, 8.507059e+37 }
 0x172   : > { %14205 = vst [vmem:[#allocation89_spill] sm:$0xff] %v9186_v22  ;;  %2358 = vmatmul.f32.gmra.mxu1 %v2214_v23  ;;  %v1588_v22 = vand.u32 2147483648, %v9113_v60 }
 0x173   : > { %v7502_v31 = vpop.eup %7501  ;;  %v6501_v11 = vmul.f32 -1.442695, %v9189_v9  ;;  %v1581_v14 = vadd.f32 %v9153_v21, %v1580_v35 }
 0x174   : > { %v7504_v16 = vpop.eup %7503  ;;  %v9200_v44 = vadd.f32 1.0, %v7502_v31  ;;  %6760 = vset.pattern.permute.xlu2 %v7868_v18  ;;  %v2314_v39 = vpop.f32.mrf.mxu1  ;;  %v7700_v31 = vld [vmem:[%s13986_s3 + $0x8] sm:$0xff] }
 0x175   : > { %v1593_v23 = vmul.f32 %v7504_v16, %v9155_v26  ;;  %7505 = vpow2.f32 %v6501_v11  ;;  %6759 = vset.pattern.permute.xlu1 %v7868_v18  ;;  %v9206_v20 = vadd.f32 %v8909_v6, %v2314_v39  ;;  %3457 = vperm.xlu2 %6760, %v7699_v36   ;;  %v7701_v18 = vld [vmem:[%s13986_s3 + $0x28] sm:$0xff]  ;;  %v1585_v39 = vsel %vm1584_vm9, %v9153_v21, %v1581_v14  ;;  %v553_v14 = vld [vmem:[%s13985_s2 + $0x198] sm:$0xff] }
 0x176   : > { %7507 = vrcp.f32 %v9200_v44  ;;  %3453 = vperm.xlu1 %6759, %v7700_v31   ;;  %3469 = vperm.xlu0 %6758, %v7701_v18   ;;  %v9219_v35 = vpop.permute.xlu2 %3261  ;;  %v1589_v36 = vor.u32 1.1754944e-38, %v1588_v22  ;;  %v1601_v31 = vand.u32 2147483647, %v9155_v26  ;;  %v1603_v18 = vand.u32 2147483648, %v9155_v26  ;;  %v7702_v26 = vld [vmem:[%s13986_s3 + $0x20] sm:$0xff] }
 0x177   : > { %14206 = vst [vmem:[#allocation90_spill] sm:$0xff] %v9219_v35  ;;  %v1594_v11 = vsub.f32 1.0, %v1593_v23  ;;  %v9225_v60 = vpop.permute.xlu1 %3221  ;;  %v9227_v27 = vpop.permute.xlu0 %3229  ;;  %vm1598_vm11 = vweird.f32 %v7504_v16  ;;  %vm1612_vm0 = vweird.f32 %v9200_v44 }
 0x178   : > { %2494 = vst.msk [vmem:[#allocation2 + $0x38] sm:$0xff] %vm2486_vm8, %v9206_v20  ;;  %v865_v30 = vpop.f32.mrf.mxu0  ;;  %v1590_v59 = vsel %vm1587_vm10, %v1589_v36, %v1585_v39  ;;  %vm1599_vm13 = vmor %vm1597_vm12, %vm1598_vm11  ;;  %v1604_v28 = vor.u32 1.1754944e-38, %v1603_v18  ;;  %vm1602_vm14 = vcmp.eq.f32.partialorder %v1601_v31, 8.507059e+37 }
 0x179   : > { %14207 = vst [vmem:[#allocation91_spill] sm:$0xff] %v9225_v60  ;;  %v1595_v35 = vmul.f32 %v7504_v16, %v1594_v11  ;;  %v9233_v23 = vadd.f32 %v8831_v34, %v865_v30  ;;  %v2215_v32 = vmul.f32 %v1590_v59, %v9065_v2  ;;  %6462 = vmatmul.msk.f32.gmra.mxu3 %vm574_vm1, %v553_v14 }
 0x17a   : > { %14208 = vst [vmem:[#allocation92_spill] sm:$0xff] %v9227_v27 }
 0x17b   : > { %v7506_v60 = vpop.eup %7505  ;;  %v1596_v38 = vadd.f32 %v7504_v16, %v1595_v35  ;;  %v6502_v21 = vmul.f32 -1.442695, %v9233_v23  ;;  %2361 = vmatmul.f32.gmra.mxu1 %v2215_v32  ;;  %v7703_v32 = vld [vmem:[%s13986_s3 + $0x18] sm:$0xff] }
 0x17c   : > { %v7508_v22 = vpop.eup %7507  ;;  %v9241_v11 = vadd.f32 1.0, %v7506_v60  ;;  %v2317_v30 = vpop.f32.mrf.mxu1 }
 0x17d   : > { %v1600_v59 = vsel %vm1599_vm13, %v7504_v16, %v1596_v38  ;;  %v1608_v2 = vmul.f32 %v7508_v22, %v9200_v44  ;;  %7509 = vpow2.f32 %v6502_v21  ;;  %3465 = vperm.xlu2 %6760, %v7702_v26   ;;  %v7704_v38 = vld [vmem:[%s13986_s3 + $0x40] sm:$0xff]  ;;  %v9258_v39 = vadd.f32 %v8909_v6, %v2317_v30 }
 0x17e   : > { %v1605_v35 = vsel %vm1602_vm14, %v1604_v28, %v1600_v59  ;;  %7511 = vrcp.f32 %v9241_v11  ;;  %3461 = vperm.xlu1 %6759, %v7703_v32   ;;  %3481 = vperm.xlu0 %6758, %v7704_v38   ;;  %v9255_v16 = vpop.permute.xlu2 %3273  ;;  %v1618_v21 = vand.u32 2147483648, %v9200_v44  ;;  %vm1613_vm15 = vweird.f32 %v7508_v22 }
 0x17f   : > { %14209 = vst [vmem:[#allocation93_spill] sm:$0xff] %v9255_v16  ;;  %v1609_v60 = vsub.f32 1.0, %v1608_v2  ;;  %v9260_v36 = vpop.permute.xlu1 %3233  ;;  %v9262_v31 = vpop.permute.xlu0 %3241  ;;  %v2216_v18 = vmul.f32 %v1605_v35, %v9104_v52  ;;  %v1616_v59 = vand.u32 2147483647, %v9200_v44  ;;  %v554_v52 = vld [vmem:[%s13985_s2 + $0x1a0] sm:$0xff]  ;;  %vm1614_vm2 = vmor %vm1612_vm0, %vm1613_vm15  ;;  %v7705_v44 = vld [vmem:[%s13986_s3 + $0x38] sm:$0xff]  ;;  %vm1627_vm5 = vweird.f32 %v9241_v11 }
 0x180   : > { %14210 = vst [vmem:[#allocation94_spill] sm:$0xff] %v9260_v36  ;;  %v868_v14 = vpop.f32.mrf.mxu0  ;;  %v1619_v38 = vor.u32 1.1754944e-38, %v1618_v21 }
 0x181   : > { %14211 = vst [vmem:[#allocation95_spill] sm:$0xff] %v9262_v31  ;;  %v1610_v28 = vmul.f32 %v7508_v22, %v1609_v60  ;;  %v9270_v2 = vadd.f32 %v8831_v34, %v868_v14  ;;  %6463 = vmatmul.msk.f32.gmra.mxu3 %vm574_vm1, %v554_v52  ;;  %vm1617_vm3 = vcmp.eq.f32.partialorder %v1616_v59, 8.507059e+37 }
 0x182   : > { %2495 = vst.msk [vmem:[#allocation2 + $0x40] sm:$0xff] %vm2486_vm8, %v9258_v39 }
 0x183   : > { %v7510_v30 = vpop.eup %7509  ;;  %v1611_v26 = vadd.f32 %v7508_v22, %v1610_v28  ;;  %v6503_v32 = vmul.f32 -1.442695, %v9270_v2  ;;  %2364 = vmatmul.f32.gmra.mxu1 %v2216_v18  ;;  %v7706_v18 = vld [vmem:[%s13986_s3 + $0x30] sm:$0xff] }
 0x184   : > { %v7512_v35 = vpop.eup %7511  ;;  %v9277_v60 = vadd.f32 1.0, %v7510_v30  ;;  %v2320_v16 = vpop.f32.mrf.mxu1 }
 0x185   : > { %v1615_v14 = vsel %vm1614_vm2, %v7508_v22, %v1611_v26  ;;  %v1623_v28 = vmul.f32 %v7512_v35, %v9241_v11  ;;  %7513 = vpow2.f32 %v6503_v32  ;;  %3477 = vperm.xlu2 %6760, %v7705_v44   ;;  %v7707_v22 = vld [vmem:[%s13986_s3 + $0x58] sm:$0xff]  ;;  %v9294_v30 = vadd.f32 %v8909_v6, %v2320_v16  ;;  %v9302_v44 = vpop.f32.mrf.mxu3 }
 0x186   : > { %v1620_v36 = vsel %vm1617_vm3, %v1619_v38, %v1615_v14  ;;  %7515 = vrcp.f32 %v9277_v60  ;;  %3473 = vperm.xlu1 %6759, %v7706_v18   ;;  %3493 = vperm.xlu0 %6758, %v7707_v22   ;;  %v9291_v21 = vpop.permute.xlu2 %3285  ;;  %v1633_v38 = vand.u32 2147483648, %v9241_v11  ;;  %vm1628_vm4 = vweird.f32 %v7512_v35 }
 0x187   : > { %14212 = vst [vmem:[#allocation96_spill] sm:$0xff] %v9291_v21  ;;  %v1624_v59 = vsub.f32 1.0, %v1623_v28  ;;  %v9296_v26 = vpop.permute.xlu1 %3245  ;;  %v9298_v32 = vpop.permute.xlu0 %3253  ;;  %v2217_v52 = vmul.f32 %v1620_v36, %v9142_v10  ;;  %v1631_v22 = vand.u32 2147483647, %v9241_v11  ;;  %v555_v36 = vld [vmem:[%s13985_s2 + $0x1a8] sm:$0xff]  ;;  %vm1629_vm6 = vmor %vm1627_vm5, %vm1628_vm4  ;;  %v7708_v11 = vld [vmem:[%s13986_s3 + $0x50] sm:$0xff]  ;;  %vm1642_vm10 = vweird.f32 %v9277_v60 }
 0x188   : > { %14213 = vst [vmem:[#allocation97_spill] sm:$0xff] %v9296_v26  ;;  %v871_v14 = vpop.f32.mrf.mxu0 }
 0x189   : > { %14214 = vst [vmem:[#allocation98_spill] sm:$0xff] %v9298_v32  ;;  %v1625_v18 = vmul.f32 %v7512_v35, %v1624_v59  ;;  %v9308_v16 = vadd.f32 %v8831_v34, %v871_v14  ;;  %v1634_v32 = vor.u32 1.1754944e-38, %v1633_v38  ;;  %6464 = vmatmul.msk.f32.gmra.mxu3 %vm574_vm1, %v555_v36  ;;  %vm1632_vm7 = vcmp.eq.f32.partialorder %v1631_v22, 8.507059e+37 }
 0x18a   : > { %2496 = vst.msk [vmem:[#allocation2 + $0x48] sm:$0xff] %vm2486_vm8, %v9294_v30  ;;  %v1648_v36 = vand.u32 2147483648, %v9277_v60 }
 0x18b   : > { %v7514_v28 = vpop.eup %7513  ;;  %v1626_v21 = vadd.f32 %v7512_v35, %v1625_v18  ;;  %v6504_v10 = vmul.f32 -1.442695, %v9308_v16  ;;  %2367 = vmatmul.f32.gmra.mxu1 %v2217_v52  ;;  %v7709_v52 = vld [vmem:[%s13986_s3 + $0x48] sm:$0xff] }
 0x18c   : > { %v7516_v59 = vpop.eup %7515  ;;  %v9315_v27 = vadd.f32 1.0, %v7514_v28  ;;  %v2323_v31 = vpop.f32.mrf.mxu1 }
 0x18d   : > { %v1630_v14 = vsel %vm1629_vm6, %v7512_v35, %v1626_v21  ;;  %v1638_v18 = vmul.f32 %v7516_v59, %v9277_v60  ;;  %7517 = vpow2.f32 %v6504_v10  ;;  %3489 = vperm.xlu2 %6760, %v7708_v11   ;;  %v7710_v35 = vld [vmem:[%s13986_s3 + $0x70] sm:$0xff]  ;;  %v9332_v22 = vadd.f32 %v8909_v6, %v2323_v31  ;;  %v9340_v11 = vpop.f32.mrf.mxu3 }
 0x18e   : > { %v1635_v26 = vsel %vm1632_vm7, %v1634_v32, %v1630_v14  ;;  %7519 = vrcp.f32 %v9315_v27  ;;  %3485 = vperm.xlu1 %6759, %v7709_v52   ;;  %3505 = vperm.xlu0 %6758, %v7710_v35   ;;  %v9329_v21 = vpop.permute.xlu2 %3297  ;;  %vm1643_vm9 = vweird.f32 %v7516_v59  ;;  %v1646_v35 = vand.u32 2147483647, %v9277_v60  ;;  %v7711_v60 = vld [vmem:[%s13986_s3 + $0x68] sm:$0xff] }
 0x18f   : > { %14215 = vst [vmem:[#allocation99_spill] sm:$0xff] %v9329_v21  ;;  %v1639_v38 = vsub.f32 1.0, %v1638_v18  ;;  %v9334_v28 = vpop.permute.xlu1 %3257  ;;  %v9336_v32 = vpop.permute.xlu0 %3265  ;;  %v2218_v10 = vmul.f32 %v1635_v26, %v9189_v9  ;;  %v556_v26 = vld [vmem:[%s13985_s2 + $0x1b0] sm:$0xff]  ;;  %vm1644_vm11 = vmor %vm1642_vm10, %vm1643_vm9  ;;  %vm1657_vm14 = vweird.f32 %v9315_v27 }
 0x190   : > { %14216 = vst [vmem:[#allocation100_spill] sm:$0xff] %v9334_v28  ;;  %v874_v14 = vpop.f32.mrf.mxu0  ;;  %v1649_v28 = vor.u32 1.1754944e-38, %v1648_v36  ;;  %vm1647_vm12 = vcmp.eq.f32.partialorder %v1646_v35, 8.507059e+37 }
 0x191   : > { %14217 = vst [vmem:[#allocation101_spill] sm:$0xff] %v9336_v32  ;;  %v1640_v52 = vmul.f32 %v7516_v59, %v1639_v38  ;;  %v9346_v31 = vadd.f32 %v8831_v34, %v874_v14  ;;  %6465 = vmatmul.msk.f32.gmra.mxu3 %vm574_vm1, %v556_v26  ;;  %v1663_v26 = vand.u32 2147483648, %v9315_v27 }
 0x192   : > { %2497 = vst.msk [vmem:[#allocation2 + $0x50] sm:$0xff] %vm2486_vm8, %v9332_v22 }
 0x193   : > { %v7518_v18 = vpop.eup %7517  ;;  %v1641_v21 = vadd.f32 %v7516_v59, %v1640_v52  ;;  %v6505_v9 = vmul.f32 -1.442695, %v9346_v31  ;;  %2370 = vmatmul.f32.gmra.mxu1 %v2218_v10  ;;  %v7712_v10 = vld [vmem:[%s13986_s3 + $0x60] sm:$0xff] }
 0x194   : > { %v7520_v38 = vpop.eup %7519  ;;  %v9353_v32 = vadd.f32 1.0, %v7518_v18  ;;  %v2326_v15 = vpop.f32.mrf.mxu1 }
 0x195   : > { %v1645_v14 = vsel %vm1644_vm11, %v7516_v59, %v1641_v21  ;;  %v1653_v52 = vmul.f32 %v7520_v38, %v9315_v27  ;;  %7521 = vpow2.f32 %v6505_v9  ;;  %3501 = vperm.xlu2 %6760, %v7711_v60   ;;  %v7713_v59 = vld [vmem:[%s13986_s3 + $0x88] sm:$0xff]  ;;  %v9370_v35 = vadd.f32 %v8909_v6, %v2326_v15  ;;  %v9378_v60 = vpop.f32.mrf.mxu3 }
 0x196   : > { %v1650_v47 = vsel %vm1647_vm12, %v1649_v28, %v1645_v14  ;;  %7523 = vrcp.f32 %v9353_v32  ;;  %3497 = vperm.xlu1 %6759, %v7712_v10   ;;  %3517 = vperm.xlu0 %6758, %v7713_v59   ;;  %v9367_v21 = vpop.permute.xlu2 %3309  ;;  %vm1658_vm13 = vweird.f32 %v7520_v38  ;;  %v1661_v59 = vand.u32 2147483647, %v9315_v27  ;;  %v7714_v27 = vld [vmem:[%s13986_s3 + $0x80] sm:$0xff] }
 0x197   : > { %14218 = vst [vmem:[#allocation102_spill] sm:$0xff] %v9367_v21  ;;  %v1654_v36 = vsub.f32 1.0, %v1653_v52  ;;  %v9372_v18 = vpop.permute.xlu1 %3269  ;;  %v9374_v28 = vpop.permute.xlu0 %3277  ;;  %v2219_v9 = vmul.f32 %v1650_v47, %v9233_v23  ;;  %v557_v23 = vld [vmem:[%s13985_s2 + $0x1b8] sm:$0xff]  ;;  %vm1659_vm15 = vmor %vm1657_vm14, %vm1658_vm13  ;;  %vm1672_vm3 = vweird.f32 %v9353_v32 }
 0x198   : > { %14219 = vst [vmem:[#allocation103_spill] sm:$0xff] %v9372_v18  ;;  %v877_v14 = vpop.f32.mrf.mxu0  ;;  %vm1662_vm0 = vcmp.eq.f32.partialorder %v1661_v59, 8.507059e+37 }
 0x199   : > { %14220 = vst [vmem:[#allocation104_spill] sm:$0xff] %v9374_v28  ;;  %v1655_v10 = vmul.f32 %v7520_v38, %v1654_v36  ;;  %v9384_v15 = vadd.f32 %v8831_v34, %v877_v14  ;;  %v1664_v28 = vor.u32 1.1754944e-38, %v1663_v26  ;;  %6466 = vmatmul.msk.f32.gmra.mxu3 %vm574_vm1, %v557_v23  ;;  %v1678_v23 = vand.u32 2147483648, %v9353_v32 }
 0x19a   : > { %2498 = vst.msk [vmem:[#allocation2 + $0x58] sm:$0xff] %vm2486_vm8, %v9370_v35 }
 0x19b   : > { %v7522_v52 = vpop.eup %7521  ;;  %v1656_v21 = vadd.f32 %v7520_v38, %v1655_v10  ;;  %v6506_v47 = vmul.f32 -1.442695, %v9384_v15  ;;  %2373 = vmatmul.f32.gmra.mxu1 %v2219_v9  ;;  %v7715_v9 = vld [vmem:[%s13986_s3 + $0x78] sm:$0xff] }
 0x19c   : > { %v7524_v36 = vpop.eup %7523  ;;  %v9391_v18 = vadd.f32 1.0, %v7522_v52  ;;  %v2329_v19 = vpop.f32.mrf.mxu1 }
 0x19d   : > { %v1660_v34 = vsel %vm1659_vm15, %v7520_v38, %v1656_v21  ;;  %v1668_v14 = vmul.f32 %v7524_v36, %v9353_v32  ;;  %7525 = vpow2.f32 %v6506_v47  ;;  %3513 = vperm.xlu2 %6760, %v7714_v27   ;;  %v7716_v38 = vld [vmem:[%s13986_s3 + $0xa0] sm:$0xff]  ;;  %v9408_v59 = vadd.f32 %v8909_v6, %v2329_v19  ;;  %v9416_v27 = vpop.f32.mrf.mxu3 }
 0x19e   : > { %v1665_v10 = vsel %vm1662_vm0, %v1664_v28, %v1660_v34  ;;  %7527 = vrcp.f32 %v9391_v18  ;;  %3509 = vperm.xlu1 %6759, %v7715_v9   ;;  %3529 = vperm.xlu0 %6758, %v7716_v38   ;;  %v9405_v21 = vpop.permute.xlu2 %3321  ;;  %vm1673_vm2 = vweird.f32 %v7524_v36  ;;  %v1676_v38 = vand.u32 2147483647, %v9353_v32  ;;  %v9424_v19 = vld [vmem:[%s13989_s6] ss:$0 sm:$0xff]  ;;  %v7718_v32 = vld [vmem:[%s13986_s3 + $0x98] sm:$0xff] }
 0x19f   : > { %14221 = vst [vmem:[#allocation105_spill] sm:$0xff] %v9405_v21  ;;  %v1669_v26 = vsub.f32 1.0, %v1668_v14  ;;  %v9410_v52 = vpop.permute.xlu1 %3281  ;;  %v9412_v28 = vpop.permute.xlu0 %3289  ;;  %v2220_v47 = vmul.f32 %v1665_v10, %v9270_v2  ;;  %v558_v21 = vld [vmem:[%s13985_s2 + $0x1c0] sm:$0xff]  ;;  %vm1674_vm4 = vmor %vm1672_vm3, %vm1673_vm2  ;;  %vm1687_vm7 = vweird.f32 %v9391_v18 }
 0x1a0   : > { %14222 = vst [vmem:[#allocation106_spill] sm:$0xff] %v9410_v52  ;;  %v880_v34 = vpop.f32.mrf.mxu0  ;;  %vm1677_vm5 = vcmp.eq.f32.partialorder %v1676_v38, 8.507059e+37 }
 0x1a1   : > { %14223 = vst [vmem:[#allocation107_spill] sm:$0xff] %v9412_v28  ;;  %v1670_v9 = vmul.f32 %v7524_v36, %v1669_v26  ;;  %v9427_v14 = vadd.f32 %v9424_v19, %v880_v34  ;;  %v1679_v28 = vor.u32 1.1754944e-38, %v1678_v23  ;;  %6467 = vmatmul.msk.f32.gmra.mxu3 %vm574_vm1, %v558_v21 }
 0x1a2   : > { %2499 = vst.msk [vmem:[#allocation2 + $0x60] sm:$0xff] %vm2486_vm8, %v9408_v59 }
 0x1a3   : > { %v7526_v2 = vpop.eup %7525  ;;  %v1671_v10 = vadd.f32 %v7524_v36, %v1670_v9  ;;  %v6507_v26 = vmul.f32 -1.442695, %v9427_v14  ;;  %2376 = vmatmul.f32.gmra.mxu1 %v2220_v47  ;;  %v7719_v47 = vld [vmem:[%s13986_s3 + $0x90] sm:$0xff] }
 0x1a4   : > { %v7528_v52 = vpop.eup %7527  ;;  %v9434_v56 = vadd.f32 1.0, %v7526_v2  ;;  %v2332_v54 = vpop.f32.mrf.mxu1 }
 0x1a5   : > { %v1675_v34 = vsel %vm1674_vm4, %v7524_v36, %v1671_v10  ;;  %v1683_v9 = vmul.f32 %v7528_v52, %v9391_v18  ;;  %7529 = vpow2.f32 %v6507_v26  ;;  %3525 = vperm.xlu2 %6760, %v7718_v32   ;;  %v7720_v36 = vld [vmem:[%s13986_s3 + $0xb8] sm:$0xff]  ;;  %v9451_v38 = vadd.f32 %v8909_v6, %v2332_v54 }
 0x1a6   : > { %v1680_v43 = vsel %vm1677_vm5, %v1679_v28, %v1675_v34  ;;  %7531 = vrcp.f32 %v9434_v56  ;;  %3521 = vperm.xlu1 %6759, %v7719_v47   ;;  %3541 = vperm.xlu0 %6758, %v7720_v36   ;;  %v9448_v21 = vpop.permute.xlu2 %3333  ;;  %v1693_v26 = vand.u32 2147483648, %v9391_v18  ;;  %v9461_v34 = vadd.f32 %v9424_v19, %v9302_v44  ;;  %v9463_v47 = vpop.f32.mrf.mxu3 }
 0x1a7   : > { %14224 = vst [vmem:[#allocation108_spill] sm:$0xff] %v9448_v21  ;;  %v1684_v23 = vsub.f32 1.0, %v1683_v9  ;;  %v9453_v2 = vpop.permute.xlu1 %3293  ;;  %v9455_v28 = vpop.permute.xlu0 %3301  ;;  %v2221_v10 = vmul.f32 %v1680_v43, %v9308_v16  ;;  %vm1688_vm6 = vweird.f32 %v7528_v52  ;;  %v1691_v54 = vand.u32 2147483647, %v9391_v18  ;;  %v559_v43 = vld [vmem:[%s13985_s2 + $0x1c8] sm:$0xff]  ;;  %v7721_v18 = vld [vmem:[%s13986_s3 + $0xb0] sm:$0xff] }
 0x1a8   : > { %14225 = vst [vmem:[#allocation109_spill] sm:$0xff] %v9453_v2  ;;  %v883_v32 = vpop.f32.mrf.mxu0  ;;  %vm1689_vm9 = vmor %vm1687_vm7, %vm1688_vm6  ;;  %v1694_v21 = vor.u32 1.1754944e-38, %v1693_v26  ;;  %v6511_v2 = vmul.f32 -1.442695, %v9461_v34  ;;  %vm1702_vm12 = vweird.f32 %v9434_v56 }
 0x1a9   : > { %14226 = vst [vmem:[#allocation110_spill] sm:$0xff] %v9455_v28  ;;  %v1685_v36 = vmul.f32 %v7528_v52, %v1684_v23  ;;  %v9469_v6 = vadd.f32 %v9424_v19, %v883_v32  ;;  %6468 = vmatmul.msk.f32.gmra.mxu3 %vm574_vm1, %v559_v43  ;;  %vm1692_vm10 = vcmp.eq.f32.partialorder %v1691_v54, 8.507059e+37  ;;  %v9496_v43 = vld [vmem:[%s13991_s8] ss:$0 sm:$0xff] }
 0x1aa   : > { %2500 = vst.msk [vmem:[#allocation2 + $0x68] sm:$0xff] %vm2486_vm8, %v9451_v38 }
 0x1ab   : > { %v7530_v16 = vpop.eup %7529  ;;  %v1686_v44 = vadd.f32 %v7528_v52, %v1685_v36  ;;  %v6508_v9 = vmul.f32 -1.442695, %v9469_v6  ;;  %2379 = vmatmul.f32.gmra.mxu1 %v2221_v10  ;;  %v7722_v10 = vld [vmem:[%s13986_s3 + $0xa8] sm:$0xff] }
 0x1ac   : > { %v7532_v23 = vpop.eup %7531  ;;  %v9476_v28 = vadd.f32 1.0, %v7530_v16  ;;  %v2335_v32 = vpop.f32.mrf.mxu1 }
 0x1ad   : > { %v1690_v3 = vsel %vm1689_vm9, %v7528_v52, %v1686_v44  ;;  %v1698_v61 = vmul.f32 %v7532_v23, %v9434_v56  ;;  %7533 = vpow2.f32 %v6508_v9  ;;  %3537 = vperm.xlu2 %6760, %v7721_v18   ;;  %v7723_v52 = vld [vmem:[%s13986_s3 + $0xd0] sm:$0xff]  ;;  %v1708_v9 = vand.u32 2147483648, %v9434_v56 }
 0x1ae   : > { %v1695_v36 = vsel %vm1692_vm10, %v1694_v21, %v1690_v3  ;;  %7535 = vrcp.f32 %v9476_v28  ;;  %3533 = vperm.xlu1 %6759, %v7722_v10   ;;  %3553 = vperm.xlu0 %6758, %v7723_v52   ;;  %v9491_v26 = vpop.permute.xlu2 %3345  ;;  %v9499_v3 = vadd.f32 %v9496_v43, %v2335_v32  ;;  %v9507_v10 = vpop.f32.mrf.mxu3  ;;  %vm1703_vm11 = vweird.f32 %v7532_v23 }
 0x1af   : > { %14227 = vst [vmem:[#allocation111_spill] sm:$0xff] %v9491_v26  ;;  %v1699_v54 = vsub.f32 1.0, %v1698_v61  ;;  %v9501_v21 = vpop.permute.xlu1 %3305  ;;  %v9503_v16 = vpop.permute.xlu0 %3313  ;;  %v2222_v44 = vmul.f32 %v1695_v36, %v9346_v31  ;;  %7537 = vpow2.f32 %v6511_v2  ;;  %v1706_v52 = vand.u32 2147483647, %v9434_v56  ;;  %v560_v31 = vld [vmem:[%s13985_s2 + $0x1d0] sm:$0xff]  ;;  %vm1704_vm13 = vmor %vm1702_vm12, %vm1703_vm11  ;;  %v7725_v56 = vld [vmem:[%s13986_s3 + $0xc8] sm:$0xff] }
 0x1b0   : > { %14228 = vst [vmem:[#allocation112_spill] sm:$0xff] %v9501_v21  ;;  %v886_v18 = vpop.f32.mrf.mxu0  ;;  %v9517_v26 = vadd.f32 %v9424_v19, %v9340_v11  ;;  %v1709_v21 = vor.u32 1.1754944e-38, %v1708_v9  ;;  %vm1717_vm0 = vweird.f32 %v9476_v28 }
 0x1b1   : > { %14229 = vst [vmem:[#allocation113_spill] sm:$0xff] %v9503_v16  ;;  %v1700_v61 = vmul.f32 %v7532_v23, %v1699_v54  ;;  %v9513_v32 = vadd.f32 %v9424_v19, %v886_v18  ;;  %6469 = vmatmul.msk.f32.gmra.mxu3 %vm574_vm1, %v560_v31  ;;  %vm1707_vm14 = vcmp.eq.f32.partialorder %v1706_v52, 8.507059e+37 }
 0x1b2   : > { %2501 = vst.msk [vmem:[#allocation2 + $0x70] sm:$0xff] %vm2486_vm8, %v9499_v3  ;;  %v6512_v9 = vmul.f32 -1.442695, %v9517_v26 }
 0x1b3   : > { %v7534_v2 = vpop.eup %7533  ;;  %v1701_v36 = vadd.f32 %v7532_v23, %v1700_v61  ;;  %v6509_v54 = vmul.f32 -1.442695, %v9513_v32  ;;  %2382 = vmatmul.f32.gmra.mxu1 %v2222_v44  ;;  %v7726_v44 = vld [vmem:[%s13986_s3 + $0xc0] sm:$0xff] }
 0x1b4   : > { %v7536_v16 = vpop.eup %7535  ;;  %v9524_v5 = vadd.f32 1.0, %v7534_v2  ;;  %v2338_v18 = vpop.f32.mrf.mxu1 }
 0x1b5   : > { %v1705_v11 = vsel %vm1704_vm13, %v7532_v23, %v1701_v36  ;;  %v1713_v46 = vmul.f32 %v7536_v16, %v9476_v28  ;;  %7539 = vpow2.f32 %v6509_v54  ;;  %3549 = vperm.xlu2 %6760, %v7725_v56   ;;  %v7538_v61 = vpop.eup %7537  ;;  %v7727_v23 = vld [vmem:[%s13986_s3 + $0xe8] sm:$0xff]  ;;  %v9542_v2 = vadd.f32 %v9496_v43, %v2338_v18 }
 0x1b6   : > { %v1710_v17 = vsel %vm1707_vm14, %v1709_v21, %v1705_v11  ;;  %7541 = vrcp.f32 %v9524_v5  ;;  %3545 = vperm.xlu1 %6759, %v7726_v44   ;;  %3565 = vperm.xlu0 %6758, %v7727_v23   ;;  %v9539_v52 = vpop.permute.xlu2 %3357  ;;  %v1723_v11 = vand.u32 2147483648, %v9476_v28  ;;  %v9550_v44 = vpop.f32.mrf.mxu3  ;;  %vm1718_vm15 = vweird.f32 %v7536_v16 }
 0x1b7   : > { %14230 = vst [vmem:[#allocation114_spill] sm:$0xff] %v9539_v52  ;;  %v1714_v31 = vsub.f32 1.0, %v1713_v46  ;;  %v9544_v21 = vpop.permute.xlu1 %3317  ;;  %v9546_v36 = vpop.permute.xlu0 %3325  ;;  %v2223_v54 = vmul.f32 %v1710_v17, %v9384_v15  ;;  %v1721_v23 = vand.u32 2147483647, %v9476_v28  ;;  %v9558_v18 = vadd.f32 1.0, %v7538_v61  ;;  %v561_v17 = vld [vmem:[%s13985_s2 + $0x1d8] sm:$0xff]  ;;  %vm1719_vm2 = vmor %vm1717_vm0, %vm1718_vm15 }
 0x1b8   : > { %14231 = vst [vmem:[#allocation115_spill] sm:$0xff] %v9544_v21  ;;  %v889_v56 = vpop.f32.mrf.mxu0  ;;  %7543 = vpow2.f32 %v6512_v9  ;;  %vm1732_vm5 = vweird.f32 %v9524_v5 }
 0x1b9   : > { %14232 = vst [vmem:[#allocation116_spill] sm:$0xff] %v9546_v36  ;;  %v1715_v48 = vmul.f32 %v7536_v16, %v1714_v31  ;;  %v9556_v46 = vadd.f32 %v9424_v19, %v889_v56  ;;  %v9566_v31 = vadd.f32 %v9424_v19, %v9378_v60  ;;  %v1724_v56 = vor.u32 1.1754944e-38, %v1723_v11  ;;  %6470 = vmatmul.msk.f32.gmra.mxu3 %vm574_vm1, %v561_v17  ;;  %v7728_v60 = vld [vmem:[%s13986_s3 + $0xe0] sm:$0xff] }
 0x1ba   : > { %2502 = vst.msk [vmem:[#allocation2 + $0x78] sm:$0xff] %vm2486_vm8, %v9542_v2  ;;  %vm1722_vm3 = vcmp.eq.f32.partialorder %v1721_v23, 8.507059e+37  ;;  %vm1777_vm14 = vweird.f32 %v9558_v18 }
 0x1bb   : > { %v7540_v15 = vpop.eup %7539  ;;  %v1716_v36 = vadd.f32 %v7536_v16, %v1715_v48  ;;  %v6510_v52 = vmul.f32 -1.442695, %v9556_v46  ;;  %2385 = vmatmul.f32.gmra.mxu1 %v2223_v54  ;;  %v7729_v54 = vld [vmem:[%s13986_s3 + $0xd8] sm:$0xff]  ;;  %v6513_v11 = vmul.f32 -1.442695, %v9566_v31 }
 0x1bc   : > { %v7542_v21 = vpop.eup %7541  ;;  %v9569_v61 = vadd.f32 1.0, %v7540_v15 }
 0x1bd   : > { %v1720_v9 = vsel %vm1719_vm2, %v7536_v16, %v1716_v36  ;;  %v1728_v48 = vmul.f32 %v7542_v21, %v9524_v5  ;;  %7545 = vpow2.f32 %v6510_v52  ;;  %3561 = vperm.xlu2 %6760, %v7728_v60   ;;  %v7730_v16 = vld [vmem:[%s13986_s3 + $0x100] sm:$0xff]  ;;  %v1738_v60 = vand.u32 2147483648, %v9524_v5 }
 0x1be   : > { %v1725_v28 = vsel %vm1722_vm3, %v1724_v56, %v1720_v9  ;;  %7547 = vrcp.f32 %v9569_v61  ;;  %v2341_v51 = vpop.f32.mrf.mxu1  ;;  %3557 = vperm.xlu1 %6759, %v7729_v54   ;;  %3577 = vperm.xlu0 %6758, %v7730_v16   ;;  %v9583_v52 = vpop.permute.xlu2 %3369  ;;  %vm1733_vm4 = vweird.f32 %v7542_v21  ;;  %vm1747_vm10 = vweird.f32 %v9569_v61 }
 0x1bf   : > { %14233 = vst [vmem:[#allocation117_spill] sm:$0xff] %v9583_v52  ;;  %7549 = vrcp.f32 %v9558_v18  ;;  %v1729_v36 = vsub.f32 1.0, %v1728_v48  ;;  %v9588_v23 = vadd.f32 %v9496_v43, %v2341_v51  ;;  %v9590_v17 = vpop.permute.xlu1 %3329  ;;  %v9592_v15 = vpop.permute.xlu0 %3337  ;;  %v2224_v9 = vmul.f32 %v1725_v28, %v9427_v14  ;;  %v562_v14 = vld [vmem:[%s13985_s2 + $0x1e0] sm:$0xff]  ;;  %vm1734_vm6 = vmor %vm1732_vm5, %vm1733_vm4 }
 0x1c0   : > { %14234 = vst [vmem:[#allocation118_spill] sm:$0xff] %v9590_v17  ;;  %v7544_v56 = vpop.eup %7543  ;;  %v9596_v54 = vpop.f32.mrf.mxu3  ;;  %v1736_v48 = vand.u32 2147483647, %v9524_v5  ;;  %7551 = vpow2.f32 %v6513_v11 }
 0x1c1   : > { %14235 = vst [vmem:[#allocation119_spill] sm:$0xff] %v9592_v15  ;;  %v1730_v16 = vmul.f32 %v7542_v21, %v1729_v36  ;;  %v9604_v15 = vadd.f32 %v9424_v19, %v9416_v27  ;;  %v1739_v36 = vor.u32 1.1754944e-38, %v1738_v60  ;;  %v9609_v17 = vadd.f32 1.0, %v7544_v56  ;;  %6471 = vmatmul.msk.f32.gmra.mxu3 %vm574_vm1, %v562_v14  ;;  %v7731_v27 = vld [vmem:[%s13986_s3 + $0xf8] sm:$0xff] }
 0x1c2   : > { %2503 = vst.msk [vmem:[#allocation2 + $0x80] sm:$0xff] %vm2486_vm8, %v9588_v23  ;;  %vm1737_vm7 = vcmp.eq.f32.partialorder %v1736_v48, 8.507059e+37 }
 0x1c3   : > { %v7546_v51 = vpop.eup %7545  ;;  %v1731_v52 = vadd.f32 %v7542_v21, %v1730_v16  ;;  %2388 = vmatmul.f32.gmra.mxu1 %v2224_v9  ;;  %v7732_v9 = vld [vmem:[%s13986_s3 + $0xf0] sm:$0xff]  ;;  %v6514_v60 = vmul.f32 -1.442695, %v9604_v15 }
 0x1c4   : > { %v7548_v28 = vpop.eup %7547  ;;  %v9611_v7 = vadd.f32 1.0, %v7546_v51 }
 0x1c5   : > { %v9614_v5 = vpop.eup %7549  ;;  %v1735_v11 = vsel %vm1734_vm6, %v7542_v21, %v1731_v52  ;;  %3573 = vperm.xlu2 %6760, %v7731_v27   ;;  %v1743_v16 = vmul.f32 %v7548_v28, %v9569_v61  ;;  %v7733_v21 = vld [vmem:[%s13986_s3 + $0x118] sm:$0xff]  ;;  %v1753_v27 = vand.u32 2147483648, %v9569_v61  ;;  %vm1748_vm9 = vweird.f32 %v7548_v28 }
 0x1c6   : > { %v1740_v45 = vsel %vm1737_vm7, %v1739_v36, %v1735_v11  ;;  %7553 = vrcp.f32 %v9611_v7  ;;  %v2344_v56 = vpop.f32.mrf.mxu1  ;;  %3569 = vperm.xlu1 %6759, %v7732_v9   ;;  %3589 = vperm.xlu0 %6758, %v7733_v21   ;;  %v9627_v52 = vpop.permute.xlu2 %3381  ;;  %v1773_v9 = vmul.f32 %v9614_v5, %v9558_v18  ;;  %vm9659_vm11 = vmor %vm1747_vm10, %vm1748_vm9  ;;  %v1768_v63 = vand.u32 2147483648, %v9611_v7 }
 0x1c7   : > { %14236 = vst [vmem:[#allocation120_spill] sm:$0xff] %v9627_v52  ;;  %v9631_v48 = vadd.f32 %v9496_v43, %v2344_v56  ;;  %v9633_v51 = vpop.permute.xlu1 %3341  ;;  %v9635_v14 = vpop.permute.xlu0 %3349  ;;  %v1744_v36 = vsub.f32 1.0, %v1743_v16  ;;  %v2225_v11 = vmul.f32 %v1740_v45, %v9469_v6  ;;  %7555 = vrcp.f32 %v9609_v17  ;;  %v563_v16 = vld [vmem:[%s13985_s2 + $0x1e8] sm:$0xff] }
 0x1c8   : > { %14237 = vst [vmem:[#allocation121_spill] sm:$0xff] %v9633_v51  ;;  %v9642_v21 = vpop.f32.mrf.mxu3  ;;  %v7552_v52 = vpop.eup %7551  ;;  %7557 = vpow2.f32 %v6514_v60  ;;  %v9649_v45 = vadd.f32 %v9424_v19, %v9463_v47  ;;  %v1754_v60 = vor.u32 1.1754944e-38, %v1753_v27  ;;  %v1774_v4 = vsub.f32 1.0, %v1773_v9  ;;  %v7734_v47 = vld [vmem:[%s13986_s3 + $0x110] sm:$0xff]  ;;  %v7735_v27 = vld [vmem:[%s13986_s3 + $0x108] sm:$0xff] }
 0x1c9   : > { %14238 = vst [vmem:[#allocation122_spill] sm:$0xff] %v9635_v14  ;;  %v1745_v56 = vmul.f32 %v7548_v28, %v1744_v36  ;;  %v1751_v14 = vand.u32 2147483647, %v9569_v61  ;;  %v9657_v29 = vadd.f32 1.0, %v7552_v52  ;;  %6472 = vmatmul.msk.f32.gmra.mxu3 %vm574_vm1, %v563_v16  ;;  %v7736_v9 = vld [vmem:[%s13986_s3 + $0x130] sm:$0xff]  ;;  %vm1778_vm15 = vweird.f32 %v9614_v5 }
 0x1ca   : > { %2504 = vst.msk [vmem:[#allocation2 + $0x88] sm:$0xff] %vm2486_vm8, %v9631_v48  ;;  %vm1762_vm0 = vweird.f32 %v9611_v7  ;;  %vm9741_vm4 = vmor %vm1777_vm14, %vm1778_vm15  ;;  %vm1792_vm6 = vweird.f32 %v9609_v17 }
 0x1cb   : > { %v1746_v6 = vadd.f32 %v7548_v28, %v1745_v56  ;;  %2391 = vmatmul.f32.gmra.mxu1 %v2225_v11  ;;  %vm1752_vm12 = vcmp.eq.f32.partialorder %v1751_v14, 8.507059e+37  ;;  %7559 = vrcp.f32 %v9657_v29 }
 0x1cc   : > { %v9655_v51 = vpop.eup %7553 }
 0x1cd   : > { %3585 = vperm.xlu2 %6760, %v7734_v47   ;;  %v1750_v61 = vsel %vm9659_vm11, %v7548_v28, %v1746_v6  ;;  %v1758_v52 = vmul.f32 %v9655_v51, %v9611_v7  ;;  %v9671_v11 = vpop.eup %7555  ;;  %v6515_v28 = vmul.f32 -1.442695, %v9649_v45  ;;  %vm1763_vm13 = vweird.f32 %v9655_v51 }
 0x1ce   : > { %v2347_v56 = vpop.f32.mrf.mxu1  ;;  %3581 = vperm.xlu1 %6759, %v7735_v27   ;;  %3601 = vperm.xlu0 %6758, %v7736_v9   ;;  %v1755_v16 = vsel %vm1752_vm12, %v1754_v60, %v1750_v61  ;;  %v1775_v60 = vmul.f32 %v9614_v5, %v1774_v4  ;;  %v7558_v9 = vpop.eup %7557  ;;  %v9706_v4 = vadd.f32 %v9424_v19, %v9507_v10  ;;  %vm9715_vm2 = vmor %vm1762_vm0, %vm1763_vm13  ;;  %v1783_v10 = vand.u32 2147483648, %v9558_v18 }
 0x1cf   : > { %v9681_v14 = vadd.f32 %v9496_v43, %v2347_v56  ;;  %v9683_v6 = vpop.permute.xlu1 %3353  ;;  %v9685_v36 = vpop.permute.xlu0 %3361  ;;  %v2226_v47 = vmul.f32 %v1755_v16, %v9513_v32  ;;  %v1759_v41 = vsub.f32 1.0, %v1758_v52  ;;  %v1766_v32 = vand.u32 2147483647, %v9611_v7  ;;  %v7737_v7 = vld [vmem:[%s13986_s3 + $0x128] sm:$0xff] }
 0x1d0   : > { %14241 = vst [vmem:[#allocation123_spill] sm:$0xff] %v9683_v6  ;;  %v9689_v27 = vpop.permute.xlu2 %3457  ;;  %v9693_v61 = vpop.f32.mrf.mxu3  ;;  %v1788_v52 = vmul.f32 %v9671_v11, %v9609_v17  ;;  %7561 = vpow2.f32 %v6515_v28  ;;  %v1769_v6 = vor.u32 1.1754944e-38, %v1768_v63  ;;  %v1781_v28 = vand.u32 2147483647, %v9558_v18 }
 0x1d1   : > { %14242 = vst [vmem:[#allocation124_spill] sm:$0xff] %v9685_v36  ;;  %2394 = vmatmul.f32.vlgmr.msra.gmra.mxu2 %v2226_v47  ;;  %v1760_v56 = vmul.f32 %v9655_v51, %v1759_v41  ;;  %v564_v41 = vld [vmem:[%s13985_s2 + $0x1f0] sm:$0xff]  ;;  %v9713_v47 = vadd.f32 1.0, %v7558_v9  ;;  %vm1767_vm3 = vcmp.eq.f32.partialorder %v1766_v32, 8.507059e+37  ;;  %v9729_v63 = vpop.eup %7559  ;;  %v6516_v36 = vmul.f32 -1.442695, %v9706_v4 }
 0x1d2   : > { %14243 = vst [vmem:[#allocation125_spill] sm:$0xff] %v9689_v27  ;;  %6473 = vmatmul.msk.f32.gmra.mxu3 %vm574_vm1, %v564_v41  ;;  %v1789_v27 = vsub.f32 1.0, %v1788_v52  ;;  %v7738_v41 = vld [vmem:[%s13986_s3 + $0x120] sm:$0xff]  ;;  %v1784_v18 = vor.u32 1.1754944e-38, %v1783_v10  ;;  %vm1782_vm5 = vcmp.eq.f32.partialorder %v1781_v28, 8.507059e+37  ;;  %vm1793_vm7 = vweird.f32 %v9671_v11 }
 0x1d3   : > { %2505 = vst.msk [vmem:[#allocation2 + $0x90] sm:$0xff] %vm2486_vm8, %v9681_v14  ;;  %v1761_v16 = vadd.f32 %v9655_v51, %v1760_v56  ;;  %v1776_v56 = vadd.f32 %v9614_v5, %v1775_v60  ;;  %7563 = vrcp.f32 %v9713_v47  ;;  %vm9796_vm9 = vmor %vm1792_vm6, %vm1793_vm7  ;;  %vm1807_vm11 = vweird.f32 %v9657_v29 }
 0x1d4   : > { %7565 = vpow2.f32 %v6516_v36  ;;  %vm1808_vm12 = vweird.f32 %v9729_v63  ;;  %vm1822_vm15 = vweird.f32 %v9713_v47 }
 0x1d5   : > { %3597 = vperm.xlu2 %6760, %v7737_v7   ;;  %v1765_v9 = vsel %vm9715_vm2, %v9655_v51, %v1761_v16  ;;  %v7739_v7 = vld [vmem:[%s13986_s3 + $0x148] sm:$0xff]  ;;  %v565_v51 = vld [vmem:[%s13985_s2 + $0x1f8] sm:$0xff]  ;;  %vm9844_vm13 = vmor %vm1807_vm11, %vm1808_vm12 }
 0x1d6   : > { %v2350_v0 = vpop.f32.mrf.mxu1  ;;  %3593 = vperm.xlu1 %6759, %v7738_v41   ;;  %3613 = vperm.xlu0 %6758, %v7739_v7   ;;  %v1770_v58 = vsel %vm1767_vm3, %v1769_v6, %v1765_v9  ;;  %v7562_v41 = vpop.eup %7561  ;;  %v1790_v7 = vmul.f32 %v9671_v11, %v1789_v27  ;;  %v7740_v27 = vld [vmem:[%s13986_s3 + $0x140] sm:$0xff] }
 0x1d7   : > { %v9747_v60 = vadd.f32 %v9496_v43, %v2350_v0  ;;  %v9749_v32 = vpop.permute.xlu1 %3365  ;;  %v9751_v52 = vpop.permute.xlu0 %3373  ;;  %v2227_v16 = vmul.f32 %v1770_v58, %v9556_v46  ;;  %v1780_v0 = vsel %vm9741_vm4, %v9614_v5, %v1776_v56  ;;  %v1803_v58 = vmul.f32 %v9729_v63, %v9657_v29 }
 0x1d8   : > { %14248 = vst [vmem:[#allocation126_spill] sm:$0xff] %v9749_v32  ;;  %v9755_v6 = vpop.permute.xlu2 %3465  ;;  %v9757_v9 = vpop.f32.mrf.mxu3  ;;  %v9769_v46 = vadd.f32 %v9424_v19, %v9550_v44  ;;  %v9773_v10 = vadd.f32 1.0, %v7562_v41  ;;  %v1798_v5 = vand.u32 2147483648, %v9609_v17  ;;  %v1791_v28 = vadd.f32 %v9671_v11, %v1790_v7  ;;  %v7742_v41 = vld [vmem:[%s13986_s3 + $0x160] sm:$0xff] }
 0x1d9   : > { %14249 = vst [vmem:[#allocation127_spill] sm:$0xff] %v9751_v52  ;;  %2397 = vmatmul.f32.gmra.mxu2 %v2227_v16  ;;  %v1785_v16 = vsel %vm1782_vm5, %v1784_v18, %v1780_v0  ;;  %v1796_v56 = vand.u32 2147483647, %v9609_v17  ;;  %v1804_v44 = vsub.f32 1.0, %v1803_v58  ;;  %v9784_v36 = vpop.eup %7563  ;;  %v7741_v18 = vld [vmem:[%s13986_s3 + $0x138] sm:$0xff] }
 0x1da   : > { %14250 = vst [vmem:[#allocation128_spill] sm:$0xff] %v9755_v6  ;;  %v6517_v7 = vmul.f32 -1.442695, %v9769_v46  ;;  %6474 = vmatmul.msk.f32.gmra.mxu3 %vm574_vm1, %v565_v51  ;;  %7567 = vrcp.f32 %v9773_v10  ;;  %v1799_v32 = vor.u32 1.1754944e-38, %v1798_v5  ;;  %v7566_v6 = vpop.eup %7565  ;;  %v1795_v53 = vsel %vm9796_vm9, %v9671_v11, %v1791_v28 }
 0x1db   : > { %2506 = vst.msk [vmem:[#allocation2 + $0x98] sm:$0xff] %vm2486_vm8, %v9747_v60  ;;  %vm1797_vm10 = vcmp.eq.f32.partialorder %v1796_v56, 8.507059e+37  ;;  %v9822_v5 = vadd.f32 %v9424_v19, %v9596_v54  ;;  %v9826_v11 = vadd.f32 1.0, %v7566_v6  ;;  %v1813_v56 = vand.u32 2147483648, %v9657_v29  ;;  %v7744_v6 = vld [vmem:[%s13986_s3 + $0x150] sm:$0xff] }
 0x1dc   : > { %7569 = vpow2.f32 %v6517_v7  ;;  %v1800_v28 = vsel %vm1797_vm10, %v1799_v32, %v1795_v53  ;;  %v1811_v7 = vand.u32 2147483647, %v9657_v29  ;;  %v7745_v53 = vld [vmem:[%s13986_s3 + $0x178] sm:$0xff]  ;;  %vm1823_vm0 = vweird.f32 %v9784_v36  ;;  %v7746_v32 = vld [vmem:[%s13986_s3 + $0x170] sm:$0xff] }
 0x1dd   : > { %3609 = vperm.xlu2 %6760, %v7740_v27   ;;  %7571 = vrcp.f32 %v9826_v11  ;;  %vm9902_vm2 = vmor %vm1822_vm15, %vm1823_vm0  ;;  %vm1837_vm4 = vweird.f32 %v9773_v10  ;;  %vm1852_vm9 = vweird.f32 %v9826_v11 }
 0x1de   : > { %3605 = vperm.xlu1 %6759, %v7741_v18   ;;  %3625 = vperm.xlu0 %6758, %v7742_v41   ;;  %v2228_v18 = vmul.f32 %v1785_v16, %v9461_v34  ;;  %v1805_v34 = vmul.f32 %v9729_v63, %v1804_v44  ;;  %v1818_v16 = vmul.f32 %v9784_v36, %v9713_v47  ;;  %v7743_v44 = vld [vmem:[%s13986_s3 + $0x158] sm:$0xff]  ;;  %vm1812_vm14 = vcmp.eq.f32.partialorder %v1811_v7, 8.507059e+37 }
 0x1df   : > { %v2353_v58 = vpop.f32.mrf.mxu1  ;;  %v9801_v27 = vpop.permute.xlu1 %3377  ;;  %v1826_v7 = vand.u32 2147483647, %v9713_v47 }
 0x1e0   : > { %14253 = vst [vmem:[#allocation129_spill] sm:$0xff] %v9801_v27  ;;  %v2354_v41 = vadd.f32 %v9496_v43, %v2353_v58  ;;  %v9807_v52 = vpop.permute.xlu2 %3477  ;;  %v9809_v17 = vpop.permute.xlu0 %3449  ;;  %v1806_v0 = vadd.f32 %v9729_v63, %v1805_v34  ;;  %v1819_v54 = vsub.f32 1.0, %v1818_v16  ;;  %v2229_v16 = vmul.f32 %v1800_v28, %v9517_v26 }
 0x1e1   : > { %14254 = vst [vmem:[#allocation130_spill] sm:$0xff] %v9807_v52  ;;  %2400 = vmatmul.f32.gmra.mxu2 %v2228_v18  ;;  %v9818_v51 = vpop.f32.mrf.mxu3  ;;  %v9834_v58 = vpop.eup %7567  ;;  %v6518_v18 = vmul.f32 -1.442695, %v9822_v5  ;;  %vm9910_vm3 = vcmp.eq.f32.partialorder %v1826_v7, 8.507059e+37 }
 0x1e2   : > { %14255 = vst [vmem:[#allocation131_spill] sm:$0xff] %v9809_v17  ;;  %v7570_v17 = vpop.eup %7569  ;;  %v1810_v52 = vsel %vm9844_vm13, %v9729_v63, %v1806_v0  ;;  %v1820_v26 = vmul.f32 %v9784_v36, %v1819_v54  ;;  %v1833_v28 = vmul.f32 %v9834_v58, %v9773_v10  ;;  %vm1838_vm5 = vweird.f32 %v9834_v58 }
 0x1e3   : > { %2507 = vst.msk [vmem:[#allocation2 + $0xa0] sm:$0xff] %vm2486_vm8, %v2354_v41  ;;  %7573 = vpow2.f32 %v6518_v18  ;;  %v9879_v0 = vadd.f32 1.0, %v7570_v17  ;;  %v9889_v63 = vpop.eup %7571  ;;  %vm9955_vm6 = vmor %vm1837_vm4, %vm1838_vm5 }
 0x1e4   : > { %v1821_v18 = vadd.f32 %v9784_v36, %v1820_v26  ;;  %v1848_v7 = vmul.f32 %v9889_v63, %v9826_v11  ;;  %vm1853_vm10 = vweird.f32 %v9889_v63 }
 0x1e5   : > { %3621 = vperm.xlu2 %6760, %v7743_v44   ;;  %7575 = vrcp.f32 %v9879_v0  ;;  %vm10011_vm11 = vmor %vm1852_vm9, %vm1853_vm10  ;;  %vm1867_vm13 = vweird.f32 %v9879_v0 }
 0x1e6   : > { %3617 = vperm.xlu1 %6759, %v7744_v6   ;;  %3637 = vperm.xlu0 %6758, %v7745_v53   ;;  %v1814_v53 = vor.u32 1.1754944e-38, %v1813_v56  ;;  %v9869_v56 = vadd.f32 %v9424_v19, %v9642_v21  ;;  %v1828_v21 = vand.u32 2147483648, %v9713_v47  ;;  %v1849_v26 = vsub.f32 1.0, %v1848_v7 }
 0x1e7   : > { %v2356_v34 = vpop.f32.mrf.mxu1 }
 0x1e8   : > { %v2357_v44 = vadd.f32 %v9496_v43, %v2356_v34  ;;  %v9852_v6 = vpop.permute.xlu2 %3489  ;;  %v9854_v27 = vpop.permute.xlu1 %3453  ;;  %v9865_v34 = vsel %vm2486_vm8, %v2354_v41, 0.0  ;;  %v1815_v41 = vsel %vm1812_vm14, %v1814_v53, %v1810_v52  ;;  %v6519_v17 = vmul.f32 -1.442695, %v9869_v56  ;;  %v7747_v52 = vld [vmem:[%s13986_s3 + $0x168] sm:$0xff]  ;;  %v7748_v53 = vld [vmem:[%s13986_s3 + $0x190] sm:$0xff] }
 0x1e9   : > { %14258 = vst [vmem:[#allocation132_spill] sm:$0xff] %v9852_v6  ;;  %v9856_v29 = vpop.permute.xlu0 %3469  ;;  %2403 = vmatmul.f32.gmra.mxu2 %v2229_v16  ;;  %v9883_v54 = vpop.f32.mrf.mxu3 }
 0x1ea   : > { %14259 = vst [vmem:[#allocation133_spill] sm:$0xff] %v9854_v27  ;;  %v9873_v16 = vsel %vm2486_vm8, %v2357_v44, 0.0  ;;  %7577 = vpow2.f32 %v6519_v17  ;;  %v1841_v17 = vand.u32 2147483647, %v9773_v10 }
 0x1eb   : > { %14260 = vst [vmem:[#allocation134_spill] sm:$0xff] %v9856_v29  ;;  %v7574_v29 = vpop.eup %7573 }
 0x1ec   : > { %14261 = vst [vmem:[#allocation135_spill] sm:$0xff] %v9865_v34  ;;  %vm1842_vm7 = vcmp.eq.f32.partialorder %v1841_v17, 8.507059e+37  ;;  %v1858_v17 = vand.u32 2147483648, %v9826_v11 }
 0x1ed   : > { %2508 = vst.msk [vmem:[#allocation2 + $0xa8] sm:$0xff] %vm2486_vm8, %v2357_v44  ;;  %3633 = vperm.xlu2 %6760, %v7746_v32   ;;  %v1834_v44 = vsub.f32 1.0, %v1833_v28  ;;  %v2230_v28 = vmul.f32 %v1815_v41, %v9566_v31  ;;  %v1825_v31 = vsel %vm9902_vm2, %v9784_v36, %v1821_v18  ;;  %v1843_v18 = vand.u32 2147483648, %v9773_v10 }
 0x1ee   : > { %14262 = vst [vmem:[#allocation136_spill] sm:$0xff] %v9873_v16  ;;  %3629 = vperm.xlu1 %6759, %v7747_v52   ;;  %3649 = vperm.xlu0 %6758, %v7748_v53   ;;  %v1829_v53 = vor.u32 1.1754944e-38, %v1828_v21  ;;  %v9927_v21 = vadd.f32 %v9424_v19, %v9693_v61  ;;  %v7750_v52 = vld [vmem:[%s13986_s3 + $0x180] sm:$0xff] }
 0x1ef   : > { %v2359_v32 = vpop.f32.mrf.mxu1  ;;  %v1835_v41 = vmul.f32 %v9834_v58, %v1834_v44  ;;  %v7749_v44 = vld [vmem:[%s13986_s3 + $0x188] sm:$0xff] }
 0x1f0   : > { %v9908_v27 = vpop.permute.xlu2 %3501  ;;  %v2360_v6 = vadd.f32 %v9496_v43, %v2359_v32  ;;  %v9915_v47 = vpop.permute.xlu1 %3461  ;;  %v1830_v36 = vsel %vm9910_vm3, %v1829_v53, %v1825_v31  ;;  %v7751_v53 = vld [vmem:[%s13986_s3 + $0x1a8] sm:$0xff] }
 0x1f1   : > { %14265 = vst [vmem:[#allocation137_spill] sm:$0xff] %v9908_v27  ;;  %v9917_v33 = vpop.permute.xlu0 %3481  ;;  %2406 = vmatmul.f32.gmra.mxu2 %v2230_v28  ;;  %v9932_v28 = vadd.f32 1.0, %v7574_v29  ;;  %v1836_v61 = vadd.f32 %v9834_v58, %v1835_v41  ;;  %v9942_v32 = vpop.eup %7575  ;;  %v6520_v29 = vmul.f32 -1.442695, %v9927_v21  ;;  %v2231_v7 = vmul.f32 %v1830_v36, %v9604_v15 }
 0x1f2   : > { %14268 = vst [vmem:[#allocation138_spill] sm:$0xff] %v9915_v47  ;;  %v9959_v41 = vpop.f32.mrf.mxu3  ;;  %v1844_v47 = vor.u32 1.1754944e-38, %v1843_v18  ;;  %v1850_v27 = vmul.f32 %v9889_v63, %v1849_v26  ;;  %v1863_v15 = vmul.f32 %v9942_v32, %v9879_v0  ;;  %v1859_v26 = vor.u32 1.1754944e-38, %v1858_v17 }
 0x1f3   : > { %14269 = vst [vmem:[#allocation139_spill] sm:$0xff] %v9917_v33  ;;  %7579 = vrcp.f32 %v9932_v28  ;;  %v1840_v10 = vsel %vm9955_vm6, %v9834_v58, %v1836_v61  ;;  %v9985_v58 = vsel %vm2486_vm8, %v2360_v6, 0.0  ;;  %vm1868_vm14 = vweird.f32 %v9942_v32 }
 0x1f4   : > { %2509 = vst.msk [vmem:[#allocation2 + $0xb0] sm:$0xff] %vm2486_vm8, %v2360_v6  ;;  %7581 = vpow2.f32 %v6520_v29  ;;  %v1851_v29 = vadd.f32 %v9889_v63, %v1850_v27  ;;  %v1856_v6 = vand.u32 2147483647, %v9826_v11  ;;  %v1864_v31 = vsub.f32 1.0, %v1863_v15  ;;  %vm10063_vm15 = vmor %vm1867_vm13, %vm1868_vm14 }
 0x1f5   : > { %3645 = vperm.xlu2 %6760, %v7749_v44   ;;  %v7578_v44 = vpop.eup %7577  ;;  %14275 = vst [vmem:[#allocation143_spill] sm:$0xff] %v9985_v58  ;;  %v1871_v27 = vand.u32 2147483647, %v9879_v0  ;;  %vm1882_vm2 = vweird.f32 %v9932_v28 }
 0x1f6   : > { %3641 = vperm.xlu1 %6759, %v7750_v52   ;;  %3661 = vperm.xlu0 %6758, %v7751_v53   ;;  %v9976_v18 = vadd.f32 1.0, %v7578_v44  ;;  %v1855_v11 = vsel %vm10011_vm11, %v9889_v63, %v1851_v29  ;;  %vm1857_vm12 = vcmp.eq.f32.partialorder %v1856_v6, 8.507059e+37  ;;  %v1873_v6 = vand.u32 2147483648, %v9879_v0 }
 0x1f7   : > { %v1860_v29 = vsel %vm1857_vm12, %v1859_v26, %v1855_v11  ;;  %v7757_v26 = vld [vmem:[%s13986_s3 + $0x1d8] sm:$0xff]  ;;  %vm1872_vm0 = vcmp.eq.f32.partialorder %v1871_v27, 8.507059e+37  ;;  %v7758_v27 = vld [vmem:[%s13986_s3 + $0x1d0] sm:$0xff] }
 0x1f8   : > { %v9963_v52 = vpop.permute.xlu2 %3513  ;;  %v2362_v33 = vpop.f32.mrf.mxu1  ;;  %7583 = vrcp.f32 %v9976_v18  ;;  %v2233_v11 = vmul.f32 %v1860_v29, %v9706_v4  ;;  %v10082_v29 = vadd.f32 %v9424_v19, %v9883_v54  ;;  %v1886_v54 = vand.u32 2147483647, %v9932_v28 }
 0x1f9   : > { %14272 = vst [vmem:[#allocation140_spill] sm:$0xff] %v9963_v52  ;;  %v9965_v53 = vpop.permute.xlu1 %3473  ;;  %2409 = vmatmul.f32.gmra.mxu2 %v2231_v7  ;;  %v2363_v36 = vadd.f32 %v9496_v43, %v2362_v33  ;;  %v9974_v37 = vpop.permute.xlu0 %3493  ;;  %v9980_v7 = vadd.f32 %v9424_v19, %v9757_v9  ;;  %v1845_v33 = vsel %vm1842_vm7, %v1844_v47, %v1840_v10  ;;  %v7752_v9 = vld [vmem:[%s13986_s3 + $0x1a0] sm:$0xff]  ;;  %v7753_v47 = vld [vmem:[%s13986_s3 + $0x198] sm:$0xff]  ;;  %vm1897_vm6 = vweird.f32 %v9976_v18 }
 0x1fa   : > { %14273 = vst [vmem:[#allocation141_spill] sm:$0xff] %v9965_v53  ;;  %v9999_v44 = vpop.eup %7579  ;;  %v7754_v10 = vld [vmem:[%s13986_s3 + $0x1c0] sm:$0xff]  ;;  %v10020_v53 = vpop.f32.mrf.mxu3  ;;  %vm10128_vm5 = vcmp.eq.f32.partialorder %v1886_v54, 8.507059e+37 }
 0x1fb   : > { %14274 = vst [vmem:[#allocation142_spill] sm:$0xff] %v9974_v37  ;;  %v9989_v61 = vsel %vm2486_vm8, %v2363_v36, 0.0  ;;  %v6521_v15 = vmul.f32 -1.442695, %v9980_v7  ;;  %v1865_v37 = vmul.f32 %v9942_v32, %v1864_v31  ;;  %v7755_v31 = vld [vmem:[%s13986_s3 + $0x1b8] sm:$0xff]  ;;  %vm1883_vm3 = vweird.f32 %v9999_v44 }
 0x1fc   : > { %2510 = vst.msk [vmem:[#allocation2 + $0xb8] sm:$0xff] %vm2486_vm8, %v2363_v36  ;;  %v2232_v36 = vmul.f32 %v1845_v33, %v9649_v45  ;;  %v1878_v45 = vmul.f32 %v9999_v44, %v9932_v28  ;;  %vm10116_vm4 = vmor %vm1882_vm2, %vm1883_vm3 }
 0x1fd   : > { %14276 = vst [vmem:[#allocation144_spill] sm:$0xff] %v9989_v61  ;;  %3657 = vperm.xlu2 %6760, %v7752_v9   ;;  %v7582_v9 = vpop.eup %7581  ;;  %7585 = vpow2.f32 %v6521_v15 }
 0x1fe   : > { %3653 = vperm.xlu1 %6759, %v7753_v47   ;;  %3673 = vperm.xlu0 %6758, %v7754_v10   ;;  %v10041_v63 = vadd.f32 1.0, %v7582_v9  ;;  %v1879_v15 = vsub.f32 1.0, %v1878_v45  ;;  %v7756_v9 = vld [vmem:[%s13986_s3 + $0x1b0] sm:$0xff] }
 0x200   : > { %v10018_v47 = vpop.permute.xlu2 %3525  ;;  %v2365_v10 = vpop.f32.mrf.mxu1  ;;  %7587 = vrcp.f32 %v10041_v63  ;;  %vm1912_vm11 = vweird.f32 %v10041_v63 }
 0x201   : > { %14279 = vst [vmem:[#allocation145_spill] sm:$0xff] %v10018_v47  ;;  %v10022_v52 = vpop.permute.xlu1 %3485  ;;  %2412 = vmatmul.f32.gmra.mxu2 %v2232_v36  ;;  %v10031_v33 = vadd.f32 %v9496_v43, %v2365_v10  ;;  %v10033_v17 = vpop.permute.xlu0 %3505  ;;  %v10037_v47 = vadd.f32 %v9424_v19, %v9818_v51  ;;  %v1866_v51 = vadd.f32 %v9942_v32, %v1865_v37 }
 0x202   : > { %14280 = vst [vmem:[#allocation146_spill] sm:$0xff] %v10022_v52  ;;  %v10051_v36 = vpop.eup %7583 }
 0x203   : > { %14281 = vst [vmem:[#allocation147_spill] sm:$0xff] %v10033_v17  ;;  %v6522_v10 = vmul.f32 -1.442695, %v10037_v47  ;;  %v1870_v0 = vsel %vm10063_vm15, %v9942_v32, %v1866_v51  ;;  %v1880_v17 = vmul.f32 %v9999_v44, %v1879_v15  ;;  %v1893_v4 = vmul.f32 %v10051_v36, %v9976_v18 }
 0x204   : > { %2511 = vst.msk [vmem:[#allocation2 + $0xc0] sm:$0xff] %vm2486_vm8, %v10031_v33  ;;  %vm1898_vm7 = vweird.f32 %v10051_v36 }
 0x205   : > { %3669 = vperm.xlu2 %6760, %v7755_v31   ;;  %v1874_v31 = vor.u32 1.1754944e-38, %v1873_v6  ;;  %7589 = vpow2.f32 %v6522_v10  ;;  %v1881_v15 = vadd.f32 %v9999_v44, %v1880_v17  ;;  %v1894_v37 = vsub.f32 1.0, %v1893_v4  ;;  %v7761_v17 = vld [vmem:[%s13986_s3 + $0x1e8] sm:$0xff]  ;;  %vm10190_vm9 = vmor %vm1897_vm6, %vm1898_vm7 }
 0x206   : > { %3665 = vperm.xlu1 %6759, %v7756_v9   ;;  %3685 = vperm.xlu0 %6758, %v7757_v26   ;;  %v7586_v9 = vpop.eup %7585 }
 0x207   : > { %v10093_v32 = vadd.f32 1.0, %v7586_v9  ;;  %v1875_v51 = vsel %vm1872_vm0, %v1874_v31, %v1870_v0  ;;  %v10103_v10 = vpop.eup %7587  ;;  %v6523_v9 = vmul.f32 -1.442695, %v10082_v29  ;;  %v7759_v31 = vld [vmem:[%s13986_s3 + $0x1c8] sm:$0xff]  ;;  %v7760_v0 = vld [vmem:[%s13986_s3 + $0x1f0] sm:$0xff] }
 0x208   : > { %v10070_v45 = vpop.permute.xlu2 %3537  ;;  %v2368_v52 = vpop.f32.mrf.mxu1  ;;  %v2234_v4 = vmul.f32 %v1875_v51, %v9769_v46  ;;  %v1895_v51 = vmul.f32 %v10051_v36, %v1894_v37  ;;  %v1908_v54 = vmul.f32 %v10103_v10, %v10041_v63  ;;  %vm1913_vm12 = vweird.f32 %v10103_v10 }
 0x209   : > { %14284 = vst [vmem:[#allocation148_spill] sm:$0xff] %v10070_v45  ;;  %v10072_v26 = vpop.permute.xlu1 %3497  ;;  %2415 = vmatmul.f32.gmra.mxu2 %v2233_v11  ;;  %v10085_v6 = vadd.f32 %v9496_v43, %v2368_v52  ;;  %v10087_v45 = vpop.permute.xlu0 %3517  ;;  %v1888_v52 = vand.u32 2147483648, %v9932_v28  ;;  %7591 = vrcp.f32 %v10093_v32  ;;  %vm10273_vm13 = vmor %vm1912_vm11, %vm1913_vm12  ;;  %vm1927_vm15 = vweird.f32 %v10093_v32 }
 0x20a   : > { %14285 = vst [vmem:[#allocation149_spill] sm:$0xff] %v10072_v26  ;;  %v10089_v11 = vpop.f32.mrf.mxu3  ;;  %v10134_v26 = vadd.f32 %v9424_v19, %v9959_v41  ;;  %v10150_v19 = vmul.f32 %v8477_v8, %v9873_v16  ;;  %7593 = vpow2.f32 %v6523_v9  ;;  %v1901_v8 = vand.u32 2147483647, %v9976_v18 }
 0x20b   : > { %14286 = vst [vmem:[#allocation150_spill] sm:$0xff] %v10087_v45  ;;  %v1889_v45 = vor.u32 1.1754944e-38, %v1888_v52  ;;  %v7590_v28 = vpop.eup %7589  ;;  %v10146_v52 = vsel %vm2486_vm8, %v9010_v42, 0.0 }
 0x20c   : > { %2512 = vst.msk [vmem:[#allocation2 + $0xc8] sm:$0xff] %vm2486_vm8, %v10085_v6  ;;  %v10165_v42 = vadd.f32 1.0, %v7590_v28  ;;  %v6524_v9 = vmul.f32 -1.442695, %v10134_v26  ;;  %v1896_v28 = vadd.f32 %v10051_v36, %v1895_v51  ;;  %v10198_v51 = vsel %vm2486_vm8, %v8933_v24, 0.0 }
 0x20d   : > { %3681 = vperm.xlu2 %6760, %v7758_v27   ;;  %v10123_v27 = vsel %vm2486_vm8, %v9051_v1, 0.0  ;;  %v1885_v1 = vsel %vm10116_vm4, %v9999_v44, %v1881_v15  ;;  %14294 = vst [vmem:[#allocation154_spill] sm:$0xff] %v10146_v52  ;;  %v10159_v44 = vmul.f32 %v8369_v25, %v9865_v34  ;;  %v1903_v25 = vand.u32 2147483648, %v9976_v18 }
 0x20e   : > { %3677 = vperm.xlu1 %6759, %v7759_v31   ;;  %3697 = vperm.xlu0 %6758, %v7760_v0   ;;  %14289 = vst [vmem:[#allocation151_spill] sm:$0xff] %v10123_v27  ;;  %v6766_v15 = vpack.i.bf16 %v10123_v27, %v10146_v52  ;;  %7595 = vrcp.f32 %v10165_v42  ;;  %vm10221_vm10 = vcmp.eq.f32.partialorder %v1901_v8, 8.507059e+37  ;;  %v1916_v0 = vand.u32 2147483647, %v10041_v63 }
 0x20f   : > { %14295 = vst [vmem:[#allocation155_spill] sm:$0xff] %v10150_v19  ;;  %7597 = vpow2.f32 %v6524_v9  ;;  %v10242_v9 = vsel %vm2486_vm8, %v9258_v39, 0.0  ;;  %v1918_v39 = vand.u32 2147483648, %v10041_v63  ;;  %v10291_v63 = vsel %vm2486_vm8, %v9169_v57, 0.0 }
 0x210   : > { %v10126_v31 = vpop.permute.xlu2 %3549  ;;  %v2371_v49 = vpop.f32.mrf.mxu1  ;;  %14297 = vst [vmem:[#allocation157_spill] sm:$0xff] %v10159_v44  ;;  %vm1917_vm14 = vcmp.eq.f32.partialorder %v1916_v0, 8.507059e+37  ;;  %v10325_v0 = vsel %vm2486_vm8, %v9499_v3, 0.0  ;;  %v1933_v3 = vand.u32 2147483648, %v10093_v32  ;;  %vm1942_vm4 = vweird.f32 %v10165_v42 }
 0x211   : > { %14290 = vst [vmem:[#allocation152_spill] sm:$0xff] %v10126_v31  ;;  %v10136_v46 = vpop.permute.xlu1 %3509  ;;  %2418 = vmatmul.f32.gmra.mxu2 %v2234_v4  ;;  %v10153_v41 = vadd.f32 %v9496_v43, %v2371_v49  ;;  %v10155_v4 = vpop.permute.xlu0 %3529  ;;  %v1890_v49 = vsel %vm10128_vm5, %v1889_v45, %v1885_v1  ;;  %v1909_v31 = vsub.f32 1.0, %v1908_v54  ;;  %v7762_v45 = vld [vmem:[%s13986_s3 + $0x1e0] sm:$0xff]  ;;  %v10202_v54 = vsel %vm2486_vm8, %v8969_v13, 0.0  ;;  %v7764_v1 = vld [vmem:[%s13986_s3 + $0x1f8] sm:$0xff] }
 0x212   : > { %14293 = vst [vmem:[#allocation153_spill] sm:$0xff] %v10136_v46  ;;  %v10173_v37 = vpop.f32.mrf.mxu3  ;;  %v2235_v18 = vmul.f32 %v1890_v49, %v9822_v5  ;;  %v1900_v46 = vsel %vm10190_vm9, %v10051_v36, %v1896_v28 }
 0x213   : > { %14296 = vst [vmem:[#allocation156_spill] sm:$0xff] %v10155_v4  ;;  %v10180_v4 = vpop.eup %7591  ;;  %v1910_v44 = vmul.f32 %v10103_v10, %v1909_v31 }
 0x214   : > { %2513 = vst.msk [vmem:[#allocation2 + $0xd0] sm:$0xff] %vm2486_vm8, %v10153_v41  ;;  %vm1928_vm0 = vweird.f32 %v10180_v4 }
 0x215   : > { %3693 = vperm.xlu2 %6760, %v7761_v17   ;;  %14300 = vst [vmem:[#allocation158_spill] sm:$0xff] %v10198_v51  ;;  %v7594_v17 = vpop.eup %7593  ;;  %v1911_v28 = vadd.f32 %v10103_v10, %v1910_v44  ;;  %vm10348_vm2 = vmor %vm1927_vm15, %vm1928_vm0 }
 0x216   : > { %3689 = vperm.xlu1 %6759, %v7762_v45   ;;  %6767 = vrot.lane.b32.xlu0 %v6766_v15, %s7869_s29  ;;  %14301 = vst [vmem:[#allocation159_spill] sm:$0xff] %v10202_v54  ;;  %v10206_v15 = vsel %vm2486_vm8, %v9294_v30, 0.0  ;;  %v10213_v45 = vld [vmem:[%s13989_s6] ss:$0 sm:$0xff]  ;;  %v1904_v30 = vor.u32 1.1754944e-38, %v1903_v25  ;;  %v6761_v25 = vpack.i.bf16 %v10202_v54, %v10198_v51 }
 0x217   : > { %14302 = vst [vmem:[#allocation160_spill] sm:$0xff] %v10206_v15  ;;  %v10217_v24 = vadd.f32 %v10213_v45, %v10020_v53  ;;  %v1923_v53 = vmul.f32 %v10180_v4, %v10093_v32 }
 0x218   : > { %v10219_v13 = vpop.permute.xlu2 %3561  ;;  %v2374_v5 = vpop.f32.mrf.mxu1  ;;  %14308 = vst [vmem:[#allocation164_spill] sm:$0xff] %v10242_v9  ;;  %v1905_v31 = vsel %vm10221_vm10, %v1904_v30, %v1900_v46 }
 0x219   : > { %14303 = vst [vmem:[#allocation161_spill] sm:$0xff] %v10219_v13  ;;  %v10225_v49 = vpop.permute.xlu1 %3521  ;;  %2421 = vmatmul.f32.gmra.mxu2 %v2235_v18  ;;  %v10234_v8 = vadd.f32 %v9496_v43, %v2374_v5  ;;  %v10236_v13 = vpop.permute.xlu0 %3541  ;;  %v10244_v18 = vadd.f32 1.0, %v7594_v17  ;;  %v6525_v36 = vmul.f32 -1.442695, %v10217_v24  ;;  %v6781_v43 = vpack.i.bf16 %v10206_v15, %v10242_v9 }
 0x21a   : > { %14306 = vst [vmem:[#allocation162_spill] sm:$0xff] %v10225_v49  ;;  %v1924_v17 = vsub.f32 1.0, %v1923_v53  ;;  %v10259_v5 = vpop.eup %7595  ;;  %v10263_v49 = vsel %vm2486_vm8, %v9087_v40, 0.0  ;;  %v10277_v44 = vpop.f32.mrf.mxu3  ;;  %v10281_v40 = vsel %vm2486_vm8, %v9126_v12, 0.0  ;;  %v10285_v53 = vsel %vm2486_vm8, %v9206_v20, 0.0 }
 0x21b   : > { %14307 = vst [vmem:[#allocation163_spill] sm:$0xff] %v10236_v13  ;;  %v7598_v30 = vpop.eup %7597  ;;  %7599 = vrcp.f32 %v10244_v18  ;;  %v1919_v12 = vor.u32 1.1754944e-38, %v1918_v39  ;;  %v1915_v20 = vsel %vm10273_vm13, %v10103_v10, %v1911_v28  ;;  %v6771_v10 = vpack.i.bf16 %v10281_v40, %v10263_v49 }
 0x21c   : > { %2514 = vst.msk [vmem:[#allocation2 + $0xd8] sm:$0xff] %vm2486_vm8, %v10234_v8  ;;  %7601 = vpow2.f32 %v6525_v36  ;;  %v1925_v57 = vmul.f32 %v10180_v4, %v1924_v17  ;;  %v10312_v36 = vld [vmem:[%s13991_s8] ss:$0 sm:$0xff]  ;;  %v6776_v28 = vpack.i.bf16 %v10285_v53, %v10291_v63  ;;  %v10329_v17 = vadd.f32 %v10213_v45, %v10089_v11 }
 0x21d   : > { %6762 = vrot.lane.b32.xlu2 %v6761_v25, %s7869_s29  ;;  %14311 = vst [vmem:[#allocation165_spill] sm:$0xff] %v10285_v53  ;;  %v2236_v25 = vmul.f32 %v1905_v31, %v9869_v56  ;;  %v1938_v56 = vmul.f32 %v10259_v5, %v10165_v42  ;;  %v1920_v46 = vsel %vm1917_vm14, %v1919_v12, %v1915_v20  ;;  %v10354_v20 = vsel %vm2486_vm8, %v9370_v35, 0.0 }
 0x21e   : > { %3701 = vperm.xlu1 %6759, %v7764_v1   ;;  %6782 = vrot.lane.b32.xlu0 %v6781_v43, %s7869_s29  ;;  %14312 = vst [vmem:[#allocation166_spill] sm:$0xff] %v10291_v63  ;;  %v10295_v43 = vsel %vm2486_vm8, %v9542_v2, 0.0  ;;  %v10307_v2 = vadd.f32 1.0, %v7598_v30  ;;  %v1931_v30 = vand.u32 2147483647, %v10093_v32  ;;  %v1926_v11 = vadd.f32 %v10180_v4, %v1925_v57 }
 0x21f   : > { %14316 = vst [vmem:[#allocation170_spill] sm:$0xff] %v10325_v0  ;;  %v10358_v57 = vsel %vm2486_vm8, %v9451_v38, 0.0  ;;  %v10368_v32 = vsel %vm2486_vm8, %v9408_v59, 0.0  ;;  %v1934_v38 = vor.u32 1.1754944e-38, %v1933_v3  ;;  %vm1943_vm5 = vweird.f32 %v10259_v5 }
 0x220   : > { %v10297_v1 = vpop.permute.xlu2 %3573  ;;  %v2377_v13 = vpop.f32.mrf.mxu1  ;;  %7603 = vrcp.f32 %v10307_v2  ;;  %vm10372_vm3 = vcmp.eq.f32.partialorder %v1931_v30, 8.507059e+37  ;;  %v10411_v12 = vsel %vm2486_vm8, %v9747_v60, 0.0  ;;  %v10424_v60 = vsel %vm2486_vm8, %v9588_v23, 0.0  ;;  %vm10435_vm6 = vmor %vm1942_vm4, %vm1943_vm5 }
 0x221   : > { %14313 = vst [vmem:[#allocation167_spill] sm:$0xff] %v10297_v1  ;;  %v10299_v19 = vpop.permute.xlu1 %3533  ;;  %2424 = vmatmul.f32.gmra.mxu2 %v2236_v25  ;;  %v10315_v31 = vadd.f32 %v10312_v36, %v2377_v13  ;;  %v10317_v39 = vpop.permute.xlu0 %3553  ;;  %v6796_v13 = vpack.i.bf16 %v10295_v43, %v10325_v0  ;;  %v14327_v35 = vpack.i.bf16 %v9873_v16, %v9865_v34  ;;  %vm1957_vm9 = vweird.f32 %v10244_v18 }
 0x222   : > { %14314 = vst [vmem:[#allocation168_spill] sm:$0xff] %v10299_v19  ;;  %v10339_v25 = vpop.eup %7599  ;;  %v1939_v19 = vsub.f32 1.0, %v1938_v56  ;;  %v6526_v56 = vmul.f32 -1.442695, %v10329_v17  ;;  %vm1972_vm13 = vweird.f32 %v10307_v2 }
 0x223   : > { %14315 = vst [vmem:[#allocation169_spill] sm:$0xff] %v10317_v39  ;;  %v7602_v1 = vpop.eup %7601  ;;  %v10376_v39 = vpop.f32.mrf.mxu3  ;;  %v1953_v30 = vmul.f32 %v10339_v25, %v10244_v18  ;;  %vm1958_vm10 = vweird.f32 %v10339_v25 }
 0x224   : > { %2515 = vst.msk [vmem:[#allocation2 + $0xe0] sm:$0xff] %vm2486_vm8, %v10315_v31  ;;  %v10378_v0 = vadd.f32 1.0, %v7602_v1  ;;  %v1940_v59 = vmul.f32 %v10259_v5, %v1939_v19  ;;  %v6791_v1 = vpack.i.bf16 %v10358_v57, %v10368_v32  ;;  %7605 = vpow2.f32 %v6526_v56  ;;  %vm10512_vm11 = vmor %vm1957_vm9, %vm1958_vm10 }
 0x225   : > { %6777 = vrot.lane.b32.xlu2 %v6776_v28, %s7869_s29  ;;  %v10364_v28 = vsel %vm2486_vm8, %v9332_v22, 0.0  ;;  %v1930_v22 = vsel %vm10348_vm2, %v10180_v4, %v1926_v11  ;;  %v10399_v4 = vadd.f32 %v10213_v45, %v10173_v37  ;;  %v10407_v11 = vsel %vm2486_vm8, %v9631_v48, 0.0  ;;  %14325 = vst [vmem:[#allocation175_spill] sm:$0xff] %v10411_v12 }
 0x226   : > { %6772 = vrot.lane.b32.xlu1 %v6771_v10, %s7869_s29  ;;  %6797 = vrot.lane.b32.xlu0 %v6796_v13, %s7869_s29  ;;  %v2237_v10 = vmul.f32 %v1920_v46, %v9927_v21  ;;  %v6786_v3 = vpack.i.bf16 %v10354_v20, %v10364_v28  ;;  %v10403_v19 = vpop.eup %7603  ;;  %14324 = vst [vmem:[#allocation174_spill] sm:$0xff] %v10407_v11  ;;  %v1948_v56 = vand.u32 2147483648, %v10165_v42  ;;  %7607 = vrcp.f32 %v10378_v0 }
 0x227   : > { %v1935_v37 = vsel %vm10372_vm3, %v1934_v38, %v1930_v22  ;;  %v1946_v48 = vand.u32 2147483647, %v10165_v42  ;;  %14326 = vst [vmem:[#allocation176_spill] sm:$0xff] %v10424_v60  ;;  %v10441_v22 = vsel %vm2486_vm8, %v9681_v14, 0.0  ;;  %v6527_v23 = vmul.f32 -1.442695, %v10399_v4 }
 0x228   : > { %v10370_v13 = vpop.permute.xlu2 %3585  ;;  %v2380_v21 = vpop.f32.mrf.mxu1  ;;  %14330 = vst [vmem:[#allocation177_spill] sm:$0xff] %v10441_v22  ;;  %v6806_v42 = vpack.i.bf16 %v10411_v12, %v10441_v22  ;;  %v10455_v14 = vsel %vm2486_vm8, %v10234_v8, 0.0  ;;  %vm1973_vm14 = vweird.f32 %v10403_v19  ;;  %vm1987_vm2 = vweird.f32 %v10378_v0 }
 0x229   : > { %14319 = vst [vmem:[#allocation171_spill] sm:$0xff] %v10370_v13  ;;  %v10380_v46 = vpop.permute.xlu1 %3545  ;;  %2427 = vmatmul.f32.gmra.mxu2 %v2237_v10  ;;  %v10393_v13 = vadd.f32 %v10312_v36, %v2380_v21  ;;  %v1941_v10 = vadd.f32 %v10259_v5, %v1940_v59  ;;  %v1954_v21 = vsub.f32 1.0, %v1953_v30  ;;  %v2238_v59 = vmul.f32 %v1935_v37, %v9980_v7  ;;  %vm10557_vm15 = vmor %vm1972_vm13, %vm1973_vm14 }
 0x22a   : > { %14322 = vst [vmem:[#allocation172_spill] sm:$0xff] %v10380_v46  ;;  %v10395_v46 = vpop.permute.xlu0 %3565  ;;  %v1968_v30 = vmul.f32 %v10403_v19, %v10307_v2  ;;  %vm10462_vm7 = vcmp.eq.f32.partialorder %v1946_v48, 8.507059e+37  ;;  %7609 = vpow2.f32 %v6527_v23  ;;  %v10501_v23 = vmul.f32 %v8474_v62, %v9985_v58 }
 0x22b   : > { %14323 = vst [vmem:[#allocation173_spill] sm:$0xff] %v10395_v46  ;;  %v7606_v46 = vpop.eup %7605  ;;  %v1945_v7 = vsel %vm10435_vm6, %v10259_v5, %v1941_v10  ;;  %v10484_v10 = vsel %vm2486_vm8, %v10153_v41, 0.0  ;;  %v1963_v41 = vand.u32 2147483648, %v10244_v18 }
 0x22c   : > { %2516 = vst.msk [vmem:[#allocation2 + $0xe8] sm:$0xff] %vm2486_vm8, %v10393_v13  ;;  %v10480_v5 = vpop.eup %7607  ;;  %v6826_v48 = vpack.i.bf16 %v10455_v14, %v10484_v10 }
 0x22d   : > { %6792 = vrot.lane.b32.xlu2 %v6791_v1, %s7869_s29  ;;  %v1983_v62 = vmul.f32 %v10480_v5, %v10378_v0  ;;  %v1964_v37 = vor.u32 1.1754944e-38, %v1963_v41  ;;  %v1978_v41 = vand.u32 2147483648, %v10307_v2  ;;  %vm1988_vm3 = vweird.f32 %v10480_v5 }
 0x22e   : > { %6787 = vrot.lane.b32.xlu1 %v6786_v3, %s7869_s29  ;;  %6812 = vrot.lane.b32.xlu0 %v14327_v35, %s7869_s29  ;;  %v6801_v3 = vpack.i.bf16 %v10407_v11, %v10424_v60  ;;  %v1949_v35 = vor.u32 1.1754944e-38, %v1948_v56  ;;  %v10469_v56 = vmul.f32 %v8392_v55, %v9989_v61  ;;  %v10488_v55 = vadd.f32 %v10213_v45, %v10277_v44  ;;  %vm10626_vm4 = vmor %vm1987_vm2, %vm1988_vm3 }
 0x230   : > { %v10451_v1 = vpop.permute.xlu2 %3597  ;;  %v2383_v34 = vpop.f32.mrf.mxu1  ;;  %v1950_v38 = vsel %vm10462_vm7, %v1949_v35, %v1945_v7  ;;  %v10525_v7 = vsel %vm2486_vm8, %v10085_v6, 0.0  ;;  %v10539_v6 = vsel %vm2486_vm8, %v10031_v33, 0.0 }
 0x231   : > { %14331 = vst [vmem:[#allocation178_spill] sm:$0xff] %v10451_v1  ;;  %v10457_v16 = vpop.permute.xlu1 %3557  ;;  %2430 = vmatmul.f32.gmra.mxu2 %v2238_v59  ;;  %v1955_v1 = vmul.f32 %v10339_v25, %v1954_v21  ;;  %v10472_v8 = vadd.f32 %v10312_v36, %v2383_v34  ;;  %v10476_v59 = vpop.f32.mrf.mxu3  ;;  %v1969_v34 = vsub.f32 1.0, %v1968_v30  ;;  %v10492_v21 = vadd.f32 1.0, %v7606_v46 }
 0x232   : > { %14332 = vst [vmem:[#allocation179_spill] sm:$0xff] %v10457_v16  ;;  %v10474_v22 = vpop.permute.xlu0 %3577  ;;  %v1961_v30 = vand.u32 2147483647, %v10244_v18  ;;  %v6821_v46 = vpack.i.bf16 %v10525_v7, %v10539_v6 }
 0x233   : > { %14335 = vst [vmem:[#allocation180_spill] sm:$0xff] %v10474_v22  ;;  %v1956_v44 = vadd.f32 %v10339_v25, %v1955_v1  ;;  %v2239_v1 = vmul.f32 %v1950_v38, %v10037_v47  ;;  %v1970_v35 = vmul.f32 %v10403_v19, %v1969_v34  ;;  %7611 = vrcp.f32 %v10492_v21 }
 0x234   : > { %2517 = vst.msk [vmem:[#allocation2 + $0xf0] sm:$0xff] %vm2486_vm8, %v10472_v8  ;;  %vm1962_vm12 = vcmp.eq.f32.partialorder %v1961_v30, 8.507059e+37  ;;  %vm2002_vm6 = vweird.f32 %v10492_v21 }
 0x235   : > { %6807 = vrot.lane.b32.xlu2 %v6806_v42, %s7869_s29  ;;  %v6528_v42 = vmul.f32 -1.442695, %v10488_v55  ;;  %v1960_v47 = vsel %vm10512_vm11, %v10339_v25, %v1956_v44  ;;  %v10549_v25 = vadd.f32 %v10213_v45, %v10376_v39  ;;  %v1971_v44 = vadd.f32 %v10403_v19, %v1970_v35 }
 0x236   : > { %6802 = vrot.lane.b32.xlu1 %v6801_v3, %s7869_s29  ;;  %6827 = vrot.lane.b32.xlu0 %v6826_v48, %s7869_s29  ;;  %v7610_v48 = vpop.eup %7609  ;;  %v1965_v33 = vsel %vm1962_vm12, %v1964_v37, %v1960_v47  ;;  %v14343_v35 = vpack.i.bf16 %v9989_v61, %v9985_v58 }
 0x237   : > { %7613 = vpow2.f32 %v6528_v42  ;;  %v10552_v30 = vadd.f32 1.0, %v7610_v48  ;;  %v1976_v42 = vand.u32 2147483647, %v10307_v2  ;;  %v6529_v48 = vmul.f32 -1.442695, %v10549_v25 }
 0x238   : > { %v10528_v18 = vpop.permute.xlu2 %3609  ;;  %v2386_v22 = vpop.f32.mrf.mxu1  ;;  %v2240_v47 = vmul.f32 %v1965_v33, %v10082_v29  ;;  %v1975_v3 = vsel %vm10557_vm15, %v10403_v19, %v1971_v44  ;;  %v1979_v2 = vor.u32 1.1754944e-38, %v1978_v41  ;;  %v10588_v29 = vsel %vm2486_vm8, %v10393_v13, 0.0 }
 0x239   : > { %14338 = vst [vmem:[#allocation181_spill] sm:$0xff] %v10528_v18  ;;  %v10530_v16 = vpop.permute.xlu1 %3569  ;;  %2433 = vmatmul.f32.gmra.mxu2 %v2239_v1  ;;  %v2387_v34 = vadd.f32 %v10312_v36, %v2386_v22  ;;  %v1984_v1 = vsub.f32 1.0, %v1983_v62  ;;  %v952_v22 = vpop.f32.mrf.mxu3  ;;  %7615 = vrcp.f32 %v10552_v30  ;;  %vm10581_vm0 = vcmp.eq.f32.partialorder %v1976_v42, 8.507059e+37 }
 0x23a   : > { %14339 = vst [vmem:[#allocation182_spill] sm:$0xff] %v10530_v16  ;;  %v10542_v38 = vpop.permute.xlu0 %3589  ;;  %v10563_v39 = vpop.eup %7611  ;;  %v10598_v44 = vsel %vm2486_vm8, %v10472_v8, 0.0  ;;  %v1991_v42 = vand.u32 2147483647, %v10378_v0  ;;  %7617 = vpow2.f32 %v6529_v48  ;;  %v10613_v8 = vadd.f32 %v10213_v45, %v10476_v59 }
 0x23b   : > { %14340 = vst [vmem:[#allocation183_spill] sm:$0xff] %v10542_v38  ;;  %v1985_v37 = vmul.f32 %v10480_v5, %v1984_v1  ;;  %v1993_v1 = vand.u32 2147483648, %v10378_v0  ;;  %v14352_v38 = vld [vmem:[#allocation12_spill] sm:$0xff]  ;;  %vm2003_vm7 = vweird.f32 %v10563_v39  ;;  %vm2017_vm11 = vweird.f32 %v10552_v30 }
 0x23c   : > { %2518 = vst.msk [vmem:[#allocation2 + $0xf8] sm:$0xff] %vm2486_vm8, %v2387_v34  ;;  %vm10645_vm5 = vcmp.eq.f32.partialorder %v1991_v42, 8.507059e+37  ;;  %vm10698_vm9 = vmor %vm2002_vm6, %vm2003_vm7 }
 0x23d   : > { %6822 = vrot.lane.b32.xlu2 %v6821_v46, %s7869_s29  ;;  %v10577_v46 = vsel %vm2486_vm8, %v2387_v34, 0.0  ;;  %v7614_v16 = vpop.eup %7613  ;;  %14347 = vst [vmem:[#allocation185_spill] sm:$0xff] %v10588_v29  ;;  %v1998_v34 = vmul.f32 %v10563_v39, %v10492_v21  ;;  %v1986_v13 = vadd.f32 %v10480_v5, %v1985_v37  ;;  %v1980_v37 = vsel %vm10581_vm0, %v1979_v2, %v1975_v3 }
 0x23e   : > { %6817 = vrot.lane.b32.xlu1 %v14343_v35, %s7869_s29  ;;  %v3067_v35 = vmul.f32 %v14352_v38, %v10123_v27  ;;  %v1994_v0 = vor.u32 1.1754944e-38, %v1993_v1  ;;  %v6530_v2 = vmul.f32 -1.442695, %v10613_v8 }
 0x23f   : > { %v1999_v59 = vsub.f32 1.0, %v1998_v34  ;;  %v10631_v48 = vpop.eup %7615 }
 0x240   : > { %v10579_v18 = vpop.permute.xlu2 %3621  ;;  %v2389_v19 = vpop.f32.mrf.mxu1  ;;  %v2013_v42 = vmul.f32 %v10631_v48, %v10552_v30  ;;  %vm2018_vm12 = vweird.f32 %v10631_v48 }
 0x241   : > { %14344 = vst [vmem:[#allocation184_spill] sm:$0xff] %v10579_v18  ;;  %v10590_v41 = vpop.permute.xlu1 %3581  ;;  %2436 = vmatmul.f32.gmra.mxu2 %v2240_v47  ;;  %v2390_v33 = vadd.f32 %v10312_v36, %v2389_v19  ;;  %v10607_v47 = vsel %vm2486_vm8, %v10315_v31, 0.0  ;;  %v10638_v3 = vpop.f32.mrf.mxu3  ;;  %v2241_v18 = vmul.f32 %v1980_v37, %v10134_v26  ;;  %v10657_v26 = vadd.f32 %v10213_v45, %v952_v22  ;;  %vm10751_vm13 = vmor %vm2017_vm11, %vm2018_vm12 }
 0x242   : > { %14348 = vst [vmem:[#allocation186_spill] sm:$0xff] %v10590_v41  ;;  %v10601_v62 = vpop.permute.xlu0 %3601  ;;  %v6836_v41 = vpack.i.bf16 %v10577_v46, %v10598_v44  ;;  %v6831_v19 = vpack.i.bf16 %v10588_v29, %v10607_v47  ;;  %v7618_v61 = vpop.eup %7617 }
 0x243   : > { %14349 = vst [vmem:[#allocation187_spill] sm:$0xff] %v10601_v62  ;;  %v10617_v62 = vadd.f32 1.0, %v7614_v16  ;;  %v3065_v16 = vmul.f32 %v8311_v50, %v10202_v54  ;;  %v14355_v50 = vld [vmem:[#allocation10_spill] sm:$0xff]  ;;  %v10672_v22 = vadd.f32 1.0, %v7618_v61 }
 0x244   : > { %2519 = vst.msk [vmem:[#allocation2 + $0x100] sm:$0xff] %vm2486_vm8, %v2390_v33  ;;  %v3064_v38 = vmul.f32 %v14355_v50, %v10198_v51 }
 0x245   : > { %6837 = vrot.lane.b32.xlu2 %v6836_v41, %s7869_s29  ;;  %v1990_v41 = vsel %vm10626_vm4, %v10480_v5, %v1986_v13  ;;  %7619 = vrcp.f32 %v10617_v62  ;;  %v2000_v13 = vmul.f32 %v10563_v39, %v1999_v59  ;;  %v10675_v59 = vsel %vm2486_vm8, %v2390_v33, 0.0 }
 0x246   : > { %6832 = vrot.lane.b32.xlu1 %v6831_v19, %s7869_s29  ;;  %v14356_v19 = vld [vmem:[#allocation9_spill] sm:$0xff]  ;;  %v6846_v51 = vpack.i.bf16 %v3065_v16, %v3064_v38  ;;  %7621 = vpow2.f32 %v6530_v2  ;;  %v2006_v16 = vand.u32 2147483647, %v10492_v21  ;;  %v2014_v2 = vsub.f32 1.0, %v2013_v42  ;;  %v14362_v38 = vld [vmem:[#allocation6_spill] sm:$0xff] }
 0x247   : > { %v3066_v58 = vmul.f32 %v14356_v19, %v10146_v52  ;;  %v2001_v61 = vadd.f32 %v10563_v39, %v2000_v13  ;;  %v14365_v13 = vld [vmem:[#allocation15_spill] sm:$0xff]  ;;  %7623 = vrcp.f32 %v10672_v22  ;;  %vm2032_vm15 = vweird.f32 %v10617_v62 }
 0x248   : > { %v10654_v1 = vpop.permute.xlu2 %3633  ;;  %v2392_v37 = vpop.f32.mrf.mxu1  ;;  %v3070_v42 = vmul.f32 %v14365_v13, %v10291_v63  ;;  %vm10715_vm10 = vcmp.eq.f32.partialorder %v2006_v16, 8.507059e+37  ;;  %vm2047_vm4 = vweird.f32 %v10672_v22 }
 0x249   : > { %14357 = vst [vmem:[#allocation12_spill] sm:$0xff] %v10654_v1  ;;  %v10659_v5 = vpop.permute.xlu1 %3593  ;;  %2439 = vmatmul.f32.gmra.mxu2 %v2241_v18  ;;  %v2393_v31 = vadd.f32 %v10312_v36, %v2392_v37  ;;  %v6851_v19 = vpack.i.bf16 %v3067_v35, %v3066_v58  ;;  %v1995_v1 = vsel %vm10645_vm5, %v1994_v0, %v1990_v41  ;;  %v2008_v18 = vand.u32 2147483648, %v10492_v21  ;;  %v14361_v41 = vld [vmem:[#allocation5_spill] sm:$0xff]  ;;  %v958_v54 = vpop.f32.mrf.mxu3 }
 0x24a   : > { %14358 = vst [vmem:[#allocation10_spill] sm:$0xff] %v10659_v5  ;;  %v10665_v50 = vpop.permute.xlu0 %3613  ;;  %v6531_v35 = vmul.f32 -1.442695, %v10657_v26  ;;  %v3068_v34 = vmul.f32 %v14361_v41, %v10263_v49  ;;  %v3069_v37 = vmul.f32 %v14362_v38, %v10281_v40  ;;  %v14367_v41 = vld [vmem:[#allocation17_spill] sm:$0xff]  ;;  %v14368_v38 = vld [vmem:[#allocation7_spill] sm:$0xff]  ;;  %v10758_v13 = vadd.f32 %v10213_v45, %v958_v54 }
 0x24b   : > { %14359 = vst [vmem:[#allocation9_spill] sm:$0xff] %v10665_v50  ;;  %v10679_v58 = vsel %vm2486_vm8, %v2393_v31, 0.0  ;;  %v10687_v33 = vpop.eup %7619  ;;  %v3073_v50 = vmul.f32 %v14367_v41, %v10206_v15  ;;  %v3072_v21 = vmul.f32 %v14368_v38, %v10242_v9 }
 0x24c   : > { %2520 = vst.msk [vmem:[#allocation2 + $0x108] sm:$0xff] %vm2486_vm8, %v2393_v31  ;;  %v6841_v0 = vpack.i.bf16 %v10679_v58, %v10675_v59  ;;  %v7622_v63 = vpop.eup %7621  ;;  %7625 = vpow2.f32 %v6531_v35  ;;  %v6856_v16 = vpack.i.bf16 %v3069_v37, %v3068_v34  ;;  %v10735_v35 = vadd.f32 %v10213_v45, %v10638_v3  ;;  %v14374_v3 = vld [vmem:[#allocation8_spill] sm:$0xff] }
 0x24d   : > { %14360 = vst [vmem:[#allocation188_spill] sm:$0xff] %v10679_v58  ;;  %6852 = vrot.lane.b32.xlu2 %v6851_v19, %s7870_s20  ;;  %v14366_v19 = vld [vmem:[#allocation14_spill] sm:$0xff]  ;;  %v10744_v37 = vpop.eup %7623  ;;  %v3075_v31 = vmul.f32 %v14374_v3, %v10354_v20  ;;  %vm2033_vm0 = vweird.f32 %v10687_v33 }
 0x24e   : > { %6847 = vrot.lane.b32.xlu1 %v6846_v51, %s7870_s20  ;;  %v3071_v5 = vmul.f32 %v14366_v19, %v10285_v53  ;;  %6842 = vrot.lane.b32.xlu0 %v6841_v0, %s7869_s29  ;;  %v2242_v51 = vmul.f32 %v1995_v1, %v10217_v24  ;;  %v2009_v19 = vor.u32 1.1754944e-38, %v2008_v18  ;;  %v2005_v24 = vsel %vm10698_vm9, %v10563_v39, %v2001_v61  ;;  %vm10794_vm2 = vmor %vm2032_vm15, %vm2033_vm0 }
 0x24f   : > { %v2015_v1 = vmul.f32 %v10631_v48, %v2014_v2  ;;  %v2028_v0 = vmul.f32 %v10687_v33, %v10617_v62  ;;  %v10731_v18 = vadd.f32 1.0, %v7622_v63  ;;  %v2023_v2 = vand.u32 2147483648, %v10552_v30 }
 0x250   : > { %v10713_v52 = vpop.permute.xlu2 %3645  ;;  %v6861_v9 = vpack.i.bf16 %v3071_v5, %v3070_v42  ;;  %v2010_v61 = vsel %vm10715_vm10, %v2009_v19, %v2005_v24  ;;  %v14379_v24 = vld [vmem:[#allocation11_spill] sm:$0xff]  ;;  %v2038_v42 = vand.u32 2147483648, %v10617_v62  ;;  %vm2048_vm5 = vweird.f32 %v10744_v37 }
 0x251   : > { %14369 = vst [vmem:[#allocation5_spill] sm:$0xff] %v10713_v52  ;;  %v10719_v41 = vpop.permute.xlu1 %3605  ;;  %2442 = vmatmul.f32.gmra.mxu2 %v2242_v51  ;;  %v6866_v52 = vpack.i.bf16 %v3073_v50, %v3072_v21  ;;  %v2016_v5 = vadd.f32 %v10631_v48, %v2015_v1  ;;  %v2021_v50 = vand.u32 2147483647, %v10552_v30  ;;  %v2029_v63 = vsub.f32 1.0, %v2028_v0  ;;  %vm10860_vm6 = vmor %vm2047_vm4, %vm2048_vm5 }
 0x252   : > { %14372 = vst [vmem:[#allocation6_spill] sm:$0xff] %v10719_v41  ;;  %v10727_v38 = vpop.permute.xlu0 %3625  ;;  %v7626_v51 = vpop.eup %7625  ;;  %v2243_v19 = vmul.f32 %v2010_v61, %v10329_v17  ;;  %7627 = vrcp.f32 %v10731_v18  ;;  %v6532_v1 = vmul.f32 -1.442695, %v10735_v35  ;;  %v14382_v61 = vld [vmem:[#allocation16_spill] sm:$0xff]  ;;  %v14395_v41 = vld [vmem:[#allocation157_spill] sm:$0xff]  ;;  %vm2062_vm9 = vweird.f32 %v10731_v18 }
 0x253   : > { %14373 = vst [vmem:[#allocation15_spill] sm:$0xff] %v10727_v38  ;;  %v2020_v54 = vsel %vm10751_vm13, %v10631_v48, %v2016_v5  ;;  %vm2022_vm14 = vcmp.eq.f32.partialorder %v2021_v50, 8.507059e+37  ;;  %v2030_v17 = vmul.f32 %v10687_v33, %v2029_v63  ;;  %v2036_v63 = vand.u32 2147483647, %v10617_v62 }
 0x254   : > { %v2395_v39 = vpop.f32.mrf.mxu2  ;;  %7629 = vpow2.f32 %v6532_v1 }
 0x255   : > { %v2396_v34 = vadd.f32 %v10312_v36, %v2395_v39  ;;  %6867 = vrot.lane.b32.xlu2 %v6866_v52, %s7870_s20  ;;  %v14377_v52 = vld [vmem:[#allocation22_spill] sm:$0xff]  ;;  %v2024_v39 = vor.u32 1.1754944e-38, %v2023_v2  ;;  %v961_v2 = vpop.f32.mrf.mxu3  ;;  %vm10814_vm3 = vcmp.eq.f32.partialorder %v2036_v63, 8.507059e+37 }
 0x256   : > { %6862 = vrot.lane.b32.xlu1 %v6861_v9, %s7870_s20  ;;  %v3079_v21 = vmul.f32 %v14377_v52, %v10295_v43  ;;  %6857 = vrot.lane.b32.xlu0 %v6856_v16, %s7870_s20  ;;  %v14378_v9 = vld [vmem:[#allocation170_spill] sm:$0xff]  ;;  %v2043_v16 = vmul.f32 %v10744_v37, %v10672_v22  ;;  %v3074_v52 = vmul.f32 %v14382_v61, %v10364_v28 }
 0x257   : > { %2521 = vst.msk [vmem:[#allocation2 + $0x110] sm:$0xff] %vm2486_vm8, %v2396_v34  ;;  %v3078_v30 = vmul.f32 %v14379_v24, %v14378_v9  ;;  %v10779_v24 = vadd.f32 1.0, %v7626_v51  ;;  %v2025_v50 = vsel %vm2022_vm14, %v2024_v39, %v2020_v54  ;;  %v2031_v61 = vadd.f32 %v10687_v33, %v2030_v17 }
 0x258   : > { %v10767_v0 = vpop.permute.xlu2 %3657  ;;  %v6871_v5 = vpack.i.bf16 %v3075_v31, %v3074_v52  ;;  %v2044_v38 = vsub.f32 1.0, %v2043_v16  ;;  %v14386_v31 = vld [vmem:[#allocation13_spill] sm:$0xff]  ;;  %v2244_v1 = vmul.f32 %v2025_v50, %v10399_v4  ;;  %v10810_v54 = vadd.f32 %v10213_v45, %v961_v2  ;;  %v14398_v16 = vld [vmem:[#allocation32_spill] sm:$0xff] }
 0x259   : > { %14380 = vst [vmem:[#allocation14_spill] sm:$0xff] %v10767_v0  ;;  %v10769_v3 = vpop.permute.xlu1 %3617  ;;  %2445 = vmatmul.f32.gmra.mxu2 %v2243_v19  ;;  %v6533_v19 = vmul.f32 -1.442695, %v10758_v13  ;;  %7631 = vrcp.f32 %v10779_v24  ;;  %v3081_v39 = vmul.f32 %v14386_v31, %v10407_v11  ;;  %v2039_v52 = vor.u32 1.1754944e-38, %v2038_v42 }
 0x25a   : > { %14381 = vst [vmem:[#allocation17_spill] sm:$0xff] %v10769_v3  ;;  %v10781_v0 = vpop.permute.xlu0 %3637  ;;  %v6886_v3 = vpack.i.bf16 %v3079_v21, %v3078_v30  ;;  %v10791_v21 = vpop.eup %7627  ;;  %v2035_v4 = vsel %vm10794_vm2, %v10687_v33, %v2031_v61  ;;  %v2051_v9 = vand.u32 2147483647, %v10672_v22  ;;  %vm2077_vm13 = vweird.f32 %v10779_v24 }
 0x25b   : > { %14383 = vst [vmem:[#allocation7_spill] sm:$0xff] %v10781_v0  ;;  %7633 = vpow2.f32 %v6533_v19  ;;  %v2058_v2 = vmul.f32 %v10791_v21, %v10731_v18  ;;  %v7630_v42 = vpop.eup %7629  ;;  %vm2063_vm10 = vweird.f32 %v10791_v21 }
 0x25c   : > { %v2398_v48 = vpop.f32.mrf.mxu2  ;;  %vm2052_vm7 = vcmp.eq.f32.partialorder %v2051_v9, 8.507059e+37  ;;  %vm10905_vm11 = vmor %vm2062_vm9, %vm2063_vm10 }
 0x25d   : > { %v2399_v51 = vadd.f32 %v10312_v36, %v2398_v48  ;;  %6887 = vrot.lane.b32.xlu2 %v6886_v3, %s7870_s20  ;;  %v10807_v3 = vsel %vm2486_vm8, %v2396_v34, 0.0  ;;  %v2045_v34 = vmul.f32 %v10744_v37, %v2044_v38  ;;  %v6534_v38 = vmul.f32 -1.442695, %v10810_v54  ;;  %v964_v61 = vpop.f32.mrf.mxu3 }
 0x25e   : > { %6872 = vrot.lane.b32.xlu0 %v6871_v5, %s7870_s20  ;;  %v14391_v5 = vld [vmem:[#allocation21_spill] sm:$0xff] }
 0x25f   : > { %2522 = vst.msk [vmem:[#allocation2 + $0x118] sm:$0xff] %vm2486_vm8, %v2399_v51  ;;  %v10802_v62 = vsel %vm2486_vm8, %v2399_v51, 0.0  ;;  %v3080_v50 = vmul.f32 %v14391_v5, %v10424_v60  ;;  %v14393_v51 = vld [vmem:[#allocation18_spill] sm:$0xff]  ;;  %v10837_v33 = vpop.eup %7631  ;;  %v2040_v5 = vsel %vm10814_vm3, %v2039_v52, %v2035_v4  ;;  %v2046_v0 = vadd.f32 %v10744_v37, %v2045_v34  ;;  %v14401_v34 = vld [vmem:[#allocation20_spill] sm:$0xff] }
 0x260   : > { %v10812_v17 = vpop.permute.xlu2 %3669  ;;  %v6876_v48 = vpack.i.bf16 %v10802_v62, %v10807_v3  ;;  %v3077_v31 = vmul.f32 %v14393_v51, %v10358_v57  ;;  %v2059_v60 = vsub.f32 1.0, %v2058_v2  ;;  %v10854_v52 = vmul.f32 %v14398_v16, %v10455_v14 }
 0x261   : > { %14387 = vst [vmem:[#allocation8_spill] sm:$0xff] %v10812_v17  ;;  %v10818_v19 = vpop.permute.xlu1 %3629  ;;  %2448 = vmatmul.f32.gmra.mxu2 %v2244_v1  ;;  %v6891_v1 = vpack.i.bf16 %v3081_v39, %v3080_v50  ;;  %v7634_v17 = vpop.eup %7633  ;;  %v14397_v39 = vld [vmem:[#allocation19_spill] sm:$0xff]  ;;  %v10871_v2 = vmul.f32 %v14401_v34, %v10484_v10  ;;  %7635 = vpow2.f32 %v6534_v38  ;;  %v14407_v34 = vld [vmem:[#allocation25_spill] sm:$0xff]  ;;  %vm2078_vm14 = vweird.f32 %v10837_v33 }
 0x262   : > { %14390 = vst [vmem:[#allocation22_spill] sm:$0xff] %v10818_v19  ;;  %v10830_v63 = vpop.permute.xlu0 %3649  ;;  %6877 = vrot.lane.b32.xlu1 %v6876_v48, %s7869_s29  ;;  %v14394_v48 = vld [vmem:[#allocation155_spill] sm:$0xff]  ;;  %v3076_v50 = vmul.f32 %v14397_v39, %v10368_v32  ;;  %v10875_v39 = vadd.f32 1.0, %v7634_v17  ;;  %v10891_v17 = vadd.f32 %v10213_v45, %v964_v61  ;;  %vm10962_vm15 = vmor %vm2077_vm13, %vm2078_vm14 }
 0x263   : > { %14392 = vst [vmem:[#allocation11_spill] sm:$0xff] %v10830_v63  ;;  %v2053_v63 = vand.u32 2147483648, %v10672_v22  ;;  %v14396_v19 = vpack.i.bf16 %v14394_v48, %v14395_v41  ;;  %v10864_v41 = vadd.f32 1.0, %v7630_v42  ;;  %v2050_v42 = vsel %vm10860_vm6, %v10744_v37, %v2046_v0 }
 0x264   : > { %v2401_v30 = vpop.f32.mrf.mxu2  ;;  %v6881_v22 = vpack.i.bf16 %v3077_v31, %v3076_v50  ;;  %v2068_v31 = vand.u32 2147483648, %v10731_v18  ;;  %v2066_v50 = vand.u32 2147483647, %v10731_v18  ;;  %v14411_v18 = vpack.i.bf16 %v10469_v56, %v10501_v23 }
 0x265   : > { %v2402_v51 = vadd.f32 %v10312_v36, %v2401_v30  ;;  %6902 = vrot.lane.b32.xlu2 %v14396_v19, %s7870_s20  ;;  %v2245_v19 = vmul.f32 %v2040_v5, %v10488_v55  ;;  %v2054_v48 = vor.u32 1.1754944e-38, %v2053_v63  ;;  %v2060_v55 = vmul.f32 %v10791_v21, %v2059_v60  ;;  %v14405_v60 = vld [vmem:[#allocation24_spill] sm:$0xff]  ;;  %v967_v38 = vpop.f32.mrf.mxu3 }
 0x266   : > { %6892 = vrot.lane.b32.xlu0 %v6891_v1, %s7870_s20  ;;  %v2073_v63 = vmul.f32 %v10837_v33, %v10779_v24  ;;  %7637 = vrcp.f32 %v10864_v41  ;;  %v3083_v37 = vmul.f32 %v14405_v60, %v10411_v12  ;;  %vm2067_vm12 = vcmp.eq.f32.partialorder %v2066_v50, 8.507059e+37 }
 0x267   : > { %2523 = vst.msk [vmem:[#allocation2 + $0x120] sm:$0xff] %vm2486_vm8, %v2402_v51  ;;  %v2055_v0 = vsel %vm2052_vm7, %v2054_v48, %v2050_v42  ;;  %7639 = vrcp.f32 %v10875_v39  ;;  %v2061_v61 = vadd.f32 %v10791_v21, %v2060_v55  ;;  %v7636_v4 = vpop.eup %7635  ;;  %v6535_v42 = vmul.f32 -1.442695, %v10891_v17 }
 0x268   : > { %v10873_v30 = vpop.permute.xlu2 %3681  ;;  %v2074_v48 = vsub.f32 1.0, %v2073_v63  ;;  %v10911_v60 = vsel %vm2486_vm8, %v2402_v51, 0.0  ;;  %v2069_v51 = vor.u32 1.1754944e-38, %v2068_v31  ;;  %vm2092_vm2 = vweird.f32 %v10864_v41 }
 0x269   : > { %14402 = vst [vmem:[#allocation16_spill] sm:$0xff] %v10873_v30  ;;  %v10877_v16 = vpop.permute.xlu1 %3641  ;;  %2451 = vmatmul.f32.gmra.mxu2 %v2245_v19  ;;  %v14406_v19 = vld [vmem:[#allocation177_spill] sm:$0xff]  ;;  %v2065_v56 = vsel %vm10905_vm11, %v10791_v21, %v2061_v61  ;;  %7641 = vpow2.f32 %v6535_v42  ;;  %v14417_v21 = vld [vmem:[#allocation28_spill] sm:$0xff]  ;;  %vm2107_vm6 = vweird.f32 %v10875_v39 }
 0x26a   : > { %14403 = vst [vmem:[#allocation13_spill] sm:$0xff] %v10877_v16  ;;  %v10883_v1 = vpop.permute.xlu0 %3661  ;;  %6882 = vrot.lane.b32.xlu1 %v6881_v22, %s7870_s20  ;;  %v3082_v22 = vmul.f32 %v14407_v34, %v14406_v19  ;;  %v14413_v19 = vld [vmem:[#allocation23_spill] sm:$0xff]  ;;  %v2075_v23 = vmul.f32 %v10837_v33, %v2074_v48  ;;  %v3089_v16 = vmul.f32 %v14417_v21, %v10525_v7 }
 0x26b   : > { %14404 = vst [vmem:[#allocation21_spill] sm:$0xff] %v10883_v1  ;;  %v2070_v50 = vsel %vm2067_vm12, %v2069_v51, %v2065_v56  ;;  %v14420_v56 = vld [vmem:[#allocation29_spill] sm:$0xff] }
 0x26c   : > { %v2404_v9 = vpop.f32.mrf.mxu2  ;;  %v6896_v30 = vpack.i.bf16 %v3083_v37, %v3082_v22  ;;  %v10926_v1 = vpop.eup %7637  ;;  %v10938_v37 = vadd.f32 1.0, %v7636_v4  ;;  %v2083_v4 = vand.u32 2147483648, %v10779_v24 }
 0x26d   : > { %v2405_v5 = vadd.f32 %v10312_v36, %v2404_v9  ;;  %v2246_v9 = vmul.f32 %v2055_v0, %v10549_v25  ;;  %v14415_v25 = vld [vmem:[#allocation31_spill] sm:$0xff]  ;;  %v10941_v31 = vpop.eup %7639  ;;  %v2088_v48 = vmul.f32 %v10926_v1, %v10864_v41  ;;  %vm2093_vm3 = vweird.f32 %v10926_v1 }
 0x26e   : > { %6907 = vrot.lane.b32.xlu0 %v14411_v18, %s7870_s20  ;;  %v3092_v0 = vmul.f32 %v14415_v25, %v10607_v47  ;;  %v2076_v18 = vadd.f32 %v10837_v33, %v2075_v23  ;;  %7643 = vrcp.f32 %v10938_v37  ;;  %v3088_v25 = vmul.f32 %v14420_v56, %v10539_v6  ;;  %vm11013_vm4 = vmor %vm2092_vm2, %vm2093_vm3 }
 0x26f   : > { %2524 = vst.msk [vmem:[#allocation2 + $0x128] sm:$0xff] %vm2486_vm8, %v2405_v5  ;;  %v10915_v55 = vsel %vm2486_vm8, %v2405_v5, 0.0  ;;  %v3093_v5 = vmul.f32 %v14413_v19, %v10588_v29  ;;  %v10944_v19 = vadd.f32 %v10213_v45, %v967_v38  ;;  %v2089_v51 = vsub.f32 1.0, %v2088_v48 }
 0x270   : > { %14410 = vst [vmem:[#allocation18_spill] sm:$0xff] %v10915_v55  ;;  %v10922_v34 = vpop.permute.xlu2 %3693  ;;  %v6916_v63 = vpack.i.bf16 %v10915_v55, %v10911_v60  ;;  %v6911_v48 = vpack.i.bf16 %v3089_v16, %v3088_v25  ;;  %v2080_v56 = vsel %vm10962_vm15, %v10837_v33, %v2076_v18  ;;  %v14424_v16 = vld [vmem:[#allocation38_spill] sm:$0xff]  ;;  %vm2108_vm7 = vweird.f32 %v10941_v31 }
 0x271   : > { %14412 = vst [vmem:[#allocation155_spill] sm:$0xff] %v10922_v34  ;;  %v10930_v12 = vpop.permute.xlu1 %3653  ;;  %2454 = vmatmul.f32.gmra.mxu2 %v2246_v9  ;;  %v6926_v42 = vpack.i.bf16 %v3093_v5, %v3092_v0  ;;  %v2103_v9 = vmul.f32 %v10941_v31, %v10875_v39  ;;  %v6536_v21 = vmul.f32 -1.442695, %v10944_v19  ;;  %v970_v5 = vpop.f32.mrf.mxu3  ;;  %v2084_v0 = vor.u32 1.1754944e-38, %v2083_v4  ;;  %vm11057_vm9 = vmor %vm2107_vm6, %vm2108_vm7  ;;  %v14448_v34 = vld [vmem:[#allocation136_spill] sm:$0xff] }
 0x272   : > { %14414 = vst [vmem:[#allocation157_spill] sm:$0xff] %v10930_v12  ;;  %6917 = vrot.lane.b32.xlu2 %v6916_v63, %s7869_s29  ;;  %v10946_v22 = vpop.permute.xlu0 %3673  ;;  %6897 = vrot.lane.b32.xlu1 %v6896_v30, %s7870_s20  ;;  %v2081_v30 = vand.u32 2147483647, %v10779_v24  ;;  %v2247_v24 = vmul.f32 %v2070_v50, %v10613_v8  ;;  %v2090_v8 = vmul.f32 %v10926_v1, %v2089_v51  ;;  %vm2122_vm11 = vweird.f32 %v10938_v37 }
 0x273   : > { %14416 = vst [vmem:[#allocation19_spill] sm:$0xff] %v10946_v22  ;;  %v2104_v22 = vsub.f32 1.0, %v2103_v9  ;;  %7645 = vpow2.f32 %v6536_v21  ;;  %v10985_v50 = vadd.f32 %v10213_v45, %v970_v5  ;;  %v3097_v4 = vmul.f32 %v14424_v16, %v10679_v58  ;;  %v14425_v45 = vld [vmem:[#allocation34_spill] sm:$0xff] }
 0x274   : > { %v2407_v61 = vpop.f32.mrf.mxu2  ;;  %vm2082_vm0 = vcmp.eq.f32.partialorder %v2081_v30, 8.507059e+37  ;;  %v2098_v30 = vand.u32 2147483648, %v10864_v41  ;;  %v3095_v9 = vmul.f32 %v14425_v45, %v10577_v46  ;;  %v2091_v25 = vadd.f32 %v10926_v1, %v2090_v8 }
 0x275   : > { %v2408_v38 = vadd.f32 %v10312_v36, %v2407_v61  ;;  %v7642_v61 = vpop.eup %7641  ;;  %v2096_v21 = vand.u32 2147483647, %v10864_v41  ;;  %v6537_v8 = vmul.f32 -1.442695, %v10985_v50 }
 0x276   : > { %6927 = vrot.lane.b32.xlu0 %v6926_v42, %s7870_s20  ;;  %v14423_v42 = vpack.i.bf16 %v10854_v52, %v10871_v2  ;;  %v10990_v33 = vpop.eup %7643  ;;  %v10994_v18 = vadd.f32 1.0, %v7642_v61  ;;  %v2085_v2 = vsel %vm2082_vm0, %v2084_v0, %v2080_v56  ;;  %v14428_v61 = vld [vmem:[#allocation26_spill] sm:$0xff]  ;;  %v2105_v0 = vmul.f32 %v10941_v31, %v2104_v22 }
 0x277   : > { %2525 = vst.msk [vmem:[#allocation2 + $0x130] sm:$0xff] %vm2486_vm8, %v2408_v38  ;;  %v2248_v22 = vmul.f32 %v2085_v2, %v10657_v26  ;;  %v11027_v41 = vsel %vm2486_vm8, %v2408_v38, 0.0  ;;  %v2095_v26 = vsel %vm11013_vm4, %v10926_v1, %v2091_v25  ;;  %vm2097_vm5 = vcmp.eq.f32.partialorder %v2096_v21, 8.507059e+37  ;;  %v7766_v2 = vld [vmem:[%s13989_s6] ss:$0 sm:$0xff]  ;;  %v14433_v25 = vld [vmem:[#allocation44_spill] sm:$0xff] }
 0x278   : > { %v10972_v23 = vpop.permute.xlu2 %6762  ;;  %7647 = vrcp.f32 %v10994_v18  ;;  %v2111_v38 = vand.u32 2147483647, %v10875_v39  ;;  %v2106_v1 = vadd.f32 %v10941_v31, %v2105_v0  ;;  %v14446_v56 = vld [vmem:[#allocation62_spill] sm:$0xff]  ;;  %vm2123_vm12 = vweird.f32 %v10990_v33 }
 0x279   : > { %14421 = vst [vmem:[#allocation32_spill] sm:$0xff] %v10972_v23  ;;  %v10974_v12 = vpop.permute.xlu1 %3665  ;;  %2457 = vmatmul.f32.gmra.mxu2 %v2247_v24  ;;  %v14427_v24 = vld [vmem:[#allocation35_spill] sm:$0xff]  ;;  %7649 = vpow2.f32 %v6537_v8  ;;  %vm11133_vm13 = vmor %vm2122_vm11, %vm2123_vm12  ;;  %vm2137_vm15 = vweird.f32 %v10994_v18 }
 0x27a   : > { %14422 = vst [vmem:[#allocation20_spill] sm:$0xff] %v10974_v12  ;;  %6922 = vrot.lane.b32.xlu2 %v14423_v42, %s7870_s20  ;;  %6912 = vrot.lane.b32.xlu1 %v6911_v48, %s7870_s20  ;;  %v10999_v63 = vpop.permute.xlu0 %3685  ;;  %v3094_v5 = vmul.f32 %v14427_v24, %v10598_v44  ;;  %v3096_v48 = vmul.f32 %v14428_v61, %v10675_v59  ;;  %v2099_v61 = vor.u32 1.1754944e-38, %v2098_v30  ;;  %v7646_v12 = vpop.eup %7645  ;;  %vm11068_vm10 = vcmp.eq.f32.partialorder %v2111_v38, 8.507059e+37 }
 0x27b   : > { %14426 = vst [vmem:[#allocation24_spill] sm:$0xff] %v10999_v63  ;;  %v2118_v42 = vmul.f32 %v10990_v33, %v10938_v37  ;;  %v2110_v38 = vsel %vm11057_vm9, %v10941_v31, %v2106_v1  ;;  %v3388_v31 = vmul.f32 %v14446_v56, %v10263_v49 }
 0x27c   : > { %v2410_v52 = vpop.f32.mrf.mxu2  ;;  %v6936_v24 = vpack.i.bf16 %v3097_v4, %v3096_v48  ;;  %v6931_v63 = vpack.i.bf16 %v3095_v9, %v3094_v5  ;;  %v2113_v4 = vand.u32 2147483648, %v10875_v39  ;;  %v11051_v9 = vadd.f32 1.0, %v7646_v12  ;;  %v14440_v39 = vld [vmem:[#allocation30_spill] sm:$0xff] }
 0x27d   : > { %v2411_v51 = vadd.f32 %v10312_v36, %v2410_v52  ;;  %v973_v52 = vpop.f32.mrf.mxu3  ;;  %v2100_v48 = vsel %vm2097_vm5, %v2099_v61, %v2095_v26  ;;  %v2119_v8 = vsub.f32 1.0, %v2118_v42  ;;  %v3102_v61 = vmul.f32 %v14440_v39, %v11027_v41  ;;  %v14441_v26 = vld [vmem:[#allocation37_spill] sm:$0xff] }
 0x27e   : > { %v11046_v30 = vadd.f32 %v7766_v2, %v973_v52  ;;  %v3098_v42 = vmul.f32 %v14441_v26, %v10807_v3  ;;  %v14442_v2 = vld [vmem:[#allocation41_spill] sm:$0xff]  ;;  %7651 = vrcp.f32 %v11051_v9  ;;  %vm2152_vm4 = vweird.f32 %v11051_v9 }
 0x27f   : > { %2526 = vst.msk [vmem:[#allocation2 + $0x138] sm:$0xff] %vm2486_vm8, %v2411_v51  ;;  %v11022_v16 = vsel %vm2486_vm8, %v2411_v51, 0.0 }
 0x280   : > { %v11029_v45 = vpop.permute.xlu2 %6777  ;;  %v6941_v51 = vpack.i.bf16 %v11022_v16, %v11027_v41  ;;  %v3103_v21 = vmul.f32 %v14433_v25, %v11022_v16  ;;  %v3100_v25 = vmul.f32 %v14442_v2, %v10911_v60  ;;  %v2120_v2 = vmul.f32 %v10990_v33, %v2119_v8 }
 0x281   : > { %14431 = vst [vmem:[#allocation25_spill] sm:$0xff] %v11029_v45  ;;  %v11031_v23 = vpop.permute.xlu1 %3677  ;;  %2460 = vmatmul.f32.gmra.mxu2 %v2248_v22  ;;  %v14436_v22 = vld [vmem:[#allocation27_spill] sm:$0xff]  ;;  %v2128_v8 = vand.u32 2147483648, %v10938_v37 }
 0x282   : > { %14432 = vst [vmem:[#allocation23_spill] sm:$0xff] %v11031_v23  ;;  %6937 = vrot.lane.b32.xlu2 %v6936_v24, %s7870_s20  ;;  %6942 = vrot.lane.b32.xlu0 %v6941_v51, %s7869_s29  ;;  %v3099_v52 = vmul.f32 %v14436_v22, %v10802_v62  ;;  %v11066_v24 = vpop.eup %7647  ;;  %v6538_v22 = vmul.f32 -1.442695, %v11046_v30  ;;  %v6956_v26 = vpack.i.bf16 %v3103_v21, %v3102_v61 }
 0x283   : > { %6932 = vrot.lane.b32.xlu1 %v6931_v63, %s7870_s20  ;;  %v14437_v63 = vld [vmem:[#allocation40_spill] sm:$0xff]  ;;  %v7650_v45 = vpop.eup %7649  ;;  %v2133_v23 = vmul.f32 %v11066_v24, %v10994_v18  ;;  %vm2138_vm0 = vweird.f32 %v11066_v24 }
 0x284   : > { %v2413_v5 = vpop.f32.mrf.mxu2  ;;  %v3101_v0 = vmul.f32 %v14437_v63, %v10915_v55  ;;  %v11079_v63 = vpop.permute.xlu0 %3697  ;;  %7653 = vpow2.f32 %v6538_v22  ;;  %vm11186_vm2 = vmor %vm2137_vm15, %vm2138_vm0 }
 0x285   : > { %v2414_v12 = vadd.f32 %v10312_v36, %v2413_v5  ;;  %14443 = vst [vmem:[#allocation31_spill] sm:$0xff] %v11079_v63  ;;  %v2249_v36 = vmul.f32 %v2100_v48, %v10735_v35  ;;  %v2114_v5 = vor.u32 1.1754944e-38, %v2113_v4  ;;  %v6946_v35 = vpack.i.bf16 %v3099_v52, %v3098_v42  ;;  %v14447_v4 = vld [vmem:[#allocation73_spill] sm:$0xff]  ;;  %v14450_v52 = vld [vmem:[#allocation135_spill] sm:$0xff]  ;;  %v11127_v51 = vpop.eup %7651 }
 0x286   : > { %v6951_v48 = vpack.i.bf16 %v3101_v0, %v3100_v25  ;;  %v3389_v1 = vmul.f32 %v14447_v4, %v10281_v40  ;;  %v14451_v0 = vld [vmem:[#allocation88_spill] sm:$0xff]  ;;  %v2126_v25 = vand.u32 2147483647, %v10938_v37  ;;  %v2134_v56 = vsub.f32 1.0, %v2133_v23  ;;  %v14454_v37 = vld [vmem:[#allocation43_spill] sm:$0xff] }
 0x287   : > { %2527 = vst.msk [vmem:[#allocation2 + $0x140] sm:$0xff] %vm2486_vm8, %v2414_v12  ;;  %v11110_v61 = vmul.f32 %v14451_v0, %v14450_v52  ;;  %v2115_v42 = vsel %vm11068_vm10, %v2114_v5, %v2110_v38  ;;  %v11119_v22 = vsel %vm2486_vm8, %v2414_v12, 0.0  ;;  %v2129_v38 = vor.u32 1.1754944e-38, %v2128_v8  ;;  %v14455_v0 = vld [vmem:[#allocation33_spill] sm:$0xff] }
 0x288   : > { %v11087_v39 = vpop.permute.xlu2 %6792  ;;  %v6981_v23 = vpack.i.bf16 %v3389_v1, %v3388_v31  ;;  %v2250_v12 = vmul.f32 %v2115_v42, %v10758_v13  ;;  %v3104_v4 = vmul.f32 %v14454_v37, %v11119_v22  ;;  %vm2127_vm14 = vcmp.eq.f32.partialorder %v2126_v25, 8.507059e+37 }
 0x289   : > { %14444 = vst [vmem:[#allocation28_spill] sm:$0xff] %v11087_v39  ;;  %v11092_v63 = vpop.permute.xlu1 %3689  ;;  %2463 = vmatmul.f32.gmra.mxu2 %v2249_v36  ;;  %v14449_v39 = vld [vmem:[#allocation78_spill] sm:$0xff]  ;;  %v11115_v36 = vadd.f32 1.0, %v7650_v45  ;;  %v2135_v42 = vmul.f32 %v11066_v24, %v2134_v56  ;;  %v2143_v56 = vand.u32 2147483648, %v10994_v18  ;;  %vm2153_vm5 = vweird.f32 %v11127_v51 }
 0x28a   : > { %14445 = vst [vmem:[#allocation29_spill] sm:$0xff] %v11092_v63  ;;  %v11100_v21 = vmul.f32 %v14449_v39, %v14448_v34  ;;  %6957 = vrot.lane.b32.xlu2 %v6956_v26, %s7870_s20  ;;  %6947 = vrot.lane.b32.xlu0 %v6946_v35, %s7870_s20  ;;  %v2121_v26 = vadd.f32 %v10990_v33, %v2120_v2  ;;  %v11124_v35 = vld [vmem:[%s13991_s8] ss:$0 sm:$0xff]  ;;  %v7654_v1 = vpop.eup %7653  ;;  %vm11234_vm6 = vmor %vm2152_vm4, %vm2153_vm5  ;;  %vm4857_vm4 = vcmask 130048  }
 0x28b   : > { %6952 = vrot.lane.b32.xlu1 %v6951_v48, %s7870_s20  ;;  %7655 = vrcp.f32 %v11115_v36  ;;  %v11170_v45 = vadd.f32 1.0, %v7654_v1  ;;  %v14461_v34 = vld [vmem:[#allocation59_spill] sm:$0xff]  ;;  %v2144_v63 = vor.u32 1.1754944e-38, %v2143_v56  ;;  %v14470_v56 = vld [vmem:[#allocation144_spill] sm:$0xff]  ;;  %vm2167_vm9 = vweird.f32 %v11115_v36 }
 0x28c   : > { %v2416_v39 = vpop.f32.mrf.mxu2  ;;  %v2125_v8 = vsel %vm11133_vm13, %v10990_v33, %v2121_v26  ;;  %v11159_v37 = vpop.permute.xlu0 %6767  ;;  %v14459_v33 = vld [vmem:[#allocation70_spill] sm:$0xff] }
 0x28d   : > { %v2417_v48 = vadd.f32 %v11124_v35, %v2416_v39  ;;  %14457 = vst [vmem:[#allocation34_spill] sm:$0xff] %v11159_v37  ;;  %v3387_v25 = vmul.f32 %v14459_v33, %v10123_v27  ;;  %v2130_v26 = vsel %vm2127_vm14, %v2129_v38, %v2125_v8  ;;  %v14462_v38 = vld [vmem:[#allocation154_spill] sm:$0xff]  ;;  %v14463_v8 = vld [vmem:[#allocation71_spill] sm:$0xff]  ;;  %7657 = vrcp.f32 %v11170_v45 }
 0x28e   : > { %v3386_v37 = vmul.f32 %v14463_v8, %v14462_v38  ;;  %vm2182_vm13 = vweird.f32 %v11170_v45 }
 0x28f   : > { %2528 = vst.msk [vmem:[#allocation2 + $0x148] sm:$0xff] %vm2486_vm8, %v2417_v48  ;;  %v11140_v5 = vsel %vm2486_vm8, %v2417_v48, 0.0  ;;  %v2148_v48 = vmul.f32 %v11127_v51, %v11051_v9 }
 0x290   : > { %v3105_v39 = vmul.f32 %v14455_v0, %v11140_v5  ;;  %v6961_v13 = vpack.i.bf16 %v11140_v5, %v11119_v22  ;;  %v11151_v31 = vpop.permute.xlu2 %6807  ;;  %v6976_v8 = vpack.i.bf16 %v3387_v25, %v3386_v37  ;;  %v14474_v25 = vld [vmem:[#allocation89_spill] sm:$0xff] }
 0x291   : > { %14456 = vst [vmem:[#allocation38_spill] sm:$0xff] %v11151_v31  ;;  %v11161_v2 = vpop.permute.xlu1 %3701  ;;  %2466 = vmatmul.f32.gmra.mxu2 %v2250_v12  ;;  %v2141_v12 = vand.u32 2147483647, %v10994_v18 }
 0x292   : > { %14458 = vst [vmem:[#allocation35_spill] sm:$0xff] %v11161_v2  ;;  %6982 = vrot.lane.b32.xlu2 %v6981_v23, %s7871_s25  ;;  %v6966_v0 = vpack.i.bf16 %v3105_v39, %v3104_v4  ;;  %v2136_v23 = vadd.f32 %v11066_v24, %v2135_v42  ;;  %v2149_v4 = vsub.f32 1.0, %v2148_v48  ;;  %v11176_v2 = vpop.eup %7655  ;;  %v2251_v42 = vmul.f32 %v2130_v26, %v10810_v54  ;;  %v14467_v48 = vld [vmem:[#allocation68_spill] sm:$0xff] }
 0x293   : > { %6962 = vrot.lane.b32.xlu1 %v6961_v13, %s7869_s29  ;;  %v14460_v13 = vld [vmem:[#allocation159_spill] sm:$0xff]  ;;  %vm2142_vm3 = vcmp.eq.f32.partialorder %v2141_v12, 8.507059e+37  ;;  %v2163_v54 = vmul.f32 %v11176_v2, %v11115_v36  ;;  %vm2168_vm10 = vweird.f32 %v11176_v2 }
 0x294   : > { %v2419_v31 = vpop.f32.mrf.mxu2  ;;  %6967 = vrot.lane.b32.xlu0 %v6966_v0, %s7870_s20  ;;  %v3385_v33 = vmul.f32 %v14461_v34, %v14460_v13  ;;  %v2140_v18 = vsel %vm11186_vm2, %v11066_v24, %v2136_v23  ;;  %v2150_v52 = vmul.f32 %v11127_v51, %v2149_v4  ;;  %v11211_v37 = vpop.permute.xlu0 %6782  ;;  %v14473_v24 = vld [vmem:[#allocation143_spill] sm:$0xff]  ;;  %v2156_v4 = vand.u32 2147483647, %v11051_v9  ;;  %vm11290_vm11 = vmor %vm2167_vm9, %vm2168_vm10 }
 0x295   : > { %v2420_v39 = vadd.f32 %v11124_v35, %v2419_v31  ;;  %v14466_v31 = vld [vmem:[#allocation158_spill] sm:$0xff]  ;;  %14472 = vst [vmem:[#allocation27_spill] sm:$0xff] %v11211_v37  ;;  %v11216_v23 = vmul.f32 %v14474_v25, %v14473_v24  ;;  %v2145_v12 = vsel %vm2142_vm3, %v2144_v63, %v2140_v18  ;;  %v14484_v18 = vld [vmem:[#allocation79_spill] sm:$0xff]  ;;  %vm2679_vm2 = vcmask 23552  }
 0x296   : > { %v3384_v0 = vmul.f32 %v14467_v48, %v14466_v31  ;;  %v14471_v31 = vld [vmem:[#allocation91_spill] sm:$0xff]  ;;  %v14475_v25 = vld [vmem:[#allocation74_spill] sm:$0xff]  ;;  %vm2157_vm7 = vcmp.eq.f32.partialorder %v2156_v4, 8.507059e+37  ;;  %vm4792_vm3 = vcmask 64512   ;;  %vm5152_vm10 = vcmask 326656  }
 0x297   : > { %2529 = vst.msk [vmem:[#allocation2 + $0x150] sm:$0xff] %vm2486_vm8, %v2420_v39  ;;  %v11207_v27 = vmul.f32 %v14471_v31, %v14470_v56  ;;  %v2164_v31 = vsub.f32 1.0, %v2163_v54  ;;  %v3391_v63 = vmul.f32 %v14475_v25, %v10285_v53  ;;  %v14479_v54 = vld [vmem:[#allocation65_spill] sm:$0xff]  ;;  %v14481_v56 = vld [vmem:[#allocation46_spill] sm:$0xff]  ;;  %v14488_v25 = vld [vmem:[#allocation80_spill] sm:$0xff] }
 0x298   : > { %v11195_v34 = vpop.permute.xlu2 %6822  ;;  %v6971_v48 = vpack.i.bf16 %v3385_v33, %v3384_v0  ;;  %v2158_v33 = vand.u32 2147483648, %v11051_v9  ;;  %v11223_v0 = vsel %vm2486_vm8, %v2420_v39, 0.0  ;;  %v2252_v39 = vmul.f32 %v2145_v12, %v10891_v17  ;;  %v14480_v9 = vld [vmem:[#allocation47_spill] sm:$0xff] }
 0x299   : > { %14468 = vst [vmem:[#allocation26_spill] sm:$0xff] %v11195_v34  ;;  %2469 = vmatmul.f32.gmra.mxu2 %v2251_v42  ;;  %v11203_v26 = vpop.permute.xlu1 %6772  ;;  %v2151_v42 = vadd.f32 %v11127_v51, %v2150_v52  ;;  %v11226_v34 = vpop.eup %7657  ;;  %v14478_v52 = vld [vmem:[#allocation166_spill] sm:$0xff]  ;;  %v3106_v37 = vmul.f32 %v14480_v9, %v11223_v0  ;;  %v2165_v12 = vmul.f32 %v11176_v2, %v2164_v31 }
 0x29a   : > { %14469 = vst [vmem:[#allocation44_spill] sm:$0xff] %v11203_v26  ;;  %v2159_v26 = vor.u32 1.1754944e-38, %v2158_v33  ;;  %v2178_v33 = vmul.f32 %v11226_v34, %v11170_v45  ;;  %vm2183_vm14 = vweird.f32 %v11226_v34 }
 0x29b   : > { %6977 = vrot.lane.b32.xlu1 %v6976_v8, %s7871_s25  ;;  %v2155_v17 = vsel %vm11234_vm6, %v11127_v51, %v2151_v42  ;;  %v3395_v51 = vmul.f32 %v14484_v18, %v10354_v20  ;;  %v2173_v42 = vand.u32 2147483648, %v11115_v36  ;;  %vm11343_vm15 = vmor %vm2182_vm13, %vm2183_vm14 }
 0x29c   : > { %v2422_v1 = vpop.f32.mrf.mxu2  ;;  %6972 = vrot.lane.b32.xlu0 %v6971_v48, %s7871_s25  ;;  %v3390_v48 = vmul.f32 %v14479_v54, %v14478_v52  ;;  %v2160_v4 = vsel %vm2157_vm7, %v2159_v26, %v2155_v17  ;;  %v14487_v26 = vld [vmem:[#allocation77_spill] sm:$0xff] }
 0x29d   : > { %v2423_v8 = vadd.f32 %v11124_v35, %v2422_v1  ;;  %v3394_v17 = vmul.f32 %v14487_v26, %v10364_v28  ;;  %v2253_v26 = vmul.f32 %v2160_v4, %v10944_v19 }
 0x29f   : > { %2530 = vst.msk [vmem:[#allocation2 + $0x158] sm:$0xff] %vm2486_vm8, %v2423_v8  ;;  %v11243_v1 = vsel %vm2486_vm8, %v2423_v8, 0.0 }
 0x2a0   : > { %v3107_v24 = vmul.f32 %v14481_v56, %v11243_v1  ;;  %v6991_v54 = vpack.i.bf16 %v11243_v1, %v11223_v0  ;;  %v11253_v38 = vpop.permute.xlu2 %6837  ;;  %v6986_v56 = vpack.i.bf16 %v3391_v63, %v3390_v48  ;;  %v2171_v63 = vand.u32 2147483647, %v11115_v36 }
 0x2a1   : > { %14482 = vst [vmem:[#allocation40_spill] sm:$0xff] %v11253_v38  ;;  %2472 = vmatmul.f32.gmra.mxu2 %v2252_v39  ;;  %v11261_v8 = vpop.permute.xlu1 %6787  ;;  %v2166_v39 = vadd.f32 %v11176_v2, %v2165_v12 }
 0x2a2   : > { %14483 = vst [vmem:[#allocation30_spill] sm:$0xff] %v11261_v8  ;;  %6992 = vrot.lane.b32.xlu2 %v6991_v54, %s7869_s29  ;;  %v6996_v9 = vpack.i.bf16 %v3107_v24, %v3106_v37  ;;  %v2179_v37 = vsub.f32 1.0, %v2178_v33  ;;  %v11273_v24 = vpop.permute.xlu0 %6797  ;;  %v14486_v54 = vld [vmem:[#allocation67_spill] sm:$0xff]  ;;  %v14492_v33 = vld [vmem:[#allocation164_spill] sm:$0xff]  ;;  %vm2172_vm12 = vcmp.eq.f32.partialorder %v2171_v63, 8.507059e+37  ;;  %v14500_v63 = vld [vmem:[#allocation81_spill] sm:$0xff] }
 0x2a3   : > { %14485 = vst [vmem:[#allocation37_spill] sm:$0xff] %v11273_v24  ;;  %v3393_v18 = vmul.f32 %v14486_v54, %v10206_v15  ;;  %v7006_v15 = vpack.i.bf16 %v3395_v51, %v3394_v17  ;;  %v2170_v53 = vsel %vm11290_vm11, %v11176_v2, %v2166_v39  ;;  %v14499_v2 = vld [vmem:[#allocation85_spill] sm:$0xff]  ;;  %v14501_v17 = vld [vmem:[#allocation84_spill] sm:$0xff] }
 0x2a4   : > { %v2425_v31 = vpop.f32.mrf.mxu2  ;;  %6987 = vrot.lane.b32.xlu0 %v6986_v56, %s7871_s25  ;;  %6997 = vrot.lane.b32.xlu1 %v6996_v9, %s7870_s20  ;;  %v3397_v56 = vmul.f32 %v14488_v25, %v10358_v57  ;;  %v14489_v9 = vld [vmem:[#allocation97_spill] sm:$0xff]  ;;  %v2180_v19 = vmul.f32 %v11226_v34, %v2179_v37  ;;  %v3401_v39 = vmul.f32 %v14499_v2, %v10407_v11  ;;  %v14504_v2 = vld [vmem:[#allocation83_spill] sm:$0xff] }
 0x2a5   : > { %v2426_v48 = vadd.f32 %v11124_v35, %v2425_v31  ;;  %v11284_v8 = vmul.f32 %v14489_v9, %v10588_v29  ;;  %v14493_v31 = vld [vmem:[#allocation76_spill] sm:$0xff]  ;;  %v14494_v25 = vld [vmem:[#allocation69_spill] sm:$0xff]  ;;  %v14495_v9 = vld [vmem:[#allocation95_spill] sm:$0xff]  ;;  %v2174_v29 = vor.u32 1.1754944e-38, %v2173_v42  ;;  %v11325_v37 = vmul.f32 %v14500_v63, %v10539_v6 }
 0x2a6   : > { %v3392_v54 = vmul.f32 %v14493_v31, %v14492_v33  ;;  %v3396_v24 = vmul.f32 %v14494_v25, %v10368_v32  ;;  %v11302_v13 = vmul.f32 %v14495_v9, %v10607_v47  ;;  %v14498_v9 = vld [vmem:[#allocation92_spill] sm:$0xff]  ;;  %v2181_v12 = vadd.f32 %v11226_v34, %v2180_v19 }
 0x2a7   : > { %2531 = vst.msk [vmem:[#allocation2 + $0x160] sm:$0xff] %vm2486_vm8, %v2426_v48  ;;  %v11317_v51 = vmul.f32 %v14498_v9, %v10525_v7  ;;  %v14502_v9 = vld [vmem:[#allocation72_spill] sm:$0xff] }
 0x2a8   : > { %v11304_v36 = vpop.permute.xlu2 %6852  ;;  %v7011_v31 = vpack.i.bf16 %v3397_v56, %v3396_v24  ;;  %v7001_v25 = vpack.i.bf16 %v3393_v18, %v3392_v54  ;;  %v2188_v24 = vand.u32 2147483648, %v11170_v45  ;;  %v11332_v56 = vmul.f32 %v14501_v17, %v10455_v14 }
 0x2a9   : > { %14496 = vst [vmem:[#allocation41_spill] sm:$0xff] %v11304_v36  ;;  %2475 = vmatmul.f32.gmra.mxu2 %v2253_v26  ;;  %v11310_v4 = vpop.permute.xlu1 %6802  ;;  %v2186_v54 = vand.u32 2147483647, %v11170_v45  ;;  %v14516_v45 = vld [vmem:[#allocation86_spill] sm:$0xff] }
 0x2aa   : > { %14497 = vst [vmem:[#allocation62_spill] sm:$0xff] %v11310_v4  ;;  %7007 = vrot.lane.b32.xlu2 %v7006_v15, %s7871_s25  ;;  %v2175_v15 = vsel %vm2172_vm12, %v2174_v29, %v2170_v53  ;;  %v3399_v53 = vmul.f32 %v14502_v9, %v10295_v43  ;;  %v14503_v29 = vld [vmem:[#allocation176_spill] sm:$0xff]  ;;  %v11352_v42 = vpop.permute.xlu0 %6812  ;;  %v14509_v9 = vld [vmem:[#allocation170_spill] sm:$0xff]  ;;  %v2189_v11 = vor.u32 1.1754944e-38, %v2188_v24 }
 0x2ab   : > { %v3400_v63 = vmul.f32 %v14504_v2, %v14503_v29  ;;  %v2254_v19 = vmul.f32 %v2175_v15, %v10985_v50  ;;  %14508 = vst [vmem:[#allocation73_spill] sm:$0xff] %v11352_v42  ;;  %v14510_v2 = vld [vmem:[#allocation82_spill] sm:$0xff]  ;;  %v2185_v50 = vsel %vm11343_vm15, %v11226_v34, %v2181_v12  ;;  %vm2187_vm0 = vcmp.eq.f32.partialorder %v2186_v54, 8.507059e+37 }
 0x2ac   : > { %v2428_v18 = vpop.f32.mrf.mxu2  ;;  %7012 = vrot.lane.b32.xlu0 %v7011_v31, %s7871_s25  ;;  %7002 = vrot.lane.b32.xlu1 %v7001_v25, %s7871_s25  ;;  %v14507_v25 = vld [vmem:[#allocation94_spill] sm:$0xff]  ;;  %v3398_v4 = vmul.f32 %v14510_v2, %v14509_v9  ;;  %v11368_v15 = vsel %vm2486_vm8, %v2426_v48, 0.0  ;;  %v2190_v34 = vsel %vm2187_vm0, %v2189_v11, %v2185_v50  ;;  %v14515_v2 = vld [vmem:[#allocation175_spill] sm:$0xff]  ;;  %v14519_v50 = vld [vmem:[#allocation36_spill] sm:$0xff] }
 0x2ad   : > { %v2429_v26 = vadd.f32 %v11124_v35, %v2428_v18  ;;  %v11349_v17 = vmul.f32 %v14507_v25, %v10484_v10  ;;  %v7021_v25 = vpack.i.bf16 %v3401_v39, %v3400_v63  ;;  %v14513_v63 = vld [vmem:[#allocation98_spill] sm:$0xff] }
 0x2ae   : > { %v7016_v39 = vpack.i.bf16 %v3399_v53, %v3398_v4  ;;  %v11379_v31 = vmul.f32 %v14513_v63, %v10577_v46  ;;  %v14514_v48 = vld [vmem:[#allocation50_spill] sm:$0xff]  ;;  %v14517_v4 = vld [vmem:[#allocation87_spill] sm:$0xff]  ;;  %v3108_v63 = vmul.f32 %v14519_v50, %v11368_v15 }
 0x2af   : > { %2532 = vst.msk [vmem:[#allocation2 + $0x168] sm:$0xff] %vm2486_vm8, %v2429_v26  ;;  %v11356_v18 = vsel %vm2486_vm8, %v2429_v26, 0.0  ;;  %v11390_v53 = vmul.f32 %v14517_v4, %v10598_v44 }
 0x2b0   : > { %v11362_v36 = vpop.permute.xlu2 %6867  ;;  %v7026_v24 = vpack.i.bf16 %v11356_v18, %v11368_v15  ;;  %v3109_v12 = vmul.f32 %v14514_v48, %v11356_v18  ;;  %v14521_v48 = vld [vmem:[#allocation75_spill] sm:$0xff] }
 0x2b1   : > { %14511 = vst [vmem:[#allocation78_spill] sm:$0xff] %v11362_v36  ;;  %2478 = vmatmul.f32.gmra.mxu2 %v2254_v19  ;;  %v11370_v26 = vpop.permute.xlu1 %6817 }
 0x2b2   : > { %14512 = vst [vmem:[#allocation88_spill] sm:$0xff] %v11370_v26  ;;  %7022 = vrot.lane.b32.xlu2 %v7021_v25, %s7871_s25  ;;  %v3403_v26 = vmul.f32 %v14516_v45, %v14515_v2  ;;  %v14518_v25 = vld [vmem:[#allocation103_spill] sm:$0xff]  ;;  %v14522_v45 = vld [vmem:[#allocation101_spill] sm:$0xff]  ;;  %v7041_v4 = vpack.i.bf16 %v3109_v12, %v3108_v63  ;;  %v14526_v12 = vpack.i.bf16 %v11100_v21, %v11110_v61  ;;  %v14527_v63 = vld [vmem:[#allocation90_spill] sm:$0xff] }
 0x2b3   : > { %v11394_v11 = vmul.f32 %v14518_v25, %v10802_v62  ;;  %v11404_v42 = vmul.f32 %v14522_v45, %v10807_v3  ;;  %v11408_v25 = vpop.permute.xlu0 %6827  ;;  %v14528_v45 = vld [vmem:[#allocation104_spill] sm:$0xff]  ;;  %v14531_v21 = vld [vmem:[#allocation109_spill] sm:$0xff] }
 0x2b4   : > { %v2431_v54 = vpop.f32.mrf.mxu2  ;;  %7027 = vrot.lane.b32.xlu0 %v7026_v24, %s7869_s29  ;;  %7017 = vrot.lane.b32.xlu1 %v7016_v39, %s7871_s25  ;;  %v2255_v24 = vmul.f32 %v2190_v34, %v11046_v30  ;;  %v14520_v39 = vld [vmem:[#allocation177_spill] sm:$0xff]  ;;  %14523 = vst [vmem:[#allocation43_spill] sm:$0xff] %v11408_v25  ;;  %v3421_v36 = vmul.f32 %v14528_v45, %v10915_v55 }
 0x2b5   : > { %v2432_v19 = vadd.f32 %v11124_v35, %v2431_v54  ;;  %v3402_v54 = vmul.f32 %v14521_v48, %v14520_v39  ;;  %v7096_v34 = vpack.i.bf16 %v11394_v11, %v11404_v42  ;;  %v14529_v42 = vld [vmem:[#allocation100_spill] sm:$0xff]  ;;  %v3425_v61 = vmul.f32 %v14531_v21, %v11140_v5  ;;  %v14534_v39 = vld [vmem:[#allocation49_spill] sm:$0xff] }
 0x2b6   : > { %v3416_v11 = vmul.f32 %v14529_v42, %v10675_v59 }
 0x2b7   : > { %2533 = vst.msk [vmem:[#allocation2 + $0x170] sm:$0xff] %vm2486_vm8, %v2432_v19  ;;  %v7031_v30 = vpack.i.bf16 %v3403_v26, %v3402_v54  ;;  %v11428_v26 = vsel %vm2486_vm8, %v2432_v19, 0.0  ;;  %v14530_v54 = vld [vmem:[#allocation93_spill] sm:$0xff]  ;;  %v14533_v19 = vld [vmem:[#allocation107_spill] sm:$0xff] }
 0x2b8   : > { %v11412_v50 = vpop.permute.xlu2 %6887  ;;  %v3424_v45 = vmul.f32 %v14533_v19, %v11119_v22  ;;  %v3110_v42 = vmul.f32 %v14534_v39, %v11428_v26  ;;  %v14537_v19 = vld [vmem:[#allocation96_spill] sm:$0xff] }
 0x2b9   : > { %2481 = vmatmul.f32.gmra.mxu2 %v2255_v24  ;;  %v11410_v2 = vpop.permute.xlu1 %6832  ;;  %14525 = vst [vmem:[#allocation70_spill] sm:$0xff] %v11412_v50  ;;  %v3417_v24 = vmul.f32 %v14527_v63, %v10679_v58  ;;  %v14532_v63 = vld [vmem:[#allocation39_spill] sm:$0xff]  ;;  %v3423_v50 = vmul.f32 %v14537_v19, %v11022_v16 }
 0x2ba   : > { %14524 = vst [vmem:[#allocation33_spill] sm:$0xff] %v11410_v2  ;;  %7042 = vrot.lane.b32.xlu2 %v7041_v4, %s7870_s20  ;;  %v7111_v58 = vpack.i.bf16 %v3425_v61, %v3424_v45  ;;  %v14544_v45 = vld [vmem:[#allocation110_spill] sm:$0xff] }
 0x2bb   : > { %v7091_v55 = vpack.i.bf16 %v3417_v24, %v3416_v11  ;;  %v14539_v24 = vld [vmem:[#allocation106_spill] sm:$0xff] }
 0x2bc   : > { %v2434_v48 = vpop.f32.mrf.mxu2  ;;  %7032 = vrot.lane.b32.xlu0 %v7031_v30, %s7871_s25  ;;  %7037 = vrot.lane.b32.xlu1 %v14526_v12, %s7871_s25  ;;  %v3420_v30 = vmul.f32 %v14530_v54, %v10911_v60 }
 0x2bd   : > { %v2435_v4 = vadd.f32 %v11124_v35, %v2434_v48 }
 0x2be   : > { %v7101_v54 = vpack.i.bf16 %v3421_v36, %v3420_v30  ;;  %v14541_v30 = vpack.i.bf16 %v11284_v8, %v11302_v13  ;;  %v14547_v13 = vpack.i.bf16 %v11317_v51, %v11325_v37  ;;  %v14548_v8 = vld [vmem:[#allocation99_spill] sm:$0xff] }
 0x2bf   : > { %2534 = vst.msk [vmem:[#allocation2 + $0x178] sm:$0xff] %vm2486_vm8, %v2435_v4  ;;  %v11438_v12 = vsel %vm2486_vm8, %v2435_v4, 0.0  ;;  %v14536_v4 = vpack.i.bf16 %v11207_v27, %v11216_v23  ;;  %v3422_v27 = vmul.f32 %v14539_v24, %v11027_v41 }
 0x2c0   : > { %v3111_v48 = vmul.f32 %v14532_v63, %v11438_v12  ;;  %v11446_v2 = vpop.permute.xlu0 %6842  ;;  %v7051_v21 = vpack.i.bf16 %v11438_v12, %v11428_v26  ;;  %v11458_v39 = vpop.permute.xlu2 %6902 }
 0x2c1   : > { %14535 = vst [vmem:[#allocation59_spill] sm:$0xff] %v11446_v2  ;;  %v11454_v25 = vpop.permute.xlu1 %6847  ;;  %v7106_v23 = vpack.i.bf16 %v3423_v50, %v3422_v27 }
 0x2c2   : > { %7047 = vrot.lane.b32.xlu2 %v14536_v4, %s7871_s25  ;;  %v7056_v63 = vpack.i.bf16 %v3111_v48, %v3110_v42  ;;  %14538 = vst [vmem:[#allocation71_spill] sm:$0xff] %v11458_v39  ;;  %v3427_v42 = vmul.f32 %v14544_v45, %v11243_v1  ;;  %v14551_v45 = vpack.i.bf16 %v11379_v31, %v11390_v53 }
 0x2c4   : > { %v2437_v2 = vpop.f32.mrf.mxu2  ;;  %7052 = vrot.lane.b32.xlu1 %v7051_v21, %s7869_s29  ;;  %7057 = vrot.lane.b32.xlu0 %v7056_v63, %s7870_s20  ;;  %v3426_v63 = vmul.f32 %v14548_v8, %v11223_v0 }
 0x2c5   : > { %v2438_v36 = vadd.f32 %v11124_v35, %v2437_v2  ;;  %v14543_v2 = vpack.i.bf16 %v11332_v56, %v11349_v17  ;;  %v14549_v17 = vld [vmem:[#allocation53_spill] sm:$0xff] }
 0x2c6   : > { %v7121_v51 = vpack.i.bf16 %v3427_v42, %v3426_v63 }
 0x2c7   : > { %2535 = vst.msk [vmem:[#allocation2 + $0x180] sm:$0xff] %vm2486_vm8, %v2438_v36  ;;  %v11481_v50 = vsel %vm2486_vm8, %v2438_v36, 0.0  ;;  %v14550_v36 = vld [vmem:[#allocation52_spill] sm:$0xff] }
 0x2c8   : > { %v11466_v11 = vpop.permute.xlu0 %6857  ;;  %14545 = vst [vmem:[#allocation89_spill] sm:$0xff] %v11481_v50  ;;  %v3112_v19 = vmul.f32 %v14549_v17, %v11481_v50 }
 0x2c9   : > { %14540 = vst [vmem:[#allocation68_spill] sm:$0xff] %v11466_v11  ;;  %v11483_v21 = vpop.permute.xlu1 %6862 }
 0x2ca   : > { %7072 = vrot.lane.b32.xlu2 %v14541_v30, %s7871_s25  ;;  %14546 = vst [vmem:[#allocation74_spill] sm:$0xff] %v11483_v21 }
 0x2cc   : > { %v2440_v61 = vpop.f32.mrf.mxu2  ;;  %v11472_v48 = vpop.permute.xlu2 %6917  ;;  %7067 = vrot.lane.b32.xlu1 %v14543_v2, %s7871_s25  ;;  %7062 = vrot.lane.b32.xlu0 %v14547_v13, %s7871_s25 }
 0x2cd   : > { %14542 = vst [vmem:[#allocation91_spill] sm:$0xff] %v11472_v48  ;;  %v2441_v4 = vadd.f32 %v11124_v35, %v2440_v61 }
 0x2cf   : > { %2536 = vst.msk [vmem:[#allocation2 + $0x188] sm:$0xff] %vm2486_vm8, %v2441_v4  ;;  %v11494_v56 = vsel %vm2486_vm8, %v2441_v4, 0.0 }
 0x2d0   : > { %v3113_v24 = vmul.f32 %v14550_v36, %v11494_v56  ;;  %v7081_v27 = vpack.i.bf16 %v11494_v56, %v11481_v50  ;;  %v11502_v30 = vpop.permute.xlu0 %6872 }
 0x2d2   : > { %7082 = vrot.lane.b32.xlu2 %v7081_v27, %s7869_s29  ;;  %v7086_v37 = vpack.i.bf16 %v3113_v24, %v3112_v19 }
 0x2d4   : > { %v2443_v61 = vpop.f32.mrf.mxu2  ;;  %7087 = vrot.lane.b32.xlu1 %v7086_v37, %s7870_s20  ;;  %7077 = vrot.lane.b32.xlu0 %v14551_v45, %s7871_s25  ;;  %v11511_v4 = vpop.permute.xlu1 %6877 }
 0x2d5   : > { %v2444_v2 = vadd.f32 %v11124_v35, %v2443_v61  ;;  %14552 = vst [vmem:[#allocation166_spill] sm:$0xff] %v11511_v4  ;;  %v11513_v13 = vpop.permute.xlu2 %6922  ;;  %v14559_v61 = vld [vmem:[#allocation102_spill] sm:$0xff] }
 0x2d6   : > { %14553 = vst [vmem:[#allocation65_spill] sm:$0xff] %v11513_v13  ;;  %v14670_v13 = vld [vmem:[#allocation187_spill] sm:$0xff] }
 0x2d7   : > { %2537 = vst.msk [vmem:[#allocation2 + $0x190] sm:$0xff] %vm2486_vm8, %v2444_v2  ;;  %v11531_v19 = vsel %vm2486_vm8, %v2444_v2, 0.0  ;;  %v14560_v2 = vld [vmem:[#allocation42_spill] sm:$0xff] }
 0x2d8   : > { %v11516_v42 = vpop.permute.xlu0 %6892  ;;  %v3114_v45 = vmul.f32 %v14560_v2, %v11531_v19 }
 0x2d9   : > { %14554 = vst [vmem:[#allocation47_spill] sm:$0xff] %v11516_v42 }
 0x2da   : > { %7097 = vrot.lane.b32.xlu2 %v7096_v34, %s7871_s25 }
 0x2dc   : > { %v2446_v8 = vpop.f32.mrf.mxu2  ;;  %7092 = vrot.lane.b32.xlu1 %v7091_v55, %s7871_s25  ;;  %7102 = vrot.lane.b32.xlu0 %v7101_v54, %s7871_s25  ;;  %v11522_v17 = vpop.permute.xlu1 %6882  ;;  %v14557_v54 = vld [vmem:[#allocation56_spill] sm:$0xff] }
 0x2dd   : > { %v2447_v63 = vadd.f32 %v11124_v35, %v2446_v8  ;;  %v11528_v53 = vpop.permute.xlu2 %6937  ;;  %v14561_v8 = vld [vmem:[#allocation112_spill] sm:$0xff] }
 0x2de   : > { %14555 = vst [vmem:[#allocation46_spill] sm:$0xff] %v11528_v53  ;;  %v14575_v53 = vld [vmem:[#allocation142_spill] sm:$0xff] }
 0x2df   : > { %2538 = vst.msk [vmem:[#allocation2 + $0x198] sm:$0xff] %vm2486_vm8, %v2447_v63  ;;  %v11526_v31 = vsel %vm2486_vm8, %v2447_v63, 0.0  ;;  %v3428_v63 = vmul.f32 %v14561_v8, %v11368_v15 }
 0x2e0   : > { %v7116_v55 = vpack.i.bf16 %v11526_v31, %v11531_v19  ;;  %v11536_v34 = vpop.permute.xlu0 %6907  ;;  %v3115_v36 = vmul.f32 %v14557_v54, %v11526_v31 }
 0x2e1   : > { %14556 = vst [vmem:[#allocation79_spill] sm:$0xff] %v11536_v34 }
 0x2e2   : > { %7112 = vrot.lane.b32.xlu2 %v7111_v58, %s7871_s25  ;;  %v3429_v58 = vmul.f32 %v14559_v61, %v11356_v18  ;;  %v7131_v54 = vpack.i.bf16 %v3115_v36, %v3114_v45  ;;  %v14566_v45 = vld [vmem:[#allocation113_spill] sm:$0xff] }
 0x2e4   : > { %v2449_v24 = vpop.f32.mrf.mxu2  ;;  %7107 = vrot.lane.b32.xlu1 %v7106_v23, %s7871_s25  ;;  %7117 = vrot.lane.b32.xlu0 %v7116_v55, %s7869_s29  ;;  %v11543_v37 = vpop.permute.xlu1 %6897  ;;  %v7126_v23 = vpack.i.bf16 %v3429_v58, %v3428_v63  ;;  %v14563_v55 = vld [vmem:[#allocation115_spill] sm:$0xff]  ;;  %v3430_v58 = vmul.f32 %v14566_v45, %v11428_v26  ;;  %v14569_v45 = vld [vmem:[#allocation149_spill] sm:$0xff] }
 0x2e5   : > { %v2450_v27 = vadd.f32 %v11124_v35, %v2449_v24  ;;  %14558 = vst [vmem:[#allocation67_spill] sm:$0xff] %v11543_v37  ;;  %v11552_v4 = vpop.permute.xlu2 %6957  ;;  %v3431_v24 = vmul.f32 %v14563_v55, %v11438_v12  ;;  %v14567_v63 = vld [vmem:[#allocation55_spill] sm:$0xff] }
 0x2e6   : > { %14562 = vst [vmem:[#allocation77_spill] sm:$0xff] %v11552_v4  ;;  %v3716_v4 = vmul.f32 %v14569_v45, %v10368_v32 }
 0x2e7   : > { %2539 = vst.msk [vmem:[#allocation2 + $0x1a0] sm:$0xff] %vm2486_vm8, %v2450_v27  ;;  %v11559_v61 = vsel %vm2486_vm8, %v2450_v27, 0.0  ;;  %v7136_v55 = vpack.i.bf16 %v3431_v24, %v3430_v58  ;;  %v7768_v24 = vld [vmem:[%s13986_s3 + $0xf8] sm:$0xff] }
 0x2e8   : > { %v11561_v2 = vpop.permute.xlu0 %6927  ;;  %v3116_v27 = vmul.f32 %v14567_v63, %v11559_v61  ;;  %v2711_v58 = vsel %vm2679_vm2, %v7768_v24, 0.0 }
 0x2e9   : > { %14564 = vst [vmem:[#allocation80_spill] sm:$0xff] %v11561_v2  ;;  %v3715_v2 = vmul.f32 %v14575_v53, %v10354_v20 }
 0x2ea   : > { %7132 = vrot.lane.b32.xlu2 %v7131_v54, %s7870_s20  ;;  %v14568_v54 = vld [vmem:[#allocation45_spill] sm:$0xff] }
 0x2ec   : > { %v2452_v48 = vpop.f32.mrf.mxu2  ;;  %7127 = vrot.lane.b32.xlu1 %v7126_v23, %s7871_s25  ;;  %7122 = vrot.lane.b32.xlu0 %v7121_v51, %s7871_s25  ;;  %v11565_v36 = vpop.permute.xlu1 %6912 }
 0x2ed   : > { %v2453_v37 = vadd.f32 %v11124_v35, %v2452_v48  ;;  %14565 = vst [vmem:[#allocation97_spill] sm:$0xff] %v11565_v36  ;;  %v11583_v36 = vpop.permute.xlu2 %6982 }
 0x2ee   : > { %14570 = vst [vmem:[#allocation164_spill] sm:$0xff] %v11583_v36 }
 0x2ef   : > { %2540 = vst.msk [vmem:[#allocation2 + $0x1a8] sm:$0xff] %vm2486_vm8, %v2453_v37  ;;  %v11571_v8 = vsel %vm2486_vm8, %v2453_v37, 0.0  ;;  %v6840_v37 = vunpack.i.h.bf16 %v11253_v38  ;;  %v14676_v38 = vld [vmem:[#allocation21_spill] sm:$0xff] }
 0x2f0   : > { %v3117_v23 = vmul.f32 %v14568_v54, %v11571_v8  ;;  %v7141_v48 = vpack.i.bf16 %v11571_v8, %v11559_v61  ;;  %v14573_v54 = vld [vmem:[#allocation137_spill] sm:$0xff] }
 0x2f2   : > { %7137 = vrot.lane.b32.xlu2 %v7136_v55, %s7871_s25  ;;  %v7156_v51 = vpack.i.bf16 %v3117_v23, %v3116_v27  ;;  %v3717_v23 = vmul.f32 %v14573_v54, %v10358_v57  ;;  %v14574_v55 = vld [vmem:[#allocation153_spill] sm:$0xff]  ;;  %v14577_v57 = vld [vmem:[#allocation132_spill] sm:$0xff] }
 0x2f3   : > { %v3714_v54 = vmul.f32 %v14577_v57, %v10364_v28 }
 0x2f4   : > { %v2455_v34 = vpop.f32.mrf.mxu2  ;;  %7142 = vrot.lane.b32.xlu1 %v7141_v48, %s7869_s29  ;;  %v11591_v27 = vpop.permute.xlu0 %6942  ;;  %7157 = vrot.lane.b32.xlu0 %v7156_v51, %s7870_s20  ;;  %v3719_v48 = vmul.f32 %v14574_v55, %v10295_v43  ;;  %v7151_v51 = vpack.i.bf16 %v3716_v4, %v3717_v23 }
 0x2f5   : > { %v2456_v63 = vadd.f32 %v11124_v35, %v2455_v34  ;;  %14571 = vst [vmem:[#allocation76_spill] sm:$0xff] %v11591_v27  ;;  %v11594_v32 = vpop.permute.xlu1 %6932  ;;  %v14576_v34 = vld [vmem:[#allocation147_spill] sm:$0xff]  ;;  %v4824_v27 = vsel %vm4792_vm3, %v2711_v58, %v6840_v37  ;;  %v7161_v20 = vpack.i.bf16 %v3714_v54, %v3715_v2  ;;  %v14589_v54 = vld [vmem:[#allocation57_spill] sm:$0xff] }
 0x2f6   : > { %14572 = vst [vmem:[#allocation69_spill] sm:$0xff] %v11594_v32  ;;  %v6935_v45 = vunpack.i.h.bf16 %v11594_v32  ;;  %v3718_v24 = vmul.f32 %v14576_v34, %v14509_v9  ;;  %v14580_v9 = vld [vmem:[#allocation184_spill] sm:$0xff]  ;;  %v14581_v37 = vld [vmem:[#allocation7_spill] sm:$0xff] }
 0x2f7   : > { %2541 = vst.msk [vmem:[#allocation2 + $0x1b0] sm:$0xff] %vm2486_vm8, %v2456_v63  ;;  %v11618_v4 = vmul.f32 %v14580_v9, %v11243_v1  ;;  %v11622_v28 = vmul.f32 %v14581_v37, %v11438_v12  ;;  %v11625_v58 = vsel %vm2486_vm8, %v2456_v63, 0.0  ;;  %v14586_v1 = vld [vmem:[#allocation172_spill] sm:$0xff]  ;;  %v14587_v12 = vld [vmem:[#allocation179_spill] sm:$0xff]  ;;  %v14605_v37 = vld [vmem:[#allocation173_spill] sm:$0xff] }
 0x2f8   : > { %v11610_v43 = vsel %vm4857_vm4, %v4824_v27, %v6935_v45  ;;  %v7146_v55 = vpack.i.bf16 %v3718_v24, %v3719_v48  ;;  %14582 = vst [vmem:[#allocation85_spill] sm:$0xff] %v11625_v58  ;;  %v14585_v48 = vld [vmem:[#allocation134_spill] sm:$0xff]  ;;  %v11637_v34 = vmul.f32 %v14586_v1, %v10539_v6  ;;  %v11641_v24 = vmul.f32 %v14587_v12, %v10455_v14  ;;  %v14590_v6 = vld [vmem:[#allocation128_spill] sm:$0xff]  ;;  %v14591_v14 = vld [vmem:[#allocation183_spill] sm:$0xff] }
 0x2f9   : > { %14578 = vst [vmem:[#allocation95_spill] sm:$0xff] %v11610_v43  ;;  %v3709_v45 = vmul.f32 %v14585_v48, %v10281_v40  ;;  %v14593_v1 = vld [vmem:[#allocation140_spill] sm:$0xff]  ;;  %v14606_v9 = vld [vmem:[#allocation139_spill] sm:$0xff] }
 0x2fa   : > { %7152 = vrot.lane.b32.xlu2 %v7151_v51, %s7872_s28  ;;  %v14588_v51 = vld [vmem:[#allocation58_spill] sm:$0xff]  ;;  %v11666_v12 = vmul.f32 %v14593_v1, %v14503_v29  ;;  %v3712_v29 = vmul.f32 %v14606_v9, %v14492_v33 }
 0x2fb   : > { %v3118_v57 = vmul.f32 %v14588_v51, %v11625_v58  ;;  %v14601_v1 = vld [vmem:[#allocation146_spill] sm:$0xff] }
 0x2fc   : > { %v2458_v53 = vpop.f32.mrf.mxu2  ;;  %v11613_v32 = vpop.permute.xlu2 %6992  ;;  %7147 = vrot.lane.b32.xlu1 %v7146_v55, %s7872_s28  ;;  %7162 = vrot.lane.b32.xlu0 %v7161_v20, %s7872_s28  ;;  %v3708_v20 = vmul.f32 %v14590_v6, %v10263_v49  ;;  %14594 = vst [vmem:[#allocation176_spill] sm:$0xff] %v11666_v12  ;;  %v14595_v49 = vld [vmem:[#allocation141_spill] sm:$0xff]  ;;  %v14596_v6 = vld [vmem:[#allocation22_spill] sm:$0xff] }
 0x2fd   : > { %14579 = vst [vmem:[#allocation92_spill] sm:$0xff] %v11613_v32  ;;  %v2459_v27 = vadd.f32 %v11124_v35, %v2458_v53  ;;  %v11629_v2 = vpop.permute.xlu1 %6952  ;;  %v11631_v23 = vpop.permute.xlu0 %6947  ;;  %v11657_v53 = vmul.f32 %v14591_v14, %v10802_v62  ;;  %v3710_v51 = vmul.f32 %v14595_v49, %v14478_v52  ;;  %v11675_v14 = vmul.f32 %v14596_v6, %v11356_v18  ;;  %v14599_v52 = vld [vmem:[#allocation130_spill] sm:$0xff]  ;;  %v14603_v18 = vld [vmem:[#allocation169_spill] sm:$0xff] }
 0x2fe   : > { %14583 = vst [vmem:[#allocation81_spill] sm:$0xff] %v11629_v2  ;;  %v7186_v48 = vpack.i.bf16 %v3708_v20, %v3709_v45  ;;  %v14600_v20 = vld [vmem:[#allocation160_spill] sm:$0xff]  ;;  %v11691_v6 = vmul.f32 %v14603_v18, %v10484_v10  ;;  %v14609_v18 = vld [vmem:[#allocation182_spill] sm:$0xff] }
 0x2ff   : > { %14584 = vst [vmem:[#allocation84_spill] sm:$0xff] %v11631_v23  ;;  %v11645_v63 = vsel %vm2486_vm8, %v2459_v27, 0.0  ;;  %v3713_v49 = vmul.f32 %v14601_v1, %v14600_v20  ;;  %v14611_v9 = vld [vmem:[#allocation154_spill] sm:$0xff] }
 0x300   : > { %2542 = vst.msk [vmem:[#allocation2 + $0x1b8] sm:$0xff] %vm2486_vm8, %v2459_v27  ;;  %v3119_v55 = vmul.f32 %v14589_v54, %v11645_v63  ;;  %v7166_v40 = vpack.i.bf16 %v11645_v63, %v11625_v58 }
 0x301   : > { %14592 = vst [vmem:[#allocation72_spill] sm:$0xff] %v11657_v53  ;;  %v7176_v1 = vpack.i.bf16 %v3712_v29, %v3713_v49  ;;  %v14613_v29 = vld [vmem:[#allocation167_spill] sm:$0xff]  ;;  %v14666_v53 = vld [vmem:[#allocation8_spill] sm:$0xff] }
 0x302   : > { %7167 = vrot.lane.b32.xlu2 %v7166_v40, %s7869_s29  ;;  %v7171_v27 = vpack.i.bf16 %v3119_v55, %v3118_v57  ;;  %v14598_v57 = vld [vmem:[#allocation165_spill] sm:$0xff] }
 0x303   : > { %v3711_v55 = vmul.f32 %v14599_v52, %v14598_v57  ;;  %v14608_v57 = vld [vmem:[#allocation133_spill] sm:$0xff] }
 0x304   : > { %v2461_v54 = vpop.f32.mrf.mxu2  ;;  %v11670_v62 = vpop.permute.xlu2 %7007  ;;  %7172 = vrot.lane.b32.xlu1 %v7171_v27, %s7870_s20  ;;  %7187 = vrot.lane.b32.xlu0 %v7186_v48, %s7872_s28 }
 0x305   : > { %v2462_v40 = vadd.f32 %v11124_v35, %v2461_v54  ;;  %v11679_v45 = vpop.permute.xlu1 %6962  ;;  %v14604_v54 = vld [vmem:[#allocation185_spill] sm:$0xff]  ;;  %v7181_v32 = vpack.i.bf16 %v3710_v51, %v3711_v55  ;;  %v3735_v55 = vmul.f32 %v14613_v29, %v10577_v46 }
 0x306   : > { %14597 = vst [vmem:[#allocation83_spill] sm:$0xff] %v11679_v45  ;;  %v11687_v27 = vpop.permute.xlu0 %6967  ;;  %v3733_v48 = vmul.f32 %v14605_v37, %v14604_v54  ;;  %v14607_v45 = vld [vmem:[#allocation159_spill] sm:$0xff]  ;;  %v14612_v51 = vld [vmem:[#allocation125_spill] sm:$0xff] }
 0x307   : > { %14602 = vst [vmem:[#allocation94_spill] sm:$0xff] %v11687_v27  ;;  %v3705_v52 = vmul.f32 %v14608_v57, %v14607_v45  ;;  %v3734_v27 = vmul.f32 %v14609_v18, %v10598_v44  ;;  %v3706_v45 = vmul.f32 %v14612_v51, %v14611_v9  ;;  %v14616_v44 = vld [vmem:[#allocation151_spill] sm:$0xff] }
 0x308   : > { %2543 = vst.msk [vmem:[#allocation2 + $0x1c0] sm:$0xff] %vm2486_vm8, %v2462_v40 }
 0x309   : > { %v7201_v10 = vpack.i.bf16 %v3733_v48, %v3705_v52  ;;  %v14617_v48 = vld [vmem:[#allocation138_spill] sm:$0xff]  ;;  %v7196_v52 = vpack.i.bf16 %v3734_v27, %v3706_v45  ;;  %v14621_v45 = vld [vmem:[#allocation48_spill] sm:$0xff] }
 0x30a   : > { %7182 = vrot.lane.b32.xlu2 %v7181_v32, %s7872_s28  ;;  %v3707_v57 = vmul.f32 %v14617_v48, %v14616_v44 }
 0x30c   : > { %v2464_v37 = vpop.f32.mrf.mxu2  ;;  %v11705_v54 = vpop.permute.xlu2 %7022  ;;  %7177 = vrot.lane.b32.xlu1 %v7176_v1, %s7872_s28  ;;  %7202 = vrot.lane.b32.xlu0 %v7201_v10, %s7872_s28  ;;  %v11725_v10 = vsel %vm2486_vm8, %v2462_v40, 0.0  ;;  %v7191_v18 = vpack.i.bf16 %v3735_v55, %v3707_v57  ;;  %v14620_v40 = vld [vmem:[#allocation161_spill] sm:$0xff]  ;;  %v14624_v57 = vld [vmem:[#allocation158_spill] sm:$0xff] }
 0x30d   : > { %14610 = vst [vmem:[#allocation170_spill] sm:$0xff] %v11705_v54  ;;  %v2465_v33 = vadd.f32 %v11124_v35, %v2464_v37  ;;  %v11714_v32 = vpop.permute.xlu1 %6977  ;;  %v14618_v37 = vld [vmem:[#allocation61_spill] sm:$0xff]  ;;  %v3120_v55 = vmul.f32 %v14621_v45, %v11725_v10  ;;  %v14627_v45 = vpack.i.bf16 %v11618_v4, %v11637_v34  ;;  %v14631_v34 = vpack.i.bf16 %v11641_v24, %v11622_v28 }
 0x30e   : > { %14614 = vst [vmem:[#allocation82_spill] sm:$0xff] %v11714_v32  ;;  %v11716_v49 = vpop.permute.xlu0 %6972 }
 0x30f   : > { %14615 = vst [vmem:[#allocation98_spill] sm:$0xff] %v11716_v49  ;;  %v11722_v1 = vsel %vm2486_vm8, %v2465_v33, 0.0 }
 0x310   : > { %2544 = vst.msk [vmem:[#allocation2 + $0x1c8] sm:$0xff] %vm2486_vm8, %v2465_v33  ;;  %v7211_v46 = vpack.i.bf16 %v11722_v1, %v11725_v10  ;;  %v3121_v9 = vmul.f32 %v14618_v37, %v11722_v1  ;;  %v3732_v33 = vmul.f32 %v14620_v40, %v10607_v47 }
 0x312   : > { %7197 = vrot.lane.b32.xlu2 %v7196_v52, %s7872_s28  ;;  %v14625_v52 = vld [vmem:[#allocation131_spill] sm:$0xff] }
 0x313   : > { %v3704_v37 = vmul.f32 %v14625_v52, %v14624_v57 }
 0x314   : > { %v2467_v51 = vpop.f32.mrf.mxu2  ;;  %v11732_v29 = vpop.permute.xlu2 %7042  ;;  %7192 = vrot.lane.b32.xlu1 %v7191_v18, %s7872_s28  ;;  %7212 = vrot.lane.b32.xlu0 %v7211_v46, %s7869_s29  ;;  %v7216_v18 = vpack.i.bf16 %v3121_v9, %v3120_v55  ;;  %v14628_v55 = vld [vmem:[#allocation60_spill] sm:$0xff] }
 0x315   : > { %14619 = vst [vmem:[#allocation50_spill] sm:$0xff] %v11732_v29  ;;  %v2468_v27 = vadd.f32 %v11124_v35, %v2467_v51  ;;  %v7206_v51 = vpack.i.bf16 %v3732_v33, %v3704_v37 }
 0x316   : > { %v11741_v44 = vpop.permute.xlu0 %6987  ;;  %v11743_v48 = vpop.permute.xlu1 %6997 }
 0x317   : > { %14622 = vst [vmem:[#allocation86_spill] sm:$0xff] %v11741_v44  ;;  %v11753_v47 = vsel %vm2486_vm8, %v2468_v27, 0.0 }
 0x318   : > { %14623 = vst [vmem:[#allocation87_spill] sm:$0xff] %v11743_v48  ;;  %v3122_v52 = vmul.f32 %v14628_v55, %v11753_v47  ;;  %v14633_v48 = vld [vmem:[#allocation156_spill] sm:$0xff] }
 0x319   : > { %2545 = vst.msk [vmem:[#allocation2 + $0x1d0] sm:$0xff] %vm2486_vm8, %v2468_v27  ;;  %v14629_v27 = vld [vmem:[#allocation51_spill] sm:$0xff] }
 0x31a   : > { %7217 = vrot.lane.b32.xlu2 %v7216_v18, %s7870_s20  ;;  %v14630_v18 = vld [vmem:[#allocation6_spill] sm:$0xff] }
 0x31c   : > { %v2470_v46 = vpop.f32.mrf.mxu2  ;;  %v11749_v20 = vpop.permute.xlu2 %7047  ;;  %7207 = vrot.lane.b32.xlu1 %v7206_v51, %s7872_s28  ;;  %7232 = vrot.lane.b32.xlu0 %v14627_v45, %s7872_s28  ;;  %v11771_v51 = vmul.f32 %v14630_v18, %v11022_v16  ;;  %v14632_v45 = vld [vmem:[#allocation135_spill] sm:$0xff] }
 0x31d   : > { %14626 = vst [vmem:[#allocation103_spill] sm:$0xff] %v11749_v20  ;;  %v2471_v40 = vadd.f32 %v11124_v35, %v2470_v46 }
 0x31e   : > { %v11760_v57 = vpop.permute.xlu0 %7012  ;;  %v11762_v9 = vpop.permute.xlu1 %7002 }
 0x31f   : > { %2546 = vst.msk [vmem:[#allocation2 + $0x1d8] sm:$0xff] %vm2486_vm8, %v2471_v40  ;;  %v2674_v33 = vsel %vm2486_vm8, %v2471_v40, 0.0  ;;  %v11780_v40 = vmul.f32 %v14633_v48, %v14632_v45  ;;  %v14636_v48 = vpack.i.bf16 %v11675_v14, %v11691_v6  ;;  %v14642_v14 = vld [vmem:[#allocation64_spill] sm:$0xff] }
 0x320   : > { %v3123_v37 = vmul.f32 %v14629_v27, %v2674_v33  ;;  %v7236_v4 = vpack.i.bf16 %v2674_v33, %v11753_v47 }
 0x322   : > { %7222 = vrot.lane.b32.xlu2 %v14631_v34, %s7872_s28  ;;  %v7241_v46 = vpack.i.bf16 %v3123_v37, %v3122_v52 }
 0x324   : > { %v2473_v29 = vpop.f32.mrf.mxu2  ;;  %v11782_v55 = vpop.permute.xlu2 %7072  ;;  %7237 = vrot.lane.b32.xlu1 %v7236_v4, %s7869_s29  ;;  %7242 = vrot.lane.b32.xlu0 %v7241_v46, %s7870_s20  ;;  %v14639_v46 = vld [vmem:[#allocation126_spill] sm:$0xff] }
 0x325   : > { %14634 = vst [vmem:[#allocation36_spill] sm:$0xff] %v11782_v55  ;;  %v2474_v16 = vadd.f32 %v11124_v35, %v2473_v29  ;;  %v14637_v29 = vld [vmem:[#allocation117_spill] sm:$0xff]  ;;  %v3443_v45 = vmul.f32 %v14639_v46, %v2674_v33  ;;  %v14645_v46 = vld [vmem:[#allocation143_spill] sm:$0xff] }
 0x326   : > { %v11789_v18 = vpop.permute.xlu0 %7027  ;;  %v11791_v28 = vpop.permute.xlu1 %7017 }
 0x327   : > { %14635 = vst [vmem:[#allocation75_spill] sm:$0xff] %v11789_v18  ;;  %v11795_v24 = vsel %vm2486_vm8, %v2474_v16, 0.0 }
 0x328   : > { %2547 = vst.msk [vmem:[#allocation2 + $0x1e0] sm:$0xff] %vm2486_vm8, %v2474_v16  ;;  %v3444_v52 = vmul.f32 %v14637_v29, %v11795_v24  ;;  %v3124_v6 = vmul.f32 %v14642_v14, %v11795_v24  ;;  %v14651_v14 = vld [vmem:[#allocation152_spill] sm:$0xff] }
 0x32a   : > { %7227 = vrot.lane.b32.xlu2 %v14636_v48, %s7872_s28  ;;  %v14643_v48 = vld [vmem:[#allocation63_spill] sm:$0xff]  ;;  %v7246_v18 = vpack.i.bf16 %v3443_v45, %v3444_v52 }
 0x32b   : > { %v14648_v45 = vld [vmem:[#allocation155_spill] sm:$0xff] }
 0x32c   : > { %v2476_v37 = vpop.f32.mrf.mxu2  ;;  %v11803_v4 = vpop.permute.xlu2 %7082 }
 0x32d   : > { %14638 = vst [vmem:[#allocation101_spill] sm:$0xff] %v11803_v4  ;;  %v2477_v34 = vadd.f32 %v11124_v35, %v2476_v37  ;;  %v14644_v4 = vld [vmem:[#allocation9_spill] sm:$0xff] }
 0x32e   : > { %v11807_v27 = vpop.permute.xlu0 %7032  ;;  %v11809_v54 = vpop.permute.xlu1 %7037  ;;  %v11818_v2 = vmul.f32 %v14644_v4, %v11140_v5 }
 0x32f   : > { %14640 = vst [vmem:[#allocation90_spill] sm:$0xff] %v11807_v27  ;;  %v2676_v16 = vsel %vm2486_vm8, %v2477_v34, 0.0  ;;  %v14646_v27 = vld [vmem:[#allocation148_spill] sm:$0xff] }
 0x330   : > { %14641 = vst [vmem:[#allocation104_spill] sm:$0xff] %v11809_v54  ;;  %v3125_v29 = vmul.f32 %v14643_v48, %v2676_v16  ;;  %v11823_v54 = vmul.f32 %v14646_v27, %v14645_v46  ;;  %v3765_v5 = vmul.f32 %v14648_v45, %v2676_v16  ;;  %v14652_v48 = vld [vmem:[#allocation15_spill] sm:$0xff] }
 0x331   : > { %2548 = vst.msk [vmem:[#allocation2 + $0x1e8] sm:$0xff] %vm2486_vm8, %v2477_v34 }
 0x332   : > { %7247 = vrot.lane.b32.xlu2 %v7246_v18, %s7871_s25  ;;  %v7256_v37 = vpack.i.bf16 %v3125_v29, %v3124_v6  ;;  %v3729_v6 = vmul.f32 %v14651_v14, %v10525_v7  ;;  %v7251_v29 = vpack.i.bf16 %v2676_v16, %v11795_v24  ;;  %v14655_v7 = vld [vmem:[#allocation24_spill] sm:$0xff] }
 0x333   : > { %v3763_v14 = vmul.f32 %v14655_v7, %v2674_v33  ;;  %v14658_v33 = vld [vmem:[#allocation123_spill] sm:$0xff]  ;;  %v14659_v7 = vld [vmem:[#allocation17_spill] sm:$0xff] }
 0x334   : > { %v2479_v23 = vpop.f32.mrf.mxu2  ;;  %v11825_v20 = vpop.permute.xlu2 %7097  ;;  %7257 = vrot.lane.b32.xlu1 %v7256_v37, %s7870_s20  ;;  %v14653_v37 = vld [vmem:[#allocation31_spill] sm:$0xff] }
 0x335   : > { %14647 = vst [vmem:[#allocation100_spill] sm:$0xff] %v11825_v20  ;;  %v2480_v34 = vadd.f32 %v11124_v35, %v2479_v23  ;;  %v3748_v23 = vmul.f32 %v14652_v48, %v11368_v15  ;;  %v14657_v48 = vld [vmem:[#allocation111_spill] sm:$0xff] }
 0x336   : > { %v11832_v4 = vpop.permute.xlu1 %7052  ;;  %v11838_v27 = vpop.permute.xlu0 %7057 }
 0x337   : > { %14649 = vst [vmem:[#allocation93_spill] sm:$0xff] %v11832_v4  ;;  %v11836_v18 = vsel %vm2486_vm8, %v2480_v34, 0.0  ;;  %v7261_v52 = vpack.i.bf16 %v3765_v5, %v3748_v23  ;;  %v7770_v5 = vld [vmem:[%s13986_s3 + $0x10] sm:$0xff]  ;;  %v11867_v23 = vmul.f32 %v14657_v48, %v11625_v58  ;;  %v14668_v4 = vld [vmem:[#allocation23_spill] sm:$0xff]  ;;  %v14680_v58 = vld [vmem:[#allocation54_spill] sm:$0xff] }
 0x338   : > { %2549 = vst.msk [vmem:[#allocation2 + $0x1f0] sm:$0xff] %vm2486_vm8, %v2480_v34  ;;  %v3766_v46 = vmul.f32 %v14653_v37, %v11836_v18  ;;  %v7769_v34 = vld [vmem:[%s13986_s3 + $0x20] sm:$0xff]  ;;  %v14660_v48 = vld [vmem:[#allocation129_spill] sm:$0xff]  ;;  %v11931_v42 = vmul.f32 %v14668_v4, %v11722_v1 }
 0x339   : > { %14650 = vst [vmem:[#allocation109_spill] sm:$0xff] %v11838_v27  ;;  %v11852_v20 = vsel %vm2679_vm2, %v7769_v34, 0.0 }
 0x33a   : > { %7252 = vrot.lane.b32.xlu2 %v7251_v29, %s7869_s29  ;;  %v7281_v45 = vpack.i.bf16 %v3729_v6, %v3766_v46  ;;  %14654 = vst [vmem:[#allocation39_spill] sm:$0xff] %v11852_v20  ;;  %v11863_v6 = vsel %vm2679_vm2, %v7770_v5, 0.0  ;;  %v11871_v29 = vmul.f32 %v14658_v33, %v11725_v10  ;;  %v3746_v5 = vmul.f32 %v14659_v7, %v11223_v0  ;;  %v7773_v33 = vld [vmem:[%s13986_s3 + $0x18] sm:$0xff] }
 0x33b   : > { %14669 = vst [vmem:[#allocation110_spill] sm:$0xff] %v11931_v42  ;;  %v14697_v42 = vld [vmem:[#allocation145_spill] sm:$0xff] }
 0x33c   : > { %v2482_v43 = vpop.f32.mrf.mxu2  ;;  %v11855_v15 = vpop.permute.xlu2 %7112  ;;  %7282 = vrot.lane.b32.xlu0 %v7281_v45, %s7872_s28  ;;  %7262 = vrot.lane.b32.xlu1 %v7261_v52, %s7872_s28  ;;  %v7771_v52 = vld [vmem:[%s13986_s3] sm:$0xff]  ;;  %v7772_v45 = vld [vmem:[%s13986_s3 + $0x28] sm:$0xff] }
 0x33d   : > { %14656 = vst [vmem:[#allocation107_spill] sm:$0xff] %v11855_v15  ;;  %v2483_v37 = vadd.f32 %v11124_v35, %v2482_v43  ;;  %v11878_v46 = vsel %vm2679_vm2, %v7771_v52, 0.0  ;;  %v11884_v34 = vsel %vm2679_vm2, %v7772_v45, 0.0  ;;  %v3446_v35 = vmul.f32 %v14660_v48, %v11836_v18  ;;  %v14662_v15 = vld [vmem:[#allocation121_spill] sm:$0xff]  ;;  %v14663_v45 = vld [vmem:[#allocation122_spill] sm:$0xff]  ;;  %v7774_v48 = vld [vmem:[%s13986_s3 + $0x8] sm:$0xff] }
 0x33e   : > { %v11890_v43 = vpop.permute.xlu1 %7067  ;;  %v11896_v52 = vsel %vm2679_vm2, %v7773_v33, 0.0  ;;  %v11900_v27 = vmul.f32 %v14662_v15, %v11571_v8  ;;  %v11904_v55 = vmul.f32 %v14663_v45, %v11645_v63  ;;  %v11910_v7 = vpop.permute.xlu0 %7062  ;;  %v11916_v33 = vsel %vm2679_vm2, %v7774_v48, 0.0  ;;  %v7775_v15 = vld [vmem:[%s13986_s3 + $0x40] sm:$0xff] }
 0x33f   : > { %14661 = vst [vmem:[#allocation49_spill] sm:$0xff] %v11890_v43  ;;  %v11908_v0 = vsel %vm2486_vm8, %v2483_v37, 0.0  ;;  %v11922_v45 = vsel %vm2679_vm2, %v7775_v15, 0.0  ;;  %v14665_v43 = vld [vmem:[#allocation127_spill] sm:$0xff]  ;;  %v7776_v15 = vld [vmem:[%s13986_s3 + $0x38] sm:$0xff]  ;;  %v11966_v48 = vmul.f32 %v14670_v13, %v11027_v41  ;;  %v7782_v41 = vld [vmem:[%s13986_s3 + $0x68] sm:$0xff] }
 0x340   : > { %2550 = vst.msk [vmem:[#allocation2 + $0x1f8] sm:$0xff] %vm2486_vm8, %v2483_v37  ;;  %v3445_v12 = vmul.f32 %v14665_v43, %v2676_v16  ;;  %v7276_v37 = vpack.i.bf16 %v3763_v14, %v3746_v5  ;;  %v11941_v16 = vsel %vm2679_vm2, %v7776_v15, 0.0  ;;  %v7286_v4 = vpack.i.bf16 %v11908_v0, %v11836_v18  ;;  %v7778_v5 = vld [vmem:[%s13986_s3 + $0x58] sm:$0xff]  ;;  %v7779_v15 = vld [vmem:[%s13986_s3 + $0x50] sm:$0xff] }
 0x341   : > { %14664 = vst [vmem:[#allocation96_spill] sm:$0xff] %v11910_v7  ;;  %v11927_v7 = vmul.f32 %v14666_v53, %v11645_v63  ;;  %v7777_v63 = vld [vmem:[%s13986_s3 + $0x30] sm:$0xff]  ;;  %v11956_v43 = vsel %vm2679_vm2, %v7778_v5, 0.0  ;;  %v14674_v13 = vld [vmem:[#allocation66_spill] sm:$0xff]  ;;  %vm4922_vm8 = vcmask 195584  }
 0x342   : > { %v11947_v53 = vsel %vm2679_vm2, %v7777_v63, 0.0  ;;  %7277 = vrot.lane.b32.xlu2 %v7276_v37, %s7872_s28  ;;  %v7266_v14 = vpack.i.bf16 %v3445_v12, %v3446_v35  ;;  %v11962_v63 = vsel %vm2679_vm2, %v7779_v15, 0.0  ;;  %14671 = vst [vmem:[#allocation99_spill] sm:$0xff] %v11966_v48  ;;  %v14672_v12 = vld [vmem:[#allocation181_spill] sm:$0xff]  ;;  %v7780_v37 = vld [vmem:[%s13986_s3 + $0x48] sm:$0xff] }
 0x343   : > { %14667 = vst [vmem:[#allocation106_spill] sm:$0xff] %v11927_v7  ;;  %v11970_v35 = vmul.f32 %v14672_v12, %v11119_v22  ;;  %v11976_v5 = vsel %vm2679_vm2, %v7780_v37, 0.0  ;;  %v7781_v15 = vld [vmem:[%s13986_s3 + $0x70] sm:$0xff]  ;;  %v11988_v22 = vsel %vm2679_vm2, %v7782_v41, 0.0  ;;  %v3127_v12 = vmul.f32 %v14674_v13, %v11908_v0  ;;  %v7783_v37 = vld [vmem:[%s13986_s3 + $0x60] sm:$0xff] }
 0x344   : > { %v11982_v49 = vsel %vm2679_vm2, %v7781_v15, 0.0  ;;  %v11992_v32 = vpop.permute.xlu2 %7132  ;;  %7287 = vrot.lane.b32.xlu0 %v7286_v4, %s7869_s29  ;;  %7267 = vrot.lane.b32.xlu1 %v7266_v14, %s7871_s25  ;;  %v12000_v15 = vsel %vm2679_vm2, %v7783_v37, 0.0  ;;  %v12004_v41 = vmul.f32 %v14676_v38, %v11571_v8  ;;  %v7784_v4 = vld [vmem:[%s13986_s3 + $0x88] sm:$0xff]  ;;  %v14679_v37 = vld [vmem:[#allocation29_spill] sm:$0xff]  ;;  %v3126_v38 = vmul.f32 %v14680_v58, %v11836_v18  ;;  %v7787_v58 = vld [vmem:[%s13986_s3 + $0xa0] sm:$0xff] }
 0x345   : > { %14673 = vst [vmem:[#allocation53_spill] sm:$0xff] %v11970_v35  ;;  %v12014_v14 = vsel %vm2679_vm2, %v7784_v4, 0.0  ;;  %v3764_v44 = vmul.f32 %v14679_v37, %v11795_v24  ;;  %v14681_v8 = vld [vmem:[#allocation120_spill] sm:$0xff]  ;;  %v7786_v4 = vld [vmem:[%s13986_s3 + $0x78] sm:$0xff]  ;;  %v12038_v18 = vsel %vm2679_vm2, %v7787_v58, 0.0  ;;  %v14691_v48 = vld [vmem:[#allocation105_spill] sm:$0xff] }
 0x346   : > { %14675 = vst [vmem:[#allocation52_spill] sm:$0xff] %v11992_v32  ;;  %v3447_v36 = vmul.f32 %v14681_v8, %v11908_v0  ;;  %v12022_v13 = vpop.permute.xlu1 %7087  ;;  %v7785_v32 = vld [vmem:[%s13986_s3 + $0x80] sm:$0xff]  ;;  %v2695_v24 = vsel %vm2679_vm2, %v7786_v4, 0.0  ;;  %v14685_v37 = vld [vmem:[#allocation10_spill] sm:$0xff]  ;;  %v14689_v4 = vld [vmem:[#allocation144_spill] sm:$0xff]  ;;  %v3432_v58 = vmul.f32 %v14691_v48, %v11481_v50 }
 0x347   : > { %14677 = vst [vmem:[#allocation56_spill] sm:$0xff] %v12004_v41  ;;  %v12028_v21 = vsel %vm2679_vm2, %v7785_v32, 0.0  ;;  %v12042_v8 = vmul.f32 %v14685_v37, %v10911_v60  ;;  %v7788_v32 = vld [vmem:[%s13986_s3 + $0xa8] sm:$0xff]  ;;  %v7789_v60 = vld [vmem:[%s13986_s3 + $0xd0] sm:$0xff]  ;;  %v14694_v35 = vld [vmem:[#allocation19_spill] sm:$0xff] }
 0x348   : > { %14678 = vst [vmem:[#allocation102_spill] sm:$0xff] %v12014_v14  ;;  %v14690_v14 = vld [vmem:[#allocation163_spill] sm:$0xff]  ;;  %v12060_v37 = vsel %vm2679_vm2, %v7789_v60, 0.0  ;;  %v14700_v50 = vld [vmem:[#allocation168_spill] sm:$0xff] }
 0x349   : > { %14682 = vst [vmem:[#allocation42_spill] sm:$0xff] %v12022_v13  ;;  %v12044_v13 = vpop.permute.xlu0 %7077  ;;  %v3727_v11 = vmul.f32 %v14690_v14, %v14689_v4  ;;  %v14696_v4 = vld [vmem:[#allocation175_spill] sm:$0xff] }
 0x34a   : > { %14683 = vst [vmem:[#allocation112_spill] sm:$0xff] %v12028_v21  ;;  %v12050_v21 = vsel %vm2679_vm2, %v7788_v32, 0.0  ;;  %v12065_v32 = vmul.f32 %v14694_v35, %v11725_v10  ;;  %v12071_v48 = vmul.f32 %v14697_v42, %v14696_v4  ;;  %v14702_v35 = vld [vmem:[#allocation41_spill] sm:$0xff]  ;;  %v14703_v42 = vld [vmem:[#allocation171_spill] sm:$0xff] }
 0x34b   : > { %14684 = vst [vmem:[#allocation115_spill] sm:$0xff] %v12038_v18  ;;  %v7291_v18 = vpack.i.bf16 %v3127_v12, %v3126_v38  ;;  %v7296_v38 = vpack.i.bf16 %v3447_v36, %v3432_v58  ;;  %v7271_v60 = vpack.i.bf16 %v3727_v11, %v3764_v44  ;;  %v6855_v20 = vunpack.i.h.bf16 %v14702_v35  ;;  %v14705_v36 = vld [vmem:[#allocation14_spill] sm:$0xff] }
 0x34c   : > { %14686 = vst [vmem:[#allocation113_spill] sm:$0xff] %v12042_v8  ;;  %v6854_v14 = vunpack.i.l.bf16 %v14702_v35  ;;  %v12085_v4 = vmul.f32 %v14703_v42, %v10807_v3  ;;  %v12090_v11 = vmul.f32 %v14705_v36, %v11559_v61  ;;  %v14709_v42 = vld [vmem:[#allocation27_spill] sm:$0xff] }
 0x34d   : > { %14687 = vst [vmem:[#allocation55_spill] sm:$0xff] %v12044_v13  ;;  %v14693_v13 = vld [vmem:[#allocation34_spill] sm:$0xff]  ;;  %7292 = vrot.lane.b32.xlu2 %v7291_v18, %s7870_s20  ;;  %v12094_v18 = vpop.permute.xlu2 %7137  ;;  %7297 = vrot.lane.b32.xlu0 %v7296_v38, %s7871_s25  ;;  %v6785_v36 = vunpack.i.h.bf16 %v14709_v42  ;;  %v14711_v38 = vld [vmem:[#allocation35_spill] sm:$0xff] }
 0x34e   : > { %14688 = vst [vmem:[#allocation45_spill] sm:$0xff] %v12050_v21  ;;  %v6770_v7 = vunpack.i.h.bf16 %v14693_v13  ;;  %v6769_v12 = vunpack.i.l.bf16 %v14693_v13  ;;  %v14701_v21 = vld [vmem:[#allocation180_spill] sm:$0xff]  ;;  %7272 = vrot.lane.b32.xlu1 %v7271_v60, %s7872_s28  ;;  %v3767_v60 = vmul.f32 %v14711_v38, %v11908_v0  ;;  %v12110_v41 = vpop.permute.xlu1 %7092 }
 0x34f   : > { %14692 = vst [vmem:[#allocation149_spill] sm:$0xff] %v12060_v37  ;;  %v14699_v37 = vld [vmem:[#allocation136_spill] sm:$0xff]  ;;  %v12079_v10 = vmul.f32 %v14701_v21, %v10675_v59  ;;  %v14708_v21 = vld [vmem:[#allocation37_spill] sm:$0xff] }
 0x350   : > { %14695 = vst [vmem:[#allocation137_spill] sm:$0xff] %v12065_v32  ;;  %v3725_v39 = vmul.f32 %v14700_v50, %v14699_v37  ;;  %v14704_v13 = vld [vmem:[#allocation28_spill] sm:$0xff]  ;;  %v4796_v59 = vsel %vm4792_vm3, %v11896_v52, %v6770_v7  ;;  %v6800_v58 = vunpack.i.h.bf16 %v14708_v21  ;;  %v4795_v35 = vsel %vm4792_vm3, %v11863_v6, %v6769_v12 }
 0x351   : > { %14698 = vst [vmem:[#allocation153_spill] sm:$0xff] %v12071_v48  ;;  %v6795_v8 = vunpack.i.h.bf16 %v14704_v13  ;;  %v14706_v50 = vld [vmem:[#allocation16_spill] sm:$0xff]  ;;  %v6794_v3 = vunpack.i.l.bf16 %v14704_v13  ;;  %v6784_v52 = vunpack.i.l.bf16 %v14709_v42  ;;  %v7020_v7 = vunpack.i.h.bf16 %v11791_v28  ;;  %v12114_v13 = vpop.permute.xlu0 %7102 }
 0x352   : > { %v3762_v44 = vmul.f32 %v14706_v50, %v11753_v47  ;;  %14707 = vst [vmem:[#allocation142_spill] sm:$0xff] %v12094_v18  ;;  %v14710_v50 = vld [vmem:[#allocation70_spill] sm:$0xff]  ;;  %v12117_v37 = vsel %vm4857_vm4, %v4796_v59, %v6855_v20  ;;  %v12120_v6 = vsel %vm4857_vm4, %v4795_v35, %v6854_v14  ;;  %v6799_v12 = vunpack.i.l.bf16 %v14708_v21  ;;  %v14714_v32 = vld [vmem:[#allocation12_spill] sm:$0xff] }
 0x353   : > { %v6890_v18 = vunpack.i.h.bf16 %v14710_v50  ;;  %14712 = vst [vmem:[#allocation147_spill] sm:$0xff] %v12110_v41  ;;  %v3750_v48 = vmul.f32 %v14714_v32, %v11428_v26  ;;  %v4806_v42 = vsel %vm4792_vm3, %v11988_v22, %v6795_v8  ;;  %v4805_v41 = vsel %vm4792_vm3, %v12000_v15, %v6794_v3  ;;  %v14715_v32 = vld [vmem:[#allocation78_spill] sm:$0xff]  ;;  %v14717_v3 = vld [vmem:[#allocation11_spill] sm:$0xff] }
 0x354   : > { %14713 = vst [vmem:[#allocation132_spill] sm:$0xff] %v12114_v13  ;;  %v7316_v0 = vpack.i.bf16 %v3725_v39, %v3762_v44  ;;  %v4808_v20 = vsel %vm4792_vm3, %v2695_v24, %v6800_v58  ;;  %v6889_v14 = vunpack.i.l.bf16 %v14710_v50  ;;  %v7019_v59 = vunpack.i.l.bf16 %v11791_v28 }
 0x355   : > { %v7301_v21 = vpack.i.bf16 %v3767_v60, %v3750_v48  ;;  %v4873_v26 = vsel %vm4857_vm4, %v4808_v20, %v6890_v18  ;;  %v4802_v39 = vsel %vm4792_vm3, %v11976_v5, %v6785_v36  ;;  %v6870_v22 = vunpack.i.h.bf16 %v14715_v32  ;;  %v12149_v18 = vpop.permute.xlu2 %7152  ;;  %v14719_v60 = vld [vmem:[#allocation124_spill] sm:$0xff] }
 0x356   : > { %7317 = vrot.lane.b32.xlu2 %v7316_v0, %s7872_s28  ;;  %v6869_v8 = vunpack.i.l.bf16 %v14715_v32  ;;  %v12141_v15 = vsel %vm4922_vm8, %v4873_v26, %v7020_v7  ;;  %v4801_v24 = vsel %vm4792_vm3, %v11922_v45, %v6784_v52  ;;  %v4807_v28 = vsel %vm4792_vm3, %v11982_v49, %v6799_v12  ;;  %v12167_v7 = vpop.permute.xlu1 %7107  ;;  %v14721_v12 = vld [vmem:[#allocation118_spill] sm:$0xff] }
 0x357   : > { %v6885_v48 = vunpack.i.h.bf16 %v11522_v17  ;;  %v6884_v44 = vunpack.i.l.bf16 %v11522_v17  ;;  %7302 = vrot.lane.b32.xlu0 %v7301_v21, %s7872_s28  ;;  %v14716_v5 = vpack.i.bf16 %v11818_v2, %v11823_v54  ;;  %v12158_v58 = vmul.f32 %v14717_v3, %v11531_v19  ;;  %v14718_v17 = vld [vmem:[#allocation30_spill] sm:$0xff]  ;;  %14720 = vst [vmem:[#allocation184_spill] sm:$0xff] %v12167_v7  ;;  %v14726_v3 = vld [vmem:[#allocation116_spill] sm:$0xff] }
 0x358   : > { %v7015_v45 = vunpack.i.h.bf16 %v11760_v57  ;;  %v7014_v49 = vunpack.i.l.bf16 %v11760_v57  ;;  %v4872_v35 = vsel %vm4857_vm4, %v4807_v28, %v6889_v14  ;;  %v6790_v36 = vunpack.i.h.bf16 %v14718_v17  ;;  %v14723_v21 = vld [vmem:[#allocation114_spill] sm:$0xff]  ;;  %v14724_v28 = vld [vmem:[#allocation119_spill] sm:$0xff] }
 0x359   : > { %7312 = vrot.lane.b32.xlu1 %v14716_v5, %s7872_s28  ;;  %v6789_v50 = vunpack.i.l.bf16 %v14718_v17  ;;  %v3442_v52 = vmul.f32 %v14719_v60, %v11753_v47  ;;  %v12170_v2 = vsel %vm4922_vm8, %v4872_v35, %v7019_v59  ;;  %v6875_v54 = vunpack.i.h.bf16 %v11502_v30  ;;  %v12177_v57 = vpop.permute.xlu0 %7117  ;;  %v7793_v35 = vld [vmem:[%s13986_s3 + $0x100] sm:$0xff] }
 0x35a   : > { %v12175_v0 = vmul.f32 %v14721_v12, %v11531_v19  ;;  %14722 = vst [vmem:[#allocation7_spill] sm:$0xff] %v12177_v57  ;;  %v4867_v20 = vsel %vm4857_vm4, %v4802_v39, %v6870_v22  ;;  %v12181_v14 = vsel %vm4857_vm4, %v4801_v24, %v6869_v8  ;;  %v7010_v47 = vunpack.i.h.bf16 %v11670_v62  ;;  %v14739_v22 = vld [vmem:[#allocation188_spill] sm:$0xff] }
 0x35b   : > { %v3441_v26 = vmul.f32 %v14723_v21, %v11722_v1  ;;  %v4871_v59 = vsel %vm4857_vm4, %v4806_v42, %v6885_v48  ;;  %v4870_v32 = vsel %vm4857_vm4, %v4805_v41, %v6884_v44  ;;  %v12190_v19 = vmul.f32 %v14724_v28, %v11559_v61  ;;  %v7790_v1 = vld [vmem:[%s13986_s3 + $0xe8] sm:$0xff]  ;;  %v7791_v48 = vld [vmem:[%s13986_s3 + $0xe0] sm:$0xff] }
 0x35c   : > { %v12193_v5 = vsel %vm4922_vm8, %v4871_v59, %v7015_v45  ;;  %v12196_v39 = vsel %vm4922_vm8, %v4870_v32, %v7014_v49  ;;  %v12204_v42 = vsel %vm2679_vm2, %v7790_v1, 0.0  ;;  %v4804_v61 = vsel %vm4792_vm3, %v11956_v43, %v6790_v36  ;;  %v14727_v43 = vld [vmem:[#allocation108_spill] sm:$0xff] }
 0x35d   : > { %v6874_v41 = vunpack.i.l.bf16 %v11502_v30  ;;  %v14725_v8 = vpack.i.bf16 %v11771_v51, %v11780_v40  ;;  %v7306_v24 = vpack.i.bf16 %v3441_v26, %v3442_v52  ;;  %v12217_v44 = vsel %vm2679_vm2, %v7791_v48, 0.0  ;;  %v7792_v51 = vld [vmem:[%s13986_s3 + $0xd8] sm:$0xff]  ;;  %v12241_v60 = vpop.permute.xlu2 %7167  ;;  %v14730_v59 = vld [vmem:[#allocation32_spill] sm:$0xff] }
 0x35e   : > { %v12221_v45 = vmul.f32 %v14726_v3, %v11494_v56  ;;  %v12225_v30 = vmul.f32 %v14727_v43, %v11526_v31  ;;  %v4869_v49 = vsel %vm4857_vm4, %v4804_v61, %v6875_v54  ;;  %v12232_v40 = vsel %vm2679_vm2, %v7792_v51, 0.0  ;;  %14728 = vst [vmem:[#allocation134_spill] sm:$0xff] %v12241_v60  ;;  %v12261_v1 = vpop.permute.xlu1 %7127  ;;  %v7795_v61 = vld [vmem:[%s13986_s3 + $0x108] sm:$0xff] }
 0x35f   : > { %7332 = vrot.lane.b32.xlu2 %v14725_v8, %s7872_s28  ;;  %v12238_v17 = vsel %vm2679_vm2, %v7793_v35, 0.0  ;;  %v7009_v36 = vunpack.i.l.bf16 %v11670_v62  ;;  %7307 = vrot.lane.b32.xlu0 %v7306_v24, %s7871_s25  ;;  %v14729_v52 = vpack.i.bf16 %v11904_v55, %v11871_v29  ;;  %v12249_v54 = vsel %vm4922_vm8, %v4869_v49, %v7010_v47  ;;  %v14731_v55 = vld [vmem:[#allocation25_spill] sm:$0xff]  ;;  %14732 = vst [vmem:[#allocation172_spill] sm:$0xff] %v12261_v1  ;;  %v14733_v48 = vld [vmem:[#allocation44_spill] sm:$0xff]  ;;  %v14736_v49 = vld [vmem:[#allocation150_spill] sm:$0xff] }
 0x360   : > { %v4803_v12 = vsel %vm4792_vm3, %v11962_v63, %v6789_v50  ;;  %v7005_v21 = vunpack.i.h.bf16 %v11762_v9  ;;  %v6765_v32 = vunpack.i.h.bf16 %v14730_v59  ;;  %v6764_v28 = vunpack.i.l.bf16 %v14730_v59  ;;  %v7794_v63 = vld [vmem:[%s13986_s3 + $0xf0] sm:$0xff] }
 0x361   : > { %7327 = vrot.lane.b32.xlu1 %v14729_v52, %s7871_s25  ;;  %v6780_v29 = vunpack.i.h.bf16 %v14731_v55  ;;  %v4868_v47 = vsel %vm4857_vm4, %v4803_v12, %v6874_v41  ;;  %v12268_v50 = vsel %vm2679_vm2, %v7794_v63, 0.0  ;;  %v12274_v8 = vsel %vm2679_vm2, %v7795_v61, 0.0  ;;  %v12278_v43 = vpop.permute.xlu0 %7122  ;;  %v14735_v41 = vld [vmem:[#allocation174_spill] sm:$0xff]  ;;  %v14737_v52 = vld [vmem:[#allocation73_spill] sm:$0xff] }
 0x362   : > { %v6779_v24 = vunpack.i.l.bf16 %v14731_v55  ;;  %v6775_v3 = vunpack.i.h.bf16 %v14733_v48  ;;  %14734 = vst [vmem:[#allocation179_spill] sm:$0xff] %v12278_v43  ;;  %v3721_v51 = vmul.f32 %v14736_v49, %v14735_v41  ;;  %v6774_v35 = vunpack.i.l.bf16 %v14733_v48  ;;  %v14738_v61 = vld [vmem:[#allocation157_spill] sm:$0xff]  ;;  %v14740_v41 = vld [vmem:[#allocation186_spill] sm:$0xff] }
 0x363   : > { %v6815_v12 = vunpack.i.h.bf16 %v14737_v52  ;;  %v12285_v59 = vsel %vm4922_vm8, %v4868_v47, %v7009_v36  ;;  %v6814_v63 = vunpack.i.l.bf16 %v14737_v52  ;;  %v12290_v26 = vmul.f32 %v14738_v61, %v11526_v31 }
 0x364   : > { %v7004_v55 = vunpack.i.l.bf16 %v11762_v9  ;;  %v12294_v62 = vsel %vm4922_vm8, %v4867_v20, %v7005_v21  ;;  %v12298_v49 = vmul.f32 %v14740_v41, %v14739_v22  ;;  %v4794_v48 = vsel %vm4792_vm3, %v11916_v33, %v6765_v32  ;;  %v14742_v21 = vld [vmem:[#allocation39_spill] sm:$0xff]  ;;  %v14743_v32 = vld [vmem:[#allocation45_spill] sm:$0xff] }
 0x365   : > { %v4793_v36 = vsel %vm4792_vm3, %v11878_v46, %v6764_v28  ;;  %v4800_v47 = vsel %vm4792_vm3, %v11941_v16, %v6780_v29  ;;  %v14741_v31 = vpack.i.bf16 %v11900_v27, %v11867_v23  ;;  %v4799_v9 = vsel %vm4792_vm3, %v11947_v53, %v6779_v24  ;;  %v14744_v28 = vld [vmem:[#allocation71_spill] sm:$0xff]  ;;  %v12322_v23 = vpop.permute.xlu2 %7182  ;;  %v14745_v53 = vld [vmem:[#allocation110_spill] sm:$0xff]  ;;  %v14746_v24 = vld [vmem:[#allocation53_spill] sm:$0xff] }
 0x366   : > { %v4798_v20 = vsel %vm4792_vm3, %v11884_v34, %v6775_v3  ;;  %v6850_v22 = vunpack.i.h.bf16 %v11454_v25  ;;  %v6849_v33 = vunpack.i.l.bf16 %v11454_v25  ;;  %v4797_v46 = vsel %vm4792_vm3, %v14742_v21, %v6774_v35  ;;  %v14748_v3 = vld [vmem:[#allocation106_spill] sm:$0xff]  ;;  %v14749_v25 = vld [vmem:[#allocation99_spill] sm:$0xff]  ;;  %v12346_v38 = vpop.permute.xlu1 %7142 }
 0x367   : > { %7347 = vrot.lane.b32.xlu2 %v14741_v31, %s7871_s25  ;;  %v4814_v16 = vsel %vm4792_vm3, %v14743_v32, %v6815_v12  ;;  %v6905_v29 = vunpack.i.h.bf16 %v14744_v28  ;;  %v6904_v27 = vunpack.i.l.bf16 %v14744_v28  ;;  %v14747_v34 = vpack.i.bf16 %v14745_v53, %v14746_v24  ;;  %v14751_v35 = vld [vmem:[#allocation115_spill] sm:$0xff]  ;;  %v14752_v12 = vld [vmem:[#allocation68_spill] sm:$0xff]  ;;  %v14753_v32 = vld [vmem:[#allocation74_spill] sm:$0xff]  ;;  %14757 = vst [vmem:[#allocation58_spill] sm:$0xff] %v12346_v38 }
 0x368   : > { %v14750_v52 = vpack.i.bf16 %v14748_v3, %v14749_v25  ;;  %v4813_v61 = vsel %vm4792_vm3, %v14751_v35, %v6814_v63  ;;  %v6860_v41 = vunpack.i.h.bf16 %v14752_v12  ;;  %v12339_v21 = vsel %vm4922_vm8, %v12181_v14, %v7004_v55  ;;  %v14754_v24 = vld [vmem:[#allocation164_spill] sm:$0xff]  ;;  %v14755_v3 = vld [vmem:[#allocation85_spill] sm:$0xff]  ;;  %v14758_v63 = vld [vmem:[#allocation86_spill] sm:$0xff] }
 0x369   : > { %7322 = vrot.lane.b32.xlu0 %v14747_v34, %s7872_s28  ;;  %v6865_v28 = vunpack.i.h.bf16 %v14753_v32  ;;  %v6864_v53 = vunpack.i.l.bf16 %v14753_v32  ;;  %v6985_v34 = vunpack.i.h.bf16 %v14754_v24  ;;  %v14756_v25 = vld [vmem:[#allocation20_spill] sm:$0xff]  ;;  %v6990_v35 = vunpack.i.h.bf16 %v14758_v63 }
 0x36a   : > { %7342 = vrot.lane.b32.xlu1 %v14750_v52, %s7872_s28  ;;  %v3758_v52 = vmul.f32 %v14756_v25, %v14755_v3  ;;  %v6989_v57 = vunpack.i.l.bf16 %v14758_v63  ;;  %v4859_v31 = vsel %vm4857_vm4, %v4794_v48, %v6850_v22  ;;  %v12352_v14 = vsel %vm4857_vm4, %v4793_v36, %v6849_v33  ;;  %v14759_v55 = vld [vmem:[#allocation40_spill] sm:$0xff]  ;;  %v14762_v25 = vld [vmem:[#allocation62_spill] sm:$0xff]  ;;  %v14763_v63 = vld [vmem:[#allocation5_spill] sm:$0xff]  ;;  %v12369_v22 = vpop.permute.xlu0 %7157 }
 0x36b   : > { %v6839_v60 = vunpack.i.l.bf16 %v14759_v55  ;;  %v6859_v32 = vunpack.i.l.bf16 %v14752_v12  ;;  %v12357_v13 = vsel %vm4857_vm4, %v4814_v16, %v6905_v29  ;;  %v12360_v3 = vsel %vm4857_vm4, %v4813_v61, %v6904_v27  ;;  %14764 = vst [vmem:[#allocation183_spill] sm:$0xff] %v12369_v22  ;;  %v14765_v33 = vld [vmem:[#allocation56_spill] sm:$0xff]  ;;  %v14766_v12 = vld [vmem:[#allocation113_spill] sm:$0xff] }
 0x36c   : > { %14760 = vst [vmem:[#allocation57_spill] sm:$0xff] %v12357_v13  ;;  %v6805_v38 = vunpack.i.h.bf16 %v14762_v25  ;;  %v6804_v7 = vunpack.i.l.bf16 %v14762_v25  ;;  %v12366_v48 = vmul.f32 %v14763_v63, %v11494_v56  ;;  %v6984_v36 = vunpack.i.l.bf16 %v14754_v24  ;;  %v14768_v25 = vld [vmem:[#allocation89_spill] sm:$0xff] }
 0x36d   : > { %14761 = vst [vmem:[#allocation128_spill] sm:$0xff] %v12360_v3  ;;  %v14767_v16 = vpack.i.bf16 %v14765_v33, %v14766_v12  ;;  %v7356_v29 = vpack.i.bf16 %v3721_v51, %v3758_v52  ;;  %v4865_v27 = vsel %vm4857_vm4, %v4800_v47, %v6865_v28  ;;  %v4864_v61 = vsel %vm4857_vm4, %v4799_v9, %v6864_v53  ;;  %v14769_v3 = vld [vmem:[#allocation13_spill] sm:$0xff]  ;;  %v14770_v51 = vld [vmem:[#allocation43_spill] sm:$0xff]  ;;  %v14771_v47 = vld [vmem:[#allocation82_spill] sm:$0xff] }
 0x36e   : > { %v4863_v55 = vsel %vm4857_vm4, %v4798_v20, %v6860_v41  ;;  %v12380_v56 = vmul.f32 %v14769_v3, %v14768_v25  ;;  %v12383_v24 = vsel %vm4922_vm8, %v4865_v27, %v6990_v35  ;;  %v12386_v63 = vsel %vm4922_vm8, %v4864_v61, %v6989_v57  ;;  %v12394_v20 = vpop.permute.xlu2 %7197  ;;  %v14772_v41 = vld [vmem:[#allocation153_spill] sm:$0xff]  ;;  %v14775_v35 = vld [vmem:[#allocation98_spill] sm:$0xff] }
 0x36f   : > { %7362 = vrot.lane.b32.xlu2 %v14767_v16, %s7872_s28  ;;  %v12389_v33 = vsel %vm4922_vm8, %v4863_v55, %v6985_v34  ;;  %v6830_v52 = vunpack.i.h.bf16 %v14770_v51  ;;  %v6980_v28 = vunpack.i.h.bf16 %v14771_v47  ;;  %v6979_v9 = vunpack.i.l.bf16 %v14771_v47  ;;  %v14773_v53 = vld [vmem:[#allocation137_spill] sm:$0xff]  ;;  %v7796_v61 = vld [vmem:[%s13986_s3 + $0x178] sm:$0xff] }
 0x370   : > { %v14774_v3 = vpack.i.bf16 %v14772_v41, %v14773_v53  ;;  %v4862_v57 = vsel %vm4857_vm4, %v4797_v46, %v6859_v32  ;;  %v6829_v34 = vunpack.i.l.bf16 %v14770_v51  ;;  %v6975_v12 = vunpack.i.h.bf16 %v14775_v35  ;;  %v14776_v25 = vld [vmem:[#allocation18_spill] sm:$0xff]  ;;  %v14778_v46 = vld [vmem:[#allocation33_spill] sm:$0xff]  ;;  %v7148_v41 = vpop.permute.xlu1 %7147 }
 0x371   : > { %v12407_v27 = vsel %vm4922_vm8, %v4862_v57, %v6984_v36  ;;  %v2727_v55 = vsel %vm2679_vm2, %v7796_v61, 0.0  ;;  %v6835_v32 = vunpack.i.h.bf16 %v14778_v46  ;;  %v6834_v51 = vunpack.i.l.bf16 %v14778_v46  ;;  %v14779_v53 = vld [vmem:[#allocation177_spill] sm:$0xff]  ;;  %v14781_v57 = vld [vmem:[#allocation102_spill] sm:$0xff]  ;;  %v14782_v61 = vld [vmem:[#allocation112_spill] sm:$0xff] }
 0x372   : > { %7337 = vrot.lane.b32.xlu0 %v14774_v3, %s7872_s28  ;;  %7357 = vrot.lane.b32.xlu1 %v7356_v29, %s7872_s28  ;;  %v14777_v29 = vld [vmem:[#allocation178_spill] sm:$0xff]  ;;  %v4823_v36 = vsel %vm4792_vm3, %v12268_v50, %v6839_v60  ;;  %v12423_v22 = vsel %vm4792_vm3, %v14781_v57, %v6805_v38  ;;  %v7149_v43 = vunpack.i.l.bf16 %v7148_v41  ;;  %v12427_v13 = vsel %vm4792_vm3, %v14782_v61, %v6804_v7  ;;  %v14783_v50 = vld [vmem:[#allocation149_spill] sm:$0xff]  ;;  %v14793_v61 = vld [vmem:[#allocation80_spill] sm:$0xff] }
 0x373   : > { %v3741_v47 = vmul.f32 %v14777_v29, %v14776_v25  ;;  %v14780_v3 = vld [vmem:[#allocation162_spill] sm:$0xff]  ;;  %v7150_v25 = vunpack.i.h.bf16 %v7148_v41  ;;  %v12431_v29 = vsel %vm4922_vm8, %v12117_v37, %v6980_v28  ;;  %v12435_v46 = vsel %vm4922_vm8, %v12120_v6, %v6979_v9  ;;  %v14785_v9 = vld [vmem:[#allocation65_spill] sm:$0xff] }
 0x374   : > { %v3722_v16 = vmul.f32 %v14780_v3, %v14779_v53  ;;  %v4820_v60 = vsel %vm4792_vm3, %v12232_v40, %v6830_v52  ;;  %v4819_v38 = vsel %vm4792_vm3, %v14783_v50, %v6829_v34  ;;  %v5002_v53 = vsel %vm574_vm1, %v12141_v15, %v7149_v43  ;;  %v14786_v34 = vld [vmem:[#allocation55_spill] sm:$0xff] }
 0x375   : > { %v12444_v7 = vsel %vm4922_vm8, %v4859_v31, %v6975_v12  ;;  %v4822_v37 = vsel %vm4792_vm3, %v12204_v42, %v6835_v32  ;;  %v4821_v28 = vsel %vm4792_vm3, %v12217_v44, %v6834_v51  ;;  %v7154_v6 = vunpack.i.l.bf16 %v12149_v18  ;;  %5071 = vmatpush.msrb.mxu3 %v5002_v53  ;;  %v7163_v12 = vpop.permute.xlu0 %7162  ;;  %v14787_v32 = vld [vmem:[#allocation47_spill] sm:$0xff]  ;;  %v14788_v51 = vld [vmem:[#allocation93_spill] sm:$0xff] }
 0x376   : > { %v14784_v40 = vpack.i.bf16 %v12085_v4, %v12090_v11  ;;  %v7351_v52 = vpack.i.bf16 %v3741_v47, %v3722_v16  ;;  %v6925_v15 = vunpack.i.h.bf16 %v14785_v9  ;;  %v6924_v43 = vunpack.i.l.bf16 %v14785_v9  ;;  %v12462_v57 = vpop.permute.xlu2 %7217  ;;  %v14790_v4 = vld [vmem:[#allocation72_spill] sm:$0xff] }
 0x377   : > { %v6974_v31 = vunpack.i.l.bf16 %v14775_v35  ;;  %v7080_v42 = vunpack.i.h.bf16 %v14786_v34  ;;  %v6895_v44 = vunpack.i.h.bf16 %v14787_v32  ;;  %v7055_v41 = vunpack.i.h.bf16 %v14788_v51  ;;  %14789 = vst [vmem:[#allocation140_spill] sm:$0xff] %v12462_v57  ;;  %v14791_v11 = vld [vmem:[#allocation176_spill] sm:$0xff] }
 0x378   : > { %7377 = vrot.lane.b32.xlu2 %v14784_v40, %s7872_s28  ;;  %v7155_v3 = vunpack.i.h.bf16 %v12149_v18  ;;  %v14792_v16 = vpack.i.bf16 %v14790_v4, %v14791_v11  ;;  %v5001_v35 = vsel %vm574_vm1, %v12170_v2, %v7150_v25  ;;  %v6894_v47 = vunpack.i.l.bf16 %v14787_v32  ;;  %v14794_v40 = vld [vmem:[#allocation69_spill] sm:$0xff]  ;;  %v14795_v9 = vld [vmem:[#allocation36_spill] sm:$0xff]  ;;  %v12477_v51 = vpop.permute.xlu1 %7172 }
 0x379   : > { %v6930_v50 = vunpack.i.h.bf16 %v14793_v61  ;;  %v6929_v53 = vunpack.i.l.bf16 %v14793_v61  ;;  %v6934_v18 = vunpack.i.l.bf16 %v14794_v40  ;;  %5072 = vmatpush.msrb.mxu3 %v5001_v35  ;;  %v7075_v57 = vunpack.i.h.bf16 %v14795_v9  ;;  %14796 = vst [vmem:[#allocation141_spill] sm:$0xff] %v12477_v51  ;;  %v14797_v25 = vld [vmem:[#allocation109_spill] sm:$0xff] }
 0x37a   : > { %7352 = vrot.lane.b32.xlu0 %v7351_v52, %s7872_s28  ;;  %7372 = vrot.lane.b32.xlu1 %v14792_v16, %s7872_s28  ;;  %v7079_v52 = vunpack.i.l.bf16 %v14786_v34  ;;  %v7164_v1 = vunpack.i.l.bf16 %v7163_v12  ;;  %v5000_v4 = vsel %vm574_vm1, %v12193_v5, %v7154_v6  ;;  %v7074_v2 = vunpack.i.l.bf16 %v14795_v9  ;;  %v14798_v16 = vld [vmem:[#allocation95_spill] sm:$0xff]  ;;  %v14799_v61 = vld [vmem:[#allocation49_spill] sm:$0xff] }
 0x37b   : > { %v7060_v32 = vunpack.i.h.bf16 %v14797_v25  ;;  %5073 = vmatpush.msrb.mxu3 %v5000_v4  ;;  %v12485_v11 = vsel %vm4922_vm8, %v12352_v14, %v6974_v31  ;;  %v12489_v35 = vsel %vm4922_vm8, %v14798_v16, %v7080_v42  ;;  %v4840_v34 = vsel %vm4792_vm3, %v2727_v55, %v7055_v41  ;;  %v14800_v4 = vld [vmem:[#allocation142_spill] sm:$0xff] }
 0x37c   : > { %v7070_v40 = vunpack.i.h.bf16 %v14799_v61  ;;  %v7165_v51 = vunpack.i.h.bf16 %v7163_v12  ;;  %v4999_v5 = vsel %vm574_vm1, %v12196_v39, %v7155_v3  ;;  %v7069_v6 = vunpack.i.l.bf16 %v14799_v61 }
 0x37d   : > { %5074 = vmatpush.msrb.mxu3 %v4999_v5  ;;  %v4888_v9 = vsel %vm4857_vm4, %v4823_v36, %v6934_v18  ;;  %v4887_v14 = vsel %vm4857_vm4, %v4822_v37, %v6930_v50  ;;  %v4886_v31 = vsel %vm4857_vm4, %v4821_v28, %v6929_v53  ;;  %v7140_v42 = vunpack.i.h.bf16 %v14800_v4  ;;  %v14802_v36 = vld [vmem:[#allocation59_spill] sm:$0xff] }
 0x37e   : > { %v14801_v55 = vpack.i.bf16 %v12079_v10, %v12158_v58  ;;  %v4998_v12 = vsel %vm574_vm1, %v12249_v54, %v7164_v1  ;;  %v12507_v39 = vsel %vm4922_vm8, %v4888_v9, %v7079_v52  ;;  %v12510_v41 = vsel %vm4922_vm8, %v4887_v14, %v7075_v57  ;;  %v12519_v50 = vpop.permute.xlu2 %7222 }
 0x37f   : > { %v6845_v37 = vunpack.i.h.bf16 %v14802_v36  ;;  %5075 = vmatpush.msrb.mxu3 %v4998_v12  ;;  %v12514_v28 = vsel %vm4922_vm8, %v4886_v31, %v7074_v2  ;;  %v4885_v3 = vsel %vm4857_vm4, %v4820_v60, %v6925_v15  ;;  %v4884_v10 = vsel %vm4857_vm4, %v4819_v38, %v6924_v43  ;;  %v14806_v43 = vld [vmem:[#allocation46_spill] sm:$0xff] }
 0x380   : > { %7392 = vrot.lane.b32.xlu2 %v14801_v55, %s7872_s28  ;;  %v6844_v58 = vunpack.i.l.bf16 %v14802_v36  ;;  %v14803_v54 = vpack.i.bf16 %v12225_v30, %v12190_v19  ;;  %v14804_v1 = vpack.i.bf16 %v12221_v45, %v12175_v0  ;;  %v4997_v57 = vsel %vm574_vm1, %v12285_v59, %v7165_v51  ;;  %v14805_v45 = vld [vmem:[#allocation88_spill] sm:$0xff]  ;;  %v7188_v51 = vpop.permute.xlu0 %7187 }
 0x381   : > { %v12533_v60 = vsel %vm4857_vm4, %v12423_v22, %v6895_v44  ;;  %v12537_v38 = vsel %vm4857_vm4, %v12427_v13, %v6894_v47  ;;  %v7224_v15 = vunpack.i.l.bf16 %v12519_v50  ;;  %5076 = vmatpush.msrb.mxu3 %v4997_v57  ;;  %v4905_v19 = vsel %vm4857_vm4, %v4840_v34, %v7060_v32  ;;  %v7178_v13 = vpop.permute.xlu1 %7177  ;;  %v7797_v32 = vld [vmem:[%s13986_s3 + $0xb8] sm:$0xff]  ;;  %v7798_v34 = vld [vmem:[%s13986_s3 + $0xb0] sm:$0xff] }
 0x382   : > { %7367 = vrot.lane.b32.xlu0 %v14803_v54, %s7871_s25  ;;  %7387 = vrot.lane.b32.xlu1 %v14804_v1, %s7871_s25  ;;  %v12542_v30 = vsel %vm4922_vm8, %v4885_v3, %v7070_v40  ;;  %v12545_v0 = vsel %vm4922_vm8, %v4884_v10, %v7069_v6  ;;  %v6820_v59 = vunpack.i.h.bf16 %v14805_v45  ;;  %v6940_v22 = vunpack.i.h.bf16 %v14806_v43  ;;  %v14807_v40 = vld [vmem:[#allocation79_spill] sm:$0xff]  ;;  %v7800_v57 = vld [vmem:[%s13986_s3 + $0x90] sm:$0xff] }
 0x383   : > { %v6939_v44 = vunpack.i.l.bf16 %v14806_v43  ;;  %v4970_v47 = vsel %vm4922_vm8, %v4905_v19, %v7140_v42  ;;  %v6819_v53 = vunpack.i.l.bf16 %v14805_v45  ;;  %v7180_v18 = vunpack.i.h.bf16 %v7178_v13  ;;  %v14810_v19 = vld [vmem:[#allocation67_spill] sm:$0xff] }
 0x384   : > { %v7179_v52 = vunpack.i.l.bf16 %v7178_v13  ;;  %v5034_v2 = vsel %vm574_vm1, %v4970_v47, %v7224_v15  ;;  %v2703_v16 = vsel %vm2679_vm2, %v7797_v32, 0.0  ;;  %v2702_v61 = vsel %vm2679_vm2, %v7798_v34, 0.0 }
 0x385   : > { %v6910_v5 = vunpack.i.h.bf16 %v14807_v40  ;;  %v6909_v6 = vunpack.i.l.bf16 %v14807_v40  ;;  %5111 = vmatpush.msrb.mxu2 %v5034_v2  ;;  %v4826_v9 = vsel %vm4792_vm3, %v12274_v8, %v6845_v37  ;;  %v4825_v14 = vsel %vm4792_vm3, %v12238_v17, %v6844_v58  ;;  %v14809_v58 = vld [vmem:[#allocation38_spill] sm:$0xff] }
 0x386   : > { %v7184_v31 = vunpack.i.l.bf16 %v12322_v23  ;;  %v4996_v42 = vsel %vm574_vm1, %v12294_v62, %v7179_v52  ;;  %v12571_v55 = vsel %vm4857_vm4, %v4826_v9, %v6940_v22  ;;  %v12574_v12 = vsel %vm4857_vm4, %v4825_v14, %v6939_v44  ;;  %v14811_v2 = vld [vmem:[#allocation26_spill] sm:$0xff] }
 0x387   : > { %5077 = vmatpush.msrb.mxu3 %v4996_v42  ;;  %v4816_v36 = vsel %vm4792_vm3, %v2703_v16, %v6820_v59  ;;  %v4815_v3 = vsel %vm4792_vm3, %v2702_v61, %v6819_v53  ;;  %v7185_v8 = vunpack.i.h.bf16 %v12322_v23  ;;  %v4995_v17 = vsel %vm574_vm1, %v12339_v21, %v7180_v18  ;;  %v12609_v53 = vpop.permute.xlu2 %7227  ;;  %v7801_v16 = vld [vmem:[%s13986_s3 + $0xc8] sm:$0xff]  ;;  %v14812_v61 = vld [vmem:[#allocation97_spill] sm:$0xff] }
 0x388   : > { %v14808_v62 = vpack.i.bf16 %v12298_v49, %v12290_v26  ;;  %v12586_v37 = vsel %vm4857_vm4, %v4816_v36, %v6910_v5  ;;  %v12589_v10 = vsel %vm4857_vm4, %v4815_v3, %v6909_v6  ;;  %v6810_v54 = vunpack.i.h.bf16 %v14809_v58  ;;  %v7799_v26 = vld [vmem:[%s13986_s3 + $0x98] sm:$0xff]  ;;  %v7203_v44 = vpop.permute.xlu0 %7202  ;;  %v14813_v6 = vld [vmem:[#allocation96_spill] sm:$0xff]  ;;  %v7802_v3 = vld [vmem:[%s13986_s3 + $0xc0] sm:$0xff] }
 0x389   : > { %5078 = vmatpush.msrb.mxu3 %v4995_v17  ;;  %v6809_v1 = vunpack.i.l.bf16 %v14809_v58  ;;  %v7189_v23 = vunpack.i.l.bf16 %v7188_v51  ;;  %v4994_v21 = vsel %vm574_vm1, %v12383_v24, %v7184_v31  ;;  %v2699_v49 = vsel %vm2679_vm2, %v7799_v26, 0.0  ;;  %v7193_v43 = vpop.permute.xlu1 %7192 }
 0x38a   : > { %7382 = vrot.lane.b32.xlu0 %v14808_v62, %s7872_s28  ;;  %v2698_v15 = vsel %vm2679_vm2, %v7800_v57, 0.0  ;;  %v6900_v45 = vunpack.i.h.bf16 %v14810_v19  ;;  %v6899_v59 = vunpack.i.l.bf16 %v14810_v19  ;;  %v7190_v22 = vunpack.i.h.bf16 %v7188_v51  ;;  %v14815_v19 = vld [vmem:[#allocation76_spill] sm:$0xff] }
 0x38b   : > { %5079 = vmatpush.msrb.mxu3 %v4994_v21  ;;  %v4993_v24 = vsel %vm574_vm1, %v12386_v63, %v7185_v8  ;;  %v4812_v13 = vsel %vm4792_vm3, %v2699_v49, %v6810_v54  ;;  %v4811_v47 = vsel %vm4792_vm3, %v2698_v15, %v6809_v1  ;;  %v7194_v18 = vunpack.i.l.bf16 %v7193_v43 }
 0x38c   : > { %v4992_v52 = vsel %vm574_vm1, %v12389_v33, %v7189_v23  ;;  %v6825_v32 = vunpack.i.h.bf16 %v14811_v2  ;;  %v12615_v51 = vsel %vm4857_vm4, %v4812_v13, %v6900_v45  ;;  %v12618_v63 = vsel %vm4857_vm4, %v4811_v47, %v6899_v59 }
 0x38d   : > { %5080 = vmatpush.msrb.mxu3 %v4993_v24  ;;  %v2705_v34 = vsel %vm2679_vm2, %v7801_v16, 0.0  ;;  %v6915_v40 = vunpack.i.h.bf16 %v14812_v61  ;;  %v7199_v5 = vunpack.i.l.bf16 %v12394_v20  ;;  %v4991_v33 = vsel %vm574_vm1, %v12407_v27, %v7190_v22  ;;  %v7804_v24 = vld [vmem:[%s13986_s3 + $0x138] sm:$0xff] }
 0x38e   : > { %v7065_v9 = vunpack.i.h.bf16 %v14813_v6  ;;  %v14814_v14 = vpack.i.bf16 %v12380_v56, %v12366_v48  ;;  %v6824_v31 = vunpack.i.l.bf16 %v14811_v2  ;;  %v7204_v42 = vunpack.i.l.bf16 %v7203_v44 }
 0x38f   : > { %5081 = vmatpush.msrb.mxu3 %v4992_v52  ;;  %v4990_v36 = vsel %vm574_vm1, %v12431_v29, %v7194_v18  ;;  %v2704_v27 = vsel %vm2679_vm2, %v7802_v3, 0.0  ;;  %v4818_v8 = vsel %vm4792_vm3, %v2705_v34, %v6825_v32  ;;  %v6914_v17 = vunpack.i.l.bf16 %v14812_v61  ;;  %v12656_v57 = vpop.permute.xlu2 %7247  ;;  %v14816_v32 = vld [vmem:[#allocation77_spill] sm:$0xff]  ;;  %v7805_v61 = vld [vmem:[%s13986_s3 + $0x118] sm:$0xff]  ;;  %v14818_v3 = vld [vmem:[#allocation91_spill] sm:$0xff] }
 0x390   : > { %v4989_v56 = vsel %vm574_vm1, %v12435_v46, %v7199_v5  ;;  %v4883_v58 = vsel %vm4857_vm4, %v4818_v8, %v6915_v40  ;;  %v7195_v54 = vunpack.i.h.bf16 %v7193_v43  ;;  %v4817_v1 = vsel %vm4792_vm3, %v2704_v27, %v6824_v31  ;;  %v12653_v49 = vpop.permute.xlu0 %7212  ;;  %v7807_v31 = vld [vmem:[%s13986_s3 + $0x128] sm:$0xff] }
 0x391   : > { %5082 = vmatpush.msrb.mxu3 %v4991_v33  ;;  %v7208_v62 = vpop.permute.xlu1 %7207  ;;  %v12646_v29 = vsel %vm4922_vm8, %v4883_v58, %v7065_v9  ;;  %v7064_v23 = vunpack.i.l.bf16 %v14813_v6  ;;  %v4988_v21 = vsel %vm574_vm1, %v12444_v7, %v7204_v42  ;;  %v7200_v26 = vunpack.i.h.bf16 %v12394_v20  ;;  %v7803_v20 = vld [vmem:[%s13986_s3 + $0x130] sm:$0xff]  ;;  %v14817_v33 = vld [vmem:[#allocation103_spill] sm:$0xff] }
 0x392   : > { %7397 = vrot.lane.b32.xlu0 %v14814_v14, %s7872_s28  ;;  %v7209_v48 = vunpack.i.l.bf16 %v7208_v62  ;;  %v4882_v46 = vsel %vm4857_vm4, %v4817_v1, %v6914_v17  ;;  %v6945_v45 = vunpack.i.h.bf16 %v14815_v19  ;;  %v6944_v59 = vunpack.i.l.bf16 %v14815_v19  ;;  %v7808_v42 = vld [vmem:[%s13986_s3 + $0x120] sm:$0xff] }
 0x393   : > { %5083 = vmatpush.msrb.mxu3 %v4990_v36  ;;  %v7205_v43 = vunpack.i.h.bf16 %v7203_v44  ;;  %v5018_v7 = vsel %vm574_vm1, %v12489_v35, %v7195_v54  ;;  %v2718_v22 = vsel %vm2679_vm2, %v7803_v20, 0.0  ;;  %v12673_v13 = vsel %vm4922_vm8, %v4882_v46, %v7064_v23  ;;  %v14820_v54 = vld [vmem:[#allocation84_spill] sm:$0xff] }
 0x394   : > { %v4987_v15 = vsel %vm574_vm1, %v12485_v11, %v7209_v48  ;;  %v2719_v11 = vsel %vm2679_vm2, %v7804_v24, 0.0  ;;  %v7210_v44 = vunpack.i.h.bf16 %v7208_v62  ;;  %v5017_v35 = vsel %vm574_vm1, %v12507_v39, %v7200_v26  ;;  %v14819_v48 = vld [vmem:[#allocation166_spill] sm:$0xff]  ;;  %v14821_v26 = vld [vmem:[#allocation81_spill] sm:$0xff] }
 0x395   : > { %5084 = vmatpush.msrb.mxu3 %v4989_v56  ;;  %v4832_v47 = vsel %vm4792_vm3, %v2719_v11, %v6945_v45  ;;  %v4831_v18 = vsel %vm4792_vm3, %v2718_v22, %v6944_v59  ;;  %v7225_v52 = vunpack.i.h.bf16 %v12519_v50  ;;  %v5016_v2 = vsel %vm574_vm1, %v12510_v41, %v7205_v43  ;;  %v7806_v41 = vld [vmem:[%s13986_s3 + $0x110] sm:$0xff] }
 0x396   : > { %v6960_v16 = vunpack.i.h.bf16 %v14816_v32  ;;  %v6959_v34 = vunpack.i.l.bf16 %v14816_v32  ;;  %v2715_v39 = vsel %vm2679_vm2, %v7805_v61, 0.0  ;;  %v7229_v40 = vunpack.i.l.bf16 %v12609_v53  ;;  %v7811_v32 = vld [vmem:[%s13986_s3 + $0x140] sm:$0xff] }
 0x397   : > { %5085 = vmatpush.msrb.mxu3 %v4988_v21  ;;  %v5015_v5 = vsel %vm574_vm1, %v12514_v28, %v7210_v44  ;;  %v2714_v50 = vsel %vm2679_vm2, %v7806_v41, 0.0  ;;  %v7050_v6 = vunpack.i.h.bf16 %v14817_v33  ;;  %v2717_v28 = vsel %vm2679_vm2, %v7807_v31, 0.0  ;;  %v12719_v23 = vpop.permute.xlu2 %7252  ;;  %v14822_v44 = vld [vmem:[#allocation93_spill] sm:$0xff]  ;;  %v7813_v41 = vld [vmem:[%s13986_s3 + $0x158] sm:$0xff] }
 0x398   : > { %v12697_v9 = vsel %vm4857_vm4, %v4832_v47, %v6960_v16  ;;  %v12700_v14 = vsel %vm4857_vm4, %v4831_v18, %v6959_v34  ;;  %v2716_v36 = vsel %vm2679_vm2, %v7808_v42, 0.0  ;;  %v6920_v27 = vunpack.i.h.bf16 %v14818_v3  ;;  %v12711_v8 = vpop.permute.xlu0 %7232  ;;  %v7809_v47 = vld [vmem:[%s13986_s3 + $0x170] sm:$0xff]  ;;  %v14823_v34 = vld [vmem:[#allocation83_spill] sm:$0xff] }
 0x399   : > { %5086 = vmatpush.msrb.mxu3 %v4987_v15  ;;  %v5014_v17 = vsel %vm574_vm1, %v12542_v30, %v7225_v52  ;;  %v6919_v62 = vunpack.i.l.bf16 %v14818_v3  ;;  %v6880_v56 = vunpack.i.h.bf16 %v14819_v48  ;;  %v6879_v58 = vunpack.i.l.bf16 %v14819_v48  ;;  %v12724_v19 = vpop.permute.xlu1 %7237  ;;  %v7810_v52 = vld [vmem:[%s13986_s3 + $0x148] sm:$0xff] }
 0x39a   : > { %v6950_v1 = vunpack.i.h.bf16 %v14820_v54  ;;  %v6949_v21 = vunpack.i.l.bf16 %v14820_v54  ;;  %v6955_v46 = vunpack.i.h.bf16 %v14821_v26  ;;  %v6954_v15 = vunpack.i.l.bf16 %v14821_v26 }
 0x39b   : > { %5091 = vmatpush.msra.mxu3 %v5018_v7  ;;  %v5013_v30 = vsel %vm574_vm1, %v12545_v0, %v7229_v40  ;;  %v12730_v45 = vsel %vm4922_vm8, %v12586_v37, %v7050_v6  ;;  %v4830_v59 = vsel %vm4792_vm3, %v2717_v28, %v6920_v27  ;;  %v4829_v43 = vsel %vm4792_vm3, %v2716_v36, %v6919_v62  ;;  %v7812_v40 = vld [vmem:[%s13986_s3 + $0x160] sm:$0xff]  ;;  %v7814_v36 = vld [vmem:[%s13986_s3 + $0x168] sm:$0xff] }
 0x39c   : > { %v4828_v7 = vsel %vm4792_vm3, %v2715_v39, %v6880_v56  ;;  %v4827_v20 = vsel %vm4792_vm3, %v2714_v50, %v6879_v58  ;;  %v12737_v22 = vsel %vm4857_vm4, %v4830_v59, %v6955_v46  ;;  %v12740_v24 = vsel %vm4857_vm4, %v4829_v43, %v6954_v15  ;;  %v14825_v58 = vld [vmem:[#allocation92_spill] sm:$0xff] }
 0x39d   : > { %5092 = vmatpush.msra.mxu3 %v5017_v35  ;;  %v12743_v0 = vsel %vm4857_vm4, %v4828_v7, %v6950_v1  ;;  %v12746_v37 = vsel %vm4857_vm4, %v4827_v20, %v6949_v21  ;;  %v7049_v11 = vunpack.i.l.bf16 %v14817_v33  ;;  %v7054_v35 = vunpack.i.l.bf16 %v14822_v44  ;;  %v14824_v33 = vld [vmem:[#allocation75_spill] sm:$0xff]  ;;  %v14826_v1 = vld [vmem:[#allocation94_spill] sm:$0xff]  ;;  %v14828_v7 = vld [vmem:[#allocation172_spill] sm:$0xff] }
 0x39e   : > { %v2726_v18 = vsel %vm2679_vm2, %v7809_v47, 0.0  ;;  %v2720_v16 = vsel %vm2679_vm2, %v7811_v32, 0.0  ;;  %v6965_v61 = vunpack.i.h.bf16 %v14823_v34  ;;  %v6964_v39 = vunpack.i.l.bf16 %v14823_v34  ;;  %v14829_v44 = vld [vmem:[#allocation170_spill] sm:$0xff] }
 0x39f   : > { %5093 = vmatpush.msra.mxu3 %v5016_v2  ;;  %v2721_v2 = vsel %vm2679_vm2, %v7810_v52, 0.0  ;;  %v2723_v50 = vsel %vm2679_vm2, %v7813_v41, 0.0  ;;  %v7030_v6 = vunpack.i.h.bf16 %v14824_v33  ;;  %v7059_v31 = vunpack.i.l.bf16 %v14797_v25  ;;  %v12784_v62 = vpop.permute.xlu2 %7277  ;;  %v7815_v25 = vld [vmem:[%s13986_s3 + $0x150] sm:$0xff]  ;;  %v14830_v47 = vld [vmem:[#allocation50_spill] sm:$0xff]  ;;  %v14831_v52 = vld [vmem:[#allocation87_spill] sm:$0xff] }
 0x3a0   : > { %v12774_v28 = vpop.permute.xlu0 %7242  ;;  %v2725_v3 = vsel %vm2679_vm2, %v7814_v36, 0.0  ;;  %v4839_v27 = vsel %vm4792_vm3, %v2726_v18, %v7054_v35  ;;  %v12788_v48 = vsel %vm4922_vm8, %v12589_v10, %v7049_v11  ;;  %v2722_v56 = vsel %vm2679_vm2, %v7815_v25, 0.0  ;;  %v14827_v10 = vld [vmem:[#allocation104_spill] sm:$0xff] }
 0x3a1   : > { %5094 = vmatpush.msra.mxu3 %v5015_v5  ;;  %v2724_v5 = vsel %vm2679_vm2, %v7812_v40, 0.0  ;;  %v6995_v54 = vunpack.i.h.bf16 %v14825_v58  ;;  %v6970_v21 = vunpack.i.h.bf16 %v14826_v1  ;;  %v6969_v26 = vunpack.i.l.bf16 %v14826_v1 }
 0x3a2   : > { %v4833_v46 = vsel %vm4792_vm3, %v2720_v16, %v6964_v39  ;;  %v7029_v15 = vunpack.i.l.bf16 %v14824_v33  ;;  %v6994_v59 = vunpack.i.l.bf16 %v14825_v58  ;;  %v4838_v43 = vsel %vm4792_vm3, %v2725_v3, %v7030_v6  ;;  %v14832_v33 = vld [vmem:[#allocation57_spill] sm:$0xff]  ;;  %v14833_v3 = vld [vmem:[#allocation179_spill] sm:$0xff] }
 0x3a3   : > { %5095 = vmatpush.msra.mxu3 %v5014_v17  ;;  %v7139_v17 = vunpack.i.l.bf16 %v14800_v4  ;;  %v4834_v4 = vsel %vm4792_vm3, %v2721_v2, %v6965_v61  ;;  %v7130_v20 = vunpack.i.h.bf16 %v14828_v7  ;;  %v4904_v11 = vsel %vm4857_vm4, %v4839_v27, %v7059_v31 }
 0x3a4   : > { %v7025_v35 = vunpack.i.h.bf16 %v14829_v44  ;;  %v7045_v18 = vunpack.i.h.bf16 %v14830_v47  ;;  %v7000_v2 = vunpack.i.h.bf16 %v14831_v52  ;;  %v6999_v16 = vunpack.i.l.bf16 %v14831_v52 }
 0x3a5   : > { %5096 = vmatpush.msra.mxu3 %v5013_v30  ;;  %v7040_v30 = vunpack.i.h.bf16 %v14827_v10  ;;  %v12809_v32 = vsel %vm4922_vm8, %v4904_v11, %v7139_v17  ;;  %v7039_v34 = vunpack.i.l.bf16 %v14827_v10  ;;  %v4899_v61 = vsel %vm4857_vm4, %v4834_v4, %v6970_v21 }
 0x3a6   : > { %v12776_v42 = vpop.permute.xlu1 %7257  ;;  %v4898_v39 = vsel %vm4857_vm4, %v4833_v46, %v6969_v26  ;;  %v4837_v40 = vsel %vm4792_vm3, %v2724_v5, %v7029_v15  ;;  %v7129_v41 = vunpack.i.l.bf16 %v14828_v7  ;;  %v4903_v31 = vsel %vm4857_vm4, %v4838_v43, %v7045_v18  ;;  %v14834_v15 = vld [vmem:[#allocation107_spill] sm:$0xff] }
 0x3a7   : > { %v12819_v6 = vsel %vm4922_vm8, %v14832_v33, %v7040_v30  ;;  %v7044_v36 = vunpack.i.l.bf16 %v14830_v47  ;;  %v7125_v27 = vunpack.i.h.bf16 %v14833_v3  ;;  %v7124_v17 = vunpack.i.l.bf16 %v14833_v3  ;;  %v14835_v30 = vld [vmem:[#allocation128_spill] sm:$0xff] }
 0x3a8   : > { %v12830_v5 = vsel %vm4922_vm8, %v4903_v31, %v7130_v20  ;;  %v4836_v1 = vsel %vm4792_vm3, %v2723_v50, %v6995_v54  ;;  %v7024_v21 = vunpack.i.l.bf16 %v14829_v44  ;;  %v7234_v26 = vunpack.i.l.bf16 %v12711_v8  ;;  %v12843_v20 = vpop.permute.xlu2 %7292 }
 0x3a9   : > { %v4835_v46 = vsel %vm4792_vm3, %v2722_v56, %v6994_v59  ;;  %v7115_v10 = vunpack.i.h.bf16 %v14834_v15  ;;  %v12840_v43 = vsel %vm4922_vm8, %v14835_v30, %v7039_v34  ;;  %v4902_v7 = vsel %vm4857_vm4, %v4837_v40, %v7044_v36 }
 0x3aa   : > { %v12848_v54 = vsel %vm4922_vm8, %v4902_v7, %v7129_v41  ;;  %v4901_v11 = vsel %vm4857_vm4, %v4836_v1, %v7000_v2  ;;  %v4900_v56 = vsel %vm4857_vm4, %v4835_v46, %v6999_v16  ;;  %v12860_v47 = vsel %vm4922_vm8, %v12533_v60, %v7025_v35  ;;  %v14836_v16 = vld [vmem:[#allocation184_spill] sm:$0xff]  ;;  %v14837_v35 = vld [vmem:[#allocation90_spill] sm:$0xff]  ;;  %v7817_v7 = vld [vmem:[%s13986_s3 + $0x1c0] sm:$0xff] }
 0x3ab   : > { %v12853_v59 = vsel %vm4922_vm8, %v4901_v11, %v7125_v27  ;;  %v12856_v44 = vsel %vm4922_vm8, %v4900_v56, %v7124_v17  ;;  %v12866_v18 = vsel %vm4922_vm8, %v12537_v38, %v7024_v21  ;;  %v7114_v52 = vunpack.i.l.bf16 %v14834_v15  ;;  %v7816_v21 = vld [vmem:[%s13986_s3 + $0x1a8] sm:$0xff]  ;;  %v7818_v11 = vld [vmem:[%s13986_s3 + $0x1d8] sm:$0xff] }
 0x3ac   : > { %v12870_v2 = vsel %vm4922_vm8, %v4899_v61, %v7115_v10  ;;  %v7110_v34 = vunpack.i.h.bf16 %v14836_v16  ;;  %v7035_v33 = vunpack.i.h.bf16 %v14837_v35  ;;  %v7109_v61 = vunpack.i.l.bf16 %v14836_v16 }
 0x3ad   : > { %v12878_v60 = vsel %vm4922_vm8, %v4898_v39, %v7114_v52  ;;  %v7034_v17 = vunpack.i.l.bf16 %v14837_v35  ;;  %v12931_v56 = vsel %vm2679_vm2, %v7818_v11, 0.0 }
 0x3ae   : > { %v12825_v25 = vpop.permute.xlu0 %7282  ;;  %v12827_v58 = vpop.permute.xlu1 %7262  ;;  %v12895_v39 = vsel %vm4922_vm8, %v12700_v14, %v7109_v61  ;;  %v14838_v14 = vld [vmem:[#allocation132_spill] sm:$0xff] }
 0x3af   : > { %v7285_v4 = vunpack.i.h.bf16 %v12825_v25  ;;  %v7264_v52 = vunpack.i.l.bf16 %v12827_v58 }
 0x3b0   : > { %v12884_v38 = vpop.permute.xlu2 %7317 }
 0x3b1   : > { %v5012_v50 = vsel %vm574_vm1, %v12646_v29, %v7285_v4  ;;  %v5011_v29 = vsel %vm574_vm1, %v12673_v13, %v7234_v26  ;;  %v12882_v13 = vsel %vm4922_vm8, %v12697_v9, %v7110_v34  ;;  %v12899_v9 = vsel %vm4922_vm8, %v12615_v51, %v7035_v33  ;;  %v7819_v33 = vld [vmem:[%s13986_s3 + $0x1d0] sm:$0xff] }
 0x3b2   : > { %5097 = vmatpush.msra.mxu3 %v5012_v50  ;;  %v12910_v26 = vsel %vm2679_vm2, %v7816_v21, 0.0  ;;  %v7105_v4 = vunpack.i.h.bf16 %v14838_v14  ;;  %v7320_v15 = vunpack.i.h.bf16 %v12884_v38  ;;  %v12925_v50 = vsel %vm2679_vm2, %v7817_v7, 0.0 }
 0x3b3   : > { %v12948_v61 = vsel %vm2679_vm2, %v7819_v33, 0.0  ;;  %v7235_v21 = vunpack.i.h.bf16 %v12711_v8 }
 0x3b4   : > { %5098 = vmatpush.msra.mxu3 %v5011_v29  ;;  %v12936_v29 = vsel %vm4922_vm8, %v12618_v63, %v7034_v17  ;;  %v7820_v63 = vld [vmem:[%s13986_s3 + $0x1c8] sm:$0xff] }
 0x3b6   : > { %v12873_v40 = vpop.permute.xlu0 %7287  ;;  %v12875_v41 = vpop.permute.xlu1 %7267 }
 0x3b9   : > { %v12904_v1 = vpop.permute.xlu2 %7332 }
 0x3ba   : > { %v7334_v16 = vunpack.i.l.bf16 %v12904_v1 }
 0x3bf   : > { %v12888_v31 = vpop.permute.xlu0 %7297 }
 0x3c0   : > { %v12890_v36 = vpop.permute.xlu1 %7272 }
 0x3c1   : > { %v7275_v3 = vunpack.i.h.bf16 %v12890_v36 }
 0x3c3   : > { %v5010_v27 = vsel %vm574_vm1, %v12730_v45, %v7275_v3  ;;  %v7230_v45 = vunpack.i.h.bf16 %v12609_v53  ;;  %v7104_v53 = vunpack.i.l.bf16 %v14838_v14  ;;  %v12954_v3 = vsel %vm2679_vm2, %v7820_v63, 0.0 }
 0x3c4   : > { %5099 = vmatpush.msra.mxu3 %v5010_v27  ;;  %v7255_v27 = vunpack.i.h.bf16 %v12719_v23  ;;  %v5008_v14 = vsel %vm574_vm1, %v12819_v6, %v7320_v15  ;;  %v7279_v6 = vunpack.i.l.bf16 %v12784_v62  ;;  %v5031_v15 = vsel %vm574_vm1, %v12848_v54, %v7264_v52 }
 0x3c5   : > { %v12978_v8 = vsel %vm4922_vm8, %v12740_v24, %v7104_v53  ;;  %v7254_v63 = vunpack.i.l.bf16 %v12719_v23  ;;  %v5030_v52 = vsel %vm574_vm1, %v12853_v59, %v7235_v21  ;;  %v7240_v23 = vunpack.i.h.bf16 %v12724_v19 }
 0x3c6   : > { %v5029_v59 = vsel %vm574_vm1, %v12856_v44, %v7279_v6  ;;  %v7823_v6 = vld [vmem:[%s13986_s3 + $0x1b8] sm:$0xff] }
 0x3c9   : > { %v12913_v46 = vpop.permute.xlu0 %7302 }
 0x3ca   : > { %v7304_v10 = vunpack.i.l.bf16 %v12913_v46 }
 0x3cb   : > { %v12915_v51 = vpop.permute.xlu1 %7312 }
 0x3cc   : > { %v7314_v30 = vunpack.i.l.bf16 %v12915_v51  ;;  %v5033_v35 = vsel %vm574_vm1, %v12809_v32, %v7304_v10  ;;  %v7821_v32 = vld [vmem:[%s13986_s3 + $0x1e8] sm:$0xff]  ;;  %v5032_v10 = vsel %vm574_vm1, %v12830_v5, %v7230_v45  ;;  %v7260_v5 = vunpack.i.h.bf16 %v12776_v42 }
 0x3cd   : > { %5112 = vmatpush.msrb.mxu2 %v5033_v35  ;;  %v2741_v17 = vsel %vm2679_vm2, %v7821_v32, 0.0  ;;  %v5007_v45 = vsel %vm574_vm1, %v12840_v43, %v7334_v16  ;;  %v7249_v35 = vunpack.i.l.bf16 %v12656_v57  ;;  %v7259_v32 = vunpack.i.l.bf16 %v12776_v42  ;;  %v13002_v16 = vld [vmem:[%s13983_s0] sm:$0xf] }
 0x3ce   : > { %v5009_v34 = vsel %vm574_vm1, %v12788_v48, %v7314_v30  ;;  %v12959_v48 = vsel %vm4922_vm8, %v12737_v22, %v7105_v4  ;;  %v7822_v30 = vld [vmem:[%s13986_s3 + $0x1e0] sm:$0xff]  ;;  %v14839_v4 = vld [vmem:[#allocation100_spill] sm:$0xff]  ;;  %v4854_v33 = vsel %vm4792_vm3, %v2741_v17, %v7255_v27  ;;  %v7270_v43 = vunpack.i.h.bf16 %v12875_v41 }
 0x3cf   : > { %5100 = vmatpush.msra.mxu3 %v5009_v34  ;;  %v2740_v22 = vsel %vm2679_vm2, %v7822_v30, 0.0  ;;  %v7100_v7 = vunpack.i.h.bf16 %v14839_v4  ;;  %v7099_v11 = vunpack.i.l.bf16 %v14839_v4  ;;  %5113 = vmatpush.msrb.mxu2 %v5032_v10  ;;  %v7215_v34 = vunpack.i.h.bf16 %v12653_v49 }
 0x3d0   : > { %v7315_v54 = vunpack.i.h.bf16 %v12915_v51  ;;  %v5051_v42 = vlaneseq  ;;  %v5054_v17 = vperm.slane %v13002_v16, 0  ;;  %v7239_v51 = vunpack.i.l.bf16 %v12724_v19 }
 0x3d1   : > { %5101 = vmatpush.msra.mxu3 %v5008_v14  ;;  %v12990_v24 = vpop.permute.xlu0 %7307  ;;  %5114 = vmatpush.msrb.mxu2 %v5031_v15  ;;  %v13007_v27 = vsel %vm4922_vm8, %v12743_v0, %v7100_v7  ;;  %v13015_v21 = vsel %vm4922_vm8, %v12746_v37, %v7099_v11  ;;  %v4919_v14 = vsel %vm4857_vm4, %v4854_v33, %v7260_v5  ;;  %v7265_v30 = vunpack.i.h.bf16 %v12827_v58  ;;  %v13023_v7 = vpop.permute.xlu2 %7347 }
 0x3d2   : > { %v4853_v10 = vsel %vm4792_vm3, %v2740_v22, %v7254_v63  ;;  %v13020_v0 = vshrl.u32 %v5051_v42, 7  ;;  %v7245_v4 = vunpack.i.h.bf16 %v12774_v28  ;;  %v5028_v19 = vsel %vm574_vm1, %v12870_v2, %v7315_v54  ;;  %v14840_v63 = vld [vmem:[#allocation147_spill] sm:$0xff] }
 0x3d3   : > { %v12992_v53 = vpop.permute.xlu1 %7327  ;;  %5102 = vmatpush.msra.mxu3 %v5007_v45  ;;  %5115 = vmatpush.msrb.mxu2 %v5030_v52  ;;  %v4984_v44 = vsel %vm4922_vm8, %v4919_v14, %v7270_v43  ;;  %v4918_v37 = vsel %vm4857_vm4, %v4853_v10, %v7259_v32  ;;  %v7244_v11 = vunpack.i.l.bf16 %v12774_v28  ;;  %v2735_v2 = vsel %vm2679_vm2, %v7823_v6, 0.0 }
 0x3d4   : > { %vm5058_vm5 = vcmp.eq.s32.totalorder %v13020_v0, %v5054_v17  ;;  %v13032_v58 = vsel %vm574_vm1, %v4984_v44, %v7265_v30  ;;  %v13035_v22 = vsel %vm4922_vm8, %v4918_v37, %v7249_v35  ;;  %v7214_v5 = vunpack.i.l.bf16 %v12653_v49  ;;  %v7824_v35 = vld [vmem:[%s13986_s3 + $0x1b0] sm:$0xff]  ;;  %v14841_v17 = vld [vmem:[#allocation134_spill] sm:$0xff] }
 0x3d5   : > { %5116 = vmatpush.msrb.mxu2 %v5029_v59  ;;  %v4852_v28 = vsel %vm4792_vm3, %v12931_v56, %v7240_v23  ;;  %v4851_v45 = vsel %vm4792_vm3, %v12948_v61, %v7239_v51  ;;  %v7873_v15 = vmov 1.0   ;;  %v2734_v33 = vsel %vm2679_vm2, %v7824_v35, 0.0  ;;  %v14842_v59 = vld [vmem:[#allocation140_spill] sm:$0xff]  ;;  %v14843_v37 = vld [vmem:[#allocation58_spill] sm:$0xff] }
 0x3d6   : > { %6543 = vmatmul.msk.f32.vlgmr.msrb.gmra.mxu3 %vm5058_vm5, %v7873_v15  ;;  %v7095_v32 = vunpack.i.h.bf16 %v14840_v63  ;;  %v7094_v43 = vunpack.i.l.bf16 %v14840_v63  ;;  %v7280_v49 = vunpack.i.h.bf16 %v12784_v62  ;;  %v4850_v61 = vsel %vm4792_vm3, %v12954_v3, %v7215_v34  ;;  %v7825_v63 = vld [vmem:[%s13986_s3 + $0x1a0] sm:$0xff] }
 0x3d7   : > { %5117 = vmatpush.msrb.mxu2 %v5028_v19  ;;  %v7250_v52 = vunpack.i.h.bf16 %v12656_v57  ;;  %v7335_v23 = vunpack.i.h.bf16 %v12904_v1  ;;  %v7170_v51 = vunpack.i.h.bf16 %v14841_v17  ;;  %v7220_v14 = vunpack.i.h.bf16 %v14842_v59 }
 0x3d8   : > { %v4917_v10 = vsel %vm4857_vm4, %v4852_v28, %v7245_v4  ;;  %v13067_v62 = vsel %vm4857_vm4, %v4851_v45, %v7244_v11  ;;  %v4849_v30 = vsel %vm4792_vm3, %v12925_v50, %v7214_v5  ;;  %v7219_v34 = vunpack.i.l.bf16 %v14842_v59  ;;  %v14844_v28 = vld [vmem:[#allocation141_spill] sm:$0xff]  ;;  %v14847_v59 = vld [vmem:[#allocation183_spill] sm:$0xff] }
 0x3d9   : > { %v4982_v1 = vsel %vm4922_vm8, %v4917_v10, %v7250_v52  ;;  %v13081_v4 = vsel %vm4922_vm8, %v12571_v55, %v7095_v32  ;;  %v13084_v44 = vsel %vm4857_vm4, %v4850_v61, %v7220_v14  ;;  %v7169_v50 = vunpack.i.l.bf16 %v14841_v17  ;;  %v14845_v61 = vld [vmem:[#allocation101_spill] sm:$0xff] }
 0x3da   : > { %v13077_v19 = vsel %vm574_vm1, %v4982_v1, %v7280_v49  ;;  %v7145_v11 = vunpack.i.h.bf16 %v14843_v37  ;;  %v13092_v6 = vsel %vm4922_vm8, %v12574_v12, %v7094_v43  ;;  %v7144_v5 = vunpack.i.l.bf16 %v14843_v37  ;;  %v7826_v12 = vld [vmem:[%s13986_s3 + $0x198] sm:$0xff]  ;;  %v13108_v43 = vpop.permute.xlu2 %7362 }
 0x3db   : > { %v13054_v54 = vpop.permute.xlu0 %7322  ;;  %v7175_v45 = vunpack.i.h.bf16 %v14844_v28  ;;  %v7174_v55 = vunpack.i.l.bf16 %v14844_v28  ;;  %v13098_v35 = vsel %vm4857_vm4, %v4849_v30, %v7219_v34  ;;  %v2731_v32 = vsel %vm2679_vm2, %v7826_v12, 0.0  ;;  %v7829_v28 = vld [vmem:[%s13986_s3 + $0x190] sm:$0xff] }
 0x3dc   : > { %v13056_v56 = vpop.permute.xlu1 %7342  ;;  %v7324_v42 = vunpack.i.l.bf16 %v13054_v54  ;;  %v7085_v52 = vunpack.i.h.bf16 %v14845_v61  ;;  %v4848_v17 = vsel %vm4792_vm3, %v2735_v2, %v7170_v51  ;;  %v7160_v14 = vunpack.i.h.bf16 %v14847_v59  ;;  %v7830_v12 = vld [vmem:[%s13986_s3 + $0x1f0] sm:$0xff] }
 0x3dd   : > { %v7344_v3 = vunpack.i.l.bf16 %v13056_v56  ;;  %v7159_v1 = vunpack.i.l.bf16 %v14847_v59  ;;  %v7084_v34 = vunpack.i.l.bf16 %v14845_v61  ;;  %v13128_v51 = vsel %vm4857_vm4, %v4848_v17, %v7175_v45 }
 0x3de   : > { %v5027_v57 = vsel %vm574_vm1, %v12878_v60, %v7324_v42  ;;  %v5026_v60 = vsel %vm574_vm1, %v12882_v13, %v7335_v23  ;;  %v2732_v13 = vsel %vm2679_vm2, %v7825_v63, 0.0  ;;  %v14846_v23 = vld [vmem:[#allocation7_spill] sm:$0xff]  ;;  %v2730_v45 = vsel %vm2679_vm2, %v7829_v28, 0.0 }
 0x3df   : > { %5118 = vmatpush.msrb.mxu2 %v5027_v57  ;;  %v5025_v49 = vsel %vm574_vm1, %v12895_v39, %v7344_v3  ;;  %v7120_v42 = vunpack.i.h.bf16 %v14846_v23  ;;  %v4847_v57 = vsel %vm4792_vm3, %v2734_v33, %v7169_v50  ;;  %v4846_v39 = vsel %vm4792_vm3, %v12910_v26, %v7145_v11  ;;  %v7827_v33 = vld [vmem:[%s13986_s3 + $0x188] sm:$0xff]  ;;  %v7828_v26 = vld [vmem:[%s13986_s3 + $0x180] sm:$0xff] }
 0x3e0   : > { %v4845_v2 = vsel %vm4792_vm3, %v2732_v13, %v7144_v5  ;;  %v13131_v37 = vsel %vm4857_vm4, %v4847_v57, %v7174_v55  ;;  %v2729_v50 = vsel %vm2679_vm2, %v7827_v33, 0.0  ;;  %v2728_v11 = vsel %vm2679_vm2, %v7828_v26, 0.0 }
 0x3e1   : > { %5119 = vmatpush.msrb.mxu2 %v5026_v60  ;;  %v7119_v60 = vunpack.i.l.bf16 %v14846_v23  ;;  %v4844_v55 = vsel %vm4792_vm3, %v2731_v32, %v7120_v42  ;;  %v7289_v63 = vunpack.i.l.bf16 %v12873_v40  ;;  %v13151_v13 = vsel %vm4857_vm4, %v4846_v39, %v7160_v14  ;;  %v14848_v23 = vld [vmem:[#allocation52_spill] sm:$0xff]  ;;  %v14849_v39 = vld [vmem:[#allocation42_spill] sm:$0xff] }
 0x3e2   : > { %v7135_v32 = vunpack.i.h.bf16 %v14848_v23  ;;  %v13163_v42 = vsel %vm4857_vm4, %v4845_v2, %v7159_v1  ;;  %v4842_v17 = vsel %vm4792_vm3, %v2729_v50, %v7085_v52  ;;  %v4841_v59 = vsel %vm4792_vm3, %v2728_v11, %v7084_v34  ;;  %v13180_v28 = vpop.permute.xlu2 %7377 }
 0x3e3   : > { %5120 = vmatpush.msrb.mxu2 %v5025_v49  ;;  %v7831_v49 = vld [vmem:[%s13986_s3 + $0x1f8] sm:$0xff]  ;;  %v7134_v14 = vunpack.i.l.bf16 %v14848_v23  ;;  %v7290_v57 = vunpack.i.h.bf16 %v12873_v40  ;;  %v7089_v33 = vunpack.i.l.bf16 %v14849_v39  ;;  %v4843_v26 = vsel %vm4792_vm3, %v2730_v45, %v7119_v60 }
 0x3e4   : > { %v13116_v10 = vpop.permute.xlu0 %7337  ;;  %v13118_v30 = vpop.permute.xlu1 %7357  ;;  %v2743_v61 = vsel %vm2679_vm2, %v7831_v49, 0.0  ;;  %v7295_v1 = vunpack.i.h.bf16 %v12843_v20  ;;  %v7294_v2 = vunpack.i.l.bf16 %v12843_v20  ;;  %v7269_v34 = vunpack.i.l.bf16 %v12875_v41 }
 0x3e5   : > { %v7340_v3 = vunpack.i.h.bf16 %v13116_v10  ;;  %v7364_v40 = vunpack.i.l.bf16 %v13108_v43  ;;  %v7300_v49 = vunpack.i.h.bf16 %v12888_v31  ;;  %v7299_v20 = vunpack.i.l.bf16 %v12888_v31 }
 0x3e7   : > { %v5006_v5 = vsel %vm574_vm1, %v12899_v9, %v7340_v3  ;;  %v2742_v9 = vsel %vm2679_vm2, %v7830_v12, 0.0  ;;  %v7090_v3 = vunpack.i.h.bf16 %v14849_v39  ;;  %v7360_v12 = vunpack.i.h.bf16 %v13118_v30 }
 0x3e8   : > { %5103 = vmatpush.msra.mxu3 %v5006_v5  ;;  %v13173_v5 = vsel %vm4857_vm4, %v4844_v55, %v7135_v32  ;;  %v4855_v52 = vsel %vm4792_vm3, %v2742_v9, %v7289_v63  ;;  %v4856_v55 = vsel %vm4792_vm3, %v2743_v61, %v7290_v57  ;;  %v13187_v63 = vsel %vm4857_vm4, %v4843_v26, %v7134_v14 }
 0x3e9   : > { %v7305_v39 = vunpack.i.h.bf16 %v12913_v46  ;;  %v4920_v61 = vsel %vm4857_vm4, %v4855_v52, %v7294_v2  ;;  %v13197_v31 = vsel %vm4857_vm4, %v4842_v17, %v7090_v3  ;;  %v5004_v14 = vsel %vm574_vm1, %v12860_v47, %v7360_v12 }
 0x3ea   : > { %v4921_v57 = vsel %vm4857_vm4, %v4856_v55, %v7295_v1  ;;  %v4985_v3 = vsel %vm4922_vm8, %v4920_v61, %v7269_v34  ;;  %v7284_v1 = vunpack.i.l.bf16 %v12825_v25  ;;  %v7309_v52 = vunpack.i.l.bf16 %v12990_v24  ;;  %v13227_v25 = vpop.permute.xlu2 %7392 }
 0x3eb   : > { %v4986_v46 = vsel %vm4922_vm8, %v4921_v57, %v7300_v49  ;;  %v7345_v49 = vunpack.i.h.bf16 %v13056_v56  ;;  %v7350_v56 = vunpack.i.h.bf16 %v13023_v7 }
 0x3ec   : > { %v7353_v50 = vpop.permute.xlu0 %7352  ;;  %v7373_v11 = vpop.permute.xlu1 %7372 }
 0x3ed   : > { %v7355_v60 = vunpack.i.h.bf16 %v7353_v50  ;;  %v7354_v45 = vunpack.i.l.bf16 %v7353_v50  ;;  %v7375_v41 = vunpack.i.h.bf16 %v7373_v11  ;;  %v7374_v9 = vunpack.i.l.bf16 %v7373_v11 }
 0x3ee   : > { %v7380_v50 = vunpack.i.h.bf16 %v13180_v28  ;;  %v7319_v11 = vunpack.i.l.bf16 %v12884_v38 }
 0x3ef   : > { %v5005_v23 = vsel %vm574_vm1, %v12936_v29, %v7354_v45  ;;  %v5024_v32 = vsel %vm574_vm1, %v12959_v48, %v7355_v60  ;;  %v5023_v29 = vsel %vm574_vm1, %v12978_v8, %v7364_v40  ;;  %v4906_v48 = vsel %vm4857_vm4, %v4841_v59, %v7089_v33 }
 0x3f0   : > { %5104 = vmatpush.msra.mxu3 %v5005_v23  ;;  %5121 = vmatpush.msrb.mxu2 %v5024_v32  ;;  %v13207_v26 = vsel %vm4922_vm8, %v4906_v48, %v7299_v20  ;;  %v5003_v17 = vsel %vm574_vm1, %v12866_v18, %v7374_v9  ;;  %v5022_v47 = vsel %vm574_vm1, %v13007_v27, %v7375_v41  ;;  %v5055_v8 = vperm.slane %v13002_v16, 1 }
 0x3f1   : > { %v5050_v33 = vsel %vm574_vm1, %v4986_v46, %v7305_v39  ;;  %v5021_v2 = vsel %vm574_vm1, %v13015_v21, %v7380_v50  ;;  %v7274_v18 = vunpack.i.l.bf16 %v12890_v36  ;;  %v5049_v27 = vsel %vm574_vm1, %v4985_v3, %v7284_v1 }
 0x3f2   : > { %5105 = vmatpush.msra.mxu3 %v5004_v14  ;;  %5122 = vmatpush.msrb.mxu2 %v5023_v29  ;;  %vm5059_vm6 = vcmp.eq.s32.totalorder %v13020_v0, %v5055_v8  ;;  %v7310_v21 = vunpack.i.h.bf16 %v12990_v24  ;;  %v4981_v36 = vsel %vm4922_vm8, %v13067_v62, %v7309_v52  ;;  %v7325_v40 = vunpack.i.h.bf16 %v13054_v54 }
 0x3f3   : > { %v5047_v34 = vsel %vm574_vm1, %v13035_v22, %v7274_v18  ;;  %v5056_v60 = vperm.slane %v13002_v16, 2  ;;  %v7395_v45 = vunpack.i.h.bf16 %v13227_v25  ;;  %v7339_v24 = vunpack.i.l.bf16 %v13116_v10  ;;  %v5070_v18 = vld [vmem:[#allocation4] sm:$0xff] }
 0x3f4   : > { %v13216_v59 = vpop.permute.xlu0 %7367  ;;  %5106 = vmatpush.msra.mxu3 %v5003_v17  ;;  %5123 = vmatpush.msrb.mxu2 %v5022_v47  ;;  %v5045_v22 = vsel %vm574_vm1, %v4981_v36, %v7319_v11  ;;  %v7330_v62 = vunpack.i.h.bf16 %v12992_v53  ;;  %v4980_v54 = vsel %vm4922_vm8, %v13084_v44, %v7310_v21  ;;  %v7388_v23 = vpop.permute.xlu1 %7387  ;;  %v7394_v46 = vunpack.i.l.bf16 %v13227_v25 }
 0x3f5   : > { %6544 = vmatmul.msk.f32.vlgmr.msra.gmra.mxu3 %vm5059_vm6, %v7873_v15  ;;  %v5044_v20 = vsel %vm574_vm1, %v4980_v54, %v7325_v40  ;;  %vm5060_vm7 = vcmp.eq.s32.totalorder %v13020_v0, %v5056_v60  ;;  %v7369_v41 = vunpack.i.l.bf16 %v13216_v59  ;;  %v7389_v39 = vunpack.i.l.bf16 %v7388_v23 }
 0x3f6   : > { %5131 = vmatpush.msrb.mxu3 %v5050_v33  ;;  %5124 = vmatpush.msrb.mxu2 %v5021_v2  ;;  %v4978_v9 = vsel %vm4922_vm8, %v13128_v51, %v7330_v62  ;;  %v4976_v51 = vsel %vm4922_vm8, %v13151_v13, %v7350_v56  ;;  %v7390_v57 = vunpack.i.h.bf16 %v7388_v23  ;;  %v5057_v17 = vperm.slane %v13002_v16, 3 }
 0x3f7   : > { %v4975_v50 = vsel %vm4922_vm8, %v13163_v42, %v7369_v41  ;;  %v4973_v13 = vsel %vm4922_vm8, %v13187_v63, %v7389_v39 }
 0x3f8   : > { %5132 = vmatpush.msrb.mxu3 %v5049_v27  ;;  %v5037_v3 = vsel %vm574_vm1, %v4973_v13, %v7394_v46  ;;  %v4972_v8 = vsel %vm4922_vm8, %v13197_v31, %v7390_v57  ;;  %vm5061_vm9 = vcmp.eq.s32.totalorder %v13020_v0, %v5057_v17 }
 0x3fa   : > { %5133 = vmatpush.msrb.mxu3 %v13032_v58  ;;  %v7329_v58 = vunpack.i.l.bf16 %v12992_v53  ;;  %v5019_v53 = vsel %vm574_vm1, %v13092_v6, %v7395_v45  ;;  %v7365_v6 = vunpack.i.h.bf16 %v13108_v43  ;;  %v7379_v43 = vunpack.i.l.bf16 %v13180_v28 }
 0x3fc   : > { %5134 = vmatpush.msrb.mxu3 %v5047_v34  ;;  %v7383_v12 = vpop.permute.xlu0 %7382  ;;  %v4979_v10 = vsel %vm4922_vm8, %v13098_v35, %v7329_v58  ;;  %v5042_v35 = vsel %vm574_vm1, %v4978_v9, %v7345_v49  ;;  %v5040_v14 = vsel %vm574_vm1, %v4976_v51, %v7365_v6 }
 0x3fd   : > { %v7385_v55 = vunpack.i.h.bf16 %v7383_v12  ;;  %v5043_v44 = vsel %vm574_vm1, %v4979_v10, %v7339_v24  ;;  %v7384_v61 = vunpack.i.l.bf16 %v7383_v12 }
 0x3fe   : > { %5135 = vmatpush.msrb.mxu3 %v13077_v19  ;;  %v7349_v19 = vunpack.i.l.bf16 %v13023_v7  ;;  %v7370_v7 = vunpack.i.h.bf16 %v13216_v59 }
 0x3ff   : > { %v5020_v38 = vsel %vm574_vm1, %v13081_v4, %v7385_v55  ;;  %v7359_v4 = vunpack.i.l.bf16 %v13118_v30 }
 0x400   : > { %5136 = vmatpush.msrb.mxu3 %v5045_v22  ;;  %5125 = vmatpush.msrb.mxu2 %v5020_v38  ;;  %v4977_v30 = vsel %vm4922_vm8, %v13131_v37, %v7349_v19  ;;  %v5039_v37 = vsel %vm574_vm1, %v4975_v50, %v7379_v43  ;;  %v4974_v48 = vsel %vm4922_vm8, %v13173_v5, %v7370_v7 }
 0x401   : > { %v5041_v32 = vsel %vm574_vm1, %v4977_v30, %v7359_v4  ;;  %v5038_v28 = vsel %vm574_vm1, %v4974_v48, %v7384_v61 }
 0x402   : > { %5137 = vmatpush.msrb.mxu3 %v5044_v20  ;;  %5126 = vmatpush.msrb.mxu2 %v5019_v53 }
 0x403   : > { %6545 = vmatmul.msk.f32.vlgmr.msrb.gmra.mxu2 %vm5060_vm7, %v7873_v15 }
 0x404   : > { %5138 = vmatpush.msrb.mxu3 %v5043_v44  ;;  %v7398_v29 = vpop.permute.xlu0 %7397 }
 0x405   : > { %v7399_v42 = vunpack.i.l.bf16 %v7398_v29  ;;  %v7400_v47 = vunpack.i.h.bf16 %v7398_v29 }
 0x406   : > { %5139 = vmatpush.msrb.mxu3 %v5042_v35 }
 0x407   : > { %v5036_v5 = vsel %vm574_vm1, %v4972_v8, %v7399_v42  ;;  %v5035_v63 = vsel %vm574_vm1, %v13207_v26, %v7400_v47 }
 0x408   : > { %5140 = vmatpush.msrb.mxu3 %v5041_v32 }
 0x40a   : > { %5141 = vmatpush.msrb.mxu3 %v5040_v14 }
 0x40c   : > { %5142 = vmatpush.msrb.mxu3 %v5039_v37 }
 0x40e   : > { %5143 = vmatpush.msrb.mxu3 %v5038_v28 }
 0x410   : > { %5144 = vmatpush.msrb.mxu3 %v5037_v3 }
 0x412   : > { %5145 = vmatpush.msrb.mxu3 %v5036_v5 }
 0x414   : > { %5146 = vmatpush.msrb.mxu3 %v5035_v63 }
 0x415   : > { %6546 = vmatmul.msk.f32.vlgmr.msrb.gmra.mxu3 %vm5061_vm9, %v7873_v15 }
 0x459   : > { %v5088_v1 = vpop.f32.mrf.mxu3 }
 0x478   : > { %v5108_v16 = vpop.f32.mrf.mxu3 }
 0x479   : > { %v5109_v33 = vadd.f32 %v5108_v16, %v5088_v1 }
 0x486   : > { %v5128_v59 = vpop.f32.mrf.mxu2 }
 0x487   : > { %v5129_v2 = vadd.f32 %v5128_v59, %v5109_v33 }
 0x498   : > { %v5148_v27 = vpop.f32.mrf.mxu3 }
 0x499   : > { %v5149_v52 = vadd.f32 %v5148_v27, %v5129_v2 }
 0x49b   : > { %v5151_v31 = vadd.f32 %v5149_v52, %v5070_v18 }
 0x49d   : > { %5153 = vst.msk [vmem:[#allocation4] sm:$0xff] %vm5152_vm10, %v5151_v31 }
 0x49e PF: > { %5155 = sbr.rel (!%p491_p4) target bundleno = 1558 (0x616), region = 68  ;;  %v5157_v0 = vld [vmem:[%s13987_s4] sm:$0xff] (%p491_p4)  ;;  %v7874_v26 = vmov (%p491_p4), 0   ;;  %v7875_v25 = vmov (%p491_p4), 2   ;;  %v7876_v34 = vmov (%p491_p4), 1   ;;  %s7877_s30 = smov (%p491_p4), 16  }
 0x49f   : > { %7832 = vset.pattern.permute.xlu0 (%p491_p4), %v7874_v26  ;;  %7834 = vset.pattern.permute.xlu1 (%p491_p4), %v7874_v26  ;;  %s7878_s11 = smov (%p491_p4), 8   ;;  %s7879_s28 = smov (%p491_p4), 24   ;;  %vm5173_vm1 = vcmask (%p491_p4), 15360   ;;  %vm5227_vm11 = vcmask (%p491_p4), 7168   ;;  %vm5230_vm12 = vcmask (%p491_p4), 23552   ;;  %vm5232_vm13 = vcmask (%p491_p4), 31744  }
 0x4a0   : > { %5160 = vperm.xlu0 (%p491_p4), %7832, %v5157_v0   ;;  %7836 = vset.pattern.permute.xlu2 (%p491_p4), %v7875_v25  ;;  %s7880_s12 = smov (%p491_p4), 112   ;;  %s7881_s17 = smov (%p491_p4), 114   ;;  %vm5234_vm14 = vcmask (%p491_p4), 39936   ;;  %vm5236_vm15 = vcmask (%p491_p4), 48128  }
 0x4a1   : > { %s7882_s18 = smov (%p491_p4), 98   ;;  %s7883_s25 = smov (%p491_p4), 120  }
 0x4a2   : > { %s7884_s20 = smov (%p491_p4), 100   ;;  %s7885_s19 = smov (%p491_p4), 105  }
 0x4a3   : > { %s7886_s29 = smov 107  }
 0x4a4   : > { %v5156_v15 = vld [vmem:[#allocation4] sm:$0xff] }
 0x4a5   : > { %5177 = vperm.xlu1 %7834, %v5156_v15   ;;  %5197 = vperm.xlu2 %7836, %v5156_v15  }
 0x4a8   : > { %7833 = vset.pattern.permute.xlu0 %v7876_v34 }
 0x4a9   : > { %5165 = vperm.xlu0 %7833, %v5157_v0  }
 0x4ad   : > { %7835 = vset.pattern.permute.xlu1 %v7876_v34 }
 0x4ae   : > { %5187 = vperm.xlu1 %7835, %v5156_v15  }
 0x4b1   : > { %7837 = vset.pattern.permute.xlu0 %v7875_v25 }
 0x4ff   : > { %v5198_v55 = vpop.permute.xlu2 %5197 }
 0x512   : > { %v5161_v21 = vpop.permute.xlu0 %5160 }
 0x513   : > { %v5163_v11 = vsub.f32 %v5161_v21, %v5156_v15 }
 0x517   : > { %v5178_v36 = vpop.permute.xlu1 %5177 }
 0x51b   : > { %v5166_v40 = vpop.permute.xlu0 %5165 }
 0x51c   : > { %v5168_v60 = vmul.f32 %v5166_v40, %v5163_v11 }
 0x51e   : > { %v5180_v45 = vmul.f32 %v5178_v36, %v5168_v60  ;;  %v5200_v24 = vmul.f32 %v5198_v55, %v5168_v60 }
 0x520   : > { %v5188_v12 = vpop.permute.xlu1 %5187  ;;  %5182 = vrot.lane.b32.xlu2 %v5180_v45, %s7878_s11 }
 0x521   : > { %v5190_v58 = vmul.f32 %v5188_v12, %v5168_v60 }
 0x523   : > { %5192 = vrot.lane.b32.xlu1 %v5190_v58, %s7877_s30 }
 0x528   : > { %5202 = vrot.lane.b32.xlu2 %v5200_v24, %s7879_s28 }
 0x57a   : > { %v5183_v22 = vpop.permute.xlu2 %5182 }
 0x57b   : > { %v5185_v62 = vadd.f32 %v5183_v22, %v5156_v15 }
 0x57d   : > { %5207 = vrot.lane.b32.xlu0 %v5185_v62, %s7880_s12 }
 0x582   : > { %v5203_v38 = vpop.permute.xlu2 %5202 }
 0x583   : > { %v5205_v54 = vadd.f32 %v5203_v38, %v5156_v15 }
 0x585   : > { %5218 = vrot.lane.b32.xlu0 %v5185_v62, %s7881_s17  ;;  %5215 = vrot.lane.b32.xlu2 %v5205_v54, %s7882_s18 }
 0x58d   : > { %5170 = vrot.lane.b32.xlu0 %v5168_v60, %s7883_s25  ;;  %5224 = vrot.lane.b32.xlu2 %v5205_v54, %s7884_s20 }
 0x595   : > { %v5193_v49 = vpop.permute.xlu1 %5192 }
 0x596   : > { %v5195_v20 = vadd.f32 %v5193_v49, %v5156_v15 }
 0x598   : > { %5211 = vrot.lane.b32.xlu1 %v5195_v20, %s7885_s19 }
 0x5a0   : > { %5221 = vrot.lane.b32.xlu1 %v5195_v20, %s7886_s29 }
 0x5df   : > { %v5216_v4 = vpop.permute.xlu2 %5215 }
 0x5e7   : > { %v5225_v23 = vpop.permute.xlu2 %5224 }
 0x5ef   : > { %v5208_v19 = vpop.permute.xlu0 %5207 }
 0x5f7   : > { %v5219_v53 = vpop.permute.xlu0 %5218 }
 0x5ff   : > { %v5171_v10 = vpop.permute.xlu0 %5170 }
 0x600   : > { %5174 = vst.msk [vmem:[#allocation3] sm:$0xff] %vm5173_vm1, %v5171_v10 }
 0x60a   : > { %v5212_v44 = vpop.permute.xlu1 %5211 }
 0x60b   : > { %v5228_v56 = vsel %vm5227_vm11, %v5208_v19, %v5212_v44 }
 0x60c   : > { %v5229_v41 = vsel %vm5173_vm1, %v5228_v56, %v5216_v4 }
 0x60d   : > { %v5231_v6 = vsel %vm5230_vm12, %v5229_v41, %v5219_v53 }
 0x612   : > { %v5222_v9 = vpop.permute.xlu1 %5221 }
 0x613   : > { %v5233_v35 = vsel %vm5232_vm13, %v5231_v6, %v5222_v9 }
 0x614   : > { %v5235_v30 = vsel %vm5234_vm14, %v5233_v35, %v5225_v23 }
 0x615   : > { %5237 = vst.msk [vmem:[%s13993_s10] sm:$0xff] %vm5236_vm15, %v5235_v30 }
 0x616 PF: > { %p6547_p6 = scmp.ne.s32.totalorder %s7855_s13, 1 }
 0x618   : > { %5241 = sbr.rel (%p6547_p6) target bundleno = 1982 (0x7be), region = 72 }
 0x61d   : > { %v5248_v32 = vld [vmem:[%s13984_s1 + $0x20] sm:$0xff]  ;;  %v5246_v7 = vld [vmem:[%s13984_s1 + $0x10] sm:$0xff]  ;;  %v7887_v51 = vmov 0   ;;  %v5249_v50 = vld [vmem:[%s13984_s1 + $0x28] sm:$0xff]  ;;  %v5242_v62 = vlaneseq  ;;  %vm5758_vm0 = vcmask 64512   ;;  %v7888_v4 = vmov 0.0  }
 0x61e   : > { %v5244_v39 = vld [vmem:[%s13984_s1] sm:$0xff]  ;;  %7840 = vset.pattern.permute.xlu2 %v7887_v51  ;;  %7839 = vset.pattern.permute.xlu1 %v7887_v51  ;;  %v5247_v43 = vld [vmem:[%s13984_s1 + $0x18] sm:$0xff]  ;;  %v5245_v61 = vld [vmem:[%s13984_s1 + $0x8] sm:$0xff] }
 0x61f   : > { %7838 = vset.pattern.permute.xlu0 %v7887_v51  ;;  %5321 = vperm.xlu2 %7840, %v5248_v32   ;;  %v5252_v14 = vld [vmem:[%s13984_s1 + $0x40] sm:$0xff]  ;;  %v5251_v29 = vld [vmem:[%s13984_s1 + $0x38] sm:$0xff]  ;;  %v5250_v37 = vld [vmem:[%s13984_s1 + $0x30] sm:$0xff]  ;;  %v13440_v20 = vand.u32 127, %v5242_v62 }
 0x620   : > { %5315 = vperm.xlu1 %7839, %v5246_v7   ;;  %5309 = vperm.xlu0 %7838, %v5244_v39   ;;  %v5255_v57 = vld [vmem:[%s13984_s1 + $0x58] sm:$0xff]  ;;  %v5254_v48 = vld [vmem:[%s13984_s1 + $0x50] sm:$0xff]  ;;  %v5253_v13 = vld [vmem:[%s13984_s1 + $0x48] sm:$0xff] }
 0x621   : > { %v5258_v46 = vld [vmem:[%s13984_s1 + $0x70] sm:$0xff]  ;;  %v5257_v42 = vld [vmem:[%s13984_s1 + $0x68] sm:$0xff]  ;;  %v5256_v28 = vld [vmem:[%s13984_s1 + $0x60] sm:$0xff] }
 0x622   : > { %v5260_v17 = vld [vmem:[%s13984_s1 + $0x80] sm:$0xff]  ;;  %v5261_v8 = vld [vmem:[%s13984_s1 + $0x88] sm:$0xff]  ;;  %v5262_v1 = vld [vmem:[%s13984_s1 + $0x90] sm:$0xff] }
 0x623   : > { %v5292_v47 = vld [vmem:[%s13984_s1 + $0x180] sm:$0xff]  ;;  %v5293_v5 = vld [vmem:[%s13984_s1 + $0x188] sm:$0xff]  ;;  %v5294_v16 = vld [vmem:[%s13984_s1 + $0x190] sm:$0xff] }
 0x624   : > { %v5276_v3 = vld [vmem:[%s13984_s1 + $0x100] sm:$0xff]  ;;  %v5277_v63 = vld [vmem:[%s13984_s1 + $0x108] sm:$0xff]  ;;  %v5278_v59 = vld [vmem:[%s13984_s1 + $0x110] sm:$0xff] }
 0x625   : > { %v5263_v33 = vld [vmem:[%s13984_s1 + $0x98] sm:$0xff]  ;;  %v5264_v27 = vld [vmem:[%s13984_s1 + $0xa0] sm:$0xff]  ;;  %v5265_v0 = vld [vmem:[%s13984_s1 + $0xa8] sm:$0xff] }
 0x626   : > { %v5295_v2 = vld [vmem:[%s13984_s1 + $0x198] sm:$0xff]  ;;  %v5296_v52 = vld [vmem:[%s13984_s1 + $0x1a0] sm:$0xff]  ;;  %v5297_v15 = vld [vmem:[%s13984_s1 + $0x1a8] sm:$0xff] }
 0x627   : > { %5324 = vperm.xlu2 %7840, %v5249_v50   ;;  %v5279_v18 = vld [vmem:[%s13984_s1 + $0x118] sm:$0xff]  ;;  %v5280_v31 = vld [vmem:[%s13984_s1 + $0x120] sm:$0xff]  ;;  %v5281_v26 = vld [vmem:[%s13984_s1 + $0x128] sm:$0xff] }
 0x628   : > { %5318 = vperm.xlu1 %7839, %v5247_v43   ;;  %5312 = vperm.xlu0 %7838, %v5245_v61   ;;  %v5757_v25 = vld [vmem:[#allocation3] sm:$0xff]  ;;  %v5266_v34 = vld [vmem:[%s13984_s1 + $0xb0] sm:$0xff]  ;;  %v5267_v40 = vld [vmem:[%s13984_s1 + $0xb8] sm:$0xff] }
 0x629   : > { %5966 = vmatpush.msra.mxu0 %v5757_v25  ;;  %6701 = vmatpush.msra.mxu1 %v5757_v25  ;;  %v5298_v21 = vld [vmem:[%s13984_s1 + $0x1b0] sm:$0xff]  ;;  %v5299_v12 = vld [vmem:[%s13984_s1 + $0x1b8] sm:$0xff]  ;;  %v5268_v45 = vld [vmem:[%s13984_s1 + $0xc0] sm:$0xff] }
 0x62a   : > { %v5282_v36 = vld [vmem:[%s13984_s1 + $0x130] sm:$0xff]  ;;  %6702 = vmatpush.msra.mxu2 %v5757_v25  ;;  %6703 = vmatpush.msra.mxu3 %v5757_v25  ;;  %v5283_v60 = vld [vmem:[%s13984_s1 + $0x138] sm:$0xff]  ;;  %v5300_v55 = vld [vmem:[%s13984_s1 + $0x1c0] sm:$0xff] }
 0x62b   : > { %v5284_v24 = vld [vmem:[%s13984_s1 + $0x140] sm:$0xff]  ;;  %v5269_v38 = vld [vmem:[%s13984_s1 + $0xc8] sm:$0xff]  ;;  %v5270_v56 = vld [vmem:[%s13984_s1 + $0xd0] sm:$0xff] }
 0x62c   : > { %v5301_v54 = vld [vmem:[%s13984_s1 + $0x1c8] sm:$0xff]  ;;  %v5302_v41 = vld [vmem:[%s13984_s1 + $0x1d0] sm:$0xff]  ;;  %v5271_v32 = vld [vmem:[%s13984_s1 + $0xd8] sm:$0xff] }
 0x62d   : > { %v5285_v49 = vld [vmem:[%s13984_s1 + $0x148] sm:$0xff]  ;;  %v5286_v9 = vld [vmem:[%s13984_s1 + $0x150] sm:$0xff]  ;;  %v5303_v7 = vld [vmem:[%s13984_s1 + $0x1d8] sm:$0xff] }
 0x62e   : > { %v5287_v39 = vld [vmem:[%s13984_s1 + $0x158] sm:$0xff] }
 0x62f   : > { %5333 = vperm.xlu2 %7840, %v5252_v14   ;;  %v5259_v25 = vld [vmem:[%s13984_s1 + $0x78] sm:$0xff] }
 0x630   : > { %5330 = vperm.xlu1 %7839, %v5251_v29   ;;  %5327 = vperm.xlu0 %7838, %v5250_v37   ;;  %v5272_v29 = vld [vmem:[%s13984_s1 + $0xe0] sm:$0xff] }
 0x631   : > { %v5304_v37 = vld [vmem:[%s13984_s1 + $0x1e0] sm:$0xff] }
 0x637   : > { %5342 = vperm.xlu2 %7840, %v5255_v57   ;;  %v5288_v57 = vld [vmem:[%s13984_s1 + $0x160] sm:$0xff] }
 0x638   : > { %5339 = vperm.xlu1 %7839, %v5254_v48   ;;  %5336 = vperm.xlu0 %7838, %v5253_v13  }
 0x63f   : > { %5351 = vperm.xlu2 %7840, %v5258_v46  }
 0x640   : > { %5348 = vperm.xlu1 %7839, %v5257_v42   ;;  %5345 = vperm.xlu0 %7838, %v5256_v28  }
 0x647   : > { %5357 = vperm.xlu2 %7840, %v5260_v17   ;;  %v5273_v17 = vld [vmem:[%s13984_s1 + $0xe8] sm:$0xff] }
 0x648   : > { %5453 = vperm.xlu1 %7839, %v5292_v47   ;;  %5405 = vperm.xlu0 %7838, %v5276_v3   ;;  %v5305_v47 = vld [vmem:[%s13984_s1 + $0x1e8] sm:$0xff] }
 0x649   : > { %v5289_v3 = vld [vmem:[%s13984_s1 + $0x168] sm:$0xff] }
 0x64f   : > { %5360 = vperm.xlu2 %7840, %v5261_v8  }
 0x650   : > { %5456 = vperm.xlu1 %7839, %v5293_v5   ;;  %5408 = vperm.xlu0 %7838, %v5277_v63  }
 0x657   : > { %5363 = vperm.xlu2 %7840, %v5262_v1  }
 0x658   : > { %5459 = vperm.xlu1 %7839, %v5294_v16   ;;  %5411 = vperm.xlu0 %7838, %v5278_v59   ;;  %v5274_v59 = vld [vmem:[%s13984_s1 + $0xf0] sm:$0xff] }
 0x65f   : > { %5366 = vperm.xlu2 %7840, %v5263_v33   ;;  %v5306_v33 = vld [vmem:[%s13984_s1 + $0x1f0] sm:$0xff] }
 0x660   : > { %5462 = vperm.xlu1 %7839, %v5295_v2   ;;  %5414 = vperm.xlu0 %7838, %v5279_v18   ;;  %v5290_v2 = vld [vmem:[%s13984_s1 + $0x170] sm:$0xff] }
 0x667   : > { %5369 = vperm.xlu2 %7840, %v5264_v27  }
 0x668   : > { %5465 = vperm.xlu1 %7839, %v5296_v52   ;;  %5417 = vperm.xlu0 %7838, %v5280_v31  }
 0x66f   : > { %5372 = vperm.xlu2 %7840, %v5265_v0  }
 0x670   : > { %5468 = vperm.xlu1 %7839, %v5297_v15   ;;  %5420 = vperm.xlu0 %7838, %v5281_v26  }
 0x677   : > { %5375 = vperm.xlu2 %7840, %v5266_v34   ;;  %v5307_v34 = vld [vmem:[%s13984_s1 + $0x1f8] sm:$0xff] }
 0x678   : > { %5471 = vperm.xlu1 %7839, %v5298_v21   ;;  %5423 = vperm.xlu0 %7838, %v5282_v36   ;;  %v5291_v21 = vld [vmem:[%s13984_s1 + $0x178] sm:$0xff] }
 0x679   : > { %v13407_v11 = vpop.permute.xlu2 %5321 }
 0x67a   : > { %vm5504_vm7 = vcmp.eq.s32.totalorder %v13440_v20, %v13407_v11 }
 0x67b   : > { %v6552_v16 = vsel %vm5504_vm7, 1.0, %v7888_v4 }
 0x67f   : > { %5378 = vperm.xlu2 %7840, %v5267_v40  }
 0x680   : > { %5474 = vperm.xlu1 %7839, %v5299_v12   ;;  %5426 = vperm.xlu0 %7838, %v5283_v60  }
 0x681   : > { %v13418_v58 = vpop.permute.xlu2 %5324 }
 0x682   : > { %vm5505_vm10 = vcmp.eq.s32.totalorder %v13440_v20, %v13418_v58 }
 0x683   : > { %v6553_v0 = vsel %vm5505_vm10, 1.0, %v7888_v4 }
 0x687   : > { %5381 = vperm.xlu2 %7840, %v5268_v45  }
 0x688   : > { %5477 = vperm.xlu1 %7839, %v5300_v55   ;;  %5429 = vperm.xlu0 %7838, %v5284_v24   ;;  %v5275_v55 = vld [vmem:[%s13984_s1 + $0xf8] sm:$0xff] }
 0x689   : > { %v13429_v22 = vpop.permute.xlu2 %5333 }
 0x68f   : > { %5384 = vperm.xlu2 %7840, %v5269_v38  }
 0x690   : > { %5480 = vperm.xlu1 %7839, %v5301_v54   ;;  %5432 = vperm.xlu0 %7838, %v5285_v49  }
 0x691   : > { %v13442_v19 = vpop.permute.xlu2 %5342 }
 0x692   : > { %v5316_v53 = vpop.permute.xlu1 %5315  ;;  %v5310_v10 = vpop.permute.xlu0 %5309 }
 0x693   : > { %vm5500_vm2 = vcmp.eq.s32.totalorder %v13440_v20, %v5310_v10  ;;  %vm5502_vm4 = vcmp.eq.s32.totalorder %v13440_v20, %v5316_v53 }
 0x694   : > { %v6548_v44 = vsel %vm5500_vm2, 1.0, %v7888_v4  ;;  %v6550_v14 = vsel %vm5502_vm4, 1.0, %v7888_v4 }
 0x695   : > { %6612 = vmatmul.msk.f32.vlgmr.msra.gmra.mxu0 %vm5758_vm0, %v6548_v44 }
 0x697   : > { %5387 = vperm.xlu2 %7840, %v5270_v56  }
 0x698   : > { %5483 = vperm.xlu1 %7839, %v5302_v41   ;;  %5435 = vperm.xlu0 %7838, %v5286_v9  }
 0x699   : > { %v13456_v6 = vpop.permute.xlu2 %5351 }
 0x69a   : > { %v5319_v23 = vpop.permute.xlu1 %5318  ;;  %v5313_v35 = vpop.permute.xlu0 %5312 }
 0x69b   : > { %vm5501_vm3 = vcmp.eq.s32.totalorder %v13440_v20, %v5313_v35  ;;  %vm5503_vm5 = vcmp.eq.s32.totalorder %v13440_v20, %v5319_v23 }
 0x69c   : > { %v6549_v30 = vsel %vm5501_vm3, 1.0, %v7888_v4  ;;  %v6551_v28 = vsel %vm5503_vm5, 1.0, %v7888_v4 }
 0x69d   : > { %6613 = vmatmul.msk.f32.gmra.mxu0 %vm5758_vm0, %v6549_v30 }
 0x69f   : > { %5390 = vperm.xlu2 %7840, %v5271_v32  }
 0x6a0   : > { %5486 = vperm.xlu1 %7839, %v5303_v7   ;;  %5438 = vperm.xlu0 %7838, %v5287_v39  }
 0x6a1   : > { %v5358_v51 = vpop.permute.xlu2 %5357 }
 0x6a2   : > { %vm5516_vm8 = vcmp.eq.s32.totalorder %v13440_v20, %v5358_v51  ;;  %v13472_v50 = vpop.permute.xlu1 %5330  ;;  %v13474_v43 = vpop.permute.xlu0 %5327 }
 0x6a3   : > { %v6564_v61 = vsel %vm5516_vm8, 1.0, %v7888_v4  ;;  %vm5506_vm13 = vcmp.eq.s32.totalorder %v13440_v20, %v13474_v43  ;;  %vm5507_vm3 = vcmp.eq.s32.totalorder %v13440_v20, %v13472_v50 }
 0x6a4   : > { %6628 = vmatmul.msk.f32.vlgmr.msra.gmra.mxu1 %vm5758_vm0, %v6564_v61  ;;  %v6554_v60 = vsel %vm5506_vm13, 1.0, %v7888_v4  ;;  %v6555_v49 = vsel %vm5507_vm3, 1.0, %v7888_v4 }
 0x6a5   : > { %6614 = vmatmul.msk.f32.gmra.mxu0 %vm5758_vm0, %v6550_v14 }
 0x6a7   : > { %5393 = vperm.xlu2 %7840, %v5272_v29  }
 0x6a8   : > { %5489 = vperm.xlu1 %7839, %v5304_v37   ;;  %5441 = vperm.xlu0 %7838, %v5288_v57  }
 0x6a9   : > { %v5361_v48 = vpop.permute.xlu2 %5360 }
 0x6aa   : > { %vm5517_vm6 = vcmp.eq.s32.totalorder %v13440_v20, %v5361_v48  ;;  %v13491_v13 = vpop.permute.xlu1 %5339  ;;  %v13493_v46 = vpop.permute.xlu0 %5336 }
 0x6ab   : > { %v6565_v42 = vsel %vm5517_vm6, 1.0, %v7888_v4  ;;  %vm5508_vm6 = vcmp.eq.s32.totalorder %v13440_v20, %v13429_v22 }
 0x6ac   : > { %6629 = vmatmul.msk.f32.gmra.mxu1 %vm5758_vm0, %v6565_v42  ;;  %v6556_v23 = vsel %vm5508_vm6, 1.0, %v7888_v4 }
 0x6ad   : > { %6615 = vmatmul.msk.f32.gmra.mxu0 %vm5758_vm0, %v6551_v28 }
 0x6af   : > { %5396 = vperm.xlu2 %7840, %v5273_v17  }
 0x6b0   : > { %5492 = vperm.xlu1 %7839, %v5305_v47   ;;  %5444 = vperm.xlu0 %7838, %v5289_v3  }
 0x6b1   : > { %v5364_v8 = vpop.permute.xlu2 %5363 }
 0x6b2   : > { %vm5518_vm9 = vcmp.eq.s32.totalorder %v13440_v20, %v5364_v8  ;;  %v13511_v5 = vpop.permute.xlu1 %5348  ;;  %v13513_v63 = vpop.permute.xlu0 %5345 }
 0x6b3   : > { %v6566_v1 = vsel %vm5518_vm9, 1.0, %v7888_v4 }
 0x6b4   : > { %6630 = vmatmul.msk.f32.gmra.mxu1 %vm5758_vm0, %v6566_v1 }
 0x6b5   : > { %6616 = vmatmul.msk.f32.gmra.mxu0 %vm5758_vm0, %v6552_v16 }
 0x6b7   : > { %5399 = vperm.xlu2 %7840, %v5274_v59  }
 0x6b8   : > { %5495 = vperm.xlu1 %7839, %v5306_v33   ;;  %5447 = vperm.xlu0 %7838, %v5290_v2  }
 0x6b9   : > { %v5367_v18 = vpop.permute.xlu2 %5366 }
 0x6ba   : > { %vm5519_vm1 = vcmp.eq.s32.totalorder %v13440_v20, %v5367_v18  ;;  %v5454_v27 = vpop.permute.xlu1 %5453  ;;  %v5406_v52 = vpop.permute.xlu0 %5405 }
 0x6bb   : > { %v6567_v31 = vsel %vm5519_vm1, 1.0, %v7888_v4  ;;  %vm5548_vm11 = vcmp.eq.s32.totalorder %v13440_v20, %v5454_v27  ;;  %vm5532_vm12 = vcmp.eq.s32.totalorder %v13440_v20, %v5406_v52  ;;  %vm5509_vm1 = vcmp.eq.s32.totalorder %v13440_v20, %v13493_v46 }
 0x6bc   : > { %v6596_v15 = vsel %vm5548_vm11, 1.0, %v7888_v4  ;;  %v6580_v26 = vsel %vm5532_vm12, 1.0, %v7888_v4  ;;  %6631 = vmatmul.msk.f32.gmra.mxu1 %vm5758_vm0, %v6567_v31  ;;  %v6557_v51 = vsel %vm5509_vm1, 1.0, %v7888_v4 }
 0x6bd   : > { %6617 = vmatmul.msk.f32.gmra.mxu0 %vm5758_vm0, %v6553_v0  ;;  %6644 = vmatmul.msk.f32.vlgmr.msra.gmra.mxu2 %vm5758_vm0, %v6580_v26 }
 0x6be   : > { %6660 = vmatmul.msk.f32.vlgmr.msra.gmra.mxu3 %vm5758_vm0, %v6596_v15 }
 0x6bf   : > { %5354 = vperm.xlu2 %7840, %v5259_v25  }
 0x6c0   : > { %5498 = vperm.xlu1 %7839, %v5307_v34   ;;  %5450 = vperm.xlu0 %7838, %v5291_v21  }
 0x6c1   : > { %v5370_v36 = vpop.permute.xlu2 %5369 }
 0x6c2   : > { %vm5520_vm14 = vcmp.eq.s32.totalorder %v13440_v20, %v5370_v36  ;;  %v5457_v11 = vpop.permute.xlu1 %5456  ;;  %v5409_v40 = vpop.permute.xlu0 %5408 }
 0x6c3   : > { %v6568_v12 = vsel %vm5520_vm14, 1.0, %v7888_v4  ;;  %vm5549_vm15 = vcmp.eq.s32.totalorder %v13440_v20, %v5457_v11  ;;  %vm5533_vm2 = vcmp.eq.s32.totalorder %v13440_v20, %v5409_v40  ;;  %vm5510_vm14 = vcmp.eq.s32.totalorder %v13440_v20, %v13491_v13 }
 0x6c4   : > { %v6597_v58 = vsel %vm5549_vm15, 1.0, %v7888_v4  ;;  %v6581_v45 = vsel %vm5533_vm2, 1.0, %v7888_v4  ;;  %6632 = vmatmul.msk.f32.gmra.mxu1 %vm5758_vm0, %v6568_v12  ;;  %v6558_v57 = vsel %vm5510_vm14, 1.0, %v7888_v4 }
 0x6c5   : > { %6618 = vmatmul.msk.f32.gmra.mxu0 %vm5758_vm0, %v6554_v60  ;;  %6645 = vmatmul.msk.f32.gmra.mxu2 %vm5758_vm0, %v6581_v45 }
 0x6c6   : > { %6661 = vmatmul.msk.f32.gmra.mxu3 %vm5758_vm0, %v6597_v58 }
 0x6c8   : > { %5402 = vperm.xlu0 %7838, %v5275_v55  }
 0x6c9   : > { %v5373_v24 = vpop.permute.xlu2 %5372 }
 0x6ca   : > { %vm5521_vm4 = vcmp.eq.s32.totalorder %v13440_v20, %v5373_v24  ;;  %v5460_v62 = vpop.permute.xlu1 %5459  ;;  %v5412_v38 = vpop.permute.xlu0 %5411 }
 0x6cb   : > { %v6569_v54 = vsel %vm5521_vm4, 1.0, %v7888_v4  ;;  %vm5550_vm8 = vcmp.eq.s32.totalorder %v13440_v20, %v5460_v62  ;;  %vm5534_vm5 = vcmp.eq.s32.totalorder %v13440_v20, %v5412_v38  ;;  %vm5511_vm4 = vcmp.eq.s32.totalorder %v13440_v20, %v13442_v19  ;;  %v5693_v62 = vld [vmem:[#allocation2] sm:$0xff] }
 0x6cc   : > { %v6598_v53 = vsel %vm5550_vm8, 1.0, %v7888_v4  ;;  %v6582_v10 = vsel %vm5534_vm5, 1.0, %v7888_v4  ;;  %6633 = vmatmul.msk.f32.gmra.mxu1 %vm5758_vm0, %v6569_v54  ;;  %v6559_v47 = vsel %vm5511_vm4, 1.0, %v7888_v4 }
 0x6cd   : > { %6619 = vmatmul.msk.f32.gmra.mxu0 %vm5758_vm0, %v6555_v49  ;;  %6646 = vmatmul.msk.f32.gmra.mxu2 %vm5758_vm0, %v6582_v10 }
 0x6ce   : > { %6662 = vmatmul.msk.f32.gmra.mxu3 %vm5758_vm0, %v6598_v53 }
 0x6d1   : > { %v5376_v44 = vpop.permute.xlu2 %5375 }
 0x6d2   : > { %vm5522_vm7 = vcmp.eq.s32.totalorder %v13440_v20, %v5376_v44  ;;  %v5463_v56 = vpop.permute.xlu1 %5462  ;;  %v5415_v41 = vpop.permute.xlu0 %5414 }
 0x6d3   : > { %v6570_v9 = vsel %vm5522_vm7, 1.0, %v7888_v4  ;;  %vm5551_vm9 = vcmp.eq.s32.totalorder %v13440_v20, %v5463_v56  ;;  %vm5535_vm10 = vcmp.eq.s32.totalorder %v13440_v20, %v5415_v41  ;;  %vm5512_vm7 = vcmp.eq.s32.totalorder %v13440_v20, %v13513_v63 }
 0x6d4   : > { %v6599_v35 = vsel %vm5551_vm9, 1.0, %v7888_v4  ;;  %v6583_v30 = vsel %vm5535_vm10, 1.0, %v7888_v4  ;;  %6634 = vmatmul.msk.f32.gmra.mxu1 %vm5758_vm0, %v6570_v9  ;;  %v6560_v33 = vsel %vm5512_vm7, 1.0, %v7888_v4  ;;  %v5694_v9 = vld [vmem:[#allocation2 + $0x8] sm:$0xff] }
 0x6d5   : > { %6620 = vmatmul.msk.f32.gmra.mxu0 %vm5758_vm0, %v6556_v23  ;;  %6647 = vmatmul.msk.f32.gmra.mxu2 %vm5758_vm0, %v6583_v30 }
 0x6d6   : > { %6663 = vmatmul.msk.f32.gmra.mxu3 %vm5758_vm0, %v6599_v35 }
 0x6d9   : > { %v5379_v22 = vpop.permute.xlu2 %5378 }
 0x6da   : > { %vm5523_vm11 = vcmp.eq.s32.totalorder %v13440_v20, %v5379_v22  ;;  %v5466_v32 = vpop.permute.xlu1 %5465  ;;  %v5418_v7 = vpop.permute.xlu0 %5417 }
 0x6db   : > { %v6571_v39 = vsel %vm5523_vm11, 1.0, %v7888_v4  ;;  %vm5552_vm12 = vcmp.eq.s32.totalorder %v13440_v20, %v5466_v32  ;;  %vm5536_vm13 = vcmp.eq.s32.totalorder %v13440_v20, %v5418_v7  ;;  %vm5513_vm11 = vcmp.eq.s32.totalorder %v13440_v20, %v13511_v5 }
 0x6dc   : > { %v6600_v50 = vsel %vm5552_vm12, 1.0, %v7888_v4  ;;  %v6584_v43 = vsel %vm5536_vm13, 1.0, %v7888_v4  ;;  %6635 = vmatmul.msk.f32.gmra.mxu1 %vm5758_vm0, %v6571_v39  ;;  %v6561_v0 = vsel %vm5513_vm11, 1.0, %v7888_v4 }
 0x6dd   : > { %6621 = vmatmul.msk.f32.gmra.mxu0 %vm5758_vm0, %v6557_v51  ;;  %6648 = vmatmul.msk.f32.gmra.mxu2 %vm5758_vm0, %v6584_v43  ;;  %v5709_v51 = vld [vmem:[#allocation2 + $0x80] sm:$0xff] }
 0x6de   : > { %6664 = vmatmul.msk.f32.gmra.mxu3 %vm5758_vm0, %v6600_v50  ;;  %v5695_v50 = vld [vmem:[#allocation2 + $0x10] sm:$0xff] }
 0x6e1   : > { %v5382_v61 = vpop.permute.xlu2 %5381 }
 0x6e2   : > { %vm5524_vm15 = vcmp.eq.s32.totalorder %v13440_v20, %v5382_v61  ;;  %v5469_v14 = vpop.permute.xlu1 %5468  ;;  %v5421_v29 = vpop.permute.xlu0 %5420 }
 0x6e3   : > { %v6572_v37 = vsel %vm5524_vm15, 1.0, %v7888_v4  ;;  %vm5553_vm2 = vcmp.eq.s32.totalorder %v13440_v20, %v5469_v14  ;;  %vm5537_vm3 = vcmp.eq.s32.totalorder %v13440_v20, %v5421_v29  ;;  %vm5514_vm15 = vcmp.eq.s32.totalorder %v13440_v20, %v13456_v6 }
 0x6e4   : > { %v6601_v48 = vsel %vm5553_vm2, 1.0, %v7888_v4  ;;  %v6585_v46 = vsel %vm5537_vm3, 1.0, %v7888_v4  ;;  %6636 = vmatmul.msk.f32.gmra.mxu1 %vm5758_vm0, %v6572_v37  ;;  %v6562_v36 = vsel %vm5514_vm15, 1.0, %v7888_v4 }
 0x6e5   : > { %6622 = vmatmul.msk.f32.gmra.mxu0 %vm5758_vm0, %v6558_v57  ;;  %6649 = vmatmul.msk.f32.gmra.mxu2 %vm5758_vm0, %v6585_v46 }
 0x6e6   : > { %6665 = vmatmul.msk.f32.gmra.mxu3 %vm5758_vm0, %v6601_v48 }
 0x6e9   : > { %v5385_v13 = vpop.permute.xlu2 %5384 }
 0x6ea   : > { %vm5525_vm8 = vcmp.eq.s32.totalorder %v13440_v20, %v5385_v13  ;;  %v5472_v42 = vpop.permute.xlu1 %5471  ;;  %v5424_v28 = vpop.permute.xlu0 %5423  ;;  %v5710_v13 = vld [vmem:[#allocation2 + $0x88] sm:$0xff] }
 0x6eb   : > { %v6573_v17 = vsel %vm5525_vm8, 1.0, %v7888_v4  ;;  %vm5554_vm5 = vcmp.eq.s32.totalorder %v13440_v20, %v5472_v42  ;;  %vm5538_vm6 = vcmp.eq.s32.totalorder %v13440_v20, %v5424_v28  ;;  %v5696_v42 = vld [vmem:[#allocation2 + $0x18] sm:$0xff] }
 0x6ec   : > { %v6602_v3 = vsel %vm5554_vm5, 1.0, %v7888_v4  ;;  %v6586_v8 = vsel %vm5538_vm6, 1.0, %v7888_v4  ;;  %6637 = vmatmul.msk.f32.gmra.mxu1 %vm5758_vm0, %v6573_v17 }
 0x6ed   : > { %6623 = vmatmul.msk.f32.gmra.mxu0 %vm5758_vm0, %v6559_v47  ;;  %6650 = vmatmul.msk.f32.gmra.mxu2 %vm5758_vm0, %v6586_v8 }
 0x6ee   : > { %6666 = vmatmul.msk.f32.gmra.mxu3 %vm5758_vm0, %v6602_v3 }
 0x6f1   : > { %v5388_v19 = vpop.permute.xlu2 %5387 }
 0x6f2   : > { %vm5526_vm9 = vcmp.eq.s32.totalorder %v13440_v20, %v5388_v19  ;;  %v5475_v1 = vpop.permute.xlu1 %5474  ;;  %v5427_v16 = vpop.permute.xlu0 %5426 }
 0x6f3   : > { %v6574_v59 = vsel %vm5526_vm9, 1.0, %v7888_v4  ;;  %vm5555_vm10 = vcmp.eq.s32.totalorder %v13440_v20, %v5475_v1  ;;  %vm5539_vm1 = vcmp.eq.s32.totalorder %v13440_v20, %v5427_v16 }
 0x6f4   : > { %v6603_v2 = vsel %vm5555_vm10, 1.0, %v7888_v4  ;;  %v6587_v18 = vsel %vm5539_vm1, 1.0, %v7888_v4  ;;  %6638 = vmatmul.msk.f32.gmra.mxu1 %vm5758_vm0, %v6574_v59  ;;  %vm6224_vm1 = vcmask 15360   ;;  %v5711_v59 = vld [vmem:[#allocation2 + $0x90] sm:$0xff] }
 0x6f5   : > { %6624 = vmatmul.msk.f32.gmra.mxu0 %vm5758_vm0, %v6560_v33  ;;  %6651 = vmatmul.msk.f32.gmra.mxu2 %vm5758_vm0, %v6587_v18  ;;  %v5697_v33 = vld [vmem:[#allocation2 + $0x20] sm:$0xff] }
 0x6f6   : > { %6667 = vmatmul.msk.f32.gmra.mxu3 %vm5758_vm0, %v6603_v2 }
 0x6f9   : > { %v5391_v63 = vpop.permute.xlu2 %5390 }
 0x6fa   : > { %vm5527_vm12 = vcmp.eq.s32.totalorder %v13440_v20, %v5391_v63  ;;  %v5478_v27 = vpop.permute.xlu1 %5477  ;;  %v5430_v52 = vpop.permute.xlu0 %5429 }
 0x6fb   : > { %v6575_v31 = vsel %vm5527_vm12, 1.0, %v7888_v4  ;;  %vm5556_vm13 = vcmp.eq.s32.totalorder %v13440_v20, %v5478_v27  ;;  %vm5540_vm14 = vcmp.eq.s32.totalorder %v13440_v20, %v5430_v52 }
 0x6fc   : > { %v6604_v15 = vsel %vm5556_vm13, 1.0, %v7888_v4  ;;  %v6588_v26 = vsel %vm5540_vm14, 1.0, %v7888_v4  ;;  %6639 = vmatmul.msk.f32.gmra.mxu1 %vm5758_vm0, %v6575_v31 }
 0x6fd   : > { %6625 = vmatmul.msk.f32.gmra.mxu0 %vm5758_vm0, %v6561_v0  ;;  %6652 = vmatmul.msk.f32.gmra.mxu2 %vm5758_vm0, %v6588_v26  ;;  %v5712_v26 = vld [vmem:[#allocation2 + $0x98] sm:$0xff] }
 0x6fe   : > { %6668 = vmatmul.msk.f32.gmra.mxu3 %vm5758_vm0, %v6604_v15 }
 0x701   : > { %v5394_v5 = vpop.permute.xlu2 %5393 }
 0x702   : > { %vm5528_vm2 = vcmp.eq.s32.totalorder %v13440_v20, %v5394_v5  ;;  %v5481_v25 = vpop.permute.xlu1 %5480  ;;  %v5433_v34 = vpop.permute.xlu0 %5432  ;;  %v5698_v5 = vld [vmem:[#allocation2 + $0x28] sm:$0xff] }
 0x703   : > { %v6576_v21 = vsel %vm5528_vm2, 1.0, %v7888_v4  ;;  %vm5557_vm3 = vcmp.eq.s32.totalorder %v13440_v20, %v5481_v25  ;;  %vm5541_vm4 = vcmp.eq.s32.totalorder %v13440_v20, %v5433_v34 }
 0x704   : > { %v6605_v11 = vsel %vm5557_vm3, 1.0, %v7888_v4  ;;  %v6589_v40 = vsel %vm5541_vm4, 1.0, %v7888_v4  ;;  %6640 = vmatmul.msk.f32.gmra.mxu1 %vm5758_vm0, %v6576_v21 }
 0x705   : > { %6626 = vmatmul.msk.f32.gmra.mxu0 %vm5758_vm0, %v6562_v36  ;;  %6653 = vmatmul.msk.f32.gmra.mxu2 %vm5758_vm0, %v6589_v40 }
 0x706   : > { %6669 = vmatmul.msk.f32.gmra.mxu3 %vm5758_vm0, %v6605_v11 }
 0x709   : > { %v5397_v6 = vpop.permute.xlu2 %5396 }
 0x70a   : > { %vm5529_vm8 = vcmp.eq.s32.totalorder %v13440_v20, %v5397_v6  ;;  %v5484_v12 = vpop.permute.xlu1 %5483  ;;  %v5436_v60 = vpop.permute.xlu0 %5435  ;;  %v5725_v6 = vld [vmem:[#allocation2 + $0x100] sm:$0xff] }
 0x70b   : > { %v6577_v58 = vsel %vm5529_vm8, 1.0, %v7888_v4  ;;  %vm5558_vm5 = vcmp.eq.s32.totalorder %v13440_v20, %v5484_v12  ;;  %vm5542_vm6 = vcmp.eq.s32.totalorder %v13440_v20, %v5436_v60  ;;  %v5741_v12 = vld [vmem:[#allocation2 + $0x180] sm:$0xff] }
 0x70c   : > { %v6606_v45 = vsel %vm5558_vm5, 1.0, %v7888_v4  ;;  %v6590_v55 = vsel %vm5542_vm6, 1.0, %v7888_v4  ;;  %6641 = vmatmul.msk.f32.gmra.mxu1 %vm5758_vm0, %v6577_v58  ;;  %v5713_v60 = vld [vmem:[#allocation2 + $0xa0] sm:$0xff] }
 0x70d   : > { %6654 = vmatmul.msk.f32.gmra.mxu2 %vm5758_vm0, %v6590_v55 }
 0x70e   : > { %6670 = vmatmul.msk.f32.gmra.mxu3 %vm5758_vm0, %v6606_v45 }
 0x711   : > { %v5400_v24 = vpop.permute.xlu2 %5399 }
 0x712   : > { %vm5530_vm7 = vcmp.eq.s32.totalorder %v13440_v20, %v5400_v24  ;;  %v5487_v38 = vpop.permute.xlu1 %5486  ;;  %v5439_v54 = vpop.permute.xlu0 %5438 }
 0x713   : > { %v6578_v49 = vsel %vm5530_vm7, 1.0, %v7888_v4  ;;  %vm5559_vm9 = vcmp.eq.s32.totalorder %v13440_v20, %v5487_v38  ;;  %vm5543_vm10 = vcmp.eq.s32.totalorder %v13440_v20, %v5439_v54  ;;  %v5968_v53 = vpop.f32.mrf.mxu0 }
 0x714   : > { %v6607_v10 = vsel %vm5559_vm9, 1.0, %v7888_v4  ;;  %v6591_v44 = vsel %vm5543_vm10, 1.0, %v7888_v4  ;;  %v6160_v56 = vadd.f32 %v5968_v53, %v5693_v62  ;;  %6642 = vmatmul.msk.f32.gmra.mxu1 %vm5758_vm0, %v6578_v49  ;;  %v5726_v49 = vld [vmem:[#allocation2 + $0x108] sm:$0xff] }
 0x715   : > { %6655 = vmatmul.msk.f32.gmra.mxu2 %vm5758_vm0, %v6591_v44  ;;  %v5742_v53 = vld [vmem:[#allocation2 + $0x188] sm:$0xff] }
 0x716   : > { %6225 = vst.msk [vmem:[%s13992_s9] sm:$0xff] %vm6224_vm1, %v6160_v56  ;;  %6671 = vmatmul.msk.f32.gmra.mxu3 %vm5758_vm0, %v6607_v10  ;;  %v5714_v10 = vld [vmem:[#allocation2 + $0xa8] sm:$0xff] }
 0x719   : > { %v5355_v41 = vpop.permute.xlu2 %5354 }
 0x71a   : > { %vm5515_vm11 = vcmp.eq.s32.totalorder %v13440_v20, %v5355_v41  ;;  %v5490_v23 = vpop.permute.xlu1 %5489  ;;  %v5442_v35 = vpop.permute.xlu0 %5441 }
 0x71b   : > { %v6563_v30 = vsel %vm5515_vm11, 1.0, %v7888_v4  ;;  %vm5560_vm12 = vcmp.eq.s32.totalorder %v13440_v20, %v5490_v23  ;;  %vm5544_vm13 = vcmp.eq.s32.totalorder %v13440_v20, %v5442_v35  ;;  %v5971_v22 = vpop.f32.mrf.mxu0 }
 0x71c   : > { %v6608_v32 = vsel %vm5560_vm12, 1.0, %v7888_v4  ;;  %v6592_v7 = vsel %vm5544_vm13, 1.0, %v7888_v4  ;;  %v6161_v39 = vadd.f32 %v5971_v22, %v5694_v9  ;;  %6627 = vmatmul.msk.f32.gmra.mxu0 %vm5758_vm0, %v6563_v30  ;;  %v5700_v9 = vld [vmem:[#allocation2 + $0x38] sm:$0xff] }
 0x71d   : > { %6656 = vmatmul.msk.f32.gmra.mxu2 %vm5758_vm0, %v6592_v7  ;;  %v5727_v7 = vld [vmem:[#allocation2 + $0x110] sm:$0xff] }
 0x71e   : > { %6226 = vst.msk [vmem:[%s13992_s9 + $0x8] sm:$0xff] %vm6224_vm1, %v6161_v39  ;;  %6672 = vmatmul.msk.f32.gmra.mxu3 %vm5758_vm0, %v6608_v32  ;;  %v5743_v39 = vld [vmem:[#allocation2 + $0x190] sm:$0xff] }
 0x721   : > { %v6016_v43 = vpop.f32.mrf.mxu1 }
 0x722   : > { %v5493_v61 = vpop.permute.xlu1 %5492  ;;  %v5445_v14 = vpop.permute.xlu0 %5444  ;;  %v6176_v29 = vadd.f32 %v6016_v43, %v5709_v51  ;;  %v5715_v51 = vld [vmem:[#allocation2 + $0xb0] sm:$0xff] }
 0x723   : > { %vm5561_vm14 = vcmp.eq.s32.totalorder %v13440_v20, %v5493_v61  ;;  %vm5545_vm15 = vcmp.eq.s32.totalorder %v13440_v20, %v5445_v14  ;;  %v5974_v37 = vpop.f32.mrf.mxu0  ;;  %v5701_v14 = vld [vmem:[#allocation2 + $0x40] sm:$0xff] }
 0x724   : > { %v6609_v57 = vsel %vm5561_vm14, 1.0, %v7888_v4  ;;  %v6593_v48 = vsel %vm5545_vm15, 1.0, %v7888_v4  ;;  %v6162_v46 = vadd.f32 %v5974_v37, %v5695_v50  ;;  %6241 = vst.msk [vmem:[%s13992_s9 + $0x80] sm:$0xff] %vm6224_vm1, %v6176_v29 }
 0x725   : > { %6657 = vmatmul.msk.f32.gmra.mxu2 %vm5758_vm0, %v6593_v48 }
 0x726   : > { %6227 = vst.msk [vmem:[%s13992_s9 + $0x10] sm:$0xff] %vm6224_vm1, %v6162_v46  ;;  %6673 = vmatmul.msk.f32.gmra.mxu3 %vm5758_vm0, %v6609_v57 }
 0x729   : > { %v6019_v28 = vpop.f32.mrf.mxu1 }
 0x72a   : > { %v5496_v17 = vpop.permute.xlu1 %5495  ;;  %v5448_v47 = vpop.permute.xlu0 %5447  ;;  %v6177_v3 = vadd.f32 %v6019_v28, %v5710_v13  ;;  %v5728_v13 = vld [vmem:[#allocation2 + $0x118] sm:$0xff] }
 0x72b   : > { %vm5562_vm2 = vcmp.eq.s32.totalorder %v13440_v20, %v5496_v17  ;;  %vm5546_vm3 = vcmp.eq.s32.totalorder %v13440_v20, %v5448_v47  ;;  %v5977_v8 = vpop.f32.mrf.mxu0  ;;  %v5716_v28 = vld [vmem:[#allocation2 + $0xb8] sm:$0xff] }
 0x72c   : > { %v6610_v19 = vsel %vm5562_vm2, 1.0, %v7888_v4  ;;  %v6594_v1 = vsel %vm5546_vm3, 1.0, %v7888_v4  ;;  %v6163_v16 = vadd.f32 %v5977_v8, %v5696_v42  ;;  %6242 = vst.msk [vmem:[%s13992_s9 + $0x88] sm:$0xff] %vm6224_vm1, %v6177_v3  ;;  %v5744_v42 = vld [vmem:[#allocation2 + $0x198] sm:$0xff]  ;;  %v5702_v8 = vld [vmem:[#allocation2 + $0x48] sm:$0xff] }
 0x72d   : > { %6658 = vmatmul.msk.f32.gmra.mxu2 %vm5758_vm0, %v6594_v1 }
 0x72e   : > { %6228 = vst.msk [vmem:[%s13992_s9 + $0x18] sm:$0xff] %vm6224_vm1, %v6163_v16  ;;  %6674 = vmatmul.msk.f32.gmra.mxu3 %vm5758_vm0, %v6610_v19 }
 0x731   : > { %v6022_v2 = vpop.f32.mrf.mxu1 }
 0x732   : > { %v5499_v18 = vpop.permute.xlu1 %5498  ;;  %v5451_v63 = vpop.permute.xlu0 %5450  ;;  %v6178_v27 = vadd.f32 %v6022_v2, %v5711_v59  ;;  %v5729_v2 = vld [vmem:[#allocation2 + $0x120] sm:$0xff] }
 0x733   : > { %vm5563_vm4 = vcmp.eq.s32.totalorder %v13440_v20, %v5499_v18  ;;  %vm5547_vm8 = vcmp.eq.s32.totalorder %v13440_v20, %v5451_v63  ;;  %v5980_v52 = vpop.f32.mrf.mxu0  ;;  %v5745_v18 = vld [vmem:[#allocation2 + $0x1a0] sm:$0xff] }
 0x734   : > { %v6611_v31 = vsel %vm5563_vm4, 1.0, %v7888_v4  ;;  %v6595_v0 = vsel %vm5547_vm8, 1.0, %v7888_v4  ;;  %v6164_v15 = vadd.f32 %v5980_v52, %v5697_v33  ;;  %6243 = vst.msk [vmem:[%s13992_s9 + $0x90] sm:$0xff] %vm6224_vm1, %v6178_v27  ;;  %v5717_v63 = vld [vmem:[#allocation2 + $0xc0] sm:$0xff] }
 0x735   : > { %6659 = vmatmul.msk.f32.gmra.mxu2 %vm5758_vm0, %v6595_v0  ;;  %v5703_v0 = vld [vmem:[#allocation2 + $0x50] sm:$0xff] }
 0x736   : > { %6229 = vst.msk [vmem:[%s13992_s9 + $0x20] sm:$0xff] %vm6224_vm1, %v6164_v15  ;;  %6675 = vmatmul.msk.f32.gmra.mxu3 %vm5758_vm0, %v6611_v31 }
 0x739   : > { %v6025_v25 = vpop.f32.mrf.mxu1 }
 0x73a   : > { %v5403_v34 = vpop.permute.xlu0 %5402  ;;  %v6179_v21 = vadd.f32 %v6025_v25, %v5712_v26 }
 0x73b   : > { %vm5531_vm5 = vcmp.eq.s32.totalorder %v13440_v20, %v5403_v34  ;;  %v5983_v36 = vpop.f32.mrf.mxu0 }
 0x73c   : > { %v6579_v11 = vsel %vm5531_vm5, 1.0, %v7888_v4  ;;  %v6165_v40 = vadd.f32 %v5983_v36, %v5698_v5  ;;  %6244 = vst.msk [vmem:[%s13992_s9 + $0x98] sm:$0xff] %vm6224_vm1, %v6179_v21  ;;  %v5699_v4 = vld [vmem:[#allocation2 + $0x30] sm:$0xff]  ;;  %v5730_v21 = vld [vmem:[#allocation2 + $0x128] sm:$0xff] }
 0x73d   : > { %6643 = vmatmul.msk.f32.gmra.mxu1 %vm5758_vm0, %v6579_v11  ;;  %v5746_v36 = vld [vmem:[#allocation2 + $0x1a8] sm:$0xff] }
 0x73e   : > { %6230 = vst.msk [vmem:[%s13992_s9 + $0x28] sm:$0xff] %vm6224_vm1, %v6165_v40  ;;  %v5718_v11 = vld [vmem:[#allocation2 + $0xc8] sm:$0xff] }
 0x740   : > { %v6064_v20 = vpop.f32.mrf.mxu2 }
 0x741   : > { %v6192_v58 = vadd.f32 %v6064_v20, %v5725_v6  ;;  %v6112_v45 = vpop.f32.mrf.mxu3  ;;  %v6028_v55 = vpop.f32.mrf.mxu1 }
 0x742   : > { %v6208_v24 = vadd.f32 %v6112_v45, %v5741_v12  ;;  %v6180_v62 = vadd.f32 %v6028_v55, %v5713_v60  ;;  %v5704_v60 = vld [vmem:[#allocation2 + $0x58] sm:$0xff] }
 0x743   : > { %6257 = vst.msk [vmem:[%s13992_s9 + $0x100] sm:$0xff] %vm6224_vm1, %v6192_v58  ;;  %v5986_v38 = vpop.f32.mrf.mxu0 }
 0x744   : > { %6273 = vst.msk [vmem:[%s13992_s9 + $0x180] sm:$0xff] %vm6224_vm1, %v6208_v24  ;;  %v6166_v54 = vadd.f32 %v5986_v38, %v5699_v4  ;;  %v5731_v24 = vld [vmem:[#allocation2 + $0x130] sm:$0xff] }
 0x745   : > { %6245 = vst.msk [vmem:[%s13992_s9 + $0xa0] sm:$0xff] %vm6224_vm1, %v6180_v62  ;;  %v5747_v62 = vld [vmem:[#allocation2 + $0x1b0] sm:$0xff] }
 0x746   : > { %6231 = vst.msk [vmem:[%s13992_s9 + $0x30] sm:$0xff] %vm6224_vm1, %v6166_v54  ;;  %v5719_v38 = vld [vmem:[#allocation2 + $0xd0] sm:$0xff] }
 0x748   : > { %v6067_v44 = vpop.f32.mrf.mxu2 }
 0x749   : > { %v6193_v56 = vadd.f32 %v6067_v44, %v5726_v49  ;;  %v6115_v41 = vpop.f32.mrf.mxu3  ;;  %v6031_v23 = vpop.f32.mrf.mxu1 }
 0x74a   : > { %v6209_v35 = vadd.f32 %v6115_v41, %v5742_v53  ;;  %v6181_v30 = vadd.f32 %v6031_v23, %v5714_v10  ;;  %v5705_v10 = vld [vmem:[#allocation2 + $0x60] sm:$0xff] }
 0x74b   : > { %6258 = vst.msk [vmem:[%s13992_s9 + $0x108] sm:$0xff] %vm6224_vm1, %v6193_v56  ;;  %v5989_v22 = vpop.f32.mrf.mxu0 }
 0x74c   : > { %6274 = vst.msk [vmem:[%s13992_s9 + $0x188] sm:$0xff] %vm6224_vm1, %v6209_v35  ;;  %v6167_v32 = vadd.f32 %v5989_v22, %v5700_v9  ;;  %v5732_v35 = vld [vmem:[#allocation2 + $0x138] sm:$0xff] }
 0x74d   : > { %6246 = vst.msk [vmem:[%s13992_s9 + $0xa8] sm:$0xff] %vm6224_vm1, %v6181_v30  ;;  %v5748_v30 = vld [vmem:[#allocation2 + $0x1b8] sm:$0xff] }
 0x74e   : > { %6232 = vst.msk [vmem:[%s13992_s9 + $0x38] sm:$0xff] %vm6224_vm1, %v6167_v32  ;;  %v5720_v22 = vld [vmem:[#allocation2 + $0xd8] sm:$0xff] }
 0x750   : > { %v6070_v50 = vpop.f32.mrf.mxu2 }
 0x751   : > { %v6194_v43 = vadd.f32 %v6070_v50, %v5727_v7  ;;  %v6118_v61 = vpop.f32.mrf.mxu3  ;;  %v6034_v29 = vpop.f32.mrf.mxu1 }
 0x752   : > { %v6210_v37 = vadd.f32 %v6118_v61, %v5743_v39  ;;  %v6182_v57 = vadd.f32 %v6034_v29, %v5715_v51  ;;  %v5706_v51 = vld [vmem:[#allocation2 + $0x68] sm:$0xff] }
 0x753   : > { %6259 = vst.msk [vmem:[%s13992_s9 + $0x110] sm:$0xff] %vm6224_vm1, %v6194_v43  ;;  %v5992_v48 = vpop.f32.mrf.mxu0 }
 0x754   : > { %6275 = vst.msk [vmem:[%s13992_s9 + $0x190] sm:$0xff] %vm6224_vm1, %v6210_v37  ;;  %v6168_v46 = vadd.f32 %v5992_v48, %v5701_v14  ;;  %v5733_v37 = vld [vmem:[#allocation2 + $0x140] sm:$0xff] }
 0x755   : > { %6247 = vst.msk [vmem:[%s13992_s9 + $0xb0] sm:$0xff] %vm6224_vm1, %v6182_v57  ;;  %v5749_v57 = vld [vmem:[#allocation2 + $0x1c0] sm:$0xff] }
 0x756   : > { %6233 = vst.msk [vmem:[%s13992_s9 + $0x40] sm:$0xff] %vm6224_vm1, %v6168_v46  ;;  %v5721_v48 = vld [vmem:[#allocation2 + $0xe0] sm:$0xff] }
 0x758   : > { %v6073_v17 = vpop.f32.mrf.mxu2 }
 0x759   : > { %v6195_v47 = vadd.f32 %v6073_v17, %v5728_v13  ;;  %v6121_v3 = vpop.f32.mrf.mxu3  ;;  %v6037_v19 = vpop.f32.mrf.mxu1 }
 0x75a   : > { %v6211_v1 = vadd.f32 %v6121_v3, %v5744_v42  ;;  %v6183_v16 = vadd.f32 %v6037_v19, %v5716_v28  ;;  %v5707_v28 = vld [vmem:[#allocation2 + $0x70] sm:$0xff] }
 0x75b   : > { %6260 = vst.msk [vmem:[%s13992_s9 + $0x118] sm:$0xff] %vm6224_vm1, %v6195_v47  ;;  %v5995_v59 = vpop.f32.mrf.mxu0 }
 0x75c   : > { %6276 = vst.msk [vmem:[%s13992_s9 + $0x198] sm:$0xff] %vm6224_vm1, %v6211_v1  ;;  %v6169_v33 = vadd.f32 %v5995_v59, %v5702_v8  ;;  %v5734_v1 = vld [vmem:[#allocation2 + $0x148] sm:$0xff] }
 0x75d   : > { %6248 = vst.msk [vmem:[%s13992_s9 + $0xb8] sm:$0xff] %vm6224_vm1, %v6183_v16  ;;  %v5750_v16 = vld [vmem:[#allocation2 + $0x1c8] sm:$0xff] }
 0x75e   : > { %6234 = vst.msk [vmem:[%s13992_s9 + $0x48] sm:$0xff] %vm6224_vm1, %v6169_v33  ;;  %v5722_v59 = vld [vmem:[#allocation2 + $0xe8] sm:$0xff] }
 0x760   : > { %v6076_v27 = vpop.f32.mrf.mxu2 }
 0x761   : > { %v6196_v52 = vadd.f32 %v6076_v27, %v5729_v2  ;;  %v6124_v31 = vpop.f32.mrf.mxu3  ;;  %v6040_v15 = vpop.f32.mrf.mxu1 }
 0x762   : > { %v6212_v26 = vadd.f32 %v6124_v31, %v5745_v18  ;;  %v6184_v5 = vadd.f32 %v6040_v15, %v5717_v63  ;;  %v5735_v31 = vld [vmem:[#allocation2 + $0x150] sm:$0xff] }
 0x763   : > { %6261 = vst.msk [vmem:[%s13992_s9 + $0x120] sm:$0xff] %vm6224_vm1, %v6196_v52  ;;  %v5998_v25 = vpop.f32.mrf.mxu0  ;;  %v5723_v15 = vld [vmem:[#allocation2 + $0xf0] sm:$0xff] }
 0x764   : > { %6277 = vst.msk [vmem:[%s13992_s9 + $0x1a0] sm:$0xff] %vm6224_vm1, %v6212_v26  ;;  %v6170_v34 = vadd.f32 %v5998_v25, %v5703_v0  ;;  %v5751_v0 = vld [vmem:[#allocation2 + $0x1d0] sm:$0xff] }
 0x765   : > { %6249 = vst.msk [vmem:[%s13992_s9 + $0xc0] sm:$0xff] %vm6224_vm1, %v6184_v5 }
 0x766   : > { %6235 = vst.msk [vmem:[%s13992_s9 + $0x50] sm:$0xff] %vm6224_vm1, %v6170_v34 }
 0x768   : > { %v6079_v40 = vpop.f32.mrf.mxu2 }
 0x769   : > { %v6197_v6 = vadd.f32 %v6079_v40, %v5730_v21  ;;  %v6127_v12 = vpop.f32.mrf.mxu3  ;;  %v6043_v20 = vpop.f32.mrf.mxu1  ;;  %v5752_v40 = vld [vmem:[#allocation2 + $0x1d8] sm:$0xff] }
 0x76a   : > { %v6213_v58 = vadd.f32 %v6127_v12, %v5746_v36  ;;  %v6185_v45 = vadd.f32 %v6043_v20, %v5718_v11  ;;  %v5736_v11 = vld [vmem:[#allocation2 + $0x158] sm:$0xff] }
 0x76b   : > { %6262 = vst.msk [vmem:[%s13992_s9 + $0x128] sm:$0xff] %vm6224_vm1, %v6197_v6  ;;  %v6001_v4 = vpop.f32.mrf.mxu0  ;;  %v5708_v6 = vld [vmem:[#allocation2 + $0x78] sm:$0xff] }
 0x76c   : > { %6278 = vst.msk [vmem:[%s13992_s9 + $0x1a8] sm:$0xff] %vm6224_vm1, %v6213_v58  ;;  %v6171_v55 = vadd.f32 %v6001_v4, %v5704_v60 }
 0x76d   : > { %6250 = vst.msk [vmem:[%s13992_s9 + $0xc8] sm:$0xff] %vm6224_vm1, %v6185_v45 }
 0x76e   : > { %6236 = vst.msk [vmem:[%s13992_s9 + $0x58] sm:$0xff] %vm6224_vm1, %v6171_v55  ;;  %v5737_v55 = vld [vmem:[#allocation2 + $0x160] sm:$0xff] }
 0x770   : > { %v6082_v54 = vpop.f32.mrf.mxu2 }
 0x771   : > { %v6198_v49 = vadd.f32 %v6082_v54, %v5731_v24  ;;  %v6130_v53 = vpop.f32.mrf.mxu3  ;;  %v6046_v44 = vpop.f32.mrf.mxu1  ;;  %v5753_v24 = vld [vmem:[#allocation2 + $0x1e0] sm:$0xff] }
 0x772   : > { %v6214_v56 = vadd.f32 %v6130_v53, %v5747_v62  ;;  %v6186_v41 = vadd.f32 %v6046_v44, %v5719_v38  ;;  %v5738_v53 = vld [vmem:[#allocation2 + $0x168] sm:$0xff] }
 0x773   : > { %6263 = vst.msk [vmem:[%s13992_s9 + $0x130] sm:$0xff] %vm6224_vm1, %v6198_v49  ;;  %v6004_v9 = vpop.f32.mrf.mxu0 }
 0x774   : > { %6279 = vst.msk [vmem:[%s13992_s9 + $0x1b0] sm:$0xff] %vm6224_vm1, %v6214_v56  ;;  %v6172_v23 = vadd.f32 %v6004_v9, %v5705_v10  ;;  %v5754_v10 = vld [vmem:[#allocation2 + $0x1e8] sm:$0xff] }
 0x775   : > { %6251 = vst.msk [vmem:[%s13992_s9 + $0xd0] sm:$0xff] %vm6224_vm1, %v6186_v41 }
 0x776   : > { %6237 = vst.msk [vmem:[%s13992_s9 + $0x60] sm:$0xff] %vm6224_vm1, %v6172_v23  ;;  %v5739_v23 = vld [vmem:[#allocation2 + $0x170] sm:$0xff] }
 0x778   : > { %v6085_v32 = vpop.f32.mrf.mxu2 }
 0x779   : > { %v6199_v7 = vadd.f32 %v6085_v32, %v5732_v35  ;;  %v6133_v39 = vpop.f32.mrf.mxu3  ;;  %v6049_v50 = vpop.f32.mrf.mxu1  ;;  %v5755_v35 = vld [vmem:[#allocation2 + $0x1f0] sm:$0xff] }
 0x77a   : > { %v6215_v43 = vadd.f32 %v6133_v39, %v5748_v30  ;;  %v6187_v61 = vadd.f32 %v6049_v50, %v5720_v22  ;;  %v5740_v39 = vld [vmem:[#allocation2 + $0x178] sm:$0xff] }
 0x77b   : > { %6264 = vst.msk [vmem:[%s13992_s9 + $0x138] sm:$0xff] %vm6224_vm1, %v6199_v7  ;;  %v6007_v14 = vpop.f32.mrf.mxu0 }
 0x77c   : > { %6280 = vst.msk [vmem:[%s13992_s9 + $0x1b8] sm:$0xff] %vm6224_vm1, %v6215_v43  ;;  %v6173_v29 = vadd.f32 %v6007_v14, %v5706_v51  ;;  %v5756_v51 = vld [vmem:[#allocation2 + $0x1f8] sm:$0xff] }
 0x77d   : > { %6252 = vst.msk [vmem:[%s13992_s9 + $0xd8] sm:$0xff] %vm6224_vm1, %v6187_v61  ;;  %v5724_v43 = vld [vmem:[#allocation2 + $0xf8] sm:$0xff] }
 0x77e   : > { %6238 = vst.msk [vmem:[%s13992_s9 + $0x68] sm:$0xff] %vm6224_vm1, %v6173_v29 }
 0x780   : > { %v6088_v46 = vpop.f32.mrf.mxu2 }
 0x781   : > { %v6200_v13 = vadd.f32 %v6088_v46, %v5733_v37  ;;  %v6136_v42 = vpop.f32.mrf.mxu3  ;;  %v6052_v17 = vpop.f32.mrf.mxu1 }
 0x782   : > { %v6216_v47 = vadd.f32 %v6136_v42, %v5749_v57  ;;  %v6188_v3 = vadd.f32 %v6052_v17, %v5721_v48 }
 0x783   : > { %6265 = vst.msk [vmem:[%s13992_s9 + $0x140] sm:$0xff] %vm6224_vm1, %v6200_v13  ;;  %v6010_v8 = vpop.f32.mrf.mxu0 }
 0x784   : > { %6281 = vst.msk [vmem:[%s13992_s9 + $0x1c0] sm:$0xff] %vm6224_vm1, %v6216_v47  ;;  %v6174_v19 = vadd.f32 %v6010_v8, %v5707_v28 }
 0x785   : > { %6253 = vst.msk [vmem:[%s13992_s9 + $0xe0] sm:$0xff] %vm6224_vm1, %v6188_v3 }
 0x786   : > { %6239 = vst.msk [vmem:[%s13992_s9 + $0x70] sm:$0xff] %vm6224_vm1, %v6174_v19 }
 0x788   : > { %v6091_v33 = vpop.f32.mrf.mxu2 }
 0x789   : > { %v6201_v2 = vadd.f32 %v6091_v33, %v5734_v1  ;;  %v6139_v18 = vpop.f32.mrf.mxu3  ;;  %v6055_v63 = vpop.f32.mrf.mxu1 }
 0x78a   : > { %v6217_v27 = vadd.f32 %v6139_v18, %v5750_v16  ;;  %v6189_v52 = vadd.f32 %v6055_v63, %v5722_v59 }
 0x78b   : > { %6266 = vst.msk [vmem:[%s13992_s9 + $0x148] sm:$0xff] %vm6224_vm1, %v6201_v2 }
 0x78c   : > { %6282 = vst.msk [vmem:[%s13992_s9 + $0x1c8] sm:$0xff] %vm6224_vm1, %v6217_v27 }
 0x78d   : > { %6254 = vst.msk [vmem:[%s13992_s9 + $0xe8] sm:$0xff] %vm6224_vm1, %v6189_v52 }
 0x790   : > { %v6094_v26 = vpop.f32.mrf.mxu2 }
 0x791   : > { %v6202_v5 = vadd.f32 %v6094_v26, %v5735_v31  ;;  %v6142_v25 = vpop.f32.mrf.mxu3  ;;  %v6058_v34 = vpop.f32.mrf.mxu1 }
 0x792   : > { %v6218_v21 = vadd.f32 %v6142_v25, %v5751_v0  ;;  %v6190_v36 = vadd.f32 %v6058_v34, %v5723_v15 }
 0x793   : > { %6267 = vst.msk [vmem:[%s13992_s9 + $0x150] sm:$0xff] %vm6224_vm1, %v6202_v5 }
 0x794   : > { %6283 = vst.msk [vmem:[%s13992_s9 + $0x1d0] sm:$0xff] %vm6224_vm1, %v6218_v21 }
 0x795   : > { %6255 = vst.msk [vmem:[%s13992_s9 + $0xf0] sm:$0xff] %vm6224_vm1, %v6190_v36 }
 0x798   : > { %v6097_v12 = vpop.f32.mrf.mxu2 }
 0x799   : > { %v6203_v60 = vadd.f32 %v6097_v12, %v5736_v11  ;;  %v6145_v20 = vpop.f32.mrf.mxu3  ;;  %v6013_v58 = vpop.f32.mrf.mxu0 }
 0x79a   : > { %v6219_v45 = vadd.f32 %v6145_v20, %v5752_v40  ;;  %v6175_v4 = vadd.f32 %v6013_v58, %v5708_v6 }
 0x79b   : > { %6268 = vst.msk [vmem:[%s13992_s9 + $0x158] sm:$0xff] %vm6224_vm1, %v6203_v60 }
 0x79c   : > { %6284 = vst.msk [vmem:[%s13992_s9 + $0x1d8] sm:$0xff] %vm6224_vm1, %v6219_v45 }
 0x79d   : > { %6240 = vst.msk [vmem:[%s13992_s9 + $0x78] sm:$0xff] %vm6224_vm1, %v6175_v4 }
 0x7a0   : > { %v6100_v62 = vpop.f32.mrf.mxu2 }
 0x7a1   : > { %v6204_v38 = vadd.f32 %v6100_v62, %v5737_v55  ;;  %v6148_v54 = vpop.f32.mrf.mxu3 }
 0x7a2   : > { %v6220_v49 = vadd.f32 %v6148_v54, %v5753_v24 }
 0x7a3   : > { %6269 = vst.msk [vmem:[%s13992_s9 + $0x160] sm:$0xff] %vm6224_vm1, %v6204_v38 }
 0x7a4   : > { %6285 = vst.msk [vmem:[%s13992_s9 + $0x1e0] sm:$0xff] %vm6224_vm1, %v6220_v49 }
 0x7a8   : > { %v6103_v44 = vpop.f32.mrf.mxu2 }
 0x7a9   : > { %v6205_v56 = vadd.f32 %v6103_v44, %v5738_v53  ;;  %v6151_v41 = vpop.f32.mrf.mxu3 }
 0x7aa   : > { %v6221_v9 = vadd.f32 %v6151_v41, %v5754_v10 }
 0x7ab   : > { %6270 = vst.msk [vmem:[%s13992_s9 + $0x168] sm:$0xff] %vm6224_vm1, %v6205_v56 }
 0x7ac   : > { %6286 = vst.msk [vmem:[%s13992_s9 + $0x1e8] sm:$0xff] %vm6224_vm1, %v6221_v9 }
 0x7b0   : > { %v6106_v30 = vpop.f32.mrf.mxu2 }
 0x7b1   : > { %v6206_v22 = vadd.f32 %v6106_v30, %v5739_v23  ;;  %v6154_v32 = vpop.f32.mrf.mxu3 }
 0x7b2   : > { %v6222_v7 = vadd.f32 %v6154_v32, %v5755_v35 }
 0x7b3   : > { %6271 = vst.msk [vmem:[%s13992_s9 + $0x170] sm:$0xff] %vm6224_vm1, %v6206_v22 }
 0x7b4   : > { %6287 = vst.msk [vmem:[%s13992_s9 + $0x1f0] sm:$0xff] %vm6224_vm1, %v6222_v7 }
 0x7b8   : > { %v6109_v50 = vpop.f32.mrf.mxu2 }
 0x7b9   : > { %v6207_v61 = vadd.f32 %v6109_v50, %v5740_v39  ;;  %v6157_v14 = vpop.f32.mrf.mxu3 }
 0x7ba   : > { %v6223_v29 = vadd.f32 %v6157_v14, %v5756_v51  ;;  %v6061_v37 = vpop.f32.mrf.mxu1 }
 0x7bb   : > { %6272 = vst.msk [vmem:[%s13992_s9 + $0x178] sm:$0xff] %vm6224_vm1, %v6207_v61  ;;  %v6191_v57 = vadd.f32 %v6061_v37, %v5724_v43 }
 0x7bc   : > { %6288 = vst.msk [vmem:[%s13992_s9 + $0x1f8] sm:$0xff] %vm6224_vm1, %v6223_v29 }
 0x7bd   : > { %6256 = vst.msk [vmem:[%s13992_s9 + $0xf8] sm:$0xff] %vm6224_vm1, %v6191_v57 }
 0x7be PF: > { %s21_s15 = sadd.s32 1, %s7863_s15   ;;  %s14850_s13 = smov %s7859_s14 }
 0x7bf   : > { %p18_p7 = scmp.ge.s32.totalorder %s21_s15, 4   ;;  %s14851_s14 = smov %s14853_s16 }
 0x7c1   :  { %20 = sbr.rel (!%p18_p7) target bundleno = 2 (0x2), region = 121 }

</bundles_post_ra>
